<compile_context>
chip_gen: v7x
topology: tpu7x:2x2x1
jax: 0.10.0
libtpu: 0.0.40
codegen_flags: <defaults>
</compile_context>

<pallas_src>
import functools
import math

import jax
import jax.numpy as jnp
from jax.experimental import pallas as pl
from jax.experimental.pallas import tpu as pltpu

BN_EPS = 1e-5
BLOCK_EXPANSION = 1  # BasicBlock


def _round_up(x, m):
    return (x + m - 1) // m * m


def _vmem_limit_bytes():
    # Gate scoped-VMEM budget per generation (v7x: 64 MiB physical; v5e/v6e: 128 MiB).
    try:
        cap = pltpu.get_tpu_info().vmem_capacity_bytes
        return int(min(96 * 1024 * 1024, max(32 * 1024 * 1024, cap * 3 // 4)))
    except Exception:
        return 48 * 1024 * 1024


VMEM_LIMIT = _vmem_limit_bytes()


def _cost_estimate(flops, bytes_accessed):
    try:
        return pl.CostEstimate(flops=int(flops), transcendentals=0,
                               bytes_accessed=int(bytes_accessed))
    except Exception:
        return None


def _lane_pack_factor(M, C):
    """Pack factor p so (M, C) -> (M//p, p*C) has a lane-dense (>=128) last dim."""
    if C >= 128 or 128 % C != 0:
        return 1
    p = 128 // C
    while p > 1 and M % p != 0:
        p //= 2
    return p


# --------------------------------------------------------------------------
# Pallas kernel 1: M/N/K-tiled matmul, bf16 inputs, f32 accumulator,
# optional fused per-column sum / sumsq (BatchNorm statistics) epilogue.
# --------------------------------------------------------------------------
def _matmul_kernel(a_ref, b_ref, o_ref, acc_ref):
    @pl.when(pl.program_id(2) == 0)
    def _():
        acc_ref[...] = jnp.zeros_like(acc_ref)

    acc_ref[...] += jnp.dot(a_ref[...], b_ref[...],
                            preferred_element_type=jnp.float32)

    @pl.when(pl.program_id(2) == pl.num_programs(2) - 1)
    def _():
        o_ref[...] = acc_ref[...].astype(o_ref.dtype)


def _matmul_stats_kernel(a_ref, b_ref, o_ref, sum_ref, sq_ref, acc_ref):
    @pl.when(pl.program_id(2) == 0)
    def _():
        acc_ref[...] = jnp.zeros_like(acc_ref)

    acc_ref[...] += jnp.dot(a_ref[...], b_ref[...],
                            preferred_element_type=jnp.float32)

    @pl.when(pl.program_id(2) == pl.num_programs(2) - 1)
    def _():
        acc = acc_ref[...]
        o_ref[...] = acc.astype(o_ref.dtype)
        # Column sums of the finished tile, split exactly by 8 so that summing all 8
        # sublane rows on the host recovers the true sum (division by 8 is exact).
        s = jnp.sum(acc, axis=0, keepdims=True) * 0.125
        sq = jnp.sum(acc * acc, axis=0, keepdims=True) * 0.125
        sum_ref[...] = jnp.broadcast_to(s, sum_ref.shape)
        sq_ref[...] = jnp.broadcast_to(sq, sq_ref.shape)


def pallas_matmul(a, b_padded, n_out, out_dtype=jnp.bfloat16, with_stats=False):
    """a: (M, K); b_padded: (Kp, Np) bf16, zero-padded weight matrix (Kp>=K, Np>=n_out)."""
    M, K = a.shape
    Kp, Np = b_padded.shape
    assert K <= Kp and n_out <= Np and Np % 128 == 0
    a = a.astype(jnp.bfloat16)

    tm = min(256, _round_up(M, 16))            # 16-row granularity (bf16 sublane tile)
    tn = 256 if Np % 256 == 0 else 128
    if Kp % 256 == 0:
        tk = 256
    elif Kp % 128 == 0:
        tk = 128
    else:
        tk = Kp                                # small-K (<128) weights kept unpadded
    Mp = _round_up(M, tm)
    if Mp != M or Kp != K:
        a = jnp.pad(a, ((0, Mp - M), (0, Kp - K)))

    nmt, nnt, nkt = Mp // tm, Np // tn, Kp // tk
    flops = 2 * Mp * Np * Kp
    bytes_acc = (Mp * Kp + Kp * Np) * 2 + Mp * Np * jnp.dtype(out_dtype).itemsize
    cparams = pltpu.CompilerParams(
        dimension_semantics=("parallel", "parallel", "arbitrary"),
        vmem_limit_bytes=VMEM_LIMIT)

    a_spec = pl.BlockSpec((tm, tk), lambda i, j, k: (i, k))
    b_spec = pl.BlockSpec((tk, tn), lambda i, j, k: (k, j))
    o_spec = pl.BlockSpec((tm, tn), lambda i, j, k: (i, j))

    if not with_stats:
        out = pl.pallas_call(
            _matmul_kernel,
            out_shape=jax.ShapeDtypeStruct((Mp, Np), out_dtype),
            grid_spec=pltpu.PrefetchScalarGridSpec(
                num_scalar_prefetch=0, grid=(nmt, nnt, nkt),
                in_specs=[a_spec, b_spec], out_specs=o_spec,
                scratch_shapes=[pltpu.VMEM((tm, tn), jnp.float32)]),
            compiler_params=cparams,
            cost_estimate=_cost_estimate(flops, bytes_acc),
        )(a, b_padded)
        if Mp != M or Np != n_out:
            out = out[:M, :n_out]
        return out

    s_spec = pl.BlockSpec((8, tn), lambda i, j, k: (i, j))
    out, psum, psq = pl.pallas_call(
        _matmul_stats_kernel,
        out_shape=(jax.ShapeDtypeStruct((Mp, Np), out_dtype),
                   jax.ShapeDtypeStruct((nmt * 8, Np), jnp.float32),
                   jax.ShapeDtypeStruct((nmt * 8, Np), jnp.float32)),
        grid_spec=pltpu.PrefetchScalarGridSpec(
            num_scalar_prefetch=0, grid=(nmt, nnt, nkt),
            in_specs=[a_spec, b_spec],
            out_specs=(o_spec, s_spec, s_spec),
            scratch_shapes=[pltpu.VMEM((tm, tn), jnp.float32)]),
        compiler_params=cparams,
        cost_estimate=_cost_estimate(flops, bytes_acc),
    )(a, b_padded)
    if Mp != M or Np != n_out:
        out = out[:M, :n_out]
    # Padded A rows / padded B columns are zero -> contribute nothing to the sums.
    col_sum = jnp.sum(psum, axis=0)[:n_out]
    col_sq = jnp.sum(psq, axis=0)[:n_out]
    return out, col_sum, col_sq


# --------------------------------------------------------------------------
# Generic tiled row-wise elementwise pallas_call helper
# --------------------------------------------------------------------------
def _tiled_rowwise(kernel, row_inputs, bcast_inputs, out_dtype, tm_max=1024):
    M, C = row_inputs[0].shape
    # >=2 row tiles when M allows (keeps both v7x TensorCores busy), large tiles otherwise.
    tm = max(16, min(tm_max, _round_up((M + 1) // 2, 16)))
    Mp = _round_up(M, tm)
    if Mp != M:
        row_inputs = [jnp.pad(r, ((0, Mp - M), (0, 0))) for r in row_inputs]
    in_specs = ([pl.BlockSpec((tm, C), lambda i: (i, 0))] * len(row_inputs)
                + [pl.BlockSpec((1, C), lambda i: (0, 0))] * len(bcast_inputs))
    out = pl.pallas_call(
        kernel,
        out_shape=jax.ShapeDtypeStruct((Mp, C), out_dtype),
        grid_spec=pltpu.PrefetchScalarGridSpec(
            num_scalar_prefetch=0, grid=(Mp // tm,),
            in_specs=in_specs,
            out_specs=pl.BlockSpec((tm, C), lambda i: (i, 0))),
        compiler_params=pltpu.CompilerParams(
            dimension_semantics=("parallel",), vmem_limit_bytes=VMEM_LIMIT),
    )(*row_inputs, *bcast_inputs)
    return out[:M] if Mp != M else out


# --------------------------------------------------------------------------
# Pallas kernels 2: BatchNorm apply (+residual)(+scaled residual)(+ReLU)
# --------------------------------------------------------------------------
def _bn_apply_kernel(x_ref, sc_ref, sh_ref, o_ref, *, relu):
    y = x_ref[...].astype(jnp.float32) * sc_ref[...] + sh_ref[...]
    if relu:
        y = jnp.maximum(y, 0.0)
    o_ref[...] = y.astype(o_ref.dtype)


def _bn_apply_res_kernel(x_ref, r_ref, sc_ref, sh_ref, o_ref, *, relu):
    y = (x_ref[...].astype(jnp.float32) * sc_ref[...] + sh_ref[...]
         + r_ref[...].astype(jnp.float32))
    if relu:
        y = jnp.maximum(y, 0.0)
    o_ref[...] = y.astype(o_ref.dtype)


def _bn_apply_res2_kernel(x_ref, r_ref, sc_ref, sh_ref, rsc_ref, rsh_ref, o_ref, *, relu):
    # Fused: relu(BN(x) + BN(residual)) -- downsample-branch BN folded into one kernel.
    y = (x_ref[...].astype(jnp.float32) * sc_ref[...] + sh_ref[...]
         + r_ref[...].astype(jnp.float32) * rsc_ref[...] + rsh_ref[...])
    if relu:
        y = jnp.maximum(y, 0.0)
    o_ref[...] = y.astype(o_ref.dtype)


def _bn_scale_shift(col_sum, col_sumsq, count, gamma, beta):
    # Training-mode batch statistics (biased variance), like a freshly built nn.Module.
    mean = col_sum / count
    var = jnp.maximum(col_sumsq / count - mean * mean, 0.0)
    scale = gamma * jax.lax.rsqrt(var + BN_EPS)
    shift = beta - mean * scale
    return scale, shift


def bn_apply(x, scale, shift, residual=None, res_scale=None, res_shift=None,
             relu=True, out_dtype=jnp.bfloat16):
    N, D, H, W, C = x.shape
    M = N * D * H * W
    p = _lane_pack_factor(M, C)
    Cp = p * C
    x2 = x.reshape(M // p, Cp)
    sc = jnp.tile(scale.astype(jnp.float32), (p,)).reshape(1, Cp)
    sh = jnp.tile(shift.astype(jnp.float32), (p,)).reshape(1, Cp)
    if residual is None:
        y = _tiled_rowwise(functools.partial(_bn_apply_kernel, relu=relu),
                           [x2], [sc, sh], out_dtype)
    elif res_scale is None:
        r2 = residual.reshape(M // p, Cp)
        y = _tiled_rowwise(functools.partial(_bn_apply_res_kernel, relu=relu),
                           [x2, r2], [sc, sh], out_dtype)
    else:
        r2 = residual.reshape(M // p, Cp)
        rsc = jnp.tile(res_scale.astype(jnp.float32), (p,)).reshape(1, Cp)
        rsh = jnp.tile(res_shift.astype(jnp.float32), (p,)).reshape(1, Cp)
        y = _tiled_rowwise(functools.partial(_bn_apply_res2_kernel, relu=relu),
                           [x2, r2], [sc, sh, rsc, rsh], out_dtype)
    return y.reshape(N, D, H, W, C)


# --------------------------------------------------------------------------
# Pallas kernel 3: 3-way elementwise max (separable MaxPool3d k=3, s=2, p=1)
# --------------------------------------------------------------------------
def _max3_kernel(a_ref, b_ref, c_ref, o_ref):
    o_ref[...] = jnp.maximum(jnp.maximum(a_ref[...], b_ref[...]),
                             c_ref[...]).astype(o_ref.dtype)


def _maxpool1d_k3s2p1(x, axis):
    pad = [(0, 0)] * 5
    pad[axis] = (1, 1)
    xp = jnp.pad(x, pad, constant_values=-jnp.inf)
    size = x.shape[axis]
    O = (size + 2 - 3) // 2 + 1

    def tap(off):
        idx = [slice(None)] * 5
        idx[axis] = slice(off, off + 2 * (O - 1) + 1, 2)
        return xp[tuple(idx)]

    a, b, c = tap(0), tap(1), tap(2)
    out_shape = a.shape
    C = out_shape[-1]
    M = a.size // C
    p = _lane_pack_factor(M, C)
    Cp = p * C
    a2, b2, c2 = (t.reshape(M // p, Cp) for t in (a, b, c))
    y = _tiled_rowwise(_max3_kernel, [a2, b2, c2], [], x.dtype)
    return y.reshape(out_shape)


def maxpool3d(x):
    for axis in (1, 2, 3):
        x = _maxpool1d_k3s2p1(x, axis)
    return x


# --------------------------------------------------------------------------
# im2col glue (channels-last, bf16 patches) + conv / transpose-conv wrappers
# --------------------------------------------------------------------------
def _extract_patches(x, ksize, stride, dilation, padding):
    N, D, H, W, C = x.shape
    xp = jnp.pad(x, ((0, 0), (padding,) * 2, (padding,) * 2, (padding,) * 2, (0, 0)))
    eff = dilation * (ksize - 1) + 1
    OD = (D + 2 * padding - eff) // stride + 1
    OH = (H + 2 * padding - eff) // stride + 1
    OW = (W + 2 * padding - eff) // stride + 1
    cols = []
    for kd in range(ksize):
        for kh in range(ksize):
            for kw in range(ksize):
                sl = xp[:, kd * dilation: kd * dilation + stride * OD: stride,
                        kh * dilation: kh * dilation + stride * OH: stride,
                        kw * dilation: kw * dilation + stride * OW: stride, :]
                cols.append(sl)
    patches = jnp.stack(cols, axis=4)  # (N, OD, OH, OW, K^3, C), ordered (kd,kh,kw,c)
    return patches, (N, OD, OH, OW)


def conv3d(x, wmat, k, cout, stride=1, dilation=1, padding=0,
           with_stats=True, out_dtype=jnp.bfloat16):
    """x: (N,D,H,W,Cin); wmat: pre-padded (Kp, Np) bf16 with rows ordered (kd,kh,kw,cin)."""
    N, D, H, W, Cin = x.shape
    if k == 1:
        xs = x[:, ::stride, ::stride, ::stride, :] if stride != 1 else x
        Nb, OD, OH, OW, _ = xs.shape
        a = xs.reshape(-1, Cin)
    else:
        patches, (Nb, OD, OH, OW) = _extract_patches(
            x.astype(jnp.bfloat16), k, stride, dilation, padding)
        a = patches.reshape(Nb * OD * OH * OW, (k ** 3) * Cin)
    if with_stats:
        y, s, sq = pallas_matmul(a, wmat, n_out=cout, out_dtype=out_dtype, with_stats=True)
        return y.reshape(Nb, OD, OH, OW, cout), s, sq, a.shape[0]
    y = pallas_matmul(a, wmat, n_out=cout, out_dtype=out_dtype, with_stats=False)
    return y.reshape(Nb, OD, OH, OW, cout)


def conv_transpose3d_s2k2(x, wmat, cout):
    # ConvTranspose3d(Cin, cout, kernel=2, stride=2): non-overlapping -> pure matmul.
    # wmat: (Cin, cout*8) bf16, columns ordered (cout, kd, kh, kw).
    # Bias is omitted: the training-mode BatchNorm that follows cancels any per-channel
    # constant shift exactly, so the forward output is unchanged.
    N, D, H, W, Cin = x.shape
    y, s, sq = pallas_matmul(x.reshape(-1, Cin), wmat, n_out=cout * 8,
                             out_dtype=jnp.bfloat16, with_stats=True)
    y = y.reshape(N, D, H, W, cout, 2, 2, 2)
    y = jnp.transpose(y, (0, 1, 5, 2, 6, 3, 7, 4))           # (N, D,a, H,b, W,c, Cout)
    y = y.reshape(N, 2 * D, 2 * H, 2 * W, cout)
    # Fold the 8 spatial-tap columns per channel into the BN statistics.
    s = s.reshape(cout, 8).sum(axis=1)
    sq = sq.reshape(cout, 8).sum(axis=1)
    return y, s, sq, N * D * H * W * 8


# --------------------------------------------------------------------------
# Deterministic parameter construction (kaiming_normal fan_out for convs,
# BN gamma=1 / beta=0). Conv weights are stored pre-laid-out AND pre-padded
# as (Kp, Np) bf16 matmul matrices (K -> mult of 128 when K>=128, Cout -> 128).
# --------------------------------------------------------------------------
def _conv_wmat(key, cout, cin, k):
    fan_out = cout * (k ** 3)
    std = math.sqrt(2.0 / fan_out)
    w = jax.random.normal(key, (cout, cin, k, k, k), jnp.float32) * std
    wmat = jnp.transpose(w, (2, 3, 4, 1, 0)).reshape((k ** 3) * cin, cout)
    K, N = wmat.shape
    Kp = K if (K < 128 or K % 128 == 0) else _round_up(K, 128)
    Np = _round_up(N, 128)
    if (Kp, Np) != (K, N):
        wmat = jnp.pad(wmat, ((0, Kp - K), (0, Np - N)))
    return wmat.astype(jnp.bfloat16)


def _bn_p(c):
    return (jnp.ones((c,), jnp.float32), jnp.zeros((c,), jnp.float32))


def init_params(num_seg_classes=2, layers=(1, 1, 1, 1), seed=0):
    keys = iter(jax.random.split(jax.random.PRNGKey(seed), 64))
    p = {}
    p['conv1'] = _conv_wmat(next(keys), 64, 1, 7)
    p['bn1'] = _bn_p(64)

    inplanes = 64
    layer_cfg = [(64, layers[0], 1, 1),
                 (128, layers[1], 2, 1),
                 (256, layers[2], 1, 2),
                 (512, layers[3], 1, 4)]
    p['layers'] = []
    cfg = []
    for planes, nblocks, stride, dilation in layer_cfg:
        blocks = []
        bcfgs = []
        for bi in range(nblocks):
            s = stride if bi == 0 else 1
            has_ds = bi == 0 and (stride != 1 or inplanes != planes * BLOCK_EXPANSION)
            blk = {
                'conv1': _conv_wmat(next(keys), planes, inplanes, 3),
                'bn1': _bn_p(planes),
                'conv2': _conv_wmat(next(keys), planes, planes, 3),
                'bn2': _bn_p(planes),
            }
            if has_ds:
                blk['ds_conv'] = _conv_wmat(next(keys), planes * BLOCK_EXPANSION, inplanes, 1)
                blk['ds_bn'] = _bn_p(planes * BLOCK_EXPANSION)
            blocks.append(blk)
            bcfgs.append((s, dilation, has_ds))
            inplanes = planes * BLOCK_EXPANSION
        p['layers'].append(blocks)
        cfg.append(tuple(bcfgs))

    # conv_seg head
    p['deconv_w'] = (jax.random.normal(next(keys), (512 * BLOCK_EXPANSION, 32 * 8),
                                       jnp.float32) * 0.05).astype(jnp.bfloat16)
    p['seg_bn1'] = _bn_p(32)
    p['seg_conv2'] = _conv_wmat(next(keys), 32, 32, 3)
    p['seg_bn2'] = _bn_p(32)
    p['seg_conv3'] = _conv_wmat(next(keys), num_seg_classes, 32, 1)
    return p, tuple(cfg)


# --------------------------------------------------------------------------
# Forward pass
# --------------------------------------------------------------------------
def basic_block_forward(x, blk, stride, dilation, has_downsample):
    planes = blk['bn1'][0].shape[0]
    out, s1, q1, n1 = conv3d(x, blk['conv1'], 3, planes, stride=stride,
                             dilation=dilation, padding=dilation)
    sc1, sh1 = _bn_scale_shift(s1, q1, n1, *blk['bn1'])
    out = bn_apply(out, sc1, sh1, relu=True)

    out2, s2, q2, n2 = conv3d(out, blk['conv2'], 3, planes, stride=1,
                              dilation=dilation, padding=dilation)
    sc2, sh2 = _bn_scale_shift(s2, q2, n2, *blk['bn2'])

    if has_downsample:
        ds, sd, qd, nd = conv3d(x, blk['ds_conv'], 1, planes, stride=stride)
        scd, shd = _bn_scale_shift(sd, qd, nd, *blk['ds_bn'])
        return bn_apply(out2, sc2, sh2, residual=ds,
                        res_scale=scd, res_shift=shd, relu=True)
    return bn_apply(out2, sc2, sh2, residual=x, relu=True)


def resnet_forward(params, x_ncdhw, cfg, num_seg_classes):
    # PyTorch input layout NCDHW -> internal NDHWC
    x = jnp.transpose(x_ncdhw, (0, 2, 3, 4, 1)).astype(jnp.float32)

    y, s, q, n = conv3d(x, params['conv1'], 7, 64, stride=2, padding=3)   # conv1 (+stats)
    sc, sh = _bn_scale_shift(s, q, n, *params['bn1'])
    x = bn_apply(y, sc, sh, relu=True)                                    # bn1 + relu
    x = maxpool3d(x)                                                      # maxpool 3/2/1

    for blocks, bcfgs in zip(params['layers'], cfg):                      # layer1..layer4
        for blk, (st, dil, hd) in zip(blocks, bcfgs):
            x = basic_block_forward(x, blk, st, dil, hd)

    # conv_seg
    x, s, q, n = conv_transpose3d_s2k2(x, params['deconv_w'], 32)
    sc, sh = _bn_scale_shift(s, q, n, *params['seg_bn1'])
    x = bn_apply(x, sc, sh, relu=True)
    x, s, q, n = conv3d(x, params['seg_conv2'], 3, 32, stride=1, padding=1)
    sc, sh = _bn_scale_shift(s, q, n, *params['seg_bn2'])
    x = bn_apply(x, sc, sh, relu=True)
    x = conv3d(x, params['seg_conv3'], 1, num_seg_classes,
               with_stats=False, out_dtype=jnp.float32)

    return jnp.transpose(x, (0, 4, 1, 2, 3))                              # back to NCDHW


if __name__ == "__main__":
    num_seg_classes = 2
    params, cfg = init_params(num_seg_classes=num_seg_classes, layers=(1, 1, 1, 1), seed=0)

    # sample_input_D = sample_input_H = sample_input_W = 16, single-channel volumes
    x = jax.random.normal(jax.random.PRNGKey(0), (2, 1, 16, 16, 16), jnp.float32)

    fwd = jax.jit(lambda p, xx: resnet_forward(p, xx, cfg, num_seg_classes))
    out = jax.block_until_ready(fwd(params, x))

    expected = (2, num_seg_classes, 4, 4, 4)
    assert out.shape == expected, (out.shape, expected)
    assert bool(jnp.all(jnp.isfinite(out)))
    print("KERNEL_OK")
</pallas_src>

<mosaic_0001>
module attributes {stable_mosaic.version = 11 : i64} {
  func.func @_matmul_stats_kernel(%arg0: i32, %arg1: i32, %arg2: i32, %arg3: memref<256x128xbf16, #tpu.memory_space<vmem>>, %arg4: memref<128x128xbf16, #tpu.memory_space<vmem>>, %arg5: memref<256x128xbf16, #tpu.memory_space<vmem>>, %arg6: memref<8x128xf32, #tpu.memory_space<vmem>>, %arg7: memref<8x128xf32, #tpu.memory_space<vmem>>, %arg8: memref<256x128xf32, #tpu.memory_space<vmem>>) attributes {dimension_semantics = [#tpu.dimension_semantics<parallel>, #tpu.dimension_semantics<parallel>, #tpu.dimension_semantics<arbitrary>], iteration_bounds = array<i64: 4, 1, 3>, scalar_prefetch = 0 : i64, scratch_operands = 1 : i64, tpu.core_type = #tpu.core_type<tc>, window_params = [{transform_indices = @transform_0, window_bounds = array<i64: 256, 128>}, {transform_indices = @transform_1, window_bounds = array<i64: 128, 128>}, {transform_indices = @transform_2, window_bounds = array<i64: 256, 128>}, {transform_indices = @transform_3, window_bounds = array<i64: 8, 128>}, {transform_indices = @transform_4, window_bounds = array<i64: 8, 128>}]} {
    %c0_i32 = arith.constant 0 : i32
    %0 = arith.cmpi eq, %arg2, %c0_i32 : i32
    %1 = arith.extui %0 : i1 to i32
    %c0_i32_0 = arith.constant 0 : i32
    %2 = arith.cmpi ne, %1, %c0_i32_0 : i32
    scf.if %2 {
      %cst_9 = arith.constant 0.000000e+00 : f32
      %12 = vector.broadcast %cst_9 : f32 to vector<256x128xf32>
      %c0_10 = arith.constant 0 : index
      %c0_11 = arith.constant 0 : index
      %13 = vector.load %arg8[%c0_10, %c0_11] : memref<256x128xf32, #tpu.memory_space<vmem>>, vector<256x128xf32>
      tpu.vector_store %arg8[%c0_10, %c0_11], %12 {strides = array<i32>} : memref<256x128xf32, #tpu.memory_space<vmem>>, vector<256x128xf32>,
    } else {
    }
    %c0 = arith.constant 0 : index
    %c0_1 = arith.constant 0 : index
    %3 = vector.load %arg8[%c0, %c0_1] : memref<256x128xf32, #tpu.memory_space<vmem>>, vector<256x128xf32>
    %c0_2 = arith.constant 0 : index
    %c0_3 = arith.constant 0 : index
    %4 = vector.load %arg3[%c0_2, %c0_3] : memref<256x128xbf16, #tpu.memory_space<vmem>>, vector<256x128xbf16>
    %c0_4 = arith.constant 0 : index
    %c0_5 = arith.constant 0 : index
    %5 = vector.load %arg4[%c0_4, %c0_5] : memref<128x128xbf16, #tpu.memory_space<vmem>>, vector<128x128xbf16>
    %cst = arith.constant dense<0.000000e+00> : vector<256x128xf32>
    %6 = tpu.matmul %4, %5, %cst {dimension_numbers = #tpu.dot_dimension_numbers<[1], [0], [0], [1], [0, 0, 1, 1], [], []>} : vector<256x128xbf16>, vector<128x128xbf16>, vector<256x128xf32> -> vector<256x128xf32>
    %7 = arith.addf %3, %6 : vector<256x128xf32>
    %c0_6 = arith.constant 0 : index
    %c0_7 = arith.constant 0 : index
    %8 = vector.load %arg8[%c0_6, %c0_7] : memref<256x128xf32, #tpu.memory_space<vmem>>, vector<256x128xf32>
    tpu.vector_store %arg8[%c0_6, %c0_7], %7 {strides = array<i32>} : memref<256x128xf32, #tpu.memory_space<vmem>>, vector<256x128xf32>,
    %c2_i32 = arith.constant 2 : i32
    %9 = arith.cmpi eq, %arg2, %c2_i32 : i32
    %10 = arith.extui %9 : i1 to i32
    %c0_i32_8 = arith.constant 0 : i32
    %11 = arith.cmpi ne, %10, %c0_i32_8 : i32
    scf.if %11 {
      %c0_9 = arith.constant 0 : index
      %c0_10 = arith.constant 0 : index
      %12 = vector.load %arg8[%c0_9, %c0_10] : memref<256x128xf32, #tpu.memory_space<vmem>>, vector<256x128xf32>
      %13 = arith.truncf %12 : vector<256x128xf32> to vector<256x128xbf16>
      %c0_11 = arith.constant 0 : index
      %c0_12 = arith.constant 0 : index
      %14 = vector.load %arg5[%c0_11, %c0_12] : memref<256x128xbf16, #tpu.memory_space<vmem>>, vector<256x128xbf16>
      tpu.vector_store %arg5[%c0_11, %c0_12], %13 {strides = array<i32>} : memref<256x128xbf16, #tpu.memory_space<vmem>>, vector<256x128xbf16>,
      %cst_13 = arith.constant dense<0.000000e+00> : vector<128xf32>
      %15 = vector.multi_reduction <add>, %12, %cst_13 [0] : vector<256x128xf32> to vector<128xf32>
      %16 = vector.shape_cast %15 : vector<128xf32> to vector<1x128xf32>
      %cst_14 = arith.constant 1.250000e-01 : f32
      %17 = vector.broadcast %cst_14 : f32 to vector<1x128xf32>
      %18 = arith.mulf %16, %17 : vector<1x128xf32>
      %19 = arith.mulf %12, %12 : vector<256x128xf32>
      %cst_15 = arith.constant dense<0.000000e+00> : vector<128xf32>
      %20 = vector.multi_reduction <add>, %19, %cst_15 [0] : vector<256x128xf32> to vector<128xf32>
      %21 = vector.shape_cast %20 : vector<128xf32> to vector<1x128xf32>
      %cst_16 = arith.constant 1.250000e-01 : f32
      %22 = vector.broadcast %cst_16 : f32 to vector<1x128xf32>
      %23 = arith.mulf %21, %22 : vector<1x128xf32>
      %24 = vector.shape_cast %18 : vector<1x128xf32> to vector<1x128xf32>
      %25 = vector.broadcast %24 : vector<1x128xf32> to vector<8x128xf32>
      %c0_17 = arith.constant 0 : index
      %c0_18 = arith.constant 0 : index
      %26 = vector.load %arg6[%c0_17, %c0_18] : memref<8x128xf32, #tpu.memory_space<vmem>>, vector<8x128xf32>
      tpu.vector_store %arg6[%c0_17, %c0_18], %25 {strides = array<i32>} : memref<8x128xf32, #tpu.memory_space<vmem>>, vector<8x128xf32>,
      %27 = vector.shape_cast %23 : vector<1x128xf32> to vector<1x128xf32>
      %28 = vector.broadcast %27 : vector<1x128xf32> to vector<8x128xf32>
      %c0_19 = arith.constant 0 : index
      %c0_20 = arith.constant 0 : index
      %29 = vector.load %arg7[%c0_19, %c0_20] : memref<8x128xf32, #tpu.memory_space<vmem>>, vector<8x128xf32>
      tpu.vector_store %arg7[%c0_19, %c0_20], %28 {strides = array<i32>} : memref<8x128xf32, #tpu.memory_space<vmem>>, vector<8x128xf32>,
    } else {
    }
    return
  }
  func.func @transform_0(%arg0: i32, %arg1: i32, %arg2: i32) -> (i32, i32) {
    %c0_i32 = arith.constant 0 : i32
    return %arg0, %arg2 : i32, i32
  }
  func.func @transform_1(%arg0: i32, %arg1: i32, %arg2: i32) -> (i32, i32) {
    %c0_i32 = arith.constant 0 : i32
    return %arg2, %arg1 : i32, i32
  }
  func.func @transform_2(%arg0: i32, %arg1: i32, %arg2: i32) -> (i32, i32) {
    %c0_i32 = arith.constant 0 : i32
    return %arg0, %arg1 : i32, i32
  }
  func.func @transform_3(%arg0: i32, %arg1: i32, %arg2: i32) -> (i32, i32) {
    %c0_i32 = arith.constant 0 : i32
    return %arg0, %arg1 : i32, i32
  }
  func.func @transform_4(%arg0: i32, %arg1: i32, %arg2: i32) -> (i32, i32) {
    %c0_i32 = arith.constant 0 : i32
    return %arg0, %arg1 : i32, i32
  }
}

module attributes {stable_mosaic.version = 11 : i64} {
  func.func @_bn_apply_kernel(%arg0: i32, %arg1: memref<256x128xbf16, #tpu.memory_space<vmem>>, %arg2: memref<1x128xf32, #tpu.memory_space<vmem>>, %arg3: memref<1x128xf32, #tpu.memory_space<vmem>>, %arg4: memref<256x128xbf16, #tpu.memory_space<vmem>>) attributes {dimension_semantics = [#tpu.dimension_semantics<parallel>], iteration_bounds = array<i64: 2>, scalar_prefetch = 0 : i64, scratch_operands = 0 : i64, tpu.core_type = #tpu.core_type<tc>, window_params = [{transform_indices = @transform_0, window_bounds = array<i64: 256, 128>}, {pipeline_mode = #tpu.pipeline_mode<synchronous>, transform_indices = @transform_1, window_bounds = array<i64: 1, 128>}, {pipeline_mode = #tpu.pipeline_mode<synchronous>, transform_indices = @transform_2, window_bounds = array<i64: 1, 128>}, {transform_indices = @transform_3, window_bounds = array<i64: 256, 128>}]} {
    %c0 = arith.constant 0 : index
    %c0_0 = arith.constant 0 : index
    %0 = vector.load %arg1[%c0, %c0_0] : memref<256x128xbf16, #tpu.memory_space<vmem>>, vector<256x128xbf16>
    %1 = arith.extf %0 : vector<256x128xbf16> to vector<256x128xf32>
    %c0_1 = arith.constant 0 : index
    %c0_2 = arith.constant 0 : index
    %2 = vector.load %arg2[%c0_1, %c0_2] : memref<1x128xf32, #tpu.memory_space<vmem>>, vector<1x128xf32>
    %3 = vector.broadcast %2 : vector<1x128xf32> to vector<256x128xf32>
    %4 = arith.mulf %1, %3 : vector<256x128xf32>
    %c0_3 = arith.constant 0 : index
    %c0_4 = arith.constant 0 : index
    %5 = vector.load %arg3[%c0_3, %c0_4] : memref<1x128xf32, #tpu.memory_space<vmem>>, vector<1x128xf32>
    %6 = vector.broadcast %5 : vector<1x128xf32> to vector<256x128xf32>
    %7 = arith.addf %4, %6 : vector<256x128xf32>
    %cst = arith.constant 0.000000e+00 : f32
    %8 = vector.broadcast %cst : f32 to vector<256x128xf32>
    %9 = arith.maximumf %7, %8 : vector<256x128xf32>
    %10 = arith.truncf %9 : vector<256x128xf32> to vector<256x128xbf16>
    %c0_5 = arith.constant 0 : index
    %c0_6 = arith.constant 0 : index
    %11 = vector.load %arg4[%c0_5, %c0_6] : memref<256x128xbf16, #tpu.memory_space<vmem>>, vector<256x128xbf16>
    tpu.vector_store %arg4[%c0_5, %c0_6], %10 {strides = array<i32>} : memref<256x128xbf16, #tpu.memory_space<vmem>>, vector<256x128xbf16>,
    return
  }
  func.func @transform_0(%arg0: i32) -> (i32, i32) {
    %c0_i32 = arith.constant 0 : i32
    %c0_i32_0 = arith.constant 0 : i32
    return %arg0, %c0_i32 : i32, i32
  }
  func.func @transform_1(%arg0: i32) -> (i32, i32) {
    %c0_i32 = arith.constant 0 : i32
    %c0_i32_0 = arith.constant 0 : i32
    %c0_i32_1 = arith.constant 0 : i32
    return %c0_i32, %c0_i32_0 : i32, i32
  }
  func.func @transform_2(%arg0: i32) -> (i32, i32) {
    %c0_i32 = arith.constant 0 : i32
    %c0_i32_0 = arith.constant 0 : i32
    %c0_i32_1 = arith.constant 0 : i32
    return %c0_i32, %c0_i32_0 : i32, i32
  }
  func.func @transform_3(%arg0: i32) -> (i32, i32) {
    %c0_i32 = arith.constant 0 : i32
    %c0_i32_0 = arith.constant 0 : i32
    return %arg0, %c0_i32 : i32, i32
  }
}

module attributes {stable_mosaic.version = 11 : i64} {
  func.func @_max3_kernel(%arg0: i32, %arg1: memref<128x128xbf16, #tpu.memory_space<vmem>>, %arg2: memref<128x128xbf16, #tpu.memory_space<vmem>>, %arg3: memref<128x128xbf16, #tpu.memory_space<vmem>>, %arg4: memref<128x128xbf16, #tpu.memory_space<vmem>>) attributes {dimension_semantics = [#tpu.dimension_semantics<parallel>], iteration_bounds = array<i64: 2>, scalar_prefetch = 0 : i64, scratch_operands = 0 : i64, tpu.core_type = #tpu.core_type<tc>, window_params = [{transform_indices = @transform_0, window_bounds = array<i64: 128, 128>}, {transform_indices = @transform_1, window_bounds = array<i64: 128, 128>}, {transform_indices = @transform_2, window_bounds = array<i64: 128, 128>}, {transform_indices = @transform_3, window_bounds = array<i64: 128, 128>}]} {
    %c0 = arith.constant 0 : index
    %c0_0 = arith.constant 0 : index
    %0 = vector.load %arg1[%c0, %c0_0] : memref<128x128xbf16, #tpu.memory_space<vmem>>, vector<128x128xbf16>
    %c0_1 = arith.constant 0 : index
    %c0_2 = arith.constant 0 : index
    %1 = vector.load %arg2[%c0_1, %c0_2] : memref<128x128xbf16, #tpu.memory_space<vmem>>, vector<128x128xbf16>
    %2 = arith.maximumf %0, %1 : vector<128x128xbf16>
    %c0_3 = arith.constant 0 : index
    %c0_4 = arith.constant 0 : index
    %3 = vector.load %arg3[%c0_3, %c0_4] : memref<128x128xbf16, #tpu.memory_space<vmem>>, vector<128x128xbf16>
    %4 = arith.maximumf %2, %3 : vector<128x128xbf16>
    %c0_5 = arith.constant 0 : index
    %c0_6 = arith.constant 0 : index
    %5 = vector.load %arg4[%c0_5, %c0_6] : memref<128x128xbf16, #tpu.memory_space<vmem>>, vector<128x128xbf16>
    tpu.vector_store %arg4[%c0_5, %c0_6], %4 {strides = array<i32>} : memref<128x128xbf16, #tpu.memory_space<vmem>>, vector<128x128xbf16>,
    return
  }
  func.func @transform_0(%arg0: i32) -> (i32, i32) {
    %c0_i32 = arith.constant 0 : i32
    %c0_i32_0 = arith.constant 0 : i32
    return %arg0, %c0_i32 : i32, i32
  }
  func.func @transform_1(%arg0: i32) -> (i32, i32) {
    %c0_i32 = arith.constant 0 : i32
    %c0_i32_0 = arith.constant 0 : i32
    return %arg0, %c0_i32 : i32, i32
  }
  func.func @transform_2(%arg0: i32) -> (i32, i32) {
    %c0_i32 = arith.constant 0 : i32
    %c0_i32_0 = arith.constant 0 : i32
    return %arg0, %c0_i32 : i32, i32
  }
  func.func @transform_3(%arg0: i32) -> (i32, i32) {
    %c0_i32 = arith.constant 0 : i32
    %c0_i32_0 = arith.constant 0 : i32
    return %arg0, %c0_i32 : i32, i32
  }
}

module attributes {stable_mosaic.version = 11 : i64} {
  func.func @_max3_kernel(%arg0: i32, %arg1: memref<64x128xbf16, #tpu.memory_space<vmem>>, %arg2: memref<64x128xbf16, #tpu.memory_space<vmem>>, %arg3: memref<64x128xbf16, #tpu.memory_space<vmem>>, %arg4: memref<64x128xbf16, #tpu.memory_space<vmem>>) attributes {dimension_semantics = [#tpu.dimension_semantics<parallel>], iteration_bounds = array<i64: 2>, scalar_prefetch = 0 : i64, scratch_operands = 0 : i64, tpu.core_type = #tpu.core_type<tc>, window_params = [{transform_indices = @transform_0, window_bounds = array<i64: 64, 128>}, {transform_indices = @transform_1, window_bounds = array<i64: 64, 128>}, {transform_indices = @transform_2, window_bounds = array<i64: 64, 128>}, {transform_indices = @transform_3, window_bounds = array<i64: 64, 128>}]} {
    %c0 = arith.constant 0 : index
    %c0_0 = arith.constant 0 : index
    %0 = vector.load %arg1[%c0, %c0_0] : memref<64x128xbf16, #tpu.memory_space<vmem>>, vector<64x128xbf16>
    %c0_1 = arith.constant 0 : index
    %c0_2 = arith.constant 0 : index
    %1 = vector.load %arg2[%c0_1, %c0_2] : memref<64x128xbf16, #tpu.memory_space<vmem>>, vector<64x128xbf16>
    %2 = arith.maximumf %0, %1 : vector<64x128xbf16>
    %c0_3 = arith.constant 0 : index
    %c0_4 = arith.constant 0 : index
    %3 = vector.load %arg3[%c0_3, %c0_4] : memref<64x128xbf16, #tpu.memory_space<vmem>>, vector<64x128xbf16>
    %4 = arith.maximumf %2, %3 : vector<64x128xbf16>
    %c0_5 = arith.constant 0 : index
    %c0_6 = arith.constant 0 : index
    %5 = vector.load %arg4[%c0_5, %c0_6] : memref<64x128xbf16, #tpu.memory_space<vmem>>, vector<64x128xbf16>
    tpu.vector_store %arg4[%c0_5, %c0_6], %4 {strides = array<i32>} : memref<64x128xbf16, #tpu.memory_space<vmem>>, vector<64x128xbf16>,
    return
  }
  func.func @transform_0(%arg0: i32) -> (i32, i32) {
    %c0_i32 = arith.constant 0 : i32
    %c0_i32_0 = arith.constant 0 : i32
    return %arg0, %c0_i32 : i32, i32
  }
  func.func @transform_1(%arg0: i32) -> (i32, i32) {
    %c0_i32 = arith.constant 0 : i32
    %c0_i32_0 = arith.constant 0 : i32
    return %arg0, %c0_i32 : i32, i32
  }
  func.func @transform_2(%arg0: i32) -> (i32, i32) {
    %c0_i32 = arith.constant 0 : i32
    %c0_i32_0 = arith.constant 0 : i32
    return %arg0, %c0_i32 : i32, i32
  }
  func.func @transform_3(%arg0: i32) -> (i32, i32) {
    %c0_i32 = arith.constant 0 : i32
    %c0_i32_0 = arith.constant 0 : i32
    return %arg0, %c0_i32 : i32, i32
  }
}

module attributes {stable_mosaic.version = 11 : i64} {
  func.func @_max3_kernel(%arg0: i32, %arg1: memref<32x128xbf16, #tpu.memory_space<vmem>>, %arg2: memref<32x128xbf16, #tpu.memory_space<vmem>>, %arg3: memref<32x128xbf16, #tpu.memory_space<vmem>>, %arg4: memref<32x128xbf16, #tpu.memory_space<vmem>>) attributes {dimension_semantics = [#tpu.dimension_semantics<parallel>], iteration_bounds = array<i64: 2>, scalar_prefetch = 0 : i64, scratch_operands = 0 : i64, tpu.core_type = #tpu.core_type<tc>, window_params = [{transform_indices = @transform_0, window_bounds = array<i64: 32, 128>}, {transform_indices = @transform_1, window_bounds = array<i64: 32, 128>}, {transform_indices = @transform_2, window_bounds = array<i64: 32, 128>}, {transform_indices = @transform_3, window_bounds = array<i64: 32, 128>}]} {
    %c0 = arith.constant 0 : index
    %c0_0 = arith.constant 0 : index
    %0 = vector.load %arg1[%c0, %c0_0] : memref<32x128xbf16, #tpu.memory_space<vmem>>, vector<32x128xbf16>
    %c0_1 = arith.constant 0 : index
    %c0_2 = arith.constant 0 : index
    %1 = vector.load %arg2[%c0_1, %c0_2] : memref<32x128xbf16, #tpu.memory_space<vmem>>, vector<32x128xbf16>
    %2 = arith.maximumf %0, %1 : vector<32x128xbf16>
    %c0_3 = arith.constant 0 : index
    %c0_4 = arith.constant 0 : index
    %3 = vector.load %arg3[%c0_3, %c0_4] : memref<32x128xbf16, #tpu.memory_space<vmem>>, vector<32x128xbf16>
    %4 = arith.maximumf %2, %3 : vector<32x128xbf16>
    %c0_5 = arith.constant 0 : index
    %c0_6 = arith.constant 0 : index
    %5 = vector.load %arg4[%c0_5, %c0_6] : memref<32x128xbf16, #tpu.memory_space<vmem>>, vector<32x128xbf16>
    tpu.vector_store %arg4[%c0_5, %c0_6], %4 {strides = array<i32>} : memref<32x128xbf16, #tpu.memory_space<vmem>>, vector<32x128xbf16>,
    return
  }
  func.func @transform_0(%arg0: i32) -> (i32, i32) {
    %c0_i32 = arith.constant 0 : i32
    %c0_i32_0 = arith.constant 0 : i32
    return %arg0, %c0_i32 : i32, i32
  }
  func.func @transform_1(%arg0: i32) -> (i32, i32) {
    %c0_i32 = arith.constant 0 : i32
    %c0_i32_0 = arith.constant 0 : i32
    return %arg0, %c0_i32 : i32, i32
  }
  func.func @transform_2(%arg0: i32) -> (i32, i32) {
    %c0_i32 = arith.constant 0 : i32
    %c0_i32_0 = arith.constant 0 : i32
    return %arg0, %c0_i32 : i32, i32
  }
  func.func @transform_3(%arg0: i32) -> (i32, i32) {
    %c0_i32 = arith.constant 0 : i32
    %c0_i32_0 = arith.constant 0 : i32
    return %arg0, %c0_i32 : i32, i32
  }
}

module attributes {stable_mosaic.version = 11 : i64} {
  func.func @_matmul_stats_kernel(%arg0: i32, %arg1: i32, %arg2: i32, %arg3: memref<128x256xbf16, #tpu.memory_space<vmem>>, %arg4: memref<256x128xbf16, #tpu.memory_space<vmem>>, %arg5: memref<128x128xbf16, #tpu.memory_space<vmem>>, %arg6: memref<8x128xf32, #tpu.memory_space<vmem>>, %arg7: memref<8x128xf32, #tpu.memory_space<vmem>>, %arg8: memref<128x128xf32, #tpu.memory_space<vmem>>) attributes {dimension_semantics = [#tpu.dimension_semantics<parallel>, #tpu.dimension_semantics<parallel>, #tpu.dimension_semantics<arbitrary>], iteration_bounds = array<i64: 1, 1, 7>, scalar_prefetch = 0 : i64, scratch_operands = 1 : i64, tpu.core_type = #tpu.core_type<tc>, window_params = [{transform_indices = @transform_0, window_bounds = array<i64: 128, 256>}, {transform_indices = @transform_1, window_bounds = array<i64: 256, 128>}, {transform_indices = @transform_2, window_bounds = array<i64: 128, 128>}, {transform_indices = @transform_3, window_bounds = array<i64: 8, 128>}, {transform_indices = @transform_4, window_bounds = array<i64: 8, 128>}]} {
    %c0_i32 = arith.constant 0 : i32
    %0 = arith.cmpi eq, %arg2, %c0_i32 : i32
    %1 = arith.extui %0 : i1 to i32
    %c0_i32_0 = arith.constant 0 : i32
    %2 = arith.cmpi ne, %1, %c0_i32_0 : i32
    scf.if %2 {
      %cst_9 = arith.constant 0.000000e+00 : f32
      %12 = vector.broadcast %cst_9 : f32 to vector<128x128xf32>
      %c0_10 = arith.constant 0 : index
      %c0_11 = arith.constant 0 : index
      %13 = vector.load %arg8[%c0_10, %c0_11] : memref<128x128xf32, #tpu.memory_space<vmem>>, vector<128x128xf32>
      tpu.vector_store %arg8[%c0_10, %c0_11], %12 {strides = array<i32>} : memref<128x128xf32, #tpu.memory_space<vmem>>, vector<128x128xf32>,
    } else {
    }
    %c0 = arith.constant 0 : index
    %c0_1 = arith.constant 0 : index
    %3 = vector.load %arg8[%c0, %c0_1] : memref<128x128xf32, #tpu.memory_space<vmem>>, vector<128x128xf32>
    %c0_2 = arith.constant 0 : index
    %c0_3 = arith.constant 0 : index
    %4 = vector.load %arg3[%c0_2, %c0_3] : memref<128x256xbf16, #tpu.memory_space<vmem>>, vector<128x256xbf16>
    %c0_4 = arith.constant 0 : index
    %c0_5 = arith.constant 0 : index
    %5 = vector.load %arg4[%c0_4, %c0_5] : memref<256x128xbf16, #tpu.memory_space<vmem>>, vector<256x128xbf16>
    %cst = arith.constant dense<0.000000e+00> : vector<128x128xf32>
    %6 = tpu.matmul %4, %5, %cst {dimension_numbers = #tpu.dot_dimension_numbers<[1], [0], [0], [1], [0, 0, 1, 1], [], []>} : vector<128x256xbf16>, vector<256x128xbf16>, vector<128x128xf32> -> vector<128x128xf32>
    %7 = arith.addf %3, %6 : vector<128x128xf32>
    %c0_6 = arith.constant 0 : index
    %c0_7 = arith.constant 0 : index
    %8 = vector.load %arg8[%c0_6, %c0_7] : memref<128x128xf32, #tpu.memory_space<vmem>>, vector<128x128xf32>
    tpu.vector_store %arg8[%c0_6, %c0_7], %7 {strides = array<i32>} : memref<128x128xf32, #tpu.memory_space<vmem>>, vector<128x128xf32>,
    %c6_i32 = arith.constant 6 : i32
    %9 = arith.cmpi eq, %arg2, %c6_i32 : i32
    %10 = arith.extui %9 : i1 to i32
    %c0_i32_8 = arith.constant 0 : i32
    %11 = arith.cmpi ne, %10, %c0_i32_8 : i32
    scf.if %11 {
      %c0_9 = arith.constant 0 : index
      %c0_10 = arith.constant 0 : index
      %12 = vector.load %arg8[%c0_9, %c0_10] : memref<128x128xf32, #tpu.memory_space<vmem>>, vector<128x128xf32>
      %13 = arith.truncf %12 : vector<128x128xf32> to vector<128x128xbf16>
      %c0_11 = arith.constant 0 : index
      %c0_12 = arith.constant 0 : index
      %14 = vector.load %arg5[%c0_11, %c0_12] : memref<128x128xbf16, #tpu.memory_space<vmem>>, vector<128x128xbf16>
      tpu.vector_store %arg5[%c0_11, %c0_12], %13 {strides = array<i32>} : memref<128x128xbf16, #tpu.memory_space<vmem>>, vector<128x128xbf16>,
      %cst_13 = arith.constant dense<0.000000e+00> : vector<128xf32>
      %15 = vector.multi_reduction <add>, %12, %cst_13 [0] : vector<128x128xf32> to vector<128xf32>
      %16 = vector.shape_cast %15 : vector<128xf32> to vector<1x128xf32>
      %cst_14 = arith.constant 1.250000e-01 : f32
      %17 = vector.broadcast %cst_14 : f32 to vector<1x128xf32>
      %18 = arith.mulf %16, %17 : vector<1x128xf32>
      %19 = arith.mulf %12, %12 : vector<128x128xf32>
      %cst_15 = arith.constant dense<0.000000e+00> : vector<128xf32>
      %20 = vector.multi_reduction <add>, %19, %cst_15 [0] : vector<128x128xf32> to vector<128xf32>
      %21 = vector.shape_cast %20 : vector<128xf32> to vector<1x128xf32>
      %cst_16 = arith.constant 1.250000e-01 : f32
      %22 = vector.broadcast %cst_16 : f32 to vector<1x128xf32>
      %23 = arith.mulf %21, %22 : vector<1x128xf32>
      %24 = vector.shape_cast %18 : vector<1x128xf32> to vector<1x128xf32>
      %25 = vector.broadcast %24 : vector<1x128xf32> to vector<8x128xf32>
      %c0_17 = arith.constant 0 : index
      %c0_18 = arith.constant 0 : index
      %26 = vector.load %arg6[%c0_17, %c0_18] : memref<8x128xf32, #tpu.memory_space<vmem>>, vector<8x128xf32>
      tpu.vector_store %arg6[%c0_17, %c0_18], %25 {strides = array<i32>} : memref<8x128xf32, #tpu.memory_space<vmem>>, vector<8x128xf32>,
      %27 = vector.shape_cast %23 : vector<1x128xf32> to vector<1x128xf32>
      %28 = vector.broadcast %27 : vector<1x128xf32> to vector<8x128xf32>
      %c0_19 = arith.constant 0 : index
      %c0_20 = arith.constant 0 : index
      %29 = vector.load %arg7[%c0_19, %c0_20] : memref<8x128xf32, #tpu.memory_space<vmem>>, vector<8x128xf32>
      tpu.vector_store %arg7[%c0_19, %c0_20], %28 {strides = array<i32>} : memref<8x128xf32, #tpu.memory_space<vmem>>, vector<8x128xf32>,
    } else {
    }
    return
  }
  func.func @transform_0(%arg0: i32, %arg1: i32, %arg2: i32) -> (i32, i32) {
    %c0_i32 = arith.constant 0 : i32
    return %arg0, %arg2 : i32, i32
  }
  func.func @transform_1(%arg0: i32, %arg1: i32, %arg2: i32) -> (i32, i32) {
    %c0_i32 = arith.constant 0 : i32
    return %arg2, %arg1 : i32, i32
  }
  func.func @transform_2(%arg0: i32, %arg1: i32, %arg2: i32) -> (i32, i32) {
    %c0_i32 = arith.constant 0 : i32
    return %arg0, %arg1 : i32, i32
  }
  func.func @transform_3(%arg0: i32, %arg1: i32, %arg2: i32) -> (i32, i32) {
    %c0_i32 = arith.constant 0 : i32
    return %arg0, %arg1 : i32, i32
  }
  func.func @transform_4(%arg0: i32, %arg1: i32, %arg2: i32) -> (i32, i32) {
    %c0_i32 = arith.constant 0 : i32
    return %arg0, %arg1 : i32, i32
  }
}

module attributes {stable_mosaic.version = 11 : i64} {
  func.func @_bn_apply_kernel(%arg0: i32, %arg1: memref<32x128xbf16, #tpu.memory_space<vmem>>, %arg2: memref<1x128xf32, #tpu.memory_space<vmem>>, %arg3: memref<1x128xf32, #tpu.memory_space<vmem>>, %arg4: memref<32x128xbf16, #tpu.memory_space<vmem>>) attributes {dimension_semantics = [#tpu.dimension_semantics<parallel>], iteration_bounds = array<i64: 2>, scalar_prefetch = 0 : i64, scratch_operands = 0 : i64, tpu.core_type = #tpu.core_type<tc>, window_params = [{transform_indices = @transform_0, window_bounds = array<i64: 32, 128>}, {pipeline_mode = #tpu.pipeline_mode<synchronous>, transform_indices = @transform_1, window_bounds = array<i64: 1, 128>}, {pipeline_mode = #tpu.pipeline_mode<synchronous>, transform_indices = @transform_2, window_bounds = array<i64: 1, 128>}, {transform_indices = @transform_3, window_bounds = array<i64: 32, 128>}]} {
    %c0 = arith.constant 0 : index
    %c0_0 = arith.constant 0 : index
    %0 = vector.load %arg1[%c0, %c0_0] : memref<32x128xbf16, #tpu.memory_space<vmem>>, vector<32x128xbf16>
    %1 = arith.extf %0 : vector<32x128xbf16> to vector<32x128xf32>
    %c0_1 = arith.constant 0 : index
    %c0_2 = arith.constant 0 : index
    %2 = vector.load %arg2[%c0_1, %c0_2] : memref<1x128xf32, #tpu.memory_space<vmem>>, vector<1x128xf32>
    %3 = vector.broadcast %2 : vector<1x128xf32> to vector<32x128xf32>
    %4 = arith.mulf %1, %3 : vector<32x128xf32>
    %c0_3 = arith.constant 0 : index
    %c0_4 = arith.constant 0 : index
    %5 = vector.load %arg3[%c0_3, %c0_4] : memref<1x128xf32, #tpu.memory_space<vmem>>, vector<1x128xf32>
    %6 = vector.broadcast %5 : vector<1x128xf32> to vector<32x128xf32>
    %7 = arith.addf %4, %6 : vector<32x128xf32>
    %cst = arith.constant 0.000000e+00 : f32
    %8 = vector.broadcast %cst : f32 to vector<32x128xf32>
    %9 = arith.maximumf %7, %8 : vector<32x128xf32>
    %10 = arith.truncf %9 : vector<32x128xf32> to vector<32x128xbf16>
    %c0_5 = arith.constant 0 : index
    %c0_6 = arith.constant 0 : index
    %11 = vector.load %arg4[%c0_5, %c0_6] : memref<32x128xbf16, #tpu.memory_space<vmem>>, vector<32x128xbf16>
    tpu.vector_store %arg4[%c0_5, %c0_6], %10 {strides = array<i32>} : memref<32x128xbf16, #tpu.memory_space<vmem>>, vector<32x128xbf16>,
    return
  }
  func.func @transform_0(%arg0: i32) -> (i32, i32) {
    %c0_i32 = arith.constant 0 : i32
    %c0_i32_0 = arith.constant 0 : i32
    return %arg0, %c0_i32 : i32, i32
  }
  func.func @transform_1(%arg0: i32) -> (i32, i32) {
    %c0_i32 = arith.constant 0 : i32
    %c0_i32_0 = arith.constant 0 : i32
    %c0_i32_1 = arith.constant 0 : i32
    return %c0_i32, %c0_i32_0 : i32, i32
  }
  func.func @transform_2(%arg0: i32) -> (i32, i32) {
    %c0_i32 = arith.constant 0 : i32
    %c0_i32_0 = arith.constant 0 : i32
    %c0_i32_1 = arith.constant 0 : i32
    return %c0_i32, %c0_i32_0 : i32, i32
  }
  func.func @transform_3(%arg0: i32) -> (i32, i32) {
    %c0_i32 = arith.constant 0 : i32
    %c0_i32_0 = arith.constant 0 : i32
    return %arg0, %c0_i32 : i32, i32
  }
}

module attributes {stable_mosaic.version = 11 : i64} {
  func.func @_bn_apply_res_kernel(%arg0: i32, %arg1: memref<32x128xbf16, #tpu.memory_space<vmem>>, %arg2: memref<32x128xbf16, #tpu.memory_space<vmem>>, %arg3: memref<1x128xf32, #tpu.memory_space<vmem>>, %arg4: memref<1x128xf32, #tpu.memory_space<vmem>>, %arg5: memref<32x128xbf16, #tpu.memory_space<vmem>>) attributes {dimension_semantics = [#tpu.dimension_semantics<parallel>], iteration_bounds = array<i64: 2>, scalar_prefetch = 0 : i64, scratch_operands = 0 : i64, tpu.core_type = #tpu.core_type<tc>, window_params = [{transform_indices = @transform_0, window_bounds = array<i64: 32, 128>}, {transform_indices = @transform_1, window_bounds = array<i64: 32, 128>}, {pipeline_mode = #tpu.pipeline_mode<synchronous>, transform_indices = @transform_2, window_bounds = array<i64: 1, 128>}, {pipeline_mode = #tpu.pipeline_mode<synchronous>, transform_indices = @transform_3, window_bounds = array<i64: 1, 128>}, {transform_indices = @transform_4, window_bounds = array<i64: 32, 128>}]} {
    %c0 = arith.constant 0 : index
    %c0_0 = arith.constant 0 : index
    %0 = vector.load %arg1[%c0, %c0_0] : memref<32x128xbf16, #tpu.memory_space<vmem>>, vector<32x128xbf16>
    %1 = arith.extf %0 : vector<32x128xbf16> to vector<32x128xf32>
    %c0_1 = arith.constant 0 : index
    %c0_2 = arith.constant 0 : index
    %2 = vector.load %arg3[%c0_1, %c0_2] : memref<1x128xf32, #tpu.memory_space<vmem>>, vector<1x128xf32>
    %3 = vector.broadcast %2 : vector<1x128xf32> to vector<32x128xf32>
    %4 = arith.mulf %1, %3 : vector<32x128xf32>
    %c0_3 = arith.constant 0 : index
    %c0_4 = arith.constant 0 : index
    %5 = vector.load %arg4[%c0_3, %c0_4] : memref<1x128xf32, #tpu.memory_space<vmem>>, vector<1x128xf32>
    %6 = vector.broadcast %5 : vector<1x128xf32> to vector<32x128xf32>
    %7 = arith.addf %4, %6 : vector<32x128xf32>
    %c0_5 = arith.constant 0 : index
    %c0_6 = arith.constant 0 : index
    %8 = vector.load %arg2[%c0_5, %c0_6] : memref<32x128xbf16, #tpu.memory_space<vmem>>, vector<32x128xbf16>
    %9 = arith.extf %8 : vector<32x128xbf16> to vector<32x128xf32>
    %10 = arith.addf %7, %9 : vector<32x128xf32>
    %cst = arith.constant 0.000000e+00 : f32
    %11 = vector.broadcast %cst : f32 to vector<32x128xf32>
    %12 = arith.maximumf %10, %11 : vector<32x128xf32>
    %13 = arith.truncf %12 : vector<32x128xf32> to vector<32x128xbf16>
    %c0_7 = arith.constant 0 : index
    %c0_8 = arith.constant 0 : index
    %14 = vector.load %arg5[%c0_7, %c0_8] : memref<32x128xbf16, #tpu.memory_space<vmem>>, vector<32x128xbf16>
    tpu.vector_store %arg5[%c0_7, %c0_8], %13 {strides = array<i32>} : memref<32x128xbf16, #tpu.memory_space<vmem>>, vector<32x128xbf16>,
    return
  }
  func.func @transform_0(%arg0: i32) -> (i32, i32) {
    %c0_i32 = arith.constant 0 : i32
    %c0_i32_0 = arith.constant 0 : i32
    return %arg0, %c0_i32 : i32, i32
  }
  func.func @transform_1(%arg0: i32) -> (i32, i32) {
    %c0_i32 = arith.constant 0 : i32
    %c0_i32_0 = arith.constant 0 : i32
    return %arg0, %c0_i32 : i32, i32
  }
  func.func @transform_2(%arg0: i32) -> (i32, i32) {
    %c0_i32 = arith.constant 0 : i32
    %c0_i32_0 = arith.constant 0 : i32
    %c0_i32_1 = arith.constant 0 : i32
    return %c0_i32, %c0_i32_0 : i32, i32
  }
  func.func @transform_3(%arg0: i32) -> (i32, i32) {
    %c0_i32 = arith.constant 0 : i32
    %c0_i32_0 = arith.constant 0 : i32
    %c0_i32_1 = arith.constant 0 : i32
    return %c0_i32, %c0_i32_0 : i32, i32
  }
  func.func @transform_4(%arg0: i32) -> (i32, i32) {
    %c0_i32 = arith.constant 0 : i32
    %c0_i32_0 = arith.constant 0 : i32
    return %arg0, %c0_i32 : i32, i32
  }
}

module attributes {stable_mosaic.version = 11 : i64} {
  func.func @_matmul_stats_kernel(%arg0: i32, %arg1: i32, %arg2: i32, %arg3: memref<16x256xbf16, #tpu.memory_space<vmem>>, %arg4: memref<256x128xbf16, #tpu.memory_space<vmem>>, %arg5: memref<16x128xbf16, #tpu.memory_space<vmem>>, %arg6: memref<8x128xf32, #tpu.memory_space<vmem>>, %arg7: memref<8x128xf32, #tpu.memory_space<vmem>>, %arg8: memref<16x128xf32, #tpu.memory_space<vmem>>) attributes {dimension_semantics = [#tpu.dimension_semantics<parallel>, #tpu.dimension_semantics<parallel>, #tpu.dimension_semantics<arbitrary>], iteration_bounds = array<i64: 1, 1, 7>, scalar_prefetch = 0 : i64, scratch_operands = 1 : i64, tpu.core_type = #tpu.core_type<tc>, window_params = [{transform_indices = @transform_0, window_bounds = array<i64: 16, 256>}, {transform_indices = @transform_1, window_bounds = array<i64: 256, 128>}, {transform_indices = @transform_2, window_bounds = array<i64: 16, 128>}, {transform_indices = @transform_3, window_bounds = array<i64: 8, 128>}, {transform_indices = @transform_4, window_bounds = array<i64: 8, 128>}]} {
    %c0_i32 = arith.constant 0 : i32
    %0 = arith.cmpi eq, %arg2, %c0_i32 : i32
    %1 = arith.extui %0 : i1 to i32
    %c0_i32_0 = arith.constant 0 : i32
    %2 = arith.cmpi ne, %1, %c0_i32_0 : i32
    scf.if %2 {
      %cst_9 = arith.constant 0.000000e+00 : f32
      %12 = vector.broadcast %cst_9 : f32 to vector<16x128xf32>
      %c0_10 = arith.constant 0 : index
      %c0_11 = arith.constant 0 : index
      %13 = vector.load %arg8[%c0_10, %c0_11] : memref<16x128xf32, #tpu.memory_space<vmem>>, vector<16x128xf32>
      tpu.vector_store %arg8[%c0_10, %c0_11], %12 {strides = array<i32>} : memref<16x128xf32, #tpu.memory_space<vmem>>, vector<16x128xf32>,
    } else {
    }
    %c0 = arith.constant 0 : index
    %c0_1 = arith.constant 0 : index
    %3 = vector.load %arg8[%c0, %c0_1] : memref<16x128xf32, #tpu.memory_space<vmem>>, vector<16x128xf32>
    %c0_2 = arith.constant 0 : index
    %c0_3 = arith.constant 0 : index
    %4 = vector.load %arg3[%c0_2, %c0_3] : memref<16x256xbf16, #tpu.memory_space<vmem>>, vector<16x256xbf16>
    %c0_4 = arith.constant 0 : index
    %c0_5 = arith.constant 0 : index
    %5 = vector.load %arg4[%c0_4, %c0_5] : memref<256x128xbf16, #tpu.memory_space<vmem>>, vector<256x128xbf16>
    %cst = arith.constant dense<0.000000e+00> : vector<16x128xf32>
    %6 = tpu.matmul %4, %5, %cst {dimension_numbers = #tpu.dot_dimension_numbers<[1], [0], [0], [1], [0, 0, 1, 1], [], []>} : vector<16x256xbf16>, vector<256x128xbf16>, vector<16x128xf32> -> vector<16x128xf32>
    %7 = arith.addf %3, %6 : vector<16x128xf32>
    %c0_6 = arith.constant 0 : index
    %c0_7 = arith.constant 0 : index
    %8 = vector.load %arg8[%c0_6, %c0_7] : memref<16x128xf32, #tpu.memory_space<vmem>>, vector<16x128xf32>
    tpu.vector_store %arg8[%c0_6, %c0_7], %7 {strides = array<i32>} : memref<16x128xf32, #tpu.memory_space<vmem>>, vector<16x128xf32>,
    %c6_i32 = arith.constant 6 : i32
    %9 = arith.cmpi eq, %arg2, %c6_i32 : i32
    %10 = arith.extui %9 : i1 to i32
    %c0_i32_8 = arith.constant 0 : i32
    %11 = arith.cmpi ne, %10, %c0_i32_8 : i32
    scf.if %11 {
      %c0_9 = arith.constant 0 : index
      %c0_10 = arith.constant 0 : index
      %12 = vector.load %arg8[%c0_9, %c0_10] : memref<16x128xf32, #tpu.memory_space<vmem>>, vector<16x128xf32>
      %13 = arith.truncf %12 : vector<16x128xf32> to vector<16x128xbf16>
      %c0_11 = arith.constant 0 : index
      %c0_12 = arith.constant 0 : index
      %14 = vector.load %arg5[%c0_11, %c0_12] : memref<16x128xbf16, #tpu.memory_space<vmem>>, vector<16x128xbf16>
      tpu.vector_store %arg5[%c0_11, %c0_12], %13 {strides = array<i32>} : memref<16x128xbf16, #tpu.memory_space<vmem>>, vector<16x128xbf16>,
      %cst_13 = arith.constant dense<0.000000e+00> : vector<128xf32>
      %15 = vector.multi_reduction <add>, %12, %cst_13 [0] : vector<16x128xf32> to vector<128xf32>
      %16 = vector.shape_cast %15 : vector<128xf32> to vector<1x128xf32>
      %cst_14 = arith.constant 1.250000e-01 : f32
      %17 = vector.broadcast %cst_14 : f32 to vector<1x128xf32>
      %18 = arith.mulf %16, %17 : vector<1x128xf32>
      %19 = arith.mulf %12, %12 : vector<16x128xf32>
      %cst_15 = arith.constant dense<0.000000e+00> : vector<128xf32>
      %20 = vector.multi_reduction <add>, %19, %cst_15 [0] : vector<16x128xf32> to vector<128xf32>
      %21 = vector.shape_cast %20 : vector<128xf32> to vector<1x128xf32>
      %cst_16 = arith.constant 1.250000e-01 : f32
      %22 = vector.broadcast %cst_16 : f32 to vector<1x128xf32>
      %23 = arith.mulf %21, %22 : vector<1x128xf32>
      %24 = vector.shape_cast %18 : vector<1x128xf32> to vector<1x128xf32>
      %25 = vector.broadcast %24 : vector<1x128xf32> to vector<8x128xf32>
      %c0_17 = arith.constant 0 : index
      %c0_18 = arith.constant 0 : index
      %26 = vector.load %arg6[%c0_17, %c0_18] : memref<8x128xf32, #tpu.memory_space<vmem>>, vector<8x128xf32>
      tpu.vector_store %arg6[%c0_17, %c0_18], %25 {strides = array<i32>} : memref<8x128xf32, #tpu.memory_space<vmem>>, vector<8x128xf32>,
      %27 = vector.shape_cast %23 : vector<1x128xf32> to vector<1x128xf32>
      %28 = vector.broadcast %27 : vector<1x128xf32> to vector<8x128xf32>
      %c0_19 = arith.constant 0 : index
      %c0_20 = arith.constant 0 : index
      %29 = vector.load %arg7[%c0_19, %c0_20] : memref<8x128xf32, #tpu.memory_space<vmem>>, vector<8x128xf32>
      tpu.vector_store %arg7[%c0_19, %c0_20], %28 {strides = array<i32>} : memref<8x128xf32, #tpu.memory_space<vmem>>, vector<8x128xf32>,
    } else {
    }
    return
  }
  func.func @transform_0(%arg0: i32, %arg1: i32, %arg2: i32) -> (i32, i32) {
    %c0_i32 = arith.constant 0 : i32
    return %arg0, %arg2 : i32, i32
  }
  func.func @transform_1(%arg0: i32, %arg1: i32, %arg2: i32) -> (i32, i32) {
    %c0_i32 = arith.constant 0 : i32
    return %arg2, %arg1 : i32, i32
  }
  func.func @transform_2(%arg0: i32, %arg1: i32, %arg2: i32) -> (i32, i32) {
    %c0_i32 = arith.constant 0 : i32
    return %arg0, %arg1 : i32, i32
  }
  func.func @transform_3(%arg0: i32, %arg1: i32, %arg2: i32) -> (i32, i32) {
    %c0_i32 = arith.constant 0 : i32
    return %arg0, %arg1 : i32, i32
  }
  func.func @transform_4(%arg0: i32, %arg1: i32, %arg2: i32) -> (i32, i32) {
    %c0_i32 = arith.constant 0 : i32
    return %arg0, %arg1 : i32, i32
  }
}

module attributes {stable_mosaic.version = 11 : i64} {
  func.func @_bn_apply_kernel(%arg0: i32, %arg1: memref<16x128xbf16, #tpu.memory_space<vmem>>, %arg2: memref<1x128xf32, #tpu.memory_space<vmem>>, %arg3: memref<1x128xf32, #tpu.memory_space<vmem>>, %arg4: memref<16x128xbf16, #tpu.memory_space<vmem>>) attributes {dimension_semantics = [#tpu.dimension_semantics<parallel>], iteration_bounds = array<i64: 1>, scalar_prefetch = 0 : i64, scratch_operands = 0 : i64, tpu.core_type = #tpu.core_type<tc>, window_params = [{transform_indices = @transform_0, window_bounds = array<i64: 16, 128>}, {pipeline_mode = #tpu.pipeline_mode<synchronous>, transform_indices = @transform_1, window_bounds = array<i64: 1, 128>}, {pipeline_mode = #tpu.pipeline_mode<synchronous>, transform_indices = @transform_2, window_bounds = array<i64: 1, 128>}, {transform_indices = @transform_3, window_bounds = array<i64: 16, 128>}]} {
    %c0 = arith.constant 0 : index
    %c0_0 = arith.constant 0 : index
    %0 = vector.load %arg1[%c0, %c0_0] : memref<16x128xbf16, #tpu.memory_space<vmem>>, vector<16x128xbf16>
    %1 = arith.extf %0 : vector<16x128xbf16> to vector<16x128xf32>
    %c0_1 = arith.constant 0 : index
    %c0_2 = arith.constant 0 : index
    %2 = vector.load %arg2[%c0_1, %c0_2] : memref<1x128xf32, #tpu.memory_space<vmem>>, vector<1x128xf32>
    %3 = vector.broadcast %2 : vector<1x128xf32> to vector<16x128xf32>
    %4 = arith.mulf %1, %3 : vector<16x128xf32>
    %c0_3 = arith.constant 0 : index
    %c0_4 = arith.constant 0 : index
    %5 = vector.load %arg3[%c0_3, %c0_4] : memref<1x128xf32, #tpu.memory_space<vmem>>, vector<1x128xf32>
    %6 = vector.broadcast %5 : vector<1x128xf32> to vector<16x128xf32>
    %7 = arith.addf %4, %6 : vector<16x128xf32>
    %cst = arith.constant 0.000000e+00 : f32
    %8 = vector.broadcast %cst : f32 to vector<16x128xf32>
    %9 = arith.maximumf %7, %8 : vector<16x128xf32>
    %10 = arith.truncf %9 : vector<16x128xf32> to vector<16x128xbf16>
    %c0_5 = arith.constant 0 : index
    %c0_6 = arith.constant 0 : index
    %11 = vector.load %arg4[%c0_5, %c0_6] : memref<16x128xbf16, #tpu.memory_space<vmem>>, vector<16x128xbf16>
    tpu.vector_store %arg4[%c0_5, %c0_6], %10 {strides = array<i32>} : memref<16x128xbf16, #tpu.memory_space<vmem>>, vector<16x128xbf16>,
    return
  }
  func.func @transform_0(%arg0: i32) -> (i32, i32) {
    %c0_i32 = arith.constant 0 : i32
    %c0_i32_0 = arith.constant 0 : i32
    return %arg0, %c0_i32 : i32, i32
  }
  func.func @transform_1(%arg0: i32) -> (i32, i32) {
    %c0_i32 = arith.constant 0 : i32
    %c0_i32_0 = arith.constant 0 : i32
    %c0_i32_1 = arith.constant 0 : i32
    return %c0_i32, %c0_i32_0 : i32, i32
  }
  func.func @transform_2(%arg0: i32) -> (i32, i32) {
    %c0_i32 = arith.constant 0 : i32
    %c0_i32_0 = arith.constant 0 : i32
    %c0_i32_1 = arith.constant 0 : i32
    return %c0_i32, %c0_i32_0 : i32, i32
  }
  func.func @transform_3(%arg0: i32) -> (i32, i32) {
    %c0_i32 = arith.constant 0 : i32
    %c0_i32_0 = arith.constant 0 : i32
    return %arg0, %c0_i32 : i32, i32
  }
}

module attributes {stable_mosaic.version = 11 : i64} {
  func.func @_matmul_stats_kernel(%arg0: i32, %arg1: i32, %arg2: i32, %arg3: memref<16x128xbf16, #tpu.memory_space<vmem>>, %arg4: memref<128x128xbf16, #tpu.memory_space<vmem>>, %arg5: memref<16x128xbf16, #tpu.memory_space<vmem>>, %arg6: memref<8x128xf32, #tpu.memory_space<vmem>>, %arg7: memref<8x128xf32, #tpu.memory_space<vmem>>, %arg8: memref<16x128xf32, #tpu.memory_space<vmem>>) attributes {dimension_semantics = [#tpu.dimension_semantics<parallel>, #tpu.dimension_semantics<parallel>, #tpu.dimension_semantics<arbitrary>], iteration_bounds = array<i64: 1, 1, 27>, scalar_prefetch = 0 : i64, scratch_operands = 1 : i64, tpu.core_type = #tpu.core_type<tc>, window_params = [{transform_indices = @transform_0, window_bounds = array<i64: 16, 128>}, {transform_indices = @transform_1, window_bounds = array<i64: 128, 128>}, {transform_indices = @transform_2, window_bounds = array<i64: 16, 128>}, {transform_indices = @transform_3, window_bounds = array<i64: 8, 128>}, {transform_indices = @transform_4, window_bounds = array<i64: 8, 128>}]} {
    %c0_i32 = arith.constant 0 : i32
    %0 = arith.cmpi eq, %arg2, %c0_i32 : i32
    %1 = arith.extui %0 : i1 to i32
    %c0_i32_0 = arith.constant 0 : i32
    %2 = arith.cmpi ne, %1, %c0_i32_0 : i32
    scf.if %2 {
      %cst_9 = arith.constant 0.000000e+00 : f32
      %12 = vector.broadcast %cst_9 : f32 to vector<16x128xf32>
      %c0_10 = arith.constant 0 : index
      %c0_11 = arith.constant 0 : index
      %13 = vector.load %arg8[%c0_10, %c0_11] : memref<16x128xf32, #tpu.memory_space<vmem>>, vector<16x128xf32>
      tpu.vector_store %arg8[%c0_10, %c0_11], %12 {strides = array<i32>} : memref<16x128xf32, #tpu.memory_space<vmem>>, vector<16x128xf32>,
    } else {
    }
    %c0 = arith.constant 0 : index
    %c0_1 = arith.constant 0 : index
    %3 = vector.load %arg8[%c0, %c0_1] : memref<16x128xf32, #tpu.memory_space<vmem>>, vector<16x128xf32>
    %c0_2 = arith.constant 0 : index
    %c0_3 = arith.constant 0 : index
    %4 = vector.load %arg3[%c0_2, %c0_3] : memref<16x128xbf16, #tpu.memory_space<vmem>>, vector<16x128xbf16>
    %c0_4 = arith.constant 0 : index
    %c0_5 = arith.constant 0 : index
    %5 = vector.load %arg4[%c0_4, %c0_5] : memref<128x128xbf16, #tpu.memory_space<vmem>>, vector<128x128xbf16>
    %cst = arith.constant dense<0.000000e+00> : vector<16x128xf32>
    %6 = tpu.matmul %4, %5, %cst {dimension_numbers = #tpu.dot_dimension_numbers<[1], [0], [0], [1], [0, 0, 1, 1], [], []>} : vector<16x128xbf16>, vector<128x128xbf16>, vector<16x128xf32> -> vector<16x128xf32>
    %7 = arith.addf %3, %6 : vector<16x128xf32>
    %c0_6 = arith.constant 0 : index
    %c0_7 = arith.constant 0 : index
    %8 = vector.load %arg8[%c0_6, %c0_7] : memref<16x128xf32, #tpu.memory_space<vmem>>, vector<16x128xf32>
    tpu.vector_store %arg8[%c0_6, %c0_7], %7 {strides = array<i32>} : memref<16x128xf32, #tpu.memory_space<vmem>>, vector<16x128xf32>,
    %c26_i32 = arith.constant 26 : i32
    %9 = arith.cmpi eq, %arg2, %c26_i32 : i32
    %10 = arith.extui %9 : i1 to i32
    %c0_i32_8 = arith.constant 0 : i32
    %11 = arith.cmpi ne, %10, %c0_i32_8 : i32
    scf.if %11 {
      %c0_9 = arith.constant 0 : index
      %c0_10 = arith.constant 0 : index
      %12 = vector.load %arg8[%c0_9, %c0_10] : memref<16x128xf32, #tpu.memory_space<vmem>>, vector<16x128xf32>
      %13 = arith.truncf %12 : vector<16x128xf32> to vector<16x128xbf16>
      %c0_11 = arith.constant 0 : index
      %c0_12 = arith.constant 0 : index
      %14 = vector.load %arg5[%c0_11, %c0_12] : memref<16x128xbf16, #tpu.memory_space<vmem>>, vector<16x128xbf16>
      tpu.vector_store %arg5[%c0_11, %c0_12], %13 {strides = array<i32>} : memref<16x128xbf16, #tpu.memory_space<vmem>>, vector<16x128xbf16>,
      %cst_13 = arith.constant dense<0.000000e+00> : vector<128xf32>
      %15 = vector.multi_reduction <add>, %12, %cst_13 [0] : vector<16x128xf32> to vector<128xf32>
      %16 = vector.shape_cast %15 : vector<128xf32> to vector<1x128xf32>
      %cst_14 = arith.constant 1.250000e-01 : f32
      %17 = vector.broadcast %cst_14 : f32 to vector<1x128xf32>
      %18 = arith.mulf %16, %17 : vector<1x128xf32>
      %19 = arith.mulf %12, %12 : vector<16x128xf32>
      %cst_15 = arith.constant dense<0.000000e+00> : vector<128xf32>
      %20 = vector.multi_reduction <add>, %19, %cst_15 [0] : vector<16x128xf32> to vector<128xf32>
      %21 = vector.shape_cast %20 : vector<128xf32> to vector<1x128xf32>
      %cst_16 = arith.constant 1.250000e-01 : f32
      %22 = vector.broadcast %cst_16 : f32 to vector<1x128xf32>
      %23 = arith.mulf %21, %22 : vector<1x128xf32>
      %24 = vector.shape_cast %18 : vector<1x128xf32> to vector<1x128xf32>
      %25 = vector.broadcast %24 : vector<1x128xf32> to vector<8x128xf32>
      %c0_17 = arith.constant 0 : index
      %c0_18 = arith.constant 0 : index
      %26 = vector.load %arg6[%c0_17, %c0_18] : memref<8x128xf32, #tpu.memory_space<vmem>>, vector<8x128xf32>
      tpu.vector_store %arg6[%c0_17, %c0_18], %25 {strides = array<i32>} : memref<8x128xf32, #tpu.memory_space<vmem>>, vector<8x128xf32>,
      %27 = vector.shape_cast %23 : vector<1x128xf32> to vector<1x128xf32>
      %28 = vector.broadcast %27 : vector<1x128xf32> to vector<8x128xf32>
      %c0_19 = arith.constant 0 : index
      %c0_20 = arith.constant 0 : index
      %29 = vector.load %arg7[%c0_19, %c0_20] : memref<8x128xf32, #tpu.memory_space<vmem>>, vector<8x128xf32>
      tpu.vector_store %arg7[%c0_19, %c0_20], %28 {strides = array<i32>} : memref<8x128xf32, #tpu.memory_space<vmem>>, vector<8x128xf32>,
    } else {
    }
    return
  }
  func.func @transform_0(%arg0: i32, %arg1: i32, %arg2: i32) -> (i32, i32) {
    %c0_i32 = arith.constant 0 : i32
    return %arg0, %arg2 : i32, i32
  }
  func.func @transform_1(%arg0: i32, %arg1: i32, %arg2: i32) -> (i32, i32) {
    %c0_i32 = arith.constant 0 : i32
    return %arg2, %arg1 : i32, i32
  }
  func.func @transform_2(%arg0: i32, %arg1: i32, %arg2: i32) -> (i32, i32) {
    %c0_i32 = arith.constant 0 : i32
    return %arg0, %arg1 : i32, i32
  }
  func.func @transform_3(%arg0: i32, %arg1: i32, %arg2: i32) -> (i32, i32) {
    %c0_i32 = arith.constant 0 : i32
    return %arg0, %arg1 : i32, i32
  }
  func.func @transform_4(%arg0: i32, %arg1: i32, %arg2: i32) -> (i32, i32) {
    %c0_i32 = arith.constant 0 : i32
    return %arg0, %arg1 : i32, i32
  }
}

module attributes {stable_mosaic.version = 11 : i64} {
  func.func @_matmul_stats_kernel(%arg0: i32, %arg1: i32, %arg2: i32, %arg3: memref<16x64xbf16, #tpu.memory_space<vmem>>, %arg4: memref<64x128xbf16, #tpu.memory_space<vmem>>, %arg5: memref<16x128xbf16, #tpu.memory_space<vmem>>, %arg6: memref<8x128xf32, #tpu.memory_space<vmem>>, %arg7: memref<8x128xf32, #tpu.memory_space<vmem>>, %arg8: memref<16x128xf32, #tpu.memory_space<vmem>>) attributes {dimension_semantics = [#tpu.dimension_semantics<parallel>, #tpu.dimension_semantics<parallel>, #tpu.dimension_semantics<arbitrary>], iteration_bounds = array<i64: 1, 1, 1>, scalar_prefetch = 0 : i64, scratch_operands = 1 : i64, tpu.core_type = #tpu.core_type<tc>, window_params = [{transform_indices = @transform_0, window_bounds = array<i64: 16, 64>}, {transform_indices = @transform_1, window_bounds = array<i64: 64, 128>}, {transform_indices = @transform_2, window_bounds = array<i64: 16, 128>}, {transform_indices = @transform_3, window_bounds = array<i64: 8, 128>}, {transform_indices = @transform_4, window_bounds = array<i64: 8, 128>}]} {
    %c0_i32 = arith.constant 0 : i32
    %0 = arith.cmpi eq, %arg2, %c0_i32 : i32
    %1 = arith.extui %0 : i1 to i32
    %c0_i32_0 = arith.constant 0 : i32
    %2 = arith.cmpi ne, %1, %c0_i32_0 : i32
    scf.if %2 {
      %cst_10 = arith.constant 0.000000e+00 : f32
      %12 = vector.broadcast %cst_10 : f32 to vector<16x128xf32>
      %c0_11 = arith.constant 0 : index
      %c0_12 = arith.constant 0 : index
      %13 = vector.load %arg8[%c0_11, %c0_12] : memref<16x128xf32, #tpu.memory_space<vmem>>, vector<16x128xf32>
      tpu.vector_store %arg8[%c0_11, %c0_12], %12 {strides = array<i32>} : memref<16x128xf32, #tpu.memory_space<vmem>>, vector<16x128xf32>,
    } else {
    }
    %c0 = arith.constant 0 : index
    %c0_1 = arith.constant 0 : index
    %3 = vector.load %arg8[%c0, %c0_1] : memref<16x128xf32, #tpu.memory_space<vmem>>, vector<16x128xf32>
    %c0_2 = arith.constant 0 : index
    %c0_3 = arith.constant 0 : index
    %4 = vector.load %arg3[%c0_2, %c0_3] : memref<16x64xbf16, #tpu.memory_space<vmem>>, vector<16x64xbf16>
    %c0_4 = arith.constant 0 : index
    %c0_5 = arith.constant 0 : index
    %5 = vector.load %arg4[%c0_4, %c0_5] : memref<64x128xbf16, #tpu.memory_space<vmem>>, vector<64x128xbf16>
    %cst = arith.constant dense<0.000000e+00> : vector<16x128xf32>
    %6 = tpu.matmul %4, %5, %cst {dimension_numbers = #tpu.dot_dimension_numbers<[1], [0], [0], [1], [0, 0, 1, 1], [], []>} : vector<16x64xbf16>, vector<64x128xbf16>, vector<16x128xf32> -> vector<16x128xf32>
    %7 = arith.addf %3, %6 : vector<16x128xf32>
    %c0_6 = arith.constant 0 : index
    %c0_7 = arith.constant 0 : index
    %8 = vector.load %arg8[%c0_6, %c0_7] : memref<16x128xf32, #tpu.memory_space<vmem>>, vector<16x128xf32>
    tpu.vector_store %arg8[%c0_6, %c0_7], %7 {strides = array<i32>} : memref<16x128xf32, #tpu.memory_space<vmem>>, vector<16x128xf32>,
    %c0_i32_8 = arith.constant 0 : i32
    %9 = arith.cmpi eq, %arg2, %c0_i32_8 : i32
    %10 = arith.extui %9 : i1 to i32
    %c0_i32_9 = arith.constant 0 : i32
    %11 = arith.cmpi ne, %10, %c0_i32_9 : i32
    scf.if %11 {
      %c0_10 = arith.constant 0 : index
      %c0_11 = arith.constant 0 : index
      %12 = vector.load %arg8[%c0_10, %c0_11] : memref<16x128xf32, #tpu.memory_space<vmem>>, vector<16x128xf32>
      %13 = arith.truncf %12 : vector<16x128xf32> to vector<16x128xbf16>
      %c0_12 = arith.constant 0 : index
      %c0_13 = arith.constant 0 : index
      %14 = vector.load %arg5[%c0_12, %c0_13] : memref<16x128xbf16, #tpu.memory_space<vmem>>, vector<16x128xbf16>
      tpu.vector_store %arg5[%c0_12, %c0_13], %13 {strides = array<i32>} : memref<16x128xbf16, #tpu.memory_space<vmem>>, vector<16x128xbf16>,
      %cst_14 = arith.constant dense<0.000000e+00> : vector<128xf32>
      %15 = vector.multi_reduction <add>, %12, %cst_14 [0] : vector<16x128xf32> to vector<128xf32>
      %16 = vector.shape_cast %15 : vector<128xf32> to vector<1x128xf32>
      %cst_15 = arith.constant 1.250000e-01 : f32
      %17 = vector.broadcast %cst_15 : f32 to vector<1x128xf32>
      %18 = arith.mulf %16, %17 : vector<1x128xf32>
      %19 = arith.mulf %12, %12 : vector<16x128xf32>
      %cst_16 = arith.constant dense<0.000000e+00> : vector<128xf32>
      %20 = vector.multi_reduction <add>, %19, %cst_16 [0] : vector<16x128xf32> to vector<128xf32>
      %21 = vector.shape_cast %20 : vector<128xf32> to vector<1x128xf32>
      %cst_17 = arith.constant 1.250000e-01 : f32
      %22 = vector.broadcast %cst_17 : f32 to vector<1x128xf32>
      %23 = arith.mulf %21, %22 : vector<1x128xf32>
      %24 = vector.shape_cast %18 : vector<1x128xf32> to vector<1x128xf32>
      %25 = vector.broadcast %24 : vector<1x128xf32> to vector<8x128xf32>
      %c0_18 = arith.constant 0 : index
      %c0_19 = arith.constant 0 : index
      %26 = vector.load %arg6[%c0_18, %c0_19] : memref<8x128xf32, #tpu.memory_space<vmem>>, vector<8x128xf32>
      tpu.vector_store %arg6[%c0_18, %c0_19], %25 {strides = array<i32>} : memref<8x128xf32, #tpu.memory_space<vmem>>, vector<8x128xf32>,
      %27 = vector.shape_cast %23 : vector<1x128xf32> to vector<1x128xf32>
      %28 = vector.broadcast %27 : vector<1x128xf32> to vector<8x128xf32>
      %c0_20 = arith.constant 0 : index
      %c0_21 = arith.constant 0 : index
      %29 = vector.load %arg7[%c0_20, %c0_21] : memref<8x128xf32, #tpu.memory_space<vmem>>, vector<8x128xf32>
      tpu.vector_store %arg7[%c0_20, %c0_21], %28 {strides = array<i32>} : memref<8x128xf32, #tpu.memory_space<vmem>>, vector<8x128xf32>,
    } else {
    }
    return
  }
  func.func @transform_0(%arg0: i32, %arg1: i32, %arg2: i32) -> (i32, i32) {
    %c0_i32 = arith.constant 0 : i32
    return %arg0, %arg2 : i32, i32
  }
  func.func @transform_1(%arg0: i32, %arg1: i32, %arg2: i32) -> (i32, i32) {
    %c0_i32 = arith.constant 0 : i32
    return %arg2, %arg1 : i32, i32
  }
  func.func @transform_2(%arg0: i32, %arg1: i32, %arg2: i32) -> (i32, i32) {
    %c0_i32 = arith.constant 0 : i32
    return %arg0, %arg1 : i32, i32
  }
  func.func @transform_3(%arg0: i32, %arg1: i32, %arg2: i32) -> (i32, i32) {
    %c0_i32 = arith.constant 0 : i32
    return %arg0, %arg1 : i32, i32
  }
  func.func @transform_4(%arg0: i32, %arg1: i32, %arg2: i32) -> (i32, i32) {
    %c0_i32 = arith.constant 0 : i32
    return %arg0, %arg1 : i32, i32
  }
}

module attributes {stable_mosaic.version = 11 : i64} {
  func.func @_bn_apply_res2_kernel(%arg0: i32, %arg1: memref<16x128xbf16, #tpu.memory_space<vmem>>, %arg2: memref<16x128xbf16, #tpu.memory_space<vmem>>, %arg3: memref<1x128xf32, #tpu.memory_space<vmem>>, %arg4: memref<1x128xf32, #tpu.memory_space<vmem>>, %arg5: memref<1x128xf32, #tpu.memory_space<vmem>>, %arg6: memref<1x128xf32, #tpu.memory_space<vmem>>, %arg7: memref<16x128xbf16, #tpu.memory_space<vmem>>) attributes {dimension_semantics = [#tpu.dimension_semantics<parallel>], iteration_bounds = array<i64: 1>, scalar_prefetch = 0 : i64, scratch_operands = 0 : i64, tpu.core_type = #tpu.core_type<tc>, window_params = [{transform_indices = @transform_0, window_bounds = array<i64: 16, 128>}, {transform_indices = @transform_1, window_bounds = array<i64: 16, 128>}, {pipeline_mode = #tpu.pipeline_mode<synchronous>, transform_indices = @transform_2, window_bounds = array<i64: 1, 128>}, {pipeline_mode = #tpu.pipeline_mode<synchronous>, transform_indices = @transform_3, window_bounds = array<i64: 1, 128>}, {pipeline_mode = #tpu.pipeline_mode<synchronous>, transform_indices = @transform_4, window_bounds = array<i64: 1, 128>}, {pipeline_mode = #tpu.pipeline_mode<synchronous>, transform_indices = @transform_5, window_bounds = array<i64: 1, 128>}, {transform_indices = @transform_6, window_bounds = array<i64: 16, 128>}]} {
    %c0 = arith.constant 0 : index
    %c0_0 = arith.constant 0 : index
    %0 = vector.load %arg1[%c0, %c0_0] : memref<16x128xbf16, #tpu.memory_space<vmem>>, vector<16x128xbf16>
    %1 = arith.extf %0 : vector<16x128xbf16> to vector<16x128xf32>
    %c0_1 = arith.constant 0 : index
    %c0_2 = arith.constant 0 : index
    %2 = vector.load %arg3[%c0_1, %c0_2] : memref<1x128xf32, #tpu.memory_space<vmem>>, vector<1x128xf32>
    %3 = vector.broadcast %2 : vector<1x128xf32> to vector<16x128xf32>
    %4 = arith.mulf %1, %3 : vector<16x128xf32>
    %c0_3 = arith.constant 0 : index
    %c0_4 = arith.constant 0 : index
    %5 = vector.load %arg4[%c0_3, %c0_4] : memref<1x128xf32, #tpu.memory_space<vmem>>, vector<1x128xf32>
    %6 = vector.broadcast %5 : vector<1x128xf32> to vector<16x128xf32>
    %7 = arith.addf %4, %6 : vector<16x128xf32>
    %c0_5 = arith.constant 0 : index
    %c0_6 = arith.constant 0 : index
    %8 = vector.load %arg2[%c0_5, %c0_6] : memref<16x128xbf16, #tpu.memory_space<vmem>>, vector<16x128xbf16>
    %9 = arith.extf %8 : vector<16x128xbf16> to vector<16x128xf32>
    %c0_7 = arith.constant 0 : index
    %c0_8 = arith.constant 0 : index
    %10 = vector.load %arg5[%c0_7, %c0_8] : memref<1x128xf32, #tpu.memory_space<vmem>>, vector<1x128xf32>
    %11 = vector.broadcast %10 : vector<1x128xf32> to vector<16x128xf32>
    %12 = arith.mulf %9, %11 : vector<16x128xf32>
    %13 = arith.addf %7, %12 : vector<16x128xf32>
    %c0_9 = arith.constant 0 : index
    %c0_10 = arith.constant 0 : index
    %14 = vector.load %arg6[%c0_9, %c0_10] : memref<1x128xf32, #tpu.memory_space<vmem>>, vector<1x128xf32>
    %15 = vector.broadcast %14 : vector<1x128xf32> to vector<16x128xf32>
    %16 = arith.addf %13, %15 : vector<16x128xf32>
    %cst = arith.constant 0.000000e+00 : f32
    %17 = vector.broadcast %cst : f32 to vector<16x128xf32>
    %18 = arith.maximumf %16, %17 : vector<16x128xf32>
    %19 = arith.truncf %18 : vector<16x128xf32> to vector<16x128xbf16>
    %c0_11 = arith.constant 0 : index
    %c0_12 = arith.constant 0 : index
    %20 = vector.load %arg7[%c0_11, %c0_12] : memref<16x128xbf16, #tpu.memory_space<vmem>>, vector<16x128xbf16>
    tpu.vector_store %arg7[%c0_11, %c0_12], %19 {strides = array<i32>} : memref<16x128xbf16, #tpu.memory_space<vmem>>, vector<16x128xbf16>,
    return
  }
  func.func @transform_0(%arg0: i32) -> (i32, i32) {
    %c0_i32 = arith.constant 0 : i32
    %c0_i32_0 = arith.constant 0 : i32
    return %arg0, %c0_i32 : i32, i32
  }
  func.func @transform_1(%arg0: i32) -> (i32, i32) {
    %c0_i32 = arith.constant 0 : i32
    %c0_i32_0 = arith.constant 0 : i32
    return %arg0, %c0_i32 : i32, i32
  }
  func.func @transform_2(%arg0: i32) -> (i32, i32) {
    %c0_i32 = arith.constant 0 : i32
    %c0_i32_0 = arith.constant 0 : i32
    %c0_i32_1 = arith.constant 0 : i32
    return %c0_i32, %c0_i32_0 : i32, i32
  }
  func.func @transform_3(%arg0: i32) -> (i32, i32) {
    %c0_i32 = arith.constant 0 : i32
    %c0_i32_0 = arith.constant 0 : i32
    %c0_i32_1 = arith.constant 0 : i32
    return %c0_i32, %c0_i32_0 : i32, i32
  }
  func.func @transform_4(%arg0: i32) -> (i32, i32) {
    %c0_i32 = arith.constant 0 : i32
    %c0_i32_0 = arith.constant 0 : i32
    %c0_i32_1 = arith.constant 0 : i32
    return %c0_i32, %c0_i32_0 : i32, i32
  }
  func.func @transform_5(%arg0: i32) -> (i32, i32) {
    %c0_i32 = arith.constant 0 : i32
    %c0_i32_0 = arith.constant 0 : i32
    %c0_i32_1 = arith.constant 0 : i32
    return %c0_i32, %c0_i32_0 : i32, i32
  }
  func.func @transform_6(%arg0: i32) -> (i32, i32) {
    %c0_i32 = arith.constant 0 : i32
    %c0_i32_0 = arith.constant 0 : i32
    return %arg0, %c0_i32 : i32, i32
  }
}

module attributes {stable_mosaic.version = 11 : i64} {
  func.func @_matmul_stats_kernel(%arg0: i32, %arg1: i32, %arg2: i32, %arg3: memref<16x128xbf16, #tpu.memory_space<vmem>>, %arg4: memref<128x256xbf16, #tpu.memory_space<vmem>>, %arg5: memref<16x256xbf16, #tpu.memory_space<vmem>>, %arg6: memref<8x256xf32, #tpu.memory_space<vmem>>, %arg7: memref<8x256xf32, #tpu.memory_space<vmem>>, %arg8: memref<16x256xf32, #tpu.memory_space<vmem>>) attributes {dimension_semantics = [#tpu.dimension_semantics<parallel>, #tpu.dimension_semantics<parallel>, #tpu.dimension_semantics<arbitrary>], iteration_bounds = array<i64: 1, 1, 1>, scalar_prefetch = 0 : i64, scratch_operands = 1 : i64, tpu.core_type = #tpu.core_type<tc>, window_params = [{transform_indices = @transform_0, window_bounds = array<i64: 16, 128>}, {transform_indices = @transform_1, window_bounds = array<i64: 128, 256>}, {transform_indices = @transform_2, window_bounds = array<i64: 16, 256>}, {transform_indices = @transform_3, window_bounds = array<i64: 8, 256>}, {transform_indices = @transform_4, window_bounds = array<i64: 8, 256>}]} {
    %c0_i32 = arith.constant 0 : i32
    %0 = arith.cmpi eq, %arg2, %c0_i32 : i32
    %1 = arith.extui %0 : i1 to i32
    %c0_i32_0 = arith.constant 0 : i32
    %2 = arith.cmpi ne, %1, %c0_i32_0 : i32
    scf.if %2 {
      %cst_10 = arith.constant 0.000000e+00 : f32
      %12 = vector.broadcast %cst_10 : f32 to vector<16x256xf32>
      %c0_11 = arith.constant 0 : index
      %c0_12 = arith.constant 0 : index
      %13 = vector.load %arg8[%c0_11, %c0_12] : memref<16x256xf32, #tpu.memory_space<vmem>>, vector<16x256xf32>
      tpu.vector_store %arg8[%c0_11, %c0_12], %12 {strides = array<i32>} : memref<16x256xf32, #tpu.memory_space<vmem>>, vector<16x256xf32>,
    } else {
    }
    %c0 = arith.constant 0 : index
    %c0_1 = arith.constant 0 : index
    %3 = vector.load %arg8[%c0, %c0_1] : memref<16x256xf32, #tpu.memory_space<vmem>>, vector<16x256xf32>
    %c0_2 = arith.constant 0 : index
    %c0_3 = arith.constant 0 : index
    %4 = vector.load %arg3[%c0_2, %c0_3] : memref<16x128xbf16, #tpu.memory_space<vmem>>, vector<16x128xbf16>
    %c0_4 = arith.constant 0 : index
    %c0_5 = arith.constant 0 : index
    %5 = vector.load %arg4[%c0_4, %c0_5] : memref<128x256xbf16, #tpu.memory_space<vmem>>, vector<128x256xbf16>
    %cst = arith.constant dense<0.000000e+00> : vector<16x256xf32>
    %6 = tpu.matmul %4, %5, %cst {dimension_numbers = #tpu.dot_dimension_numbers<[1], [0], [0], [1], [0, 0, 1, 1], [], []>} : vector<16x128xbf16>, vector<128x256xbf16>, vector<16x256xf32> -> vector<16x256xf32>
    %7 = arith.addf %3, %6 : vector<16x256xf32>
    %c0_6 = arith.constant 0 : index
    %c0_7 = arith.constant 0 : index
    %8 = vector.load %arg8[%c0_6, %c0_7] : memref<16x256xf32, #tpu.memory_space<vmem>>, vector<16x256xf32>
    tpu.vector_store %arg8[%c0_6, %c0_7], %7 {strides = array<i32>} : memref<16x256xf32, #tpu.memory_space<vmem>>, vector<16x256xf32>,
    %c0_i32_8 = arith.constant 0 : i32
    %9 = arith.cmpi eq, %arg2, %c0_i32_8 : i32
    %10 = arith.extui %9 : i1 to i32
    %c0_i32_9 = arith.constant 0 : i32
    %11 = arith.cmpi ne, %10, %c0_i32_9 : i32
    scf.if %11 {
      %c0_10 = arith.constant 0 : index
      %c0_11 = arith.constant 0 : index
      %12 = vector.load %arg8[%c0_10, %c0_11] : memref<16x256xf32, #tpu.memory_space<vmem>>, vector<16x256xf32>
      %13 = arith.truncf %12 : vector<16x256xf32> to vector<16x256xbf16>
      %c0_12 = arith.constant 0 : index
      %c0_13 = arith.constant 0 : index
      %14 = vector.load %arg5[%c0_12, %c0_13] : memref<16x256xbf16, #tpu.memory_space<vmem>>, vector<16x256xbf16>
      tpu.vector_store %arg5[%c0_12, %c0_13], %13 {strides = array<i32>} : memref<16x256xbf16, #tpu.memory_space<vmem>>, vector<16x256xbf16>,
      %cst_14 = arith.constant dense<0.000000e+00> : vector<256xf32>
      %15 = vector.multi_reduction <add>, %12, %cst_14 [0] : vector<16x256xf32> to vector<256xf32>
      %16 = vector.shape_cast %15 : vector<256xf32> to vector<1x256xf32>
      %cst_15 = arith.constant 1.250000e-01 : f32
      %17 = vector.broadcast %cst_15 : f32 to vector<1x256xf32>
      %18 = arith.mulf %16, %17 : vector<1x256xf32>
      %19 = arith.mulf %12, %12 : vector<16x256xf32>
      %cst_16 = arith.constant dense<0.000000e+00> : vector<256xf32>
      %20 = vector.multi_reduction <add>, %19, %cst_16 [0] : vector<16x256xf32> to vector<256xf32>
      %21 = vector.shape_cast %20 : vector<256xf32> to vector<1x256xf32>
      %cst_17 = arith.constant 1.250000e-01 : f32
      %22 = vector.broadcast %cst_17 : f32 to vector<1x256xf32>
      %23 = arith.mulf %21, %22 : vector<1x256xf32>
      %24 = vector.shape_cast %18 : vector<1x256xf32> to vector<1x256xf32>
      %25 = vector.broadcast %24 : vector<1x256xf32> to vector<8x256xf32>
      %c0_18 = arith.constant 0 : index
      %c0_19 = arith.constant 0 : index
      %26 = vector.load %arg6[%c0_18, %c0_19] : memref<8x256xf32, #tpu.memory_space<vmem>>, vector<8x256xf32>
      tpu.vector_store %arg6[%c0_18, %c0_19], %25 {strides = array<i32>} : memref<8x256xf32, #tpu.memory_space<vmem>>, vector<8x256xf32>,
      %27 = vector.shape_cast %23 : vector<1x256xf32> to vector<1x256xf32>
      %28 = vector.broadcast %27 : vector<1x256xf32> to vector<8x256xf32>
      %c0_20 = arith.constant 0 : index
      %c0_21 = arith.constant 0 : index
      %29 = vector.load %arg7[%c0_20, %c0_21] : memref<8x256xf32, #tpu.memory_space<vmem>>, vector<8x256xf32>
      tpu.vector_store %arg7[%c0_20, %c0_21], %28 {strides = array<i32>} : memref<8x256xf32, #tpu.memory_space<vmem>>, vector<8x256xf32>,
    } else {
    }
    return
  }
  func.func @transform_0(%arg0: i32, %arg1: i32, %arg2: i32) -> (i32, i32) {
    %c0_i32 = arith.constant 0 : i32
    return %arg0, %arg2 : i32, i32
  }
  func.func @transform_1(%arg0: i32, %arg1: i32, %arg2: i32) -> (i32, i32) {
    %c0_i32 = arith.constant 0 : i32
    return %arg2, %arg1 : i32, i32
  }
  func.func @transform_2(%arg0: i32, %arg1: i32, %arg2: i32) -> (i32, i32) {
    %c0_i32 = arith.constant 0 : i32
    return %arg0, %arg1 : i32, i32
  }
  func.func @transform_3(%arg0: i32, %arg1: i32, %arg2: i32) -> (i32, i32) {
    %c0_i32 = arith.constant 0 : i32
    return %arg0, %arg1 : i32, i32
  }
  func.func @transform_4(%arg0: i32, %arg1: i32, %arg2: i32) -> (i32, i32) {
    %c0_i32 = arith.constant 0 : i32
    return %arg0, %arg1 : i32, i32
  }
}

module attributes {stable_mosaic.version = 11 : i64} {
  func.func @_matmul_stats_kernel(%arg0: i32, %arg1: i32, %arg2: i32, %arg3: memref<16x128xbf16, #tpu.memory_space<vmem>>, %arg4: memref<128x256xbf16, #tpu.memory_space<vmem>>, %arg5: memref<16x256xbf16, #tpu.memory_space<vmem>>, %arg6: memref<8x256xf32, #tpu.memory_space<vmem>>, %arg7: memref<8x256xf32, #tpu.memory_space<vmem>>, %arg8: memref<16x256xf32, #tpu.memory_space<vmem>>) attributes {dimension_semantics = [#tpu.dimension_semantics<parallel>, #tpu.dimension_semantics<parallel>, #tpu.dimension_semantics<arbitrary>], iteration_bounds = array<i64: 1, 1, 27>, scalar_prefetch = 0 : i64, scratch_operands = 1 : i64, tpu.core_type = #tpu.core_type<tc>, window_params = [{transform_indices = @transform_0, window_bounds = array<i64: 16, 128>}, {transform_indices = @transform_1, window_bounds = array<i64: 128, 256>}, {transform_indices = @transform_2, window_bounds = array<i64: 16, 256>}, {transform_indices = @transform_3, window_bounds = array<i64: 8, 256>}, {transform_indices = @transform_4, window_bounds = array<i64: 8, 256>}]} {
    %c0_i32 = arith.constant 0 : i32
    %0 = arith.cmpi eq, %arg2, %c0_i32 : i32
    %1 = arith.extui %0 : i1 to i32
    %c0_i32_0 = arith.constant 0 : i32
    %2 = arith.cmpi ne, %1, %c0_i32_0 : i32
    scf.if %2 {
      %cst_9 = arith.constant 0.000000e+00 : f32
      %12 = vector.broadcast %cst_9 : f32 to vector<16x256xf32>
      %c0_10 = arith.constant 0 : index
      %c0_11 = arith.constant 0 : index
      %13 = vector.load %arg8[%c0_10, %c0_11] : memref<16x256xf32, #tpu.memory_space<vmem>>, vector<16x256xf32>
      tpu.vector_store %arg8[%c0_10, %c0_11], %12 {strides = array<i32>} : memref<16x256xf32, #tpu.memory_space<vmem>>, vector<16x256xf32>,
    } else {
    }
    %c0 = arith.constant 0 : index
    %c0_1 = arith.constant 0 : index
    %3 = vector.load %arg8[%c0, %c0_1] : memref<16x256xf32, #tpu.memory_space<vmem>>, vector<16x256xf32>
    %c0_2 = arith.constant 0 : index
    %c0_3 = arith.constant 0 : index
    %4 = vector.load %arg3[%c0_2, %c0_3] : memref<16x128xbf16, #tpu.memory_space<vmem>>, vector<16x128xbf16>
    %c0_4 = arith.constant 0 : index
    %c0_5 = arith.constant 0 : index
    %5 = vector.load %arg4[%c0_4, %c0_5] : memref<128x256xbf16, #tpu.memory_space<vmem>>, vector<128x256xbf16>
    %cst = arith.constant dense<0.000000e+00> : vector<16x256xf32>
    %6 = tpu.matmul %4, %5, %cst {dimension_numbers = #tpu.dot_dimension_numbers<[1], [0], [0], [1], [0, 0, 1, 1], [], []>} : vector<16x128xbf16>, vector<128x256xbf16>, vector<16x256xf32> -> vector<16x256xf32>
    %7 = arith.addf %3, %6 : vector<16x256xf32>
    %c0_6 = arith.constant 0 : index
    %c0_7 = arith.constant 0 : index
    %8 = vector.load %arg8[%c0_6, %c0_7] : memref<16x256xf32, #tpu.memory_space<vmem>>, vector<16x256xf32>
    tpu.vector_store %arg8[%c0_6, %c0_7], %7 {strides = array<i32>} : memref<16x256xf32, #tpu.memory_space<vmem>>, vector<16x256xf32>,
    %c26_i32 = arith.constant 26 : i32
    %9 = arith.cmpi eq, %arg2, %c26_i32 : i32
    %10 = arith.extui %9 : i1 to i32
    %c0_i32_8 = arith.constant 0 : i32
    %11 = arith.cmpi ne, %10, %c0_i32_8 : i32
    scf.if %11 {
      %c0_9 = arith.constant 0 : index
      %c0_10 = arith.constant 0 : index
      %12 = vector.load %arg8[%c0_9, %c0_10] : memref<16x256xf32, #tpu.memory_space<vmem>>, vector<16x256xf32>
      %13 = arith.truncf %12 : vector<16x256xf32> to vector<16x256xbf16>
      %c0_11 = arith.constant 0 : index
      %c0_12 = arith.constant 0 : index
      %14 = vector.load %arg5[%c0_11, %c0_12] : memref<16x256xbf16, #tpu.memory_space<vmem>>, vector<16x256xbf16>
      tpu.vector_store %arg5[%c0_11, %c0_12], %13 {strides = array<i32>} : memref<16x256xbf16, #tpu.memory_space<vmem>>, vector<16x256xbf16>,
      %cst_13 = arith.constant dense<0.000000e+00> : vector<256xf32>
      %15 = vector.multi_reduction <add>, %12, %cst_13 [0] : vector<16x256xf32> to vector<256xf32>
      %16 = vector.shape_cast %15 : vector<256xf32> to vector<1x256xf32>
      %cst_14 = arith.constant 1.250000e-01 : f32
      %17 = vector.broadcast %cst_14 : f32 to vector<1x256xf32>
      %18 = arith.mulf %16, %17 : vector<1x256xf32>
      %19 = arith.mulf %12, %12 : vector<16x256xf32>
      %cst_15 = arith.constant dense<0.000000e+00> : vector<256xf32>
      %20 = vector.multi_reduction <add>, %19, %cst_15 [0] : vector<16x256xf32> to vector<256xf32>
      %21 = vector.shape_cast %20 : vector<256xf32> to vector<1x256xf32>
      %cst_16 = arith.constant 1.250000e-01 : f32
      %22 = vector.broadcast %cst_16 : f32 to vector<1x256xf32>
      %23 = arith.mulf %21, %22 : vector<1x256xf32>
      %24 = vector.shape_cast %18 : vector<1x256xf32> to vector<1x256xf32>
      %25 = vector.broadcast %24 : vector<1x256xf32> to vector<8x256xf32>
      %c0_17 = arith.constant 0 : index
      %c0_18 = arith.constant 0 : index
      %26 = vector.load %arg6[%c0_17, %c0_18] : memref<8x256xf32, #tpu.memory_space<vmem>>, vector<8x256xf32>
      tpu.vector_store %arg6[%c0_17, %c0_18], %25 {strides = array<i32>} : memref<8x256xf32, #tpu.memory_space<vmem>>, vector<8x256xf32>,
      %27 = vector.shape_cast %23 : vector<1x256xf32> to vector<1x256xf32>
      %28 = vector.broadcast %27 : vector<1x256xf32> to vector<8x256xf32>
      %c0_19 = arith.constant 0 : index
      %c0_20 = arith.constant 0 : index
      %29 = vector.load %arg7[%c0_19, %c0_20] : memref<8x256xf32, #tpu.memory_space<vmem>>, vector<8x256xf32>
      tpu.vector_store %arg7[%c0_19, %c0_20], %28 {strides = array<i32>} : memref<8x256xf32, #tpu.memory_space<vmem>>, vector<8x256xf32>,
    } else {
    }
    return
  }
  func.func @transform_0(%arg0: i32, %arg1: i32, %arg2: i32) -> (i32, i32) {
    %c0_i32 = arith.constant 0 : i32
    return %arg0, %arg2 : i32, i32
  }
  func.func @transform_1(%arg0: i32, %arg1: i32, %arg2: i32) -> (i32, i32) {
    %c0_i32 = arith.constant 0 : i32
    return %arg2, %arg1 : i32, i32
  }
  func.func @transform_2(%arg0: i32, %arg1: i32, %arg2: i32) -> (i32, i32) {
    %c0_i32 = arith.constant 0 : i32
    return %arg0, %arg1 : i32, i32
  }
  func.func @transform_3(%arg0: i32, %arg1: i32, %arg2: i32) -> (i32, i32) {
    %c0_i32 = arith.constant 0 : i32
    return %arg0, %arg1 : i32, i32
  }
  func.func @transform_4(%arg0: i32, %arg1: i32, %arg2: i32) -> (i32, i32) {
    %c0_i32 = arith.constant 0 : i32
    return %arg0, %arg1 : i32, i32
  }
}

module attributes {stable_mosaic.version = 11 : i64} {
  func.func @_bn_apply_kernel(%arg0: i32, %arg1: memref<16x256xbf16, #tpu.memory_space<vmem>>, %arg2: memref<1x256xf32, #tpu.memory_space<vmem>>, %arg3: memref<1x256xf32, #tpu.memory_space<vmem>>, %arg4: memref<16x256xbf16, #tpu.memory_space<vmem>>) attributes {dimension_semantics = [#tpu.dimension_semantics<parallel>], iteration_bounds = array<i64: 1>, scalar_prefetch = 0 : i64, scratch_operands = 0 : i64, tpu.core_type = #tpu.core_type<tc>, window_params = [{transform_indices = @transform_0, window_bounds = array<i64: 16, 256>}, {pipeline_mode = #tpu.pipeline_mode<synchronous>, transform_indices = @transform_1, window_bounds = array<i64: 1, 256>}, {pipeline_mode = #tpu.pipeline_mode<synchronous>, transform_indices = @transform_2, window_bounds = array<i64: 1, 256>}, {transform_indices = @transform_3, window_bounds = array<i64: 16, 256>}]} {
    %c0 = arith.constant 0 : index
    %c0_0 = arith.constant 0 : index
    %0 = vector.load %arg1[%c0, %c0_0] : memref<16x256xbf16, #tpu.memory_space<vmem>>, vector<16x256xbf16>
    %1 = arith.extf %0 : vector<16x256xbf16> to vector<16x256xf32>
    %c0_1 = arith.constant 0 : index
    %c0_2 = arith.constant 0 : index
    %2 = vector.load %arg2[%c0_1, %c0_2] : memref<1x256xf32, #tpu.memory_space<vmem>>, vector<1x256xf32>
    %3 = vector.broadcast %2 : vector<1x256xf32> to vector<16x256xf32>
    %4 = arith.mulf %1, %3 : vector<16x256xf32>
    %c0_3 = arith.constant 0 : index
    %c0_4 = arith.constant 0 : index
    %5 = vector.load %arg3[%c0_3, %c0_4] : memref<1x256xf32, #tpu.memory_space<vmem>>, vector<1x256xf32>
    %6 = vector.broadcast %5 : vector<1x256xf32> to vector<16x256xf32>
    %7 = arith.addf %4, %6 : vector<16x256xf32>
    %cst = arith.constant 0.000000e+00 : f32
    %8 = vector.broadcast %cst : f32 to vector<16x256xf32>
    %9 = arith.maximumf %7, %8 : vector<16x256xf32>
    %10 = arith.truncf %9 : vector<16x256xf32> to vector<16x256xbf16>
    %c0_5 = arith.constant 0 : index
    %c0_6 = arith.constant 0 : index
    %11 = vector.load %arg4[%c0_5, %c0_6] : memref<16x256xbf16, #tpu.memory_space<vmem>>, vector<16x256xbf16>
    tpu.vector_store %arg4[%c0_5, %c0_6], %10 {strides = array<i32>} : memref<16x256xbf16, #tpu.memory_space<vmem>>, vector<16x256xbf16>,
    return
  }
  func.func @transform_0(%arg0: i32) -> (i32, i32) {
    %c0_i32 = arith.constant 0 : i32
    %c0_i32_0 = arith.constant 0 : i32
    return %arg0, %c0_i32 : i32, i32
  }
  func.func @transform_1(%arg0: i32) -> (i32, i32) {
    %c0_i32 = arith.constant 0 : i32
    %c0_i32_0 = arith.constant 0 : i32
    %c0_i32_1 = arith.constant 0 : i32
    return %c0_i32, %c0_i32_0 : i32, i32
  }
  func.func @transform_2(%arg0: i32) -> (i32, i32) {
    %c0_i32 = arith.constant 0 : i32
    %c0_i32_0 = arith.constant 0 : i32
    %c0_i32_1 = arith.constant 0 : i32
    return %c0_i32, %c0_i32_0 : i32, i32
  }
  func.func @transform_3(%arg0: i32) -> (i32, i32) {
    %c0_i32 = arith.constant 0 : i32
    %c0_i32_0 = arith.constant 0 : i32
    return %arg0, %c0_i32 : i32, i32
  }
}

module attributes {stable_mosaic.version = 11 : i64} {
  func.func @_matmul_stats_kernel(%arg0: i32, %arg1: i32, %arg2: i32, %arg3: memref<16x256xbf16, #tpu.memory_space<vmem>>, %arg4: memref<256x256xbf16, #tpu.memory_space<vmem>>, %arg5: memref<16x256xbf16, #tpu.memory_space<vmem>>, %arg6: memref<8x256xf32, #tpu.memory_space<vmem>>, %arg7: memref<8x256xf32, #tpu.memory_space<vmem>>, %arg8: memref<16x256xf32, #tpu.memory_space<vmem>>) attributes {dimension_semantics = [#tpu.dimension_semantics<parallel>, #tpu.dimension_semantics<parallel>, #tpu.dimension_semantics<arbitrary>], iteration_bounds = array<i64: 1, 1, 27>, scalar_prefetch = 0 : i64, scratch_operands = 1 : i64, tpu.core_type = #tpu.core_type<tc>, window_params = [{transform_indices = @transform_0, window_bounds = array<i64: 16, 256>}, {transform_indices = @transform_1, window_bounds = array<i64: 256, 256>}, {transform_indices = @transform_2, window_bounds = array<i64: 16, 256>}, {transform_indices = @transform_3, window_bounds = array<i64: 8, 256>}, {transform_indices = @transform_4, window_bounds = array<i64: 8, 256>}]} {
    %c0_i32 = arith.constant 0 : i32
    %0 = arith.cmpi eq, %arg2, %c0_i32 : i32
    %1 = arith.extui %0 : i1 to i32
    %c0_i32_0 = arith.constant 0 : i32
    %2 = arith.cmpi ne, %1, %c0_i32_0 : i32
    scf.if %2 {
      %cst_9 = arith.constant 0.000000e+00 : f32
      %12 = vector.broadcast %cst_9 : f32 to vector<16x256xf32>
      %c0_10 = arith.constant 0 : index
      %c0_11 = arith.constant 0 : index
      %13 = vector.load %arg8[%c0_10, %c0_11] : memref<16x256xf32, #tpu.memory_space<vmem>>, vector<16x256xf32>
      tpu.vector_store %arg8[%c0_10, %c0_11], %12 {strides = array<i32>} : memref<16x256xf32, #tpu.memory_space<vmem>>, vector<16x256xf32>,
    } else {
    }
    %c0 = arith.constant 0 : index
    %c0_1 = arith.constant 0 : index
    %3 = vector.load %arg8[%c0, %c0_1] : memref<16x256xf32, #tpu.memory_space<vmem>>, vector<16x256xf32>
    %c0_2 = arith.constant 0 : index
    %c0_3 = arith.constant 0 : index
    %4 = vector.load %arg3[%c0_2, %c0_3] : memref<16x256xbf16, #tpu.memory_space<vmem>>, vector<16x256xbf16>
    %c0_4 = arith.constant 0 : index
    %c0_5 = arith.constant 0 : index
    %5 = vector.load %arg4[%c0_4, %c0_5] : memref<256x256xbf16, #tpu.memory_space<vmem>>, vector<256x256xbf16>
    %cst = arith.constant dense<0.000000e+00> : vector<16x256xf32>
    %6 = tpu.matmul %4, %5, %cst {dimension_numbers = #tpu.dot_dimension_numbers<[1], [0], [0], [1], [0, 0, 1, 1], [], []>} : vector<16x256xbf16>, vector<256x256xbf16>, vector<16x256xf32> -> vector<16x256xf32>
    %7 = arith.addf %3, %6 : vector<16x256xf32>
    %c0_6 = arith.constant 0 : index
    %c0_7 = arith.constant 0 : index
    %8 = vector.load %arg8[%c0_6, %c0_7] : memref<16x256xf32, #tpu.memory_space<vmem>>, vector<16x256xf32>
    tpu.vector_store %arg8[%c0_6, %c0_7], %7 {strides = array<i32>} : memref<16x256xf32, #tpu.memory_space<vmem>>, vector<16x256xf32>,
    %c26_i32 = arith.constant 26 : i32
    %9 = arith.cmpi eq, %arg2, %c26_i32 : i32
    %10 = arith.extui %9 : i1 to i32
    %c0_i32_8 = arith.constant 0 : i32
    %11 = arith.cmpi ne, %10, %c0_i32_8 : i32
    scf.if %11 {
      %c0_9 = arith.constant 0 : index
      %c0_10 = arith.constant 0 : index
      %12 = vector.load %arg8[%c0_9, %c0_10] : memref<16x256xf32, #tpu.memory_space<vmem>>, vector<16x256xf32>
      %13 = arith.truncf %12 : vector<16x256xf32> to vector<16x256xbf16>
      %c0_11 = arith.constant 0 : index
      %c0_12 = arith.constant 0 : index
      %14 = vector.load %arg5[%c0_11, %c0_12] : memref<16x256xbf16, #tpu.memory_space<vmem>>, vector<16x256xbf16>
      tpu.vector_store %arg5[%c0_11, %c0_12], %13 {strides = array<i32>} : memref<16x256xbf16, #tpu.memory_space<vmem>>, vector<16x256xbf16>,
      %cst_13 = arith.constant dense<0.000000e+00> : vector<256xf32>
      %15 = vector.multi_reduction <add>, %12, %cst_13 [0] : vector<16x256xf32> to vector<256xf32>
      %16 = vector.shape_cast %15 : vector<256xf32> to vector<1x256xf32>
      %cst_14 = arith.constant 1.250000e-01 : f32
      %17 = vector.broadcast %cst_14 : f32 to vector<1x256xf32>
      %18 = arith.mulf %16, %17 : vector<1x256xf32>
      %19 = arith.mulf %12, %12 : vector<16x256xf32>
      %cst_15 = arith.constant dense<0.000000e+00> : vector<256xf32>
      %20 = vector.multi_reduction <add>, %19, %cst_15 [0] : vector<16x256xf32> to vector<256xf32>
      %21 = vector.shape_cast %20 : vector<256xf32> to vector<1x256xf32>
      %cst_16 = arith.constant 1.250000e-01 : f32
      %22 = vector.broadcast %cst_16 : f32 to vector<1x256xf32>
      %23 = arith.mulf %21, %22 : vector<1x256xf32>
      %24 = vector.shape_cast %18 : vector<1x256xf32> to vector<1x256xf32>
      %25 = vector.broadcast %24 : vector<1x256xf32> to vector<8x256xf32>
      %c0_17 = arith.constant 0 : index
      %c0_18 = arith.constant 0 : index
      %26 = vector.load %arg6[%c0_17, %c0_18] : memref<8x256xf32, #tpu.memory_space<vmem>>, vector<8x256xf32>
      tpu.vector_store %arg6[%c0_17, %c0_18], %25 {strides = array<i32>} : memref<8x256xf32, #tpu.memory_space<vmem>>, vector<8x256xf32>,
      %27 = vector.shape_cast %23 : vector<1x256xf32> to vector<1x256xf32>
      %28 = vector.broadcast %27 : vector<1x256xf32> to vector<8x256xf32>
      %c0_19 = arith.constant 0 : index
      %c0_20 = arith.constant 0 : index
      %29 = vector.load %arg7[%c0_19, %c0_20] : memref<8x256xf32, #tpu.memory_space<vmem>>, vector<8x256xf32>
      tpu.vector_store %arg7[%c0_19, %c0_20], %28 {strides = array<i32>} : memref<8x256xf32, #tpu.memory_space<vmem>>, vector<8x256xf32>,
    } else {
    }
    return
  }
  func.func @transform_0(%arg0: i32, %arg1: i32, %arg2: i32) -> (i32, i32) {
    %c0_i32 = arith.constant 0 : i32
    return %arg0, %arg2 : i32, i32
  }
  func.func @transform_1(%arg0: i32, %arg1: i32, %arg2: i32) -> (i32, i32) {
    %c0_i32 = arith.constant 0 : i32
    return %arg2, %arg1 : i32, i32
  }
  func.func @transform_2(%arg0: i32, %arg1: i32, %arg2: i32) -> (i32, i32) {
    %c0_i32 = arith.constant 0 : i32
    return %arg0, %arg1 : i32, i32
  }
  func.func @transform_3(%arg0: i32, %arg1: i32, %arg2: i32) -> (i32, i32) {
    %c0_i32 = arith.constant 0 : i32
    return %arg0, %arg1 : i32, i32
  }
  func.func @transform_4(%arg0: i32, %arg1: i32, %arg2: i32) -> (i32, i32) {
    %c0_i32 = arith.constant 0 : i32
    return %arg0, %arg1 : i32, i32
  }
}

module attributes {stable_mosaic.version = 11 : i64} {
  func.func @_bn_apply_res2_kernel(%arg0: i32, %arg1: memref<16x256xbf16, #tpu.memory_space<vmem>>, %arg2: memref<16x256xbf16, #tpu.memory_space<vmem>>, %arg3: memref<1x256xf32, #tpu.memory_space<vmem>>, %arg4: memref<1x256xf32, #tpu.memory_space<vmem>>, %arg5: memref<1x256xf32, #tpu.memory_space<vmem>>, %arg6: memref<1x256xf32, #tpu.memory_space<vmem>>, %arg7: memref<16x256xbf16, #tpu.memory_space<vmem>>) attributes {dimension_semantics = [#tpu.dimension_semantics<parallel>], iteration_bounds = array<i64: 1>, scalar_prefetch = 0 : i64, scratch_operands = 0 : i64, tpu.core_type = #tpu.core_type<tc>, window_params = [{transform_indices = @transform_0, window_bounds = array<i64: 16, 256>}, {transform_indices = @transform_1, window_bounds = array<i64: 16, 256>}, {pipeline_mode = #tpu.pipeline_mode<synchronous>, transform_indices = @transform_2, window_bounds = array<i64: 1, 256>}, {pipeline_mode = #tpu.pipeline_mode<synchronous>, transform_indices = @transform_3, window_bounds = array<i64: 1, 256>}, {pipeline_mode = #tpu.pipeline_mode<synchronous>, transform_indices = @transform_4, window_bounds = array<i64: 1, 256>}, {pipeline_mode = #tpu.pipeline_mode<synchronous>, transform_indices = @transform_5, window_bounds = array<i64: 1, 256>}, {transform_indices = @transform_6, window_bounds = array<i64: 16, 256>}]} {
    %c0 = arith.constant 0 : index
    %c0_0 = arith.constant 0 : index
    %0 = vector.load %arg1[%c0, %c0_0] : memref<16x256xbf16, #tpu.memory_space<vmem>>, vector<16x256xbf16>
    %1 = arith.extf %0 : vector<16x256xbf16> to vector<16x256xf32>
    %c0_1 = arith.constant 0 : index
    %c0_2 = arith.constant 0 : index
    %2 = vector.load %arg3[%c0_1, %c0_2] : memref<1x256xf32, #tpu.memory_space<vmem>>, vector<1x256xf32>
    %3 = vector.broadcast %2 : vector<1x256xf32> to vector<16x256xf32>
    %4 = arith.mulf %1, %3 : vector<16x256xf32>
    %c0_3 = arith.constant 0 : index
    %c0_4 = arith.constant 0 : index
    %5 = vector.load %arg4[%c0_3, %c0_4] : memref<1x256xf32, #tpu.memory_space<vmem>>, vector<1x256xf32>
    %6 = vector.broadcast %5 : vector<1x256xf32> to vector<16x256xf32>
    %7 = arith.addf %4, %6 : vector<16x256xf32>
    %c0_5 = arith.constant 0 : index
    %c0_6 = arith.constant 0 : index
    %8 = vector.load %arg2[%c0_5, %c0_6] : memref<16x256xbf16, #tpu.memory_space<vmem>>, vector<16x256xbf16>
    %9 = arith.extf %8 : vector<16x256xbf16> to vector<16x256xf32>
    %c0_7 = arith.constant 0 : index
    %c0_8 = arith.constant 0 : index
    %10 = vector.load %arg5[%c0_7, %c0_8] : memref<1x256xf32, #tpu.memory_space<vmem>>, vector<1x256xf32>
    %11 = vector.broadcast %10 : vector<1x256xf32> to vector<16x256xf32>
    %12 = arith.mulf %9, %11 : vector<16x256xf32>
    %13 = arith.addf %7, %12 : vector<16x256xf32>
    %c0_9 = arith.constant 0 : index
    %c0_10 = arith.constant 0 : index
    %14 = vector.load %arg6[%c0_9, %c0_10] : memref<1x256xf32, #tpu.memory_space<vmem>>, vector<1x256xf32>
    %15 = vector.broadcast %14 : vector<1x256xf32> to vector<16x256xf32>
    %16 = arith.addf %13, %15 : vector<16x256xf32>
    %cst = arith.constant 0.000000e+00 : f32
    %17 = vector.broadcast %cst : f32 to vector<16x256xf32>
    %18 = arith.maximumf %16, %17 : vector<16x256xf32>
    %19 = arith.truncf %18 : vector<16x256xf32> to vector<16x256xbf16>
    %c0_11 = arith.constant 0 : index
    %c0_12 = arith.constant 0 : index
    %20 = vector.load %arg7[%c0_11, %c0_12] : memref<16x256xbf16, #tpu.memory_space<vmem>>, vector<16x256xbf16>
    tpu.vector_store %arg7[%c0_11, %c0_12], %19 {strides = array<i32>} : memref<16x256xbf16, #tpu.memory_space<vmem>>, vector<16x256xbf16>,
    return
  }
  func.func @transform_0(%arg0: i32) -> (i32, i32) {
    %c0_i32 = arith.constant 0 : i32
    %c0_i32_0 = arith.constant 0 : i32
    return %arg0, %c0_i32 : i32, i32
  }
  func.func @transform_1(%arg0: i32) -> (i32, i32) {
    %c0_i32 = arith.constant 0 : i32
    %c0_i32_0 = arith.constant 0 : i32
    return %arg0, %c0_i32 : i32, i32
  }
  func.func @transform_2(%arg0: i32) -> (i32, i32) {
    %c0_i32 = arith.constant 0 : i32
    %c0_i32_0 = arith.constant 0 : i32
    %c0_i32_1 = arith.constant 0 : i32
    return %c0_i32, %c0_i32_0 : i32, i32
  }
  func.func @transform_3(%arg0: i32) -> (i32, i32) {
    %c0_i32 = arith.constant 0 : i32
    %c0_i32_0 = arith.constant 0 : i32
    %c0_i32_1 = arith.constant 0 : i32
    return %c0_i32, %c0_i32_0 : i32, i32
  }
  func.func @transform_4(%arg0: i32) -> (i32, i32) {
    %c0_i32 = arith.constant 0 : i32
    %c0_i32_0 = arith.constant 0 : i32
    %c0_i32_1 = arith.constant 0 : i32
    return %c0_i32, %c0_i32_0 : i32, i32
  }
  func.func @transform_5(%arg0: i32) -> (i32, i32) {
    %c0_i32 = arith.constant 0 : i32
    %c0_i32_0 = arith.constant 0 : i32
    %c0_i32_1 = arith.constant 0 : i32
    return %c0_i32, %c0_i32_0 : i32, i32
  }
  func.func @transform_6(%arg0: i32) -> (i32, i32) {
    %c0_i32 = arith.constant 0 : i32
    %c0_i32_0 = arith.constant 0 : i32
    return %arg0, %c0_i32 : i32, i32
  }
}

module attributes {stable_mosaic.version = 11 : i64} {
  func.func @_matmul_stats_kernel(%arg0: i32, %arg1: i32, %arg2: i32, %arg3: memref<16x256xbf16, #tpu.memory_space<vmem>>, %arg4: memref<256x256xbf16, #tpu.memory_space<vmem>>, %arg5: memref<16x256xbf16, #tpu.memory_space<vmem>>, %arg6: memref<8x256xf32, #tpu.memory_space<vmem>>, %arg7: memref<8x256xf32, #tpu.memory_space<vmem>>, %arg8: memref<16x256xf32, #tpu.memory_space<vmem>>) attributes {dimension_semantics = [#tpu.dimension_semantics<parallel>, #tpu.dimension_semantics<parallel>, #tpu.dimension_semantics<arbitrary>], iteration_bounds = array<i64: 1, 2, 1>, scalar_prefetch = 0 : i64, scratch_operands = 1 : i64, tpu.core_type = #tpu.core_type<tc>, window_params = [{transform_indices = @transform_0, window_bounds = array<i64: 16, 256>}, {transform_indices = @transform_1, window_bounds = array<i64: 256, 256>}, {transform_indices = @transform_2, window_bounds = array<i64: 16, 256>}, {transform_indices = @transform_3, window_bounds = array<i64: 8, 256>}, {transform_indices = @transform_4, window_bounds = array<i64: 8, 256>}]} {
    %c0_i32 = arith.constant 0 : i32
    %0 = arith.cmpi eq, %arg2, %c0_i32 : i32
    %1 = arith.extui %0 : i1 to i32
    %c0_i32_0 = arith.constant 0 : i32
    %2 = arith.cmpi ne, %1, %c0_i32_0 : i32
    scf.if %2 {
      %cst_10 = arith.constant 0.000000e+00 : f32
      %12 = vector.broadcast %cst_10 : f32 to vector<16x256xf32>
      %c0_11 = arith.constant 0 : index
      %c0_12 = arith.constant 0 : index
      %13 = vector.load %arg8[%c0_11, %c0_12] : memref<16x256xf32, #tpu.memory_space<vmem>>, vector<16x256xf32>
      tpu.vector_store %arg8[%c0_11, %c0_12], %12 {strides = array<i32>} : memref<16x256xf32, #tpu.memory_space<vmem>>, vector<16x256xf32>,
    } else {
    }
    %c0 = arith.constant 0 : index
    %c0_1 = arith.constant 0 : index
    %3 = vector.load %arg8[%c0, %c0_1] : memref<16x256xf32, #tpu.memory_space<vmem>>, vector<16x256xf32>
    %c0_2 = arith.constant 0 : index
    %c0_3 = arith.constant 0 : index
    %4 = vector.load %arg3[%c0_2, %c0_3] : memref<16x256xbf16, #tpu.memory_space<vmem>>, vector<16x256xbf16>
    %c0_4 = arith.constant 0 : index
    %c0_5 = arith.constant 0 : index
    %5 = vector.load %arg4[%c0_4, %c0_5] : memref<256x256xbf16, #tpu.memory_space<vmem>>, vector<256x256xbf16>
    %cst = arith.constant dense<0.000000e+00> : vector<16x256xf32>
    %6 = tpu.matmul %4, %5, %cst {dimension_numbers = #tpu.dot_dimension_numbers<[1], [0], [0], [1], [0, 0, 1, 1], [], []>} : vector<16x256xbf16>, vector<256x256xbf16>, vector<16x256xf32> -> vector<16x256xf32>
    %7 = arith.addf %3, %6 : vector<16x256xf32>
    %c0_6 = arith.constant 0 : index
    %c0_7 = arith.constant 0 : index
    %8 = vector.load %arg8[%c0_6, %c0_7] : memref<16x256xf32, #tpu.memory_space<vmem>>, vector<16x256xf32>
    tpu.vector_store %arg8[%c0_6, %c0_7], %7 {strides = array<i32>} : memref<16x256xf32, #tpu.memory_space<vmem>>, vector<16x256xf32>,
    %c0_i32_8 = arith.constant 0 : i32
    %9 = arith.cmpi eq, %arg2, %c0_i32_8 : i32
    %10 = arith.extui %9 : i1 to i32
    %c0_i32_9 = arith.constant 0 : i32
    %11 = arith.cmpi ne, %10, %c0_i32_9 : i32
    scf.if %11 {
      %c0_10 = arith.constant 0 : index
      %c0_11 = arith.constant 0 : index
      %12 = vector.load %arg8[%c0_10, %c0_11] : memref<16x256xf32, #tpu.memory_space<vmem>>, vector<16x256xf32>
      %13 = arith.truncf %12 : vector<16x256xf32> to vector<16x256xbf16>
      %c0_12 = arith.constant 0 : index
      %c0_13 = arith.constant 0 : index
      %14 = vector.load %arg5[%c0_12, %c0_13] : memref<16x256xbf16, #tpu.memory_space<vmem>>, vector<16x256xbf16>
      tpu.vector_store %arg5[%c0_12, %c0_13], %13 {strides = array<i32>} : memref<16x256xbf16, #tpu.memory_space<vmem>>, vector<16x256xbf16>,
      %cst_14 = arith.constant dense<0.000000e+00> : vector<256xf32>
      %15 = vector.multi_reduction <add>, %12, %cst_14 [0] : vector<16x256xf32> to vector<256xf32>
      %16 = vector.shape_cast %15 : vector<256xf32> to vector<1x256xf32>
      %cst_15 = arith.constant 1.250000e-01 : f32
      %17 = vector.broadcast %cst_15 : f32 to vector<1x256xf32>
      %18 = arith.mulf %16, %17 : vector<1x256xf32>
      %19 = arith.mulf %12, %12 : vector<16x256xf32>
      %cst_16 = arith.constant dense<0.000000e+00> : vector<256xf32>
      %20 = vector.multi_reduction <add>, %19, %cst_16 [0] : vector<16x256xf32> to vector<256xf32>
      %21 = vector.shape_cast %20 : vector<256xf32> to vector<1x256xf32>
      %cst_17 = arith.constant 1.250000e-01 : f32
      %22 = vector.broadcast %cst_17 : f32 to vector<1x256xf32>
      %23 = arith.mulf %21, %22 : vector<1x256xf32>
      %24 = vector.shape_cast %18 : vector<1x256xf32> to vector<1x256xf32>
      %25 = vector.broadcast %24 : vector<1x256xf32> to vector<8x256xf32>
      %c0_18 = arith.constant 0 : index
      %c0_19 = arith.constant 0 : index
      %26 = vector.load %arg6[%c0_18, %c0_19] : memref<8x256xf32, #tpu.memory_space<vmem>>, vector<8x256xf32>
      tpu.vector_store %arg6[%c0_18, %c0_19], %25 {strides = array<i32>} : memref<8x256xf32, #tpu.memory_space<vmem>>, vector<8x256xf32>,
      %27 = vector.shape_cast %23 : vector<1x256xf32> to vector<1x256xf32>
      %28 = vector.broadcast %27 : vector<1x256xf32> to vector<8x256xf32>
      %c0_20 = arith.constant 0 : index
      %c0_21 = arith.constant 0 : index
      %29 = vector.load %arg7[%c0_20, %c0_21] : memref<8x256xf32, #tpu.memory_space<vmem>>, vector<8x256xf32>
      tpu.vector_store %arg7[%c0_20, %c0_21], %28 {strides = array<i32>} : memref<8x256xf32, #tpu.memory_space<vmem>>, vector<8x256xf32>,
    } else {
    }
    return
  }
  func.func @transform_0(%arg0: i32, %arg1: i32, %arg2: i32) -> (i32, i32) {
    %c0_i32 = arith.constant 0 : i32
    return %arg0, %arg2 : i32, i32
  }
  func.func @transform_1(%arg0: i32, %arg1: i32, %arg2: i32) -> (i32, i32) {
    %c0_i32 = arith.constant 0 : i32
    return %arg2, %arg1 : i32, i32
  }
  func.func @transform_2(%arg0: i32, %arg1: i32, %arg2: i32) -> (i32, i32) {
    %c0_i32 = arith.constant 0 : i32
    return %arg0, %arg1 : i32, i32
  }
  func.func @transform_3(%arg0: i32, %arg1: i32, %arg2: i32) -> (i32, i32) {
    %c0_i32 = arith.constant 0 : i32
    return %arg0, %arg1 : i32, i32
  }
  func.func @transform_4(%arg0: i32, %arg1: i32, %arg2: i32) -> (i32, i32) {
    %c0_i32 = arith.constant 0 : i32
    return %arg0, %arg1 : i32, i32
  }
}

module attributes {stable_mosaic.version = 11 : i64} {
  func.func @_bn_apply_kernel(%arg0: i32, %arg1: memref<16x512xbf16, #tpu.memory_space<vmem>>, %arg2: memref<1x512xf32, #tpu.memory_space<vmem>>, %arg3: memref<1x512xf32, #tpu.memory_space<vmem>>, %arg4: memref<16x512xbf16, #tpu.memory_space<vmem>>) attributes {dimension_semantics = [#tpu.dimension_semantics<parallel>], iteration_bounds = array<i64: 1>, scalar_prefetch = 0 : i64, scratch_operands = 0 : i64, tpu.core_type = #tpu.core_type<tc>, window_params = [{transform_indices = @transform_0, window_bounds = array<i64: 16, 512>}, {pipeline_mode = #tpu.pipeline_mode<synchronous>, transform_indices = @transform_1, window_bounds = array<i64: 1, 512>}, {pipeline_mode = #tpu.pipeline_mode<synchronous>, transform_indices = @transform_2, window_bounds = array<i64: 1, 512>}, {transform_indices = @transform_3, window_bounds = array<i64: 16, 512>}]} {
    %c0 = arith.constant 0 : index
    %c0_0 = arith.constant 0 : index
    %0 = vector.load %arg1[%c0, %c0_0] : memref<16x512xbf16, #tpu.memory_space<vmem>>, vector<16x512xbf16>
    %1 = arith.extf %0 : vector<16x512xbf16> to vector<16x512xf32>
    %c0_1 = arith.constant 0 : index
    %c0_2 = arith.constant 0 : index
    %2 = vector.load %arg2[%c0_1, %c0_2] : memref<1x512xf32, #tpu.memory_space<vmem>>, vector<1x512xf32>
    %3 = vector.broadcast %2 : vector<1x512xf32> to vector<16x512xf32>
    %4 = arith.mulf %1, %3 : vector<16x512xf32>
    %c0_3 = arith.constant 0 : index
    %c0_4 = arith.constant 0 : index
    %5 = vector.load %arg3[%c0_3, %c0_4] : memref<1x512xf32, #tpu.memory_space<vmem>>, vector<1x512xf32>
    %6 = vector.broadcast %5 : vector<1x512xf32> to vector<16x512xf32>
    %7 = arith.addf %4, %6 : vector<16x512xf32>
    %cst = arith.constant 0.000000e+00 : f32
    %8 = vector.broadcast %cst : f32 to vector<16x512xf32>
    %9 = arith.maximumf %7, %8 : vector<16x512xf32>
    %10 = arith.truncf %9 : vector<16x512xf32> to vector<16x512xbf16>
    %c0_5 = arith.constant 0 : index
    %c0_6 = arith.constant 0 : index
    %11 = vector.load %arg4[%c0_5, %c0_6] : memref<16x512xbf16, #tpu.memory_space<vmem>>, vector<16x512xbf16>
    tpu.vector_store %arg4[%c0_5, %c0_6], %10 {strides = array<i32>} : memref<16x512xbf16, #tpu.memory_space<vmem>>, vector<16x512xbf16>,
    return
  }
  func.func @transform_0(%arg0: i32) -> (i32, i32) {
    %c0_i32 = arith.constant 0 : i32
    %c0_i32_0 = arith.constant 0 : i32
    return %arg0, %c0_i32 : i32, i32
  }
  func.func @transform_1(%arg0: i32) -> (i32, i32) {
    %c0_i32 = arith.constant 0 : i32
    %c0_i32_0 = arith.constant 0 : i32
    %c0_i32_1 = arith.constant 0 : i32
    return %c0_i32, %c0_i32_0 : i32, i32
  }
  func.func @transform_2(%arg0: i32) -> (i32, i32) {
    %c0_i32 = arith.constant 0 : i32
    %c0_i32_0 = arith.constant 0 : i32
    %c0_i32_1 = arith.constant 0 : i32
    return %c0_i32, %c0_i32_0 : i32, i32
  }
  func.func @transform_3(%arg0: i32) -> (i32, i32) {
    %c0_i32 = arith.constant 0 : i32
    %c0_i32_0 = arith.constant 0 : i32
    return %arg0, %c0_i32 : i32, i32
  }
}

module attributes {stable_mosaic.version = 11 : i64} {
  func.func @_matmul_stats_kernel(%arg0: i32, %arg1: i32, %arg2: i32, %arg3: memref<16x256xbf16, #tpu.memory_space<vmem>>, %arg4: memref<256x256xbf16, #tpu.memory_space<vmem>>, %arg5: memref<16x256xbf16, #tpu.memory_space<vmem>>, %arg6: memref<8x256xf32, #tpu.memory_space<vmem>>, %arg7: memref<8x256xf32, #tpu.memory_space<vmem>>, %arg8: memref<16x256xf32, #tpu.memory_space<vmem>>) attributes {dimension_semantics = [#tpu.dimension_semantics<parallel>, #tpu.dimension_semantics<parallel>, #tpu.dimension_semantics<arbitrary>], iteration_bounds = array<i64: 1, 2, 27>, scalar_prefetch = 0 : i64, scratch_operands = 1 : i64, tpu.core_type = #tpu.core_type<tc>, window_params = [{transform_indices = @transform_0, window_bounds = array<i64: 16, 256>}, {transform_indices = @transform_1, window_bounds = array<i64: 256, 256>}, {transform_indices = @transform_2, window_bounds = array<i64: 16, 256>}, {transform_indices = @transform_3, window_bounds = array<i64: 8, 256>}, {transform_indices = @transform_4, window_bounds = array<i64: 8, 256>}]} {
    %c0_i32 = arith.constant 0 : i32
    %0 = arith.cmpi eq, %arg2, %c0_i32 : i32
    %1 = arith.extui %0 : i1 to i32
    %c0_i32_0 = arith.constant 0 : i32
    %2 = arith.cmpi ne, %1, %c0_i32_0 : i32
    scf.if %2 {
      %cst_9 = arith.constant 0.000000e+00 : f32
      %12 = vector.broadcast %cst_9 : f32 to vector<16x256xf32>
      %c0_10 = arith.constant 0 : index
      %c0_11 = arith.constant 0 : index
      %13 = vector.load %arg8[%c0_10, %c0_11] : memref<16x256xf32, #tpu.memory_space<vmem>>, vector<16x256xf32>
      tpu.vector_store %arg8[%c0_10, %c0_11], %12 {strides = array<i32>} : memref<16x256xf32, #tpu.memory_space<vmem>>, vector<16x256xf32>,
    } else {
    }
    %c0 = arith.constant 0 : index
    %c0_1 = arith.constant 0 : index
    %3 = vector.load %arg8[%c0, %c0_1] : memref<16x256xf32, #tpu.memory_space<vmem>>, vector<16x256xf32>
    %c0_2 = arith.constant 0 : index
    %c0_3 = arith.constant 0 : index
    %4 = vector.load %arg3[%c0_2, %c0_3] : memref<16x256xbf16, #tpu.memory_space<vmem>>, vector<16x256xbf16>
    %c0_4 = arith.constant 0 : index
    %c0_5 = arith.constant 0 : index
    %5 = vector.load %arg4[%c0_4, %c0_5] : memref<256x256xbf16, #tpu.memory_space<vmem>>, vector<256x256xbf16>
    %cst = arith.constant dense<0.000000e+00> : vector<16x256xf32>
    %6 = tpu.matmul %4, %5, %cst {dimension_numbers = #tpu.dot_dimension_numbers<[1], [0], [0], [1], [0, 0, 1, 1], [], []>} : vector<16x256xbf16>, vector<256x256xbf16>, vector<16x256xf32> -> vector<16x256xf32>
    %7 = arith.addf %3, %6 : vector<16x256xf32>
    %c0_6 = arith.constant 0 : index
    %c0_7 = arith.constant 0 : index
    %8 = vector.load %arg8[%c0_6, %c0_7] : memref<16x256xf32, #tpu.memory_space<vmem>>, vector<16x256xf32>
    tpu.vector_store %arg8[%c0_6, %c0_7], %7 {strides = array<i32>} : memref<16x256xf32, #tpu.memory_space<vmem>>, vector<16x256xf32>,
    %c26_i32 = arith.constant 26 : i32
    %9 = arith.cmpi eq, %arg2, %c26_i32 : i32
    %10 = arith.extui %9 : i1 to i32
    %c0_i32_8 = arith.constant 0 : i32
    %11 = arith.cmpi ne, %10, %c0_i32_8 : i32
    scf.if %11 {
      %c0_9 = arith.constant 0 : index
      %c0_10 = arith.constant 0 : index
      %12 = vector.load %arg8[%c0_9, %c0_10] : memref<16x256xf32, #tpu.memory_space<vmem>>, vector<16x256xf32>
      %13 = arith.truncf %12 : vector<16x256xf32> to vector<16x256xbf16>
      %c0_11 = arith.constant 0 : index
      %c0_12 = arith.constant 0 : index
      %14 = vector.load %arg5[%c0_11, %c0_12] : memref<16x256xbf16, #tpu.memory_space<vmem>>, vector<16x256xbf16>
      tpu.vector_store %arg5[%c0_11, %c0_12], %13 {strides = array<i32>} : memref<16x256xbf16, #tpu.memory_space<vmem>>, vector<16x256xbf16>,
      %cst_13 = arith.constant dense<0.000000e+00> : vector<256xf32>
      %15 = vector.multi_reduction <add>, %12, %cst_13 [0] : vector<16x256xf32> to vector<256xf32>
      %16 = vector.shape_cast %15 : vector<256xf32> to vector<1x256xf32>
      %cst_14 = arith.constant 1.250000e-01 : f32
      %17 = vector.broadcast %cst_14 : f32 to vector<1x256xf32>
      %18 = arith.mulf %16, %17 : vector<1x256xf32>
      %19 = arith.mulf %12, %12 : vector<16x256xf32>
      %cst_15 = arith.constant dense<0.000000e+00> : vector<256xf32>
      %20 = vector.multi_reduction <add>, %19, %cst_15 [0] : vector<16x256xf32> to vector<256xf32>
      %21 = vector.shape_cast %20 : vector<256xf32> to vector<1x256xf32>
      %cst_16 = arith.constant 1.250000e-01 : f32
      %22 = vector.broadcast %cst_16 : f32 to vector<1x256xf32>
      %23 = arith.mulf %21, %22 : vector<1x256xf32>
      %24 = vector.shape_cast %18 : vector<1x256xf32> to vector<1x256xf32>
      %25 = vector.broadcast %24 : vector<1x256xf32> to vector<8x256xf32>
      %c0_17 = arith.constant 0 : index
      %c0_18 = arith.constant 0 : index
      %26 = vector.load %arg6[%c0_17, %c0_18] : memref<8x256xf32, #tpu.memory_space<vmem>>, vector<8x256xf32>
      tpu.vector_store %arg6[%c0_17, %c0_18], %25 {strides = array<i32>} : memref<8x256xf32, #tpu.memory_space<vmem>>, vector<8x256xf32>,
      %27 = vector.shape_cast %23 : vector<1x256xf32> to vector<1x256xf32>
      %28 = vector.broadcast %27 : vector<1x256xf32> to vector<8x256xf32>
      %c0_19 = arith.constant 0 : index
      %c0_20 = arith.constant 0 : index
      %29 = vector.load %arg7[%c0_19, %c0_20] : memref<8x256xf32, #tpu.memory_space<vmem>>, vector<8x256xf32>
      tpu.vector_store %arg7[%c0_19, %c0_20], %28 {strides = array<i32>} : memref<8x256xf32, #tpu.memory_space<vmem>>, vector<8x256xf32>,
    } else {
    }
    return
  }
  func.func @transform_0(%arg0: i32, %arg1: i32, %arg2: i32) -> (i32, i32) {
    %c0_i32 = arith.constant 0 : i32
    return %arg0, %arg2 : i32, i32
  }
  func.func @transform_1(%arg0: i32, %arg1: i32, %arg2: i32) -> (i32, i32) {
    %c0_i32 = arith.constant 0 : i32
    return %arg2, %arg1 : i32, i32
  }
  func.func @transform_2(%arg0: i32, %arg1: i32, %arg2: i32) -> (i32, i32) {
    %c0_i32 = arith.constant 0 : i32
    return %arg0, %arg1 : i32, i32
  }
  func.func @transform_3(%arg0: i32, %arg1: i32, %arg2: i32) -> (i32, i32) {
    %c0_i32 = arith.constant 0 : i32
    return %arg0, %arg1 : i32, i32
  }
  func.func @transform_4(%arg0: i32, %arg1: i32, %arg2: i32) -> (i32, i32) {
    %c0_i32 = arith.constant 0 : i32
    return %arg0, %arg1 : i32, i32
  }
}

module attributes {stable_mosaic.version = 11 : i64} {
  func.func @_matmul_stats_kernel(%arg0: i32, %arg1: i32, %arg2: i32, %arg3: memref<16x256xbf16, #tpu.memory_space<vmem>>, %arg4: memref<256x256xbf16, #tpu.memory_space<vmem>>, %arg5: memref<16x256xbf16, #tpu.memory_space<vmem>>, %arg6: memref<8x256xf32, #tpu.memory_space<vmem>>, %arg7: memref<8x256xf32, #tpu.memory_space<vmem>>, %arg8: memref<16x256xf32, #tpu.memory_space<vmem>>) attributes {dimension_semantics = [#tpu.dimension_semantics<parallel>, #tpu.dimension_semantics<parallel>, #tpu.dimension_semantics<arbitrary>], iteration_bounds = array<i64: 1, 2, 54>, scalar_prefetch = 0 : i64, scratch_operands = 1 : i64, tpu.core_type = #tpu.core_type<tc>, window_params = [{transform_indices = @transform_0, window_bounds = array<i64: 16, 256>}, {transform_indices = @transform_1, window_bounds = array<i64: 256, 256>}, {transform_indices = @transform_2, window_bounds = array<i64: 16, 256>}, {transform_indices = @transform_3, window_bounds = array<i64: 8, 256>}, {transform_indices = @transform_4, window_bounds = array<i64: 8, 256>}]} {
    %c0_i32 = arith.constant 0 : i32
    %0 = arith.cmpi eq, %arg2, %c0_i32 : i32
    %1 = arith.extui %0 : i1 to i32
    %c0_i32_0 = arith.constant 0 : i32
    %2 = arith.cmpi ne, %1, %c0_i32_0 : i32
    scf.if %2 {
      %cst_9 = arith.constant 0.000000e+00 : f32
      %12 = vector.broadcast %cst_9 : f32 to vector<16x256xf32>
      %c0_10 = arith.constant 0 : index
      %c0_11 = arith.constant 0 : index
      %13 = vector.load %arg8[%c0_10, %c0_11] : memref<16x256xf32, #tpu.memory_space<vmem>>, vector<16x256xf32>
      tpu.vector_store %arg8[%c0_10, %c0_11], %12 {strides = array<i32>} : memref<16x256xf32, #tpu.memory_space<vmem>>, vector<16x256xf32>,
    } else {
    }
    %c0 = arith.constant 0 : index
    %c0_1 = arith.constant 0 : index
    %3 = vector.load %arg8[%c0, %c0_1] : memref<16x256xf32, #tpu.memory_space<vmem>>, vector<16x256xf32>
    %c0_2 = arith.constant 0 : index
    %c0_3 = arith.constant 0 : index
    %4 = vector.load %arg3[%c0_2, %c0_3] : memref<16x256xbf16, #tpu.memory_space<vmem>>, vector<16x256xbf16>
    %c0_4 = arith.constant 0 : index
    %c0_5 = arith.constant 0 : index
    %5 = vector.load %arg4[%c0_4, %c0_5] : memref<256x256xbf16, #tpu.memory_space<vmem>>, vector<256x256xbf16>
    %cst = arith.constant dense<0.000000e+00> : vector<16x256xf32>
    %6 = tpu.matmul %4, %5, %cst {dimension_numbers = #tpu.dot_dimension_numbers<[1], [0], [0], [1], [0, 0, 1, 1], [], []>} : vector<16x256xbf16>, vector<256x256xbf16>, vector<16x256xf32> -> vector<16x256xf32>
    %7 = arith.addf %3, %6 : vector<16x256xf32>
    %c0_6 = arith.constant 0 : index
    %c0_7 = arith.constant 0 : index
    %8 = vector.load %arg8[%c0_6, %c0_7] : memref<16x256xf32, #tpu.memory_space<vmem>>, vector<16x256xf32>
    tpu.vector_store %arg8[%c0_6, %c0_7], %7 {strides = array<i32>} : memref<16x256xf32, #tpu.memory_space<vmem>>, vector<16x256xf32>,
    %c53_i32 = arith.constant 53 : i32
    %9 = arith.cmpi eq, %arg2, %c53_i32 : i32
    %10 = arith.extui %9 : i1 to i32
    %c0_i32_8 = arith.constant 0 : i32
    %11 = arith.cmpi ne, %10, %c0_i32_8 : i32
    scf.if %11 {
      %c0_9 = arith.constant 0 : index
      %c0_10 = arith.constant 0 : index
      %12 = vector.load %arg8[%c0_9, %c0_10] : memref<16x256xf32, #tpu.memory_space<vmem>>, vector<16x256xf32>
      %13 = arith.truncf %12 : vector<16x256xf32> to vector<16x256xbf16>
      %c0_11 = arith.constant 0 : index
      %c0_12 = arith.constant 0 : index
      %14 = vector.load %arg5[%c0_11, %c0_12] : memref<16x256xbf16, #tpu.memory_space<vmem>>, vector<16x256xbf16>
      tpu.vector_store %arg5[%c0_11, %c0_12], %13 {strides = array<i32>} : memref<16x256xbf16, #tpu.memory_space<vmem>>, vector<16x256xbf16>,
      %cst_13 = arith.constant dense<0.000000e+00> : vector<256xf32>
      %15 = vector.multi_reduction <add>, %12, %cst_13 [0] : vector<16x256xf32> to vector<256xf32>
      %16 = vector.shape_cast %15 : vector<256xf32> to vector<1x256xf32>
      %cst_14 = arith.constant 1.250000e-01 : f32
      %17 = vector.broadcast %cst_14 : f32 to vector<1x256xf32>
      %18 = arith.mulf %16, %17 : vector<1x256xf32>
      %19 = arith.mulf %12, %12 : vector<16x256xf32>
      %cst_15 = arith.constant dense<0.000000e+00> : vector<256xf32>
      %20 = vector.multi_reduction <add>, %19, %cst_15 [0] : vector<16x256xf32> to vector<256xf32>
      %21 = vector.shape_cast %20 : vector<256xf32> to vector<1x256xf32>
      %cst_16 = arith.constant 1.250000e-01 : f32
      %22 = vector.broadcast %cst_16 : f32 to vector<1x256xf32>
      %23 = arith.mulf %21, %22 : vector<1x256xf32>
      %24 = vector.shape_cast %18 : vector<1x256xf32> to vector<1x256xf32>
      %25 = vector.broadcast %24 : vector<1x256xf32> to vector<8x256xf32>
      %c0_17 = arith.constant 0 : index
      %c0_18 = arith.constant 0 : index
      %26 = vector.load %arg6[%c0_17, %c0_18] : memref<8x256xf32, #tpu.memory_space<vmem>>, vector<8x256xf32>
      tpu.vector_store %arg6[%c0_17, %c0_18], %25 {strides = array<i32>} : memref<8x256xf32, #tpu.memory_space<vmem>>, vector<8x256xf32>,
      %27 = vector.shape_cast %23 : vector<1x256xf32> to vector<1x256xf32>
      %28 = vector.broadcast %27 : vector<1x256xf32> to vector<8x256xf32>
      %c0_19 = arith.constant 0 : index
      %c0_20 = arith.constant 0 : index
      %29 = vector.load %arg7[%c0_19, %c0_20] : memref<8x256xf32, #tpu.memory_space<vmem>>, vector<8x256xf32>
      tpu.vector_store %arg7[%c0_19, %c0_20], %28 {strides = array<i32>} : memref<8x256xf32, #tpu.memory_space<vmem>>, vector<8x256xf32>,
    } else {
    }
    return
  }
  func.func @transform_0(%arg0: i32, %arg1: i32, %arg2: i32) -> (i32, i32) {
    %c0_i32 = arith.constant 0 : i32
    return %arg0, %arg2 : i32, i32
  }
  func.func @transform_1(%arg0: i32, %arg1: i32, %arg2: i32) -> (i32, i32) {
    %c0_i32 = arith.constant 0 : i32
    return %arg2, %arg1 : i32, i32
  }
  func.func @transform_2(%arg0: i32, %arg1: i32, %arg2: i32) -> (i32, i32) {
    %c0_i32 = arith.constant 0 : i32
    return %arg0, %arg1 : i32, i32
  }
  func.func @transform_3(%arg0: i32, %arg1: i32, %arg2: i32) -> (i32, i32) {
    %c0_i32 = arith.constant 0 : i32
    return %arg0, %arg1 : i32, i32
  }
  func.func @transform_4(%arg0: i32, %arg1: i32, %arg2: i32) -> (i32, i32) {
    %c0_i32 = arith.constant 0 : i32
    return %arg0, %arg1 : i32, i32
  }
}

module attributes {stable_mosaic.version = 11 : i64} {
  func.func @_bn_apply_res2_kernel(%arg0: i32, %arg1: memref<16x512xbf16, #tpu.memory_space<vmem>>, %arg2: memref<16x512xbf16, #tpu.memory_space<vmem>>, %arg3: memref<1x512xf32, #tpu.memory_space<vmem>>, %arg4: memref<1x512xf32, #tpu.memory_space<vmem>>, %arg5: memref<1x512xf32, #tpu.memory_space<vmem>>, %arg6: memref<1x512xf32, #tpu.memory_space<vmem>>, %arg7: memref<16x512xbf16, #tpu.memory_space<vmem>>) attributes {dimension_semantics = [#tpu.dimension_semantics<parallel>], iteration_bounds = array<i64: 1>, scalar_prefetch = 0 : i64, scratch_operands = 0 : i64, tpu.core_type = #tpu.core_type<tc>, window_params = [{transform_indices = @transform_0, window_bounds = array<i64: 16, 512>}, {transform_indices = @transform_1, window_bounds = array<i64: 16, 512>}, {pipeline_mode = #tpu.pipeline_mode<synchronous>, transform_indices = @transform_2, window_bounds = array<i64: 1, 512>}, {pipeline_mode = #tpu.pipeline_mode<synchronous>, transform_indices = @transform_3, window_bounds = array<i64: 1, 512>}, {pipeline_mode = #tpu.pipeline_mode<synchronous>, transform_indices = @transform_4, window_bounds = array<i64: 1, 512>}, {pipeline_mode = #tpu.pipeline_mode<synchronous>, transform_indices = @transform_5, window_bounds = array<i64: 1, 512>}, {transform_indices = @transform_6, window_bounds = array<i64: 16, 512>}]} {
    %c0 = arith.constant 0 : index
    %c0_0 = arith.constant 0 : index
    %0 = vector.load %arg1[%c0, %c0_0] : memref<16x512xbf16, #tpu.memory_space<vmem>>, vector<16x512xbf16>
    %1 = arith.extf %0 : vector<16x512xbf16> to vector<16x512xf32>
    %c0_1 = arith.constant 0 : index
    %c0_2 = arith.constant 0 : index
    %2 = vector.load %arg3[%c0_1, %c0_2] : memref<1x512xf32, #tpu.memory_space<vmem>>, vector<1x512xf32>
    %3 = vector.broadcast %2 : vector<1x512xf32> to vector<16x512xf32>
    %4 = arith.mulf %1, %3 : vector<16x512xf32>
    %c0_3 = arith.constant 0 : index
    %c0_4 = arith.constant 0 : index
    %5 = vector.load %arg4[%c0_3, %c0_4] : memref<1x512xf32, #tpu.memory_space<vmem>>, vector<1x512xf32>
    %6 = vector.broadcast %5 : vector<1x512xf32> to vector<16x512xf32>
    %7 = arith.addf %4, %6 : vector<16x512xf32>
    %c0_5 = arith.constant 0 : index
    %c0_6 = arith.constant 0 : index
    %8 = vector.load %arg2[%c0_5, %c0_6] : memref<16x512xbf16, #tpu.memory_space<vmem>>, vector<16x512xbf16>
    %9 = arith.extf %8 : vector<16x512xbf16> to vector<16x512xf32>
    %c0_7 = arith.constant 0 : index
    %c0_8 = arith.constant 0 : index
    %10 = vector.load %arg5[%c0_7, %c0_8] : memref<1x512xf32, #tpu.memory_space<vmem>>, vector<1x512xf32>
    %11 = vector.broadcast %10 : vector<1x512xf32> to vector<16x512xf32>
    %12 = arith.mulf %9, %11 : vector<16x512xf32>
    %13 = arith.addf %7, %12 : vector<16x512xf32>
    %c0_9 = arith.constant 0 : index
    %c0_10 = arith.constant 0 : index
    %14 = vector.load %arg6[%c0_9, %c0_10] : memref<1x512xf32, #tpu.memory_space<vmem>>, vector<1x512xf32>
    %15 = vector.broadcast %14 : vector<1x512xf32> to vector<16x512xf32>
    %16 = arith.addf %13, %15 : vector<16x512xf32>
    %cst = arith.constant 0.000000e+00 : f32
    %17 = vector.broadcast %cst : f32 to vector<16x512xf32>
    %18 = arith.maximumf %16, %17 : vector<16x512xf32>
    %19 = arith.truncf %18 : vector<16x512xf32> to vector<16x512xbf16>
    %c0_11 = arith.constant 0 : index
    %c0_12 = arith.constant 0 : index
    %20 = vector.load %arg7[%c0_11, %c0_12] : memref<16x512xbf16, #tpu.memory_space<vmem>>, vector<16x512xbf16>
    tpu.vector_store %arg7[%c0_11, %c0_12], %19 {strides = array<i32>} : memref<16x512xbf16, #tpu.memory_space<vmem>>, vector<16x512xbf16>,
    return
  }
  func.func @transform_0(%arg0: i32) -> (i32, i32) {
    %c0_i32 = arith.constant 0 : i32
    %c0_i32_0 = arith.constant 0 : i32
    return %arg0, %c0_i32 : i32, i32
  }
  func.func @transform_1(%arg0: i32) -> (i32, i32) {
    %c0_i32 = arith.constant 0 : i32
    %c0_i32_0 = arith.constant 0 : i32
    return %arg0, %c0_i32 : i32, i32
  }
  func.func @transform_2(%arg0: i32) -> (i32, i32) {
    %c0_i32 = arith.constant 0 : i32
    %c0_i32_0 = arith.constant 0 : i32
    %c0_i32_1 = arith.constant 0 : i32
    return %c0_i32, %c0_i32_0 : i32, i32
  }
  func.func @transform_3(%arg0: i32) -> (i32, i32) {
    %c0_i32 = arith.constant 0 : i32
    %c0_i32_0 = arith.constant 0 : i32
    %c0_i32_1 = arith.constant 0 : i32
    return %c0_i32, %c0_i32_0 : i32, i32
  }
  func.func @transform_4(%arg0: i32) -> (i32, i32) {
    %c0_i32 = arith.constant 0 : i32
    %c0_i32_0 = arith.constant 0 : i32
    %c0_i32_1 = arith.constant 0 : i32
    return %c0_i32, %c0_i32_0 : i32, i32
  }
  func.func @transform_5(%arg0: i32) -> (i32, i32) {
    %c0_i32 = arith.constant 0 : i32
    %c0_i32_0 = arith.constant 0 : i32
    %c0_i32_1 = arith.constant 0 : i32
    return %c0_i32, %c0_i32_0 : i32, i32
  }
  func.func @transform_6(%arg0: i32) -> (i32, i32) {
    %c0_i32 = arith.constant 0 : i32
    %c0_i32_0 = arith.constant 0 : i32
    return %arg0, %c0_i32 : i32, i32
  }
}

module attributes {stable_mosaic.version = 11 : i64} {
  func.func @_matmul_stats_kernel(%arg0: i32, %arg1: i32, %arg2: i32, %arg3: memref<16x256xbf16, #tpu.memory_space<vmem>>, %arg4: memref<256x256xbf16, #tpu.memory_space<vmem>>, %arg5: memref<16x256xbf16, #tpu.memory_space<vmem>>, %arg6: memref<8x256xf32, #tpu.memory_space<vmem>>, %arg7: memref<8x256xf32, #tpu.memory_space<vmem>>, %arg8: memref<16x256xf32, #tpu.memory_space<vmem>>) attributes {dimension_semantics = [#tpu.dimension_semantics<parallel>, #tpu.dimension_semantics<parallel>, #tpu.dimension_semantics<arbitrary>], iteration_bounds = array<i64: 1, 1, 2>, scalar_prefetch = 0 : i64, scratch_operands = 1 : i64, tpu.core_type = #tpu.core_type<tc>, window_params = [{transform_indices = @transform_0, window_bounds = array<i64: 16, 256>}, {transform_indices = @transform_1, window_bounds = array<i64: 256, 256>}, {transform_indices = @transform_2, window_bounds = array<i64: 16, 256>}, {transform_indices = @transform_3, window_bounds = array<i64: 8, 256>}, {transform_indices = @transform_4, window_bounds = array<i64: 8, 256>}]} {
    %c0_i32 = arith.constant 0 : i32
    %0 = arith.cmpi eq, %arg2, %c0_i32 : i32
    %1 = arith.extui %0 : i1 to i32
    %c0_i32_0 = arith.constant 0 : i32
    %2 = arith.cmpi ne, %1, %c0_i32_0 : i32
    scf.if %2 {
      %cst_9 = arith.constant 0.000000e+00 : f32
      %12 = vector.broadcast %cst_9 : f32 to vector<16x256xf32>
      %c0_10 = arith.constant 0 : index
      %c0_11 = arith.constant 0 : index
      %13 = vector.load %arg8[%c0_10, %c0_11] : memref<16x256xf32, #tpu.memory_space<vmem>>, vector<16x256xf32>
      tpu.vector_store %arg8[%c0_10, %c0_11], %12 {strides = array<i32>} : memref<16x256xf32, #tpu.memory_space<vmem>>, vector<16x256xf32>,
    } else {
    }
    %c0 = arith.constant 0 : index
    %c0_1 = arith.constant 0 : index
    %3 = vector.load %arg8[%c0, %c0_1] : memref<16x256xf32, #tpu.memory_space<vmem>>, vector<16x256xf32>
    %c0_2 = arith.constant 0 : index
    %c0_3 = arith.constant 0 : index
    %4 = vector.load %arg3[%c0_2, %c0_3] : memref<16x256xbf16, #tpu.memory_space<vmem>>, vector<16x256xbf16>
    %c0_4 = arith.constant 0 : index
    %c0_5 = arith.constant 0 : index
    %5 = vector.load %arg4[%c0_4, %c0_5] : memref<256x256xbf16, #tpu.memory_space<vmem>>, vector<256x256xbf16>
    %cst = arith.constant dense<0.000000e+00> : vector<16x256xf32>
    %6 = tpu.matmul %4, %5, %cst {dimension_numbers = #tpu.dot_dimension_numbers<[1], [0], [0], [1], [0, 0, 1, 1], [], []>} : vector<16x256xbf16>, vector<256x256xbf16>, vector<16x256xf32> -> vector<16x256xf32>
    %7 = arith.addf %3, %6 : vector<16x256xf32>
    %c0_6 = arith.constant 0 : index
    %c0_7 = arith.constant 0 : index
    %8 = vector.load %arg8[%c0_6, %c0_7] : memref<16x256xf32, #tpu.memory_space<vmem>>, vector<16x256xf32>
    tpu.vector_store %arg8[%c0_6, %c0_7], %7 {strides = array<i32>} : memref<16x256xf32, #tpu.memory_space<vmem>>, vector<16x256xf32>,
    %c1_i32 = arith.constant 1 : i32
    %9 = arith.cmpi eq, %arg2, %c1_i32 : i32
    %10 = arith.extui %9 : i1 to i32
    %c0_i32_8 = arith.constant 0 : i32
    %11 = arith.cmpi ne, %10, %c0_i32_8 : i32
    scf.if %11 {
      %c0_9 = arith.constant 0 : index
      %c0_10 = arith.constant 0 : index
      %12 = vector.load %arg8[%c0_9, %c0_10] : memref<16x256xf32, #tpu.memory_space<vmem>>, vector<16x256xf32>
      %13 = arith.truncf %12 : vector<16x256xf32> to vector<16x256xbf16>
      %c0_11 = arith.constant 0 : index
      %c0_12 = arith.constant 0 : index
      %14 = vector.load %arg5[%c0_11, %c0_12] : memref<16x256xbf16, #tpu.memory_space<vmem>>, vector<16x256xbf16>
      tpu.vector_store %arg5[%c0_11, %c0_12], %13 {strides = array<i32>} : memref<16x256xbf16, #tpu.memory_space<vmem>>, vector<16x256xbf16>,
      %cst_13 = arith.constant dense<0.000000e+00> : vector<256xf32>
      %15 = vector.multi_reduction <add>, %12, %cst_13 [0] : vector<16x256xf32> to vector<256xf32>
      %16 = vector.shape_cast %15 : vector<256xf32> to vector<1x256xf32>
      %cst_14 = arith.constant 1.250000e-01 : f32
      %17 = vector.broadcast %cst_14 : f32 to vector<1x256xf32>
      %18 = arith.mulf %16, %17 : vector<1x256xf32>
      %19 = arith.mulf %12, %12 : vector<16x256xf32>
      %cst_15 = arith.constant dense<0.000000e+00> : vector<256xf32>
      %20 = vector.multi_reduction <add>, %19, %cst_15 [0] : vector<16x256xf32> to vector<256xf32>
      %21 = vector.shape_cast %20 : vector<256xf32> to vector<1x256xf32>
      %cst_16 = arith.constant 1.250000e-01 : f32
      %22 = vector.broadcast %cst_16 : f32 to vector<1x256xf32>
      %23 = arith.mulf %21, %22 : vector<1x256xf32>
      %24 = vector.shape_cast %18 : vector<1x256xf32> to vector<1x256xf32>
      %25 = vector.broadcast %24 : vector<1x256xf32> to vector<8x256xf32>
      %c0_17 = arith.constant 0 : index
      %c0_18 = arith.constant 0 : index
      %26 = vector.load %arg6[%c0_17, %c0_18] : memref<8x256xf32, #tpu.memory_space<vmem>>, vector<8x256xf32>
      tpu.vector_store %arg6[%c0_17, %c0_18], %25 {strides = array<i32>} : memref<8x256xf32, #tpu.memory_space<vmem>>, vector<8x256xf32>,
      %27 = vector.shape_cast %23 : vector<1x256xf32> to vector<1x256xf32>
      %28 = vector.broadcast %27 : vector<1x256xf32> to vector<8x256xf32>
      %c0_19 = arith.constant 0 : index
      %c0_20 = arith.constant 0 : index
      %29 = vector.load %arg7[%c0_19, %c0_20] : memref<8x256xf32, #tpu.memory_space<vmem>>, vector<8x256xf32>
      tpu.vector_store %arg7[%c0_19, %c0_20], %28 {strides = array<i32>} : memref<8x256xf32, #tpu.memory_space<vmem>>, vector<8x256xf32>,
    } else {
    }
    return
  }
  func.func @transform_0(%arg0: i32, %arg1: i32, %arg2: i32) -> (i32, i32) {
    %c0_i32 = arith.constant 0 : i32
    return %arg0, %arg2 : i32, i32
  }
  func.func @transform_1(%arg0: i32, %arg1: i32, %arg2: i32) -> (i32, i32) {
    %c0_i32 = arith.constant 0 : i32
    return %arg2, %arg1 : i32, i32
  }
  func.func @transform_2(%arg0: i32, %arg1: i32, %arg2: i32) -> (i32, i32) {
    %c0_i32 = arith.constant 0 : i32
    return %arg0, %arg1 : i32, i32
  }
  func.func @transform_3(%arg0: i32, %arg1: i32, %arg2: i32) -> (i32, i32) {
    %c0_i32 = arith.constant 0 : i32
    return %arg0, %arg1 : i32, i32
  }
  func.func @transform_4(%arg0: i32, %arg1: i32, %arg2: i32) -> (i32, i32) {
    %c0_i32 = arith.constant 0 : i32
    return %arg0, %arg1 : i32, i32
  }
}

module attributes {stable_mosaic.version = 11 : i64} {
  func.func @_bn_apply_kernel(%arg0: i32, %arg1: memref<16x128xbf16, #tpu.memory_space<vmem>>, %arg2: memref<1x128xf32, #tpu.memory_space<vmem>>, %arg3: memref<1x128xf32, #tpu.memory_space<vmem>>, %arg4: memref<16x128xbf16, #tpu.memory_space<vmem>>) attributes {dimension_semantics = [#tpu.dimension_semantics<parallel>], iteration_bounds = array<i64: 2>, scalar_prefetch = 0 : i64, scratch_operands = 0 : i64, tpu.core_type = #tpu.core_type<tc>, window_params = [{transform_indices = @transform_0, window_bounds = array<i64: 16, 128>}, {pipeline_mode = #tpu.pipeline_mode<synchronous>, transform_indices = @transform_1, window_bounds = array<i64: 1, 128>}, {pipeline_mode = #tpu.pipeline_mode<synchronous>, transform_indices = @transform_2, window_bounds = array<i64: 1, 128>}, {transform_indices = @transform_3, window_bounds = array<i64: 16, 128>}]} {
    %c0 = arith.constant 0 : index
    %c0_0 = arith.constant 0 : index
    %0 = vector.load %arg1[%c0, %c0_0] : memref<16x128xbf16, #tpu.memory_space<vmem>>, vector<16x128xbf16>
    %1 = arith.extf %0 : vector<16x128xbf16> to vector<16x128xf32>
    %c0_1 = arith.constant 0 : index
    %c0_2 = arith.constant 0 : index
    %2 = vector.load %arg2[%c0_1, %c0_2] : memref<1x128xf32, #tpu.memory_space<vmem>>, vector<1x128xf32>
    %3 = vector.broadcast %2 : vector<1x128xf32> to vector<16x128xf32>
    %4 = arith.mulf %1, %3 : vector<16x128xf32>
    %c0_3 = arith.constant 0 : index
    %c0_4 = arith.constant 0 : index
    %5 = vector.load %arg3[%c0_3, %c0_4] : memref<1x128xf32, #tpu.memory_space<vmem>>, vector<1x128xf32>
    %6 = vector.broadcast %5 : vector<1x128xf32> to vector<16x128xf32>
    %7 = arith.addf %4, %6 : vector<16x128xf32>
    %cst = arith.constant 0.000000e+00 : f32
    %8 = vector.broadcast %cst : f32 to vector<16x128xf32>
    %9 = arith.maximumf %7, %8 : vector<16x128xf32>
    %10 = arith.truncf %9 : vector<16x128xf32> to vector<16x128xbf16>
    %c0_5 = arith.constant 0 : index
    %c0_6 = arith.constant 0 : index
    %11 = vector.load %arg4[%c0_5, %c0_6] : memref<16x128xbf16, #tpu.memory_space<vmem>>, vector<16x128xbf16>
    tpu.vector_store %arg4[%c0_5, %c0_6], %10 {strides = array<i32>} : memref<16x128xbf16, #tpu.memory_space<vmem>>, vector<16x128xbf16>,
    return
  }
  func.func @transform_0(%arg0: i32) -> (i32, i32) {
    %c0_i32 = arith.constant 0 : i32
    %c0_i32_0 = arith.constant 0 : i32
    return %arg0, %c0_i32 : i32, i32
  }
  func.func @transform_1(%arg0: i32) -> (i32, i32) {
    %c0_i32 = arith.constant 0 : i32
    %c0_i32_0 = arith.constant 0 : i32
    %c0_i32_1 = arith.constant 0 : i32
    return %c0_i32, %c0_i32_0 : i32, i32
  }
  func.func @transform_2(%arg0: i32) -> (i32, i32) {
    %c0_i32 = arith.constant 0 : i32
    %c0_i32_0 = arith.constant 0 : i32
    %c0_i32_1 = arith.constant 0 : i32
    return %c0_i32, %c0_i32_0 : i32, i32
  }
  func.func @transform_3(%arg0: i32) -> (i32, i32) {
    %c0_i32 = arith.constant 0 : i32
    %c0_i32_0 = arith.constant 0 : i32
    return %arg0, %c0_i32 : i32, i32
  }
}

module attributes {stable_mosaic.version = 11 : i64} {
  func.func @_matmul_stats_kernel(%arg0: i32, %arg1: i32, %arg2: i32, %arg3: memref<128x128xbf16, #tpu.memory_space<vmem>>, %arg4: memref<128x128xbf16, #tpu.memory_space<vmem>>, %arg5: memref<128x128xbf16, #tpu.memory_space<vmem>>, %arg6: memref<8x128xf32, #tpu.memory_space<vmem>>, %arg7: memref<8x128xf32, #tpu.memory_space<vmem>>, %arg8: memref<128x128xf32, #tpu.memory_space<vmem>>) attributes {dimension_semantics = [#tpu.dimension_semantics<parallel>, #tpu.dimension_semantics<parallel>, #tpu.dimension_semantics<arbitrary>], iteration_bounds = array<i64: 1, 1, 7>, scalar_prefetch = 0 : i64, scratch_operands = 1 : i64, tpu.core_type = #tpu.core_type<tc>, window_params = [{transform_indices = @transform_0, window_bounds = array<i64: 128, 128>}, {transform_indices = @transform_1, window_bounds = array<i64: 128, 128>}, {transform_indices = @transform_2, window_bounds = array<i64: 128, 128>}, {transform_indices = @transform_3, window_bounds = array<i64: 8, 128>}, {transform_indices = @transform_4, window_bounds = array<i64: 8, 128>}]} {
    %c0_i32 = arith.constant 0 : i32
    %0 = arith.cmpi eq, %arg2, %c0_i32 : i32
    %1 = arith.extui %0 : i1 to i32
    %c0_i32_0 = arith.constant 0 : i32
    %2 = arith.cmpi ne, %1, %c0_i32_0 : i32
    scf.if %2 {
      %cst_9 = arith.constant 0.000000e+00 : f32
      %12 = vector.broadcast %cst_9 : f32 to vector<128x128xf32>
      %c0_10 = arith.constant 0 : index
      %c0_11 = arith.constant 0 : index
      %13 = vector.load %arg8[%c0_10, %c0_11] : memref<128x128xf32, #tpu.memory_space<vmem>>, vector<128x128xf32>
      tpu.vector_store %arg8[%c0_10, %c0_11], %12 {strides = array<i32>} : memref<128x128xf32, #tpu.memory_space<vmem>>, vector<128x128xf32>,
    } else {
    }
    %c0 = arith.constant 0 : index
    %c0_1 = arith.constant 0 : index
    %3 = vector.load %arg8[%c0, %c0_1] : memref<128x128xf32, #tpu.memory_space<vmem>>, vector<128x128xf32>
    %c0_2 = arith.constant 0 : index
    %c0_3 = arith.constant 0 : index
    %4 = vector.load %arg3[%c0_2, %c0_3] : memref<128x128xbf16, #tpu.memory_space<vmem>>, vector<128x128xbf16>
    %c0_4 = arith.constant 0 : index
    %c0_5 = arith.constant 0 : index
    %5 = vector.load %arg4[%c0_4, %c0_5] : memref<128x128xbf16, #tpu.memory_space<vmem>>, vector<128x128xbf16>
    %cst = arith.constant dense<0.000000e+00> : vector<128x128xf32>
    %6 = tpu.matmul %4, %5, %cst {dimension_numbers = #tpu.dot_dimension_numbers<[1], [0], [0], [1], [0, 0, 1, 1], [], []>} : vector<128x128xbf16>, vector<128x128xbf16>, vector<128x128xf32> -> vector<128x128xf32>
    %7 = arith.addf %3, %6 : vector<128x128xf32>
    %c0_6 = arith.constant 0 : index
    %c0_7 = arith.constant 0 : index
    %8 = vector.load %arg8[%c0_6, %c0_7] : memref<128x128xf32, #tpu.memory_space<vmem>>, vector<128x128xf32>
    tpu.vector_store %arg8[%c0_6, %c0_7], %7 {strides = array<i32>} : memref<128x128xf32, #tpu.memory_space<vmem>>, vector<128x128xf32>,
    %c6_i32 = arith.constant 6 : i32
    %9 = arith.cmpi eq, %arg2, %c6_i32 : i32
    %10 = arith.extui %9 : i1 to i32
    %c0_i32_8 = arith.constant 0 : i32
    %11 = arith.cmpi ne, %10, %c0_i32_8 : i32
    scf.if %11 {
      %c0_9 = arith.constant 0 : index
      %c0_10 = arith.constant 0 : index
      %12 = vector.load %arg8[%c0_9, %c0_10] : memref<128x128xf32, #tpu.memory_space<vmem>>, vector<128x128xf32>
      %13 = arith.truncf %12 : vector<128x128xf32> to vector<128x128xbf16>
      %c0_11 = arith.constant 0 : index
      %c0_12 = arith.constant 0 : index
      %14 = vector.load %arg5[%c0_11, %c0_12] : memref<128x128xbf16, #tpu.memory_space<vmem>>, vector<128x128xbf16>
      tpu.vector_store %arg5[%c0_11, %c0_12], %13 {strides = array<i32>} : memref<128x128xbf16, #tpu.memory_space<vmem>>, vector<128x128xbf16>,
      %cst_13 = arith.constant dense<0.000000e+00> : vector<128xf32>
      %15 = vector.multi_reduction <add>, %12, %cst_13 [0] : vector<128x128xf32> to vector<128xf32>
      %16 = vector.shape_cast %15 : vector<128xf32> to vector<1x128xf32>
      %cst_14 = arith.constant 1.250000e-01 : f32
      %17 = vector.broadcast %cst_14 : f32 to vector<1x128xf32>
      %18 = arith.mulf %16, %17 : vector<1x128xf32>
      %19 = arith.mulf %12, %12 : vector<128x128xf32>
      %cst_15 = arith.constant dense<0.000000e+00> : vector<128xf32>
      %20 = vector.multi_reduction <add>, %19, %cst_15 [0] : vector<128x128xf32> to vector<128xf32>
      %21 = vector.shape_cast %20 : vector<128xf32> to vector<1x128xf32>
      %cst_16 = arith.constant 1.250000e-01 : f32
      %22 = vector.broadcast %cst_16 : f32 to vector<1x128xf32>
      %23 = arith.mulf %21, %22 : vector<1x128xf32>
      %24 = vector.shape_cast %18 : vector<1x128xf32> to vector<1x128xf32>
      %25 = vector.broadcast %24 : vector<1x128xf32> to vector<8x128xf32>
      %c0_17 = arith.constant 0 : index
      %c0_18 = arith.constant 0 : index
      %26 = vector.load %arg6[%c0_17, %c0_18] : memref<8x128xf32, #tpu.memory_space<vmem>>, vector<8x128xf32>
      tpu.vector_store %arg6[%c0_17, %c0_18], %25 {strides = array<i32>} : memref<8x128xf32, #tpu.memory_space<vmem>>, vector<8x128xf32>,
      %27 = vector.shape_cast %23 : vector<1x128xf32> to vector<1x128xf32>
      %28 = vector.broadcast %27 : vector<1x128xf32> to vector<8x128xf32>
      %c0_19 = arith.constant 0 : index
      %c0_20 = arith.constant 0 : index
      %29 = vector.load %arg7[%c0_19, %c0_20] : memref<8x128xf32, #tpu.memory_space<vmem>>, vector<8x128xf32>
      tpu.vector_store %arg7[%c0_19, %c0_20], %28 {strides = array<i32>} : memref<8x128xf32, #tpu.memory_space<vmem>>, vector<8x128xf32>,
    } else {
    }
    return
  }
  func.func @transform_0(%arg0: i32, %arg1: i32, %arg2: i32) -> (i32, i32) {
    %c0_i32 = arith.constant 0 : i32
    return %arg0, %arg2 : i32, i32
  }
  func.func @transform_1(%arg0: i32, %arg1: i32, %arg2: i32) -> (i32, i32) {
    %c0_i32 = arith.constant 0 : i32
    return %arg2, %arg1 : i32, i32
  }
  func.func @transform_2(%arg0: i32, %arg1: i32, %arg2: i32) -> (i32, i32) {
    %c0_i32 = arith.constant 0 : i32
    return %arg0, %arg1 : i32, i32
  }
  func.func @transform_3(%arg0: i32, %arg1: i32, %arg2: i32) -> (i32, i32) {
    %c0_i32 = arith.constant 0 : i32
    return %arg0, %arg1 : i32, i32
  }
  func.func @transform_4(%arg0: i32, %arg1: i32, %arg2: i32) -> (i32, i32) {
    %c0_i32 = arith.constant 0 : i32
    return %arg0, %arg1 : i32, i32
  }
}

module attributes {stable_mosaic.version = 11 : i64} {
  func.func @_matmul_kernel(%arg0: i32, %arg1: i32, %arg2: i32, %arg3: memref<128x32xbf16, #tpu.memory_space<vmem>>, %arg4: memref<32x128xbf16, #tpu.memory_space<vmem>>, %arg5: memref<128x128xf32, #tpu.memory_space<vmem>>, %arg6: memref<128x128xf32, #tpu.memory_space<vmem>>) attributes {dimension_semantics = [#tpu.dimension_semantics<parallel>, #tpu.dimension_semantics<parallel>, #tpu.dimension_semantics<arbitrary>], iteration_bounds = array<i64: 1, 1, 1>, scalar_prefetch = 0 : i64, scratch_operands = 1 : i64, tpu.core_type = #tpu.core_type<tc>, window_params = [{transform_indices = @transform_0, window_bounds = array<i64: 128, 32>}, {transform_indices = @transform_1, window_bounds = array<i64: 32, 128>}, {transform_indices = @transform_2, window_bounds = array<i64: 128, 128>}]} {
    %c0_i32 = arith.constant 0 : i32
    %0 = arith.cmpi eq, %arg2, %c0_i32 : i32
    %1 = arith.extui %0 : i1 to i32
    %c0_i32_0 = arith.constant 0 : i32
    %2 = arith.cmpi ne, %1, %c0_i32_0 : i32
    scf.if %2 {
      %cst_10 = arith.constant 0.000000e+00 : f32
      %12 = vector.broadcast %cst_10 : f32 to vector<128x128xf32>
      %c0_11 = arith.constant 0 : index
      %c0_12 = arith.constant 0 : index
      %13 = vector.load %arg6[%c0_11, %c0_12] : memref<128x128xf32, #tpu.memory_space<vmem>>, vector<128x128xf32>
      tpu.vector_store %arg6[%c0_11, %c0_12], %12 {strides = array<i32>} : memref<128x128xf32, #tpu.memory_space<vmem>>, vector<128x128xf32>,
    } else {
    }
    %c0 = arith.constant 0 : index
    %c0_1 = arith.constant 0 : index
    %3 = vector.load %arg6[%c0, %c0_1] : memref<128x128xf32, #tpu.memory_space<vmem>>, vector<128x128xf32>
    %c0_2 = arith.constant 0 : index
    %c0_3 = arith.constant 0 : index
    %4 = vector.load %arg3[%c0_2, %c0_3] : memref<128x32xbf16, #tpu.memory_space<vmem>>, vector<128x32xbf16>
    %c0_4 = arith.constant 0 : index
    %c0_5 = arith.constant 0 : index
    %5 = vector.load %arg4[%c0_4, %c0_5] : memref<32x128xbf16, #tpu.memory_space<vmem>>, vector<32x128xbf16>
    %cst = arith.constant dense<0.000000e+00> : vector<128x128xf32>
    %6 = tpu.matmul %4, %5, %cst {dimension_numbers = #tpu.dot_dimension_numbers<[1], [0], [0], [1], [0, 0, 1, 1], [], []>} : vector<128x32xbf16>, vector<32x128xbf16>, vector<128x128xf32> -> vector<128x128xf32>
    %7 = arith.addf %3, %6 : vector<128x128xf32>
    %c0_6 = arith.constant 0 : index
    %c0_7 = arith.constant 0 : index
    %8 = vector.load %arg6[%c0_6, %c0_7] : memref<128x128xf32, #tpu.memory_space<vmem>>, vector<128x128xf32>
    tpu.vector_store %arg6[%c0_6, %c0_7], %7 {strides = array<i32>} : memref<128x128xf32, #tpu.memory_space<vmem>>, vector<128x128xf32>,
    %c0_i32_8 = arith.constant 0 : i32
    %9 = arith.cmpi eq, %arg2, %c0_i32_8 : i32
    %10 = arith.extui %9 : i1 to i32
    %c0_i32_9 = arith.constant 0 : i32
    %11 = arith.cmpi ne, %10, %c0_i32_9 : i32
    scf.if %11 {
      %c0_10 = arith.constant 0 : index
      %c0_11 = arith.constant 0 : index
      %12 = vector.load %arg6[%c0_10, %c0_11] : memref<128x128xf32, #tpu.memory_space<vmem>>, vector<128x128xf32>
      %c0_12 = arith.constant 0 : index
      %c0_13 = arith.constant 0 : index
      %13 = vector.load %arg5[%c0_12, %c0_13] : memref<128x128xf32, #tpu.memory_space<vmem>>, vector<128x128xf32>
      tpu.vector_store %arg5[%c0_12, %c0_13], %12 {strides = array<i32>} : memref<128x128xf32, #tpu.memory_space<vmem>>, vector<128x128xf32>,
    } else {
    }
    return
  }
  func.func @transform_0(%arg0: i32, %arg1: i32, %arg2: i32) -> (i32, i32) {
    %c0_i32 = arith.constant 0 : i32
    return %arg0, %arg2 : i32, i32
  }
  func.func @transform_1(%arg0: i32, %arg1: i32, %arg2: i32) -> (i32, i32) {
    %c0_i32 = arith.constant 0 : i32
    return %arg2, %arg1 : i32, i32
  }
  func.func @transform_2(%arg0: i32, %arg1: i32, %arg2: i32) -> (i32, i32) {
    %c0_i32 = arith.constant 0 : i32
    return %arg0, %arg1 : i32, i32
  }
}

</mosaic_0001>

<bundles_post_ra>
// kernel: tile.71
= control target key start
LH: loop header
LB: loop body
LE: loop exit
PB: predicated region body
PF: predicated region fallthrough
CT: control target
= control target key end

     0   :  { %s22_s0 = inlined_call_operand.vmem [shape: f32[64], index: 0, kind: input, shape index: {}]   ;;  %s23_s1 = inlined_call_operand.vmem [shape: f32[2,64], index: 1, kind: output, shape index: {}]  }
   0x1   :  { %v4_v0 = vld [vmem:[%s22_s0] ss:$0 sm:$0xff] }
   0x2   :  { %5 = vst [vmem:[%s23_s1] sm:$0x3] %v4_v0 }

// kernel: tile.72
= control target key start
LH: loop header
LB: loop body
LE: loop exit
PB: predicated region body
PF: predicated region fallthrough
CT: control target
= control target key end

     0   :  { %vm7_vm0 = vcmask 523264   ;;  %vm13_vm1 = vcmask 1048064   ;;  %s39_s0 = inlined_call_operand.vmem [shape: f32[2,64], index: 0, kind: input, shape index: {}]   ;;  %s40_s1 = inlined_call_operand.vmem [shape: f32[1,128], index: 1, kind: output, shape index: {}]  }
   0x1   :  { %v4_v0 = vld [vmem:[%s39_s0] sm:$0x3]  ;;  %s22_s0 = smov 64  }
   0x2   :  { %5 = vst [vmem:[#allocation1] sm:$0x3] %v4_v0 }
   0x9   :  { %v10_v1 = vld [vmem:[#allocation1 + $0x1] sm:$0x1]   ;;  %v6_v2 = vld [vmem:[#allocation1] sm:$0x1]  }
   0xa   :  { %11 = vrot.lane.b32.xlu0 %v10_v1, %s22_s0  ;;  %8 = vst.msk [vmem:[#allocation0] sm:$0x1] %vm7_vm0, %v6_v2  }
  0x7c   :  { %v12_v3 = vpop.permute.xlu0 %11  }
  0x7d   :  { %14 = vst.msk [vmem:[#allocation0] sm:$0x1] %vm13_vm1, %v12_v3  }
  0x84   :  { %v18_v4 = vld [vmem:[#allocation0] sm:$0x1] }
  0x85   :  { %20 = vst [vmem:[%s40_s1] sm:$0x1] %v18_v4 }

// kernel: _lambda_.30
= control target key start
LH: loop header
LB: loop body
LE: loop exit
PB: predicated region body
PF: predicated region fallthrough
CT: control target
= control target key end

     0   :  { %s851_s12 = smov 0   ;;  %s985_s0 = inlined_call_operand.vmem [shape: bf16[512,128], index: 0, kind: input, shape index: {}]   ;;  %s986_s1 = inlined_call_operand.vmem [shape: f32[1,128], index: 1, kind: input, shape index: {}]   ;;  %s987_s2 = inlined_call_operand.vmem [shape: f32[1,128], index: 2, kind: input, shape index: {}]   ;;  %s988_s3 = inlined_call_operand.vmem [shape: bf16[512,128], index: 3, kind: output, shape index: {}]  }
   0x1 LB: > { %s564_s13 = sadd.s32 4294967295, %s829_s12   ;;  %p568_p0 = scmp.ge.s32.totalorder %s829_s12, 1  ;;  %s829_s12 = sphi %s851_s12, %s13_s12  }
   0x2   : > { %p138_p1 = scmp.lt.s32.totalorder %s829_s12, 3 }
   0x4   : > { %p139_p2 = pnand %p568_p0, %p138_p1 }
   0x5   : > { %s569_s14 = sshll.u32 (!%p139_p2), %s564_s13, 5  ;;  %v872_v0 = vld [vmem:[%s986_s1] ss:$0 sm:$0xff] (!%p139_p2) }
   0x6   : > { %142 = sbr.rel (%p139_p2) target bundleno = 59 (0x3b), region = 32  ;;  %p163_p3 = scmp.lt.s32.totalorder (!%p139_p2), %s569_s14, 63  ;;  %v881_v9 = vld [vmem:[%s987_s2] ss:$0 sm:$0xff] (!%p139_p2) }
   0xd   : > { %s990_s14 = smov (!%p163_p3, %s569_s14), 63 }
   0xe   : > { %s570_s15 = sshll.u32 %s990_s14, 2 }
   0xf   : > { %s867_s18 = scalar_lea.vmem %s985_s0, %s570_s15  ;;  %s906_s25 = scalar_lea.vmem %s988_s3, %s570_s15 }
  0x10   : > { %v642_v1 = vld [vmem:[%s867_s18] sm:$0xff]   ;;  %v785_v2 = vld [vmem:[%s867_s18 + $0x8] sm:$0xff]   ;;  %v786_v3 = vld [vmem:[%s867_s18 + $0x10] sm:$0xff]  }
  0x11   : > { %v643_v4 = vunpack.c.l.bf16 %v642_v1  ;;  %v644_v5 = vunpack.c.h.bf16 %v642_v1  ;;  %v647_v6 = vunpack.c.l.bf16 %v785_v2  ;;  %v648_v7 = vunpack.c.h.bf16 %v785_v2  ;;  %v787_v8 = vld [vmem:[%s867_s18 + $0x18] sm:$0xff]   ;;  %v788_v30 = vld [vmem:[%s867_s18 + $0x20] sm:$0xff]   ;;  %v789_v35 = vld [vmem:[%s867_s18 + $0x28] sm:$0xff]  }
  0x12   : > { %v651_v10 = vunpack.c.l.bf16 %v786_v3  ;;  %v652_v11 = vunpack.c.h.bf16 %v786_v3  ;;  %v655_v12 = vunpack.c.l.bf16 %v787_v8  ;;  %v656_v13 = vunpack.c.h.bf16 %v787_v8  ;;  %v790_v40 = vld [vmem:[%s867_s18 + $0x30] sm:$0xff]   ;;  %v791_v45 = vld [vmem:[%s867_s18 + $0x38] sm:$0xff]   ;;  %v792_v3 = vld [vmem:[%s867_s18 + $0x40] sm:$0xff]  }
  0x13   : > { %v245_v14 = vmul.f32 %v643_v4, %v872_v0  ;;  %v246_v15 = vmul.f32 %v644_v5, %v872_v0  ;;  %v247_v16 = vmul.f32 %v647_v6, %v872_v0  ;;  %v248_v17 = vmul.f32 %v648_v7, %v872_v0 }
  0x14   : > { %v249_v18 = vmul.f32 %v651_v10, %v872_v0  ;;  %v250_v19 = vmul.f32 %v652_v11, %v872_v0  ;;  %v251_v20 = vmul.f32 %v655_v12, %v872_v0  ;;  %v252_v21 = vmul.f32 %v656_v13, %v872_v0  ;;  %v793_v13 = vld [vmem:[%s867_s18 + $0x48] sm:$0xff]  }
  0x15   : > { %v284_v22 = vadd.f32 %v881_v9, %v245_v14  ;;  %v285_v23 = vadd.f32 %v881_v9, %v246_v15  ;;  %v286_v24 = vadd.f32 %v881_v9, %v247_v16  ;;  %v287_v25 = vadd.f32 %v881_v9, %v248_v17 }
  0x16   : > { %v288_v26 = vadd.f32 %v881_v9, %v249_v18  ;;  %v289_v27 = vadd.f32 %v881_v9, %v250_v19  ;;  %v290_v28 = vadd.f32 %v881_v9, %v251_v20  ;;  %v291_v29 = vadd.f32 %v881_v9, %v252_v21  ;;  %v794_v18 = vld [vmem:[%s867_s18 + $0x50] sm:$0xff]  }
  0x17   : > { %v316_v31 = vmax.f32 %v284_v22, 0.0  ;;  %v317_v32 = vmax.f32 %v285_v23, 0.0  ;;  %v318_v33 = vmax.f32 %v286_v24, 0.0  ;;  %v319_v34 = vmax.f32 %v287_v25, 0.0  ;;  %v795_v23 = vld [vmem:[%s867_s18 + $0x58] sm:$0xff]  }
  0x18   : > { %v320_v36 = vmax.f32 %v288_v26, 0.0  ;;  %v321_v37 = vmax.f32 %v289_v27, 0.0  ;;  %v322_v38 = vmax.f32 %v290_v28, 0.0  ;;  %v323_v39 = vmax.f32 %v291_v29, 0.0 }
  0x19   : > { %v708_v41 = vpack.c.bf16 %v317_v32, %v316_v31  ;;  %v713_v42 = vpack.c.bf16 %v319_v34, %v318_v33  ;;  %v659_v43 = vunpack.c.l.bf16 %v788_v30  ;;  %v660_v44 = vunpack.c.h.bf16 %v788_v30 }
  0x1a   : > { %v718_v46 = vpack.c.bf16 %v321_v37, %v320_v36  ;;  %v723_v47 = vpack.c.bf16 %v323_v39, %v322_v38  ;;  %v663_v48 = vunpack.c.l.bf16 %v789_v35  ;;  %v664_v49 = vunpack.c.h.bf16 %v789_v35 }
  0x1b   : > { %709 = vst [vmem:[%s906_s25] sm:$0xff] %v708_v41   ;;  %800 = vst [vmem:[%s906_s25 + $0x8] sm:$0xff] %v713_v42   ;;  %v253_v50 = vmul.f32 %v659_v43, %v872_v0  ;;  %v254_v51 = vmul.f32 %v660_v44, %v872_v0  ;;  %v667_v52 = vunpack.c.l.bf16 %v790_v40  ;;  %v668_v53 = vunpack.c.h.bf16 %v790_v40  ;;  %v796_v40 = vld [vmem:[%s867_s18 + $0x60] sm:$0xff]  }
  0x1c   : > { %801 = vst [vmem:[%s906_s25 + $0x10] sm:$0xff] %v718_v46   ;;  %802 = vst [vmem:[%s906_s25 + $0x18] sm:$0xff] %v723_v47   ;;  %v255_v54 = vmul.f32 %v663_v48, %v872_v0  ;;  %v256_v55 = vmul.f32 %v664_v49, %v872_v0  ;;  %v671_v56 = vunpack.c.l.bf16 %v791_v45  ;;  %v672_v57 = vunpack.c.h.bf16 %v791_v45 }
  0x1d   : > { %v292_v58 = vadd.f32 %v881_v9, %v253_v50  ;;  %v293_v59 = vadd.f32 %v881_v9, %v254_v51  ;;  %v257_v60 = vmul.f32 %v667_v52, %v872_v0  ;;  %v258_v61 = vmul.f32 %v668_v53, %v872_v0  ;;  %v797_v53 = vld [vmem:[%s867_s18 + $0x68] sm:$0xff]  }
  0x1e   : > { %v294_v62 = vadd.f32 %v881_v9, %v255_v54  ;;  %v295_v63 = vadd.f32 %v881_v9, %v256_v55  ;;  %v259_v1 = vmul.f32 %v671_v56, %v872_v0  ;;  %v260_v2 = vmul.f32 %v672_v57, %v872_v0 }
  0x1f   : > { %v324_v4 = vmax.f32 %v292_v58, 0.0  ;;  %v325_v5 = vmax.f32 %v293_v59, 0.0  ;;  %v296_v6 = vadd.f32 %v881_v9, %v257_v60  ;;  %v297_v7 = vadd.f32 %v881_v9, %v258_v61  ;;  %v798_v58 = vld [vmem:[%s867_s18 + $0x70] sm:$0xff]  }
  0x20   : > { %v326_v8 = vmax.f32 %v294_v62, 0.0  ;;  %v327_v10 = vmax.f32 %v295_v63, 0.0  ;;  %v298_v11 = vadd.f32 %v881_v9, %v259_v1  ;;  %v299_v12 = vadd.f32 %v881_v9, %v260_v2  ;;  %v799_v63 = vld [vmem:[%s867_s18 + $0x78] sm:$0xff]  }
  0x21   : > { %v728_v14 = vpack.c.bf16 %v325_v5, %v324_v4  ;;  %v328_v15 = vmax.f32 %v296_v6, 0.0  ;;  %v329_v16 = vmax.f32 %v297_v7, 0.0  ;;  %v675_v17 = vunpack.c.l.bf16 %v792_v3 }
  0x22   : > { %v733_v19 = vpack.c.bf16 %v327_v10, %v326_v8  ;;  %v330_v20 = vmax.f32 %v298_v11, 0.0  ;;  %v331_v21 = vmax.f32 %v299_v12, 0.0  ;;  %v676_v22 = vunpack.c.h.bf16 %v792_v3 }
  0x23   : > { %803 = vst [vmem:[%s906_s25 + $0x20] sm:$0xff] %v728_v14   ;;  %v738_v24 = vpack.c.bf16 %v329_v16, %v328_v15  ;;  %v261_v25 = vmul.f32 %v675_v17, %v872_v0  ;;  %v679_v26 = vunpack.c.l.bf16 %v793_v13  ;;  %v680_v27 = vunpack.c.h.bf16 %v793_v13 }
  0x24   : > { %804 = vst [vmem:[%s906_s25 + $0x28] sm:$0xff] %v733_v19   ;;  %v743_v28 = vpack.c.bf16 %v331_v21, %v330_v20  ;;  %v262_v29 = vmul.f32 %v676_v22, %v872_v0  ;;  %v683_v30 = vunpack.c.l.bf16 %v794_v18  ;;  %v684_v31 = vunpack.c.h.bf16 %v794_v18 }
  0x25   : > { %805 = vst [vmem:[%s906_s25 + $0x30] sm:$0xff] %v738_v24   ;;  %v300_v32 = vadd.f32 %v881_v9, %v261_v25  ;;  %v263_v33 = vmul.f32 %v679_v26, %v872_v0  ;;  %v264_v34 = vmul.f32 %v680_v27, %v872_v0  ;;  %v687_v35 = vunpack.c.l.bf16 %v795_v23 }
  0x26   : > { %806 = vst [vmem:[%s906_s25 + $0x38] sm:$0xff] %v743_v28   ;;  %v301_v36 = vadd.f32 %v881_v9, %v262_v29  ;;  %v265_v37 = vmul.f32 %v683_v30, %v872_v0  ;;  %v266_v38 = vmul.f32 %v684_v31, %v872_v0  ;;  %v688_v39 = vunpack.c.h.bf16 %v795_v23 }
  0x27   : > { %v332_v41 = vmax.f32 %v300_v32, 0.0  ;;  %v302_v42 = vadd.f32 %v881_v9, %v263_v33  ;;  %v303_v43 = vadd.f32 %v881_v9, %v264_v34  ;;  %v267_v44 = vmul.f32 %v687_v35, %v872_v0 }
  0x28   : > { %v333_v45 = vmax.f32 %v301_v36, 0.0  ;;  %v304_v46 = vadd.f32 %v881_v9, %v265_v37  ;;  %v305_v47 = vadd.f32 %v881_v9, %v266_v38  ;;  %v268_v48 = vmul.f32 %v688_v39, %v872_v0 }
  0x29   : > { %v334_v49 = vmax.f32 %v302_v42, 0.0  ;;  %v335_v50 = vmax.f32 %v303_v43, 0.0  ;;  %v306_v51 = vadd.f32 %v881_v9, %v267_v44  ;;  %v691_v52 = vunpack.c.l.bf16 %v796_v40 }
  0x2a   : > { %v748_v54 = vpack.c.bf16 %v333_v45, %v332_v41  ;;  %v336_v55 = vmax.f32 %v304_v46, 0.0  ;;  %v337_v56 = vmax.f32 %v305_v47, 0.0  ;;  %v307_v57 = vadd.f32 %v881_v9, %v268_v48 }
  0x2b   : > { %v753_v59 = vpack.c.bf16 %v335_v50, %v334_v49  ;;  %v338_v60 = vmax.f32 %v306_v51, 0.0  ;;  %v692_v61 = vunpack.c.h.bf16 %v796_v40  ;;  %v269_v62 = vmul.f32 %v691_v52, %v872_v0 }
  0x2c   : > { %807 = vst [vmem:[%s906_s25 + $0x40] sm:$0xff] %v748_v54   ;;  %v758_v1 = vpack.c.bf16 %v337_v56, %v336_v55  ;;  %v339_v2 = vmax.f32 %v307_v57, 0.0  ;;  %v695_v3 = vunpack.c.l.bf16 %v797_v53  ;;  %v696_v4 = vunpack.c.h.bf16 %v797_v53 }
  0x2d   : > { %808 = vst [vmem:[%s906_s25 + $0x48] sm:$0xff] %v753_v59   ;;  %v270_v5 = vmul.f32 %v692_v61, %v872_v0  ;;  %v308_v6 = vadd.f32 %v881_v9, %v269_v62  ;;  %v699_v7 = vunpack.c.l.bf16 %v798_v58  ;;  %v700_v8 = vunpack.c.h.bf16 %v798_v58 }
  0x2e   : > { %809 = vst [vmem:[%s906_s25 + $0x50] sm:$0xff] %v758_v1   ;;  %v763_v10 = vpack.c.bf16 %v339_v2, %v338_v60  ;;  %v271_v11 = vmul.f32 %v695_v3, %v872_v0  ;;  %v272_v12 = vmul.f32 %v696_v4, %v872_v0  ;;  %v703_v13 = vunpack.c.l.bf16 %v799_v63 }
  0x2f   : > { %v309_v14 = vadd.f32 %v881_v9, %v270_v5  ;;  %v340_v15 = vmax.f32 %v308_v6, 0.0  ;;  %v273_v16 = vmul.f32 %v699_v7, %v872_v0  ;;  %v274_v17 = vmul.f32 %v700_v8, %v872_v0 }
  0x30   : > { %810 = vst [vmem:[%s906_s25 + $0x58] sm:$0xff] %v763_v10   ;;  %v310_v18 = vadd.f32 %v881_v9, %v271_v11  ;;  %v311_v19 = vadd.f32 %v881_v9, %v272_v12  ;;  %v704_v20 = vunpack.c.h.bf16 %v799_v63  ;;  %v275_v21 = vmul.f32 %v703_v13, %v872_v0 }
  0x31   : > { %v341_v22 = vmax.f32 %v309_v14, 0.0  ;;  %v312_v23 = vadd.f32 %v881_v9, %v273_v16  ;;  %v313_v24 = vadd.f32 %v881_v9, %v274_v17 }
  0x32   : > { %v342_v25 = vmax.f32 %v310_v18, 0.0  ;;  %v343_v26 = vmax.f32 %v311_v19, 0.0  ;;  %v276_v27 = vmul.f32 %v704_v20, %v872_v0  ;;  %v314_v28 = vadd.f32 %v881_v9, %v275_v21 }
  0x33   : > { %v768_v29 = vpack.c.bf16 %v341_v22, %v340_v15  ;;  %v344_v30 = vmax.f32 %v312_v23, 0.0  ;;  %v345_v31 = vmax.f32 %v313_v24, 0.0 }
  0x34   : > { %v773_v32 = vpack.c.bf16 %v343_v26, %v342_v25  ;;  %v315_v33 = vadd.f32 %v881_v9, %v276_v27  ;;  %v346_v34 = vmax.f32 %v314_v28, 0.0 }
  0x35   : > { %811 = vst [vmem:[%s906_s25 + $0x60] sm:$0xff] %v768_v29   ;;  %v778_v35 = vpack.c.bf16 %v345_v31, %v344_v30 }
  0x36   : > { %812 = vst [vmem:[%s906_s25 + $0x68] sm:$0xff] %v773_v32   ;;  %v347_v36 = vmax.f32 %v315_v33, 0.0 }
  0x37   : > { %813 = vst [vmem:[%s906_s25 + $0x70] sm:$0xff] %v778_v35  }
  0x38   : > { %v783_v37 = vpack.c.bf16 %v347_v36, %v346_v34 }
  0x3a   : > { %814 = vst [vmem:[%s906_s25 + $0x78] sm:$0xff] %v783_v37  }
  0x3b PF: > { %s13_s12 = sadd.s32 1, %s829_s12  }
  0x3c   : > { %p10_p4 = scmp.ge.s32.totalorder %s13_s12, 4  }
  0x3e   :  { %12 = sbr.rel (!%p10_p4) target bundleno = 1 (0x1), region = 62 }

// kernel: _lambda_.29
= control target key start
LH: loop header
LB: loop body
LE: loop exit
PB: predicated region body
PF: predicated region fallthrough
CT: control target
= control target key end

     0   :  { %s1900_s15 = smov 0   ;;  %s1902_s16 = smov 0   ;;  %s2260_s0 = inlined_call_operand.vmem [shape: bf16[1024,384], index: 0, kind: input, shape index: {}]   ;;  %s2261_s1 = inlined_call_operand.vmem [shape: bf16[384,128], index: 1, kind: input, shape index: {}]   ;;  %s2262_s2 = inlined_call_operand.vmem [shape: bf16[1024,128], index: 2, kind: output, shape index: {0}]   ;;  %s2263_s3 = inlined_call_operand.vmem [shape: f32[32,128], index: 3, kind: output, shape index: {1}]   ;;  %s2264_s4 = inlined_call_operand.vmem [shape: f32[32,128], index: 4, kind: output, shape index: {2}]  }
   0x1   :  { %s1904_s17 = smov 0   ;;  %s1906_s18 = smov 0  }
   0x2   :  { %s1908_s19 = smov 0   ;;  %s1910_s20 = smov 0  }
   0x3   :  { %s1912_s21 = smov 0  }
   0x4 LB: > { %s27_s22 = sadd.s32 1, %s1864_s19  ;;  %s34_s23 = sadd.s32 1, %s1868_s20  ;;  %s1872_s21 = sphi %s1912_s21, %s15_s21   ;;  %s1868_s20 = sphi %s1910_s20, %s2270_s20   ;;  %s1864_s19 = sphi %s1908_s19, %s2269_s19   ;;  %s1860_s18 = sphi %s1906_s18, %s2268_s18   ;;  %s1856_s17 = sphi %s1904_s17, %s2267_s17   ;;  %s1852_s16 = sphi %s1902_s16, %s2266_s16   ;;  %s1848_s15 = sphi %s1900_s15, %s2265_s15  }
   0x5   : > { %p28_p0 = scmp.ge.s32.totalorder %s27_s22, 3  ;;  %p50_p1 = scmp.ne.s32.totalorder %s1852_s16, %s1848_s15 }
   0x6   : > { %p51_p2 = scmp.eq.s32.totalorder %s1872_s21, 0  ;;  %s43_s27 = sadd.s32 1, %s1852_s16 }
   0x7   : > { %s2272_s22 = smov (%p28_p0, %s27_s22), 0  ;;  %s2274_s23 = smov (!%p28_p0, %s34_s23), %s1868_s20 }
   0x8   : > { %p52_p3 = por %p51_p2, %p50_p1  ;;  %p36_p4 = scmp.ge.s32.totalorder %s2274_s23, 4 }
   0x9   : > { %s39_s24 = ssub.s32 %s1864_s19, %s2272_s22  ;;  %p1448_p6 = scmp.ge.s32.totalorder %s1872_s21, 12 }
   0xa   : > { %s2276_s23 = smov (%p36_p4, %s2274_s23), 0 }
   0xb   : > { %s38_s25 = ssub.s32 %s1868_s20, %s2276_s23  ;;  %188 = sbr.rel (%p1448_p6) target bundleno = 46 (0x2e), region = 16 }
   0xc   : > { %s40_s26 = sor.u32 %s39_s24, %s38_s25 }
   0xd   : > { %p41_p5 = scmp.eq.s32.totalorder %s40_s26, 0 }
   0xf   : > { %s1951_s28 = scalar_select %p41_p5, %s1852_s16, %s43_s27  }
  0x12   : > { %191 = sbr.rel (!%p52_p3) target bundleno = 46 (0x2e), region = 20  ;;  %s193_s29 = sand.u32 (%p52_p3), 1, %s1852_s16  }
  0x13   : > { %s1736_s30 = smul.u32 (%p52_p3), 96, %s1868_s20  ;;  %s1449_s5 = sshll.u32 (%p52_p3), %s193_s29, 7 }
  0x14   : > { %s1965_s11 = scalar_lea.vmem (%p52_p3), [#allocation3], %s1449_s5 }
  0x15   : > { %s198_s6 = sadd.s32 (%p52_p3), %s1864_s19, %s1736_s30 }
  0x16   : > { %s1452_s7 = sshll.u32 (%p52_p3), %s198_s6, 2 }
  0x17   : > { %s1960_s10 = scalar_lea.vmem (%p52_p3), %s2260_s0, %s1452_s7 }
  0x18   : > { %v216_v0 = vld [vmem:[%s1960_s10] sm:$0xf] (%p52_p3)  ;;  %v218_v1 = vld [vmem:[%s1960_s10 + $0xc] sm:$0xf] (%p52_p3)  ;;  %v220_v2 = vld [vmem:[%s1960_s10 + $0x18] sm:$0xf] (%p52_p3) }
  0x19   : > { %217 = vst [vmem:[%s1965_s11] sm:$0xf] %v216_v0  ;;  %219 = vst [vmem:[%s1965_s11 + $0x4] sm:$0xf] %v218_v1  ;;  %v222_v3 = vld [vmem:[%s1960_s10 + $0x24] sm:$0xf] }
  0x1a   : > { %221 = vst [vmem:[%s1965_s11 + $0x8] sm:$0xf] %v220_v2  ;;  %v224_v4 = vld [vmem:[%s1960_s10 + $0x30] sm:$0xf]  ;;  %v226_v5 = vld [vmem:[%s1960_s10 + $0x3c] sm:$0xf] }
  0x1b   : > { %223 = vst [vmem:[%s1965_s11 + $0xc] sm:$0xf] %v222_v3  ;;  %225 = vst [vmem:[%s1965_s11 + $0x10] sm:$0xf] %v224_v4  ;;  %v228_v6 = vld [vmem:[%s1960_s10 + $0x48] sm:$0xf] }
  0x1c   : > { %227 = vst [vmem:[%s1965_s11 + $0x14] sm:$0xf] %v226_v5  ;;  %v230_v7 = vld [vmem:[%s1960_s10 + $0x54] sm:$0xf]  ;;  %v232_v8 = vld [vmem:[%s1960_s10 + $0x60] sm:$0xf] }
  0x1d   : > { %229 = vst [vmem:[%s1965_s11 + $0x18] sm:$0xf] %v228_v6  ;;  %231 = vst [vmem:[%s1965_s11 + $0x1c] sm:$0xf] %v230_v7  ;;  %v234_v9 = vld [vmem:[%s1960_s10 + $0x6c] sm:$0xf] }
  0x1e   : > { %233 = vst [vmem:[%s1965_s11 + $0x20] sm:$0xf] %v232_v8  ;;  %v236_v10 = vld [vmem:[%s1960_s10 + $0x78] sm:$0xf]  ;;  %v238_v11 = vld [vmem:[%s1960_s10 + $0x84] sm:$0xf] }
  0x1f   : > { %235 = vst [vmem:[%s1965_s11 + $0x24] sm:$0xf] %v234_v9  ;;  %237 = vst [vmem:[%s1965_s11 + $0x28] sm:$0xf] %v236_v10  ;;  %v240_v12 = vld [vmem:[%s1960_s10 + $0x90] sm:$0xf] }
  0x20   : > { %239 = vst [vmem:[%s1965_s11 + $0x2c] sm:$0xf] %v238_v11  ;;  %v242_v13 = vld [vmem:[%s1960_s10 + $0x9c] sm:$0xf]  ;;  %v244_v14 = vld [vmem:[%s1960_s10 + $0xa8] sm:$0xf] }
  0x21   : > { %241 = vst [vmem:[%s1965_s11 + $0x30] sm:$0xf] %v240_v12  ;;  %243 = vst [vmem:[%s1965_s11 + $0x34] sm:$0xf] %v242_v13  ;;  %v246_v15 = vld [vmem:[%s1960_s10 + $0xb4] sm:$0xf] }
  0x22   : > { %245 = vst [vmem:[%s1965_s11 + $0x38] sm:$0xf] %v244_v14  ;;  %v248_v16 = vld [vmem:[%s1960_s10 + $0xc0] sm:$0xf]  ;;  %v250_v17 = vld [vmem:[%s1960_s10 + $0xcc] sm:$0xf] }
  0x23   : > { %247 = vst [vmem:[%s1965_s11 + $0x3c] sm:$0xf] %v246_v15  ;;  %249 = vst [vmem:[%s1965_s11 + $0x40] sm:$0xf] %v248_v16  ;;  %v252_v18 = vld [vmem:[%s1960_s10 + $0xd8] sm:$0xf] }
  0x24   : > { %251 = vst [vmem:[%s1965_s11 + $0x44] sm:$0xf] %v250_v17  ;;  %v254_v19 = vld [vmem:[%s1960_s10 + $0xe4] sm:$0xf]  ;;  %v256_v20 = vld [vmem:[%s1960_s10 + $0xf0] sm:$0xf] }
  0x25   : > { %253 = vst [vmem:[%s1965_s11 + $0x48] sm:$0xf] %v252_v18  ;;  %255 = vst [vmem:[%s1965_s11 + $0x4c] sm:$0xf] %v254_v19  ;;  %v258_v21 = vld [vmem:[%s1960_s10 + $0xfc] sm:$0xf] }
  0x26   : > { %257 = vst [vmem:[%s1965_s11 + $0x50] sm:$0xf] %v256_v20  ;;  %v260_v22 = vld [vmem:[%s1960_s10 + $0x108] sm:$0xf]  ;;  %v262_v23 = vld [vmem:[%s1960_s10 + $0x114] sm:$0xf] }
  0x27   : > { %259 = vst [vmem:[%s1965_s11 + $0x54] sm:$0xf] %v258_v21  ;;  %261 = vst [vmem:[%s1965_s11 + $0x58] sm:$0xf] %v260_v22  ;;  %v264_v24 = vld [vmem:[%s1960_s10 + $0x120] sm:$0xf] }
  0x28   : > { %263 = vst [vmem:[%s1965_s11 + $0x5c] sm:$0xf] %v262_v23  ;;  %v266_v25 = vld [vmem:[%s1960_s10 + $0x12c] sm:$0xf]  ;;  %v268_v26 = vld [vmem:[%s1960_s10 + $0x138] sm:$0xf] }
  0x29   : > { %265 = vst [vmem:[%s1965_s11 + $0x60] sm:$0xf] %v264_v24  ;;  %267 = vst [vmem:[%s1965_s11 + $0x64] sm:$0xf] %v266_v25  ;;  %v270_v27 = vld [vmem:[%s1960_s10 + $0x144] sm:$0xf] }
  0x2a   : > { %269 = vst [vmem:[%s1965_s11 + $0x68] sm:$0xf] %v268_v26  ;;  %v272_v28 = vld [vmem:[%s1960_s10 + $0x150] sm:$0xf]  ;;  %v274_v29 = vld [vmem:[%s1960_s10 + $0x15c] sm:$0xf] }
  0x2b   : > { %271 = vst [vmem:[%s1965_s11 + $0x6c] sm:$0xf] %v270_v27  ;;  %273 = vst [vmem:[%s1965_s11 + $0x70] sm:$0xf] %v272_v28  ;;  %v276_v30 = vld [vmem:[%s1960_s10 + $0x168] sm:$0xf] }
  0x2c   : > { %275 = vst [vmem:[%s1965_s11 + $0x74] sm:$0xf] %v274_v29  ;;  %v278_v31 = vld [vmem:[%s1960_s10 + $0x174] sm:$0xf]  ;;  %277 = vst [vmem:[%s1965_s11 + $0x78] sm:$0xf] %v276_v30 }
  0x2d   : > { %279 = vst [vmem:[%s1965_s11 + $0x7c] sm:$0xf] %v278_v31 }
  0x2e PF: > { %p1453_p7 = scmp.ge.s32.totalorder %s1872_s21, 1  ;;  %p377_p8 = scmp.lt.s32.totalorder %s1872_s21, 13 }
  0x30   : > { %p378_p9 = pnand %p1453_p7, %p377_p8 }
  0x31   : > { %s384_s12 = sand.u32 (!%p378_p9), 1, %s1848_s15   ;;  %s1455_s13 = sshll.u32 (!%p378_p9), %s1856_s17, 4 }
  0x32   : > { %381 = sbr.rel (%p378_p9) target bundleno = 417 (0x1a1), region = 65  ;;  %s1454_s14 = sshll.u32 (!%p378_p9), %s384_s12, 7 }
  0x33   : > { %p436_p10 = scmp.lt.s32.totalorder (!%p378_p9), %s1455_s13, 47  ;;  %s1457_s24 = sshll.u32 (!%p378_p9), %s1860_s18, 5 }
  0x34   : > { %p445_p11 = scmp.lt.s32.totalorder (!%p378_p9), %s1457_s24, 127  ;;  %p453_p12 = scmp.lt.s32.totalorder (!%p378_p9), %s1860_s18, 3 }
  0x35   : > { %p1461_p13 = scmp.ne.s32.totalorder (!%p378_p9), %s1856_s17, 0 }
  0x39   : > { %s2278_s13 = smov (!%p436_p10, %s1455_s13), 47  ;;  %s2280_s24 = smov (!%p445_p11, %s1457_s24), 127 }
  0x3a   : > { %s1456_s25 = sshll.u32 %s2278_s13, 2  ;;  %s2282_s18 = smov (!%p453_p12, %s1860_s18), 3  ;;  %v1874_v32 = vmov (!%p1461_p13), 0.0  }
  0x3b   : > { %s2037_s29 = scalar_lea.vmem %s2261_s1, %s1456_s25  ;;  %s1458_s30 = sshll.u32 %s2280_s24, 2  ;;  %472 = vst [vmem:[#allocation2] sm:$0xff] (!%p1461_p13), %v1874_v32  ;;  %473 = vst [vmem:[#allocation2 + $0x8] sm:$0xff] (!%p1461_p13), %v1874_v32 }
  0x3c   : > { %s2043_s15 = scalar_lea.vmem %s2262_s2, %s1458_s30  ;;  %s1459_s7 = sshll.u32 %s2282_s18, 3  ;;  %474 = vst [vmem:[#allocation2 + $0x10] sm:$0xff] (!%p1461_p13), %v1874_v32  ;;  %475 = vst [vmem:[#allocation2 + $0x18] sm:$0xff] (!%p1461_p13), %v1874_v32 }
  0x3d   : > { %s2048_s10 = scalar_lea.vmem %s2263_s3, %s1459_s7  ;;  %s2053_s13 = scalar_lea.vmem %s2264_s4, %s1459_s7  ;;  %476 = vst [vmem:[#allocation2 + $0x20] sm:$0xff] (!%p1461_p13), %v1874_v32  ;;  %477 = vst [vmem:[#allocation2 + $0x28] sm:$0xff] (!%p1461_p13), %v1874_v32 }
  0x3e   : > { %s2055_s25 = scalar_lea.vmem [#allocation3], %s1454_s14  ;;  %471 = sbr.rel (%p1461_p13) target bundleno = 75 (0x4b), region = 73  ;;  %478 = vst [vmem:[#allocation2 + $0x30] sm:$0xff] (!%p1461_p13), %v1874_v32  ;;  %479 = vst [vmem:[#allocation2 + $0x38] sm:$0xff] (!%p1461_p13), %v1874_v32 }
  0x3f   : > { %480 = vst [vmem:[#allocation2 + $0x40] sm:$0xff] (!%p1461_p13), %v1874_v32  ;;  %481 = vst [vmem:[#allocation2 + $0x48] sm:$0xff] (!%p1461_p13), %v1874_v32 }
  0x40   : > { %482 = vst [vmem:[#allocation2 + $0x50] sm:$0xff] (!%p1461_p13), %v1874_v32  ;;  %483 = vst [vmem:[#allocation2 + $0x58] sm:$0xff] (!%p1461_p13), %v1874_v32 }
  0x41   : > { %484 = vst [vmem:[#allocation2 + $0x60] sm:$0xff] (!%p1461_p13), %v1874_v32  ;;  %485 = vst [vmem:[#allocation2 + $0x68] sm:$0xff] (!%p1461_p13), %v1874_v32 }
  0x42   : > { %486 = vst [vmem:[#allocation2 + $0x70] sm:$0xff] (!%p1461_p13), %v1874_v32  ;;  %487 = vst [vmem:[#allocation2 + $0x78] sm:$0xff] (!%p1461_p13), %v1874_v32 }
  0x43   : > { %488 = vst [vmem:[#allocation2 + $0x80] sm:$0xff] (!%p1461_p13), %v1874_v32  ;;  %489 = vst [vmem:[#allocation2 + $0x88] sm:$0xff] (!%p1461_p13), %v1874_v32 }
  0x44   : > { %490 = vst [vmem:[#allocation2 + $0x90] sm:$0xff] (!%p1461_p13), %v1874_v32  ;;  %491 = vst [vmem:[#allocation2 + $0x98] sm:$0xff] (!%p1461_p13), %v1874_v32 }
  0x45   : > { %492 = vst [vmem:[#allocation2 + $0xa0] sm:$0xff] %v1874_v32  ;;  %493 = vst [vmem:[#allocation2 + $0xa8] sm:$0xff] %v1874_v32 }
  0x46   : > { %494 = vst [vmem:[#allocation2 + $0xb0] sm:$0xff] %v1874_v32  ;;  %495 = vst [vmem:[#allocation2 + $0xb8] sm:$0xff] %v1874_v32 }
  0x47   : > { %496 = vst [vmem:[#allocation2 + $0xc0] sm:$0xff] %v1874_v32  ;;  %497 = vst [vmem:[#allocation2 + $0xc8] sm:$0xff] %v1874_v32 }
  0x48   : > { %498 = vst [vmem:[#allocation2 + $0xd0] sm:$0xff] %v1874_v32  ;;  %499 = vst [vmem:[#allocation2 + $0xd8] sm:$0xff] %v1874_v32 }
  0x49   : > { %500 = vst [vmem:[#allocation2 + $0xe0] sm:$0xff] %v1874_v32  ;;  %501 = vst [vmem:[#allocation2 + $0xe8] sm:$0xff] %v1874_v32 }
  0x4a   : > { %502 = vst [vmem:[#allocation2 + $0xf0] sm:$0xff] %v1874_v32  ;;  %503 = vst [vmem:[#allocation2 + $0xf8] sm:$0xff] %v1874_v32 }
  0x4b PF: > { %v1794_v33 = vld [vmem:[%s2037_s29] sm:$0xff]   ;;  %v1795_v34 = vld [vmem:[%s2037_s29 + $0x8] sm:$0xff]   ;;  %v1796_v35 = vld [vmem:[%s2037_s29 + $0x10] sm:$0xff]   ;;  %p1486_p0 = scmp.ne.s32.totalorder %s1856_s17, 2 }
  0x4c   : > { %1672 = vmatprep.subr.bf16.mxu0 %v1794_v33  ;;  %1720 = vmatprep.subr.bf16.mxu1 %v1794_v33  ;;  %v1797_v36 = vld [vmem:[%s2037_s29 + $0x18] sm:$0xff]   ;;  %v1802_v37 = vld [vmem:[%s2055_s25] sm:$0xff]   ;;  %v1798_v39 = vld [vmem:[%s2037_s29 + $0x20] sm:$0xff]  }
  0x4d   : > { %1673 = vmatpush3.bf16.msra.mxu0 %v1794_v33  ;;  %1728 = vmatpush3.bf16.msra.mxu1 %v1794_v33  ;;  %v1803_v38 = vld [vmem:[%s2055_s25 + $0x40] sm:$0xff]   ;;  %v1799_v40 = vld [vmem:[%s2037_s29 + $0x28] sm:$0xff]   ;;  %v1801_v42 = vld [vmem:[%s2037_s29 + $0x38] sm:$0xff]  }
  0x4e   : > { %1674 = vmatprep.subr.bf16.mxu0 %v1795_v34  ;;  %1721 = vmatprep.subr.bf16.mxu1 %v1795_v34  ;;  %v1800_v41 = vld [vmem:[%s2037_s29 + $0x30] sm:$0xff]   ;;  %v1804_v43 = vld [vmem:[%s2055_s25 + $0x8] sm:$0xff]   ;;  %v1806_v45 = vld [vmem:[%s2055_s25 + $0x10] sm:$0xff]  }
  0x4f   : > { %1688 = vmatprep.mubr.bf16.mxu0 %v1802_v37  ;;  %1704 = vmatprep.mubr.bf16.mxu1 %v1803_v38  ;;  %v1805_v44 = vld [vmem:[%s2055_s25 + $0x48] sm:$0xff]   ;;  %v1807_v46 = vld [vmem:[%s2055_s25 + $0x50] sm:$0xff]   ;;  %v1808_v47 = vld [vmem:[%s2055_s25 + $0x18] sm:$0xff]  }
  0x50   : > { %v1809_v48 = vld [vmem:[%s2055_s25 + $0x58] sm:$0xff]   ;;  %v1810_v49 = vld [vmem:[%s2055_s25 + $0x20] sm:$0xff]   ;;  %v1812_v51 = vld [vmem:[%s2055_s25 + $0x28] sm:$0xff]  }
  0x51   : > { %1675 = vmatpush3.bf16.msra.mxu0 %v1795_v34  ;;  %1729 = vmatpush3.bf16.msra.mxu1 %v1795_v34  ;;  %v1811_v50 = vld [vmem:[%s2055_s25 + $0x60] sm:$0xff]   ;;  %v1813_v52 = vld [vmem:[%s2055_s25 + $0x68] sm:$0xff]   ;;  %v1814_v53 = vld [vmem:[%s2055_s25 + $0x30] sm:$0xff]  }
  0x52   : > { %1676 = vmatprep.subr.bf16.mxu0 %v1796_v35  ;;  %1722 = vmatprep.subr.bf16.mxu1 %v1796_v35  ;;  %v1815_v54 = vld [vmem:[%s2055_s25 + $0x70] sm:$0xff]   ;;  %v1816_v55 = vld [vmem:[%s2055_s25 + $0x38] sm:$0xff]   ;;  %v504_v59 = vld [vmem:[#allocation2] sm:$0xff] }
  0x53   : > { %v1817_v56 = vld [vmem:[%s2055_s25 + $0x78] sm:$0xff]   ;;  %v506_v57 = vld [vmem:[#allocation2 + $0x10] sm:$0xff]  ;;  %v520_v60 = vld [vmem:[#allocation2 + $0x80] sm:$0xff] }
  0x54   : > { %v522_v58 = vld [vmem:[#allocation2 + $0x90] sm:$0xff]  ;;  %v507_v63 = vld [vmem:[#allocation2 + $0x18] sm:$0xff]  ;;  %v505_v5 = vld [vmem:[#allocation2 + $0x8] sm:$0xff] }
  0x55   : > { %1677 = vmatpush3.bf16.msra.mxu0 %v1796_v35  ;;  %1730 = vmatpush3.bf16.msra.mxu1 %v1796_v35  ;;  %v523_v0 = vld [vmem:[#allocation2 + $0x98] sm:$0xff]  ;;  %v521_v6 = vld [vmem:[#allocation2 + $0x88] sm:$0xff]  ;;  %v510_v17 = vld [vmem:[#allocation2 + $0x30] sm:$0xff] }
  0x56   : > { %1678 = vmatprep.subr.bf16.mxu0 %v1797_v36  ;;  %1723 = vmatprep.subr.bf16.mxu1 %v1797_v36  ;;  %v526_v18 = vld [vmem:[#allocation2 + $0xb0] sm:$0xff]  ;;  %v508_v19 = vld [vmem:[#allocation2 + $0x20] sm:$0xff]  ;;  %v511_v23 = vld [vmem:[#allocation2 + $0x38] sm:$0xff] }
  0x57   : > { %v524_v20 = vld [vmem:[#allocation2 + $0xa0] sm:$0xff]  ;;  %v527_v24 = vld [vmem:[#allocation2 + $0xb8] sm:$0xff]  ;;  %v509_v29 = vld [vmem:[#allocation2 + $0x28] sm:$0xff] }
  0x58   : > { %v525_v30 = vld [vmem:[#allocation2 + $0xa8] sm:$0xff] }
  0x59   : > { %1679 = vmatpush3.bf16.msra.mxu0 %v1797_v36  ;;  %1731 = vmatpush3.bf16.msra.mxu1 %v1797_v36 }
  0x5a   : > { %1680 = vmatprep.subr.bf16.mxu0 %v1798_v39  ;;  %1724 = vmatprep.subr.bf16.mxu1 %v1798_v39 }
  0x5d   : > { %1681 = vmatpush3.bf16.msra.mxu0 %v1798_v39  ;;  %1732 = vmatpush3.bf16.msra.mxu1 %v1798_v39 }
  0x5e   : > { %1682 = vmatprep.subr.bf16.mxu0 %v1799_v40  ;;  %1725 = vmatprep.subr.bf16.mxu1 %v1799_v40 }
  0x61   : > { %1683 = vmatpush3.bf16.msra.mxu0 %v1799_v40  ;;  %1733 = vmatpush3.bf16.msra.mxu1 %v1799_v40 }
  0x62   : > { %1684 = vmatprep.subr.bf16.mxu0 %v1800_v41  ;;  %1726 = vmatprep.subr.bf16.mxu1 %v1800_v41 }
  0x65   : > { %1685 = vmatpush3.bf16.msra.mxu0 %v1800_v41  ;;  %1734 = vmatpush3.bf16.msra.mxu1 %v1800_v41  ;;  %v514_v41 = vld [vmem:[#allocation2 + $0x50] sm:$0xff] }
  0x66   : > { %1686 = vmatprep.subr.bf16.mxu0 %v1801_v42  ;;  %1727 = vmatprep.subr.bf16.mxu1 %v1801_v42 }
  0x69   : > { %1687 = vmatpush3.bf16.msra.mxu0 %v1801_v42  ;;  %1735 = vmatpush3.bf16.msra.mxu1 %v1801_v42  ;;  %v530_v42 = vld [vmem:[#allocation2 + $0xd0] sm:$0xff] }
  0x6c   : > { %1689 = vmatmul.mubr.bf16.vlgmr.msra.gmra.mrb[0].mxu0 %v1804_v43  ;;  %1705 = vmatmul.mubr.bf16.vlgmr.msra.gmra.mrb[0].mxu1 %v1805_v44  ;;  %v512_v43 = vld [vmem:[#allocation2 + $0x40] sm:$0xff] }
  0x6d   : > { %1692 = vmatprep.mubr.bf16.mxu0 %v1806_v45  ;;  %1708 = vmatprep.mubr.bf16.mxu1 %v1807_v46  ;;  %v528_v44 = vld [vmem:[#allocation2 + $0xc0] sm:$0xff] }
  0x74   : > { %1693 = vmatmul.mubr.bf16.gmra.mrb[4].mxu0 %v1808_v47  ;;  %1709 = vmatmul.mubr.bf16.gmra.mrb[4].mxu1 %v1809_v48  ;;  %v515_v47 = vld [vmem:[#allocation2 + $0x58] sm:$0xff] }
  0x75   : > { %1696 = vmatprep.mubr.bf16.mxu0 %v1810_v49  ;;  %1712 = vmatprep.mubr.bf16.mxu1 %v1811_v50  ;;  %v531_v48 = vld [vmem:[#allocation2 + $0xd8] sm:$0xff] }
  0x7c   : > { %1697 = vmatmul.mubr.bf16.gmra.mrb[8].mxu0 %v1812_v51  ;;  %1713 = vmatmul.mubr.bf16.gmra.mrb[8].mxu1 %v1813_v52 }
  0x7d   : > { %1700 = vmatprep.mubr.bf16.mxu0 %v1814_v53  ;;  %1716 = vmatprep.mubr.bf16.mxu1 %v1815_v54  ;;  %v513_v53 = vld [vmem:[#allocation2 + $0x48] sm:$0xff] }
  0x7e   : > { %v529_v54 = vld [vmem:[#allocation2 + $0xc8] sm:$0xff] }
  0x84   : > { %1701 = vmatmul.mubr.bf16.gmra.mrb[12].mxu0 %v1816_v55  ;;  %1717 = vmatmul.mubr.bf16.gmra.mrb[12].mxu1 %v1817_v56 }
 0x13f   : > { %v1690_v61 = vpop.f32.mrb[0].mxu0  ;;  %v1706_v62 = vpop.f32.mrb[0].mxu1 }
 0x140   : > { %v891_v1 = vadd.f32 %v1690_v61, %v506_v57  ;;  %v907_v2 = vadd.f32 %v1706_v62, %v522_v58  ;;  %v762_v3 = vpop.f32.mrb[1].mxu0  ;;  %v826_v4 = vpop.f32.mrb[1].mxu1 }
 0x141   : > { %v889_v7 = vadd.f32 %v762_v3, %v504_v59  ;;  %v905_v8 = vadd.f32 %v826_v4, %v520_v60  ;;  %v1691_v9 = vpop.f32.mrb[2].mxu0  ;;  %v1707_v10 = vpop.f32.mrb[2].mxu1  ;;  %v516_v3 = vld [vmem:[#allocation2 + $0x60] sm:$0xff] }
 0x142   : > { %923 = vst [vmem:[#allocation2 + $0x10] sm:$0xff] %v891_v1  ;;  %939 = vst [vmem:[#allocation2 + $0x90] sm:$0xff] %v907_v2  ;;  %v892_v11 = vadd.f32 %v1691_v9, %v507_v63  ;;  %v908_v12 = vadd.f32 %v1707_v10, %v523_v0  ;;  %v765_v13 = vpop.f32.mrb[3].mxu0  ;;  %v829_v14 = vpop.f32.mrb[3].mxu1  ;;  %v518_v1 = vld [vmem:[#allocation2 + $0x70] sm:$0xff]  ;;  %v532_v4 = vld [vmem:[#allocation2 + $0xe0] sm:$0xff] }
 0x143   : > { %921 = vst [vmem:[#allocation2] sm:$0xff] %v889_v7  ;;  %937 = vst [vmem:[#allocation2 + $0x80] sm:$0xff] %v905_v8  ;;  %v890_v15 = vadd.f32 %v765_v13, %v505_v5  ;;  %v906_v16 = vadd.f32 %v829_v14, %v521_v6  ;;  %v534_v2 = vld [vmem:[#allocation2 + $0xf0] sm:$0xff]  ;;  %v519_v7 = vld [vmem:[#allocation2 + $0x78] sm:$0xff] }
 0x144   : > { %924 = vst [vmem:[#allocation2 + $0x18] sm:$0xff] %v892_v11  ;;  %940 = vst [vmem:[#allocation2 + $0x98] sm:$0xff] %v908_v12  ;;  %v535_v8 = vld [vmem:[#allocation2 + $0xf8] sm:$0xff]  ;;  %v517_v13 = vld [vmem:[#allocation2 + $0x68] sm:$0xff] }
 0x145   : > { %922 = vst [vmem:[#allocation2 + $0x8] sm:$0xff] %v890_v15  ;;  %938 = vst [vmem:[#allocation2 + $0x88] sm:$0xff] %v906_v16  ;;  %v533_v14 = vld [vmem:[#allocation2 + $0xe8] sm:$0xff] }
 0x147   : > { %v1694_v21 = vpop.f32.mrb[4].mxu0  ;;  %v1710_v22 = vpop.f32.mrb[4].mxu1 }
 0x148   : > { %v895_v25 = vadd.f32 %v1694_v21, %v510_v17  ;;  %v911_v26 = vadd.f32 %v1710_v22, %v526_v18  ;;  %v778_v27 = vpop.f32.mrb[5].mxu0  ;;  %v842_v28 = vpop.f32.mrb[5].mxu1 }
 0x149   : > { %v893_v31 = vadd.f32 %v778_v27, %v508_v19  ;;  %v909_v32 = vadd.f32 %v842_v28, %v524_v20  ;;  %v1695_v33 = vpop.f32.mrb[6].mxu0  ;;  %v1711_v34 = vpop.f32.mrb[6].mxu1  ;;  %v959_v27 = vld [vmem:[#allocation2 + $0x10] sm:$0xff] (!%p1486_p0) }
 0x14a   : > { %927 = vst [vmem:[#allocation2 + $0x30] sm:$0xff] %v895_v25  ;;  %943 = vst [vmem:[#allocation2 + $0xb0] sm:$0xff] %v911_v26  ;;  %v896_v35 = vadd.f32 %v1695_v33, %v511_v23  ;;  %v912_v36 = vadd.f32 %v1711_v34, %v527_v24  ;;  %v781_v37 = vpop.f32.mrb[7].mxu0  ;;  %v845_v38 = vpop.f32.mrb[7].mxu1  ;;  %v957_v25 = vld [vmem:[#allocation2] sm:$0xff] (!%p1486_p0) }
 0x14b   : > { %925 = vst [vmem:[#allocation2 + $0x20] sm:$0xff] %v893_v31  ;;  %941 = vst [vmem:[#allocation2 + $0xa0] sm:$0xff] %v909_v32  ;;  %v894_v39 = vadd.f32 %v781_v37, %v509_v29  ;;  %v910_v40 = vadd.f32 %v845_v38, %v525_v30  ;;  %v1187_v30 = vmul.f32 (!%p1486_p0), %v957_v25, %v957_v25  ;;  %v960_v32 = vld [vmem:[#allocation2 + $0x18] sm:$0xff] (!%p1486_p0) }
 0x14c   : > { %928 = vst [vmem:[#allocation2 + $0x38] sm:$0xff] %v896_v35  ;;  %944 = vst [vmem:[#allocation2 + $0xb8] sm:$0xff] %v912_v36  ;;  %v958_v26 = vld [vmem:[#allocation2 + $0x8] sm:$0xff] (!%p1486_p0)  ;;  %v1561_v35 = vpack.c.bf16 (!%p1486_p0), %v960_v32, %v959_v27  ;;  %v1189_v36 = vmul.f32 (!%p1486_p0), %v959_v27, %v959_v27 }
 0x14d   : > { %926 = vst [vmem:[#allocation2 + $0x28] sm:$0xff] %v894_v39  ;;  %942 = vst [vmem:[#allocation2 + $0xa8] sm:$0xff] %v910_v40  ;;  %v1556_v28 = vpack.c.bf16 (!%p1486_p0), %v958_v26, %v957_v25  ;;  %v1149_v29 = vadd.f32 (!%p1486_p0), %v958_v26, %v957_v25  ;;  %v1188_v31 = vmul.f32 (!%p1486_p0), %v958_v26, %v958_v26 }
 0x14e   : > { %1633 = vst [vmem:[%s2043_s15 + $0x8] sm:$0xff] (!%p1486_p0), %v1561_v35  }
 0x14f   : > { %v1698_v45 = vpop.f32.mrb[8].mxu0  ;;  %v1714_v46 = vpop.f32.mrb[8].mxu1  ;;  %1557 = vst [vmem:[%s2043_s15] sm:$0xff] (!%p1486_p0), %v1556_v28   ;;  %v1219_v39 = vadd.f32 (!%p1486_p0), %v1188_v31, %v1187_v30  ;;  %v1150_v40 = vadd.f32 (!%p1486_p0), %v1149_v29, %v959_v27 }
 0x150   : > { %v899_v49 = vadd.f32 %v1698_v45, %v514_v41  ;;  %v915_v50 = vadd.f32 %v1714_v46, %v530_v42  ;;  %v794_v51 = vpop.f32.mrb[9].mxu0  ;;  %v858_v52 = vpop.f32.mrb[9].mxu1  ;;  %v1190_v41 = vmul.f32 (!%p1486_p0), %v960_v32, %v960_v32 }
 0x151   : > { %v897_v55 = vadd.f32 %v794_v51, %v512_v43  ;;  %v913_v56 = vadd.f32 %v858_v52, %v528_v44  ;;  %v1699_v57 = vpop.f32.mrb[10].mxu0  ;;  %v1715_v58 = vpop.f32.mrb[10].mxu1  ;;  %v963_v38 = vld [vmem:[#allocation2 + $0x30] sm:$0xff] (!%p1486_p0) }
 0x152   : > { %931 = vst [vmem:[#allocation2 + $0x50] sm:$0xff] %v899_v49  ;;  %947 = vst [vmem:[#allocation2 + $0xd0] sm:$0xff] %v915_v50  ;;  %v900_v59 = vadd.f32 %v1699_v57, %v515_v47  ;;  %v916_v60 = vadd.f32 %v1715_v58, %v531_v48  ;;  %v797_v61 = vpop.f32.mrb[11].mxu0  ;;  %v861_v62 = vpop.f32.mrb[11].mxu1  ;;  %v961_v33 = vld [vmem:[#allocation2 + $0x20] sm:$0xff] (!%p1486_p0)  ;;  %v1151_v48 = vadd.f32 (!%p1486_p0), %v1150_v40, %v960_v32 }
 0x153   : > { %929 = vst [vmem:[#allocation2 + $0x40] sm:$0xff] %v897_v55  ;;  %945 = vst [vmem:[#allocation2 + $0xc0] sm:$0xff] %v913_v56  ;;  %v898_v63 = vadd.f32 %v797_v61, %v513_v53  ;;  %v914_v0 = vadd.f32 %v861_v62, %v529_v54  ;;  %v964_v42 = vld [vmem:[#allocation2 + $0x38] sm:$0xff] (!%p1486_p0)  ;;  %v1220_v49 = vadd.f32 (!%p1486_p0), %v1219_v39, %v1189_v36  ;;  %v2107_v61 = vld [vmem:[#allocation2 + $0x80] sm:$0xff] (!%p1486_p0) }
 0x154   : > { %932 = vst [vmem:[#allocation2 + $0x58] sm:$0xff] %v900_v59  ;;  %948 = vst [vmem:[#allocation2 + $0xd8] sm:$0xff] %v916_v60  ;;  %v962_v34 = vld [vmem:[#allocation2 + $0x28] sm:$0xff] (!%p1486_p0)  ;;  %v1571_v45 = vpack.c.bf16 (!%p1486_p0), %v964_v42, %v963_v38  ;;  %v1191_v50 = vmul.f32 (!%p1486_p0), %v961_v33, %v961_v33  ;;  %v1152_v58 = vadd.f32 (!%p1486_p0), %v1151_v48, %v961_v33 }
 0x155   : > { %930 = vst [vmem:[#allocation2 + $0x48] sm:$0xff] %v898_v63  ;;  %946 = vst [vmem:[#allocation2 + $0xc8] sm:$0xff] %v914_v0  ;;  %v1566_v37 = vpack.c.bf16 (!%p1486_p0), %v962_v34, %v961_v33  ;;  %v1221_v57 = vadd.f32 (!%p1486_p0), %v1220_v49, %v1190_v41  ;;  %v1192_v59 = vmul.f32 (!%p1486_p0), %v962_v34, %v962_v34  ;;  %v2109_v62 = vld [vmem:[#allocation2 + $0x88] sm:$0xff] (!%p1486_p0) }
 0x156   : > { %1635 = vst [vmem:[%s2043_s15 + $0x18] sm:$0xff] (!%p1486_p0), %v1571_v45   ;;  %v1596_v0 = vpack.c.bf16 (!%p1486_p0), %v2109_v62, %v2107_v61 }
 0x157   : > { %v1702_v5 = vpop.f32.mrb[12].mxu0  ;;  %v1718_v6 = vpop.f32.mrb[12].mxu1  ;;  %956 = sbr.rel (%p1486_p0) target bundleno = 417 (0x1a1), region = 77  ;;  %1634 = vst [vmem:[%s2043_s15 + $0x10] sm:$0xff] (!%p1486_p0), %v1566_v37  }
 0x158   : > { %v903_v9 = vadd.f32 %v1702_v5, %v518_v1  ;;  %v919_v10 = vadd.f32 %v1718_v6, %v534_v2  ;;  %v810_v11 = vpop.f32.mrb[13].mxu0  ;;  %v874_v12 = vpop.f32.mrb[13].mxu1  ;;  %v2117_v1 = vld [vmem:[#allocation2 + $0x90] sm:$0xff] (!%p1486_p0)  ;;  %v1153_v2 = vadd.f32 (!%p1486_p0), %v1152_v58, %v962_v34  ;;  %v2119_v5 = vld [vmem:[#allocation2 + $0x98] sm:$0xff] (!%p1486_p0)  ;;  %v2121_v6 = vld [vmem:[#allocation2 + $0xa0] sm:$0xff] (!%p1486_p0)  ;;  %1640 = vst [vmem:[%s2043_s15 + $0x40] sm:$0xff] (!%p1486_p0), %v1596_v0  }
 0x159   : > { %v901_v15 = vadd.f32 %v810_v11, %v516_v3  ;;  %v917_v16 = vadd.f32 %v874_v12, %v532_v4  ;;  %v1703_v17 = vpop.f32.mrb[14].mxu0  ;;  %v1719_v18 = vpop.f32.mrb[14].mxu1  ;;  %v2089_v47 = vld [vmem:[#allocation2 + $0x50] sm:$0xff] (!%p1486_p0)  ;;  %v1222_v3 = vadd.f32 (!%p1486_p0), %v1221_v57, %v1191_v50  ;;  %v1193_v4 = vmul.f32 (!%p1486_p0), %v963_v38, %v963_v38 }
 0x15a   : > { %935 = vst [vmem:[#allocation2 + $0x70] sm:$0xff] %v903_v9  ;;  %951 = vst [vmem:[#allocation2 + $0xf0] sm:$0xff] %v919_v10  ;;  %v904_v19 = vadd.f32 %v1703_v17, %v519_v7  ;;  %v920_v20 = vadd.f32 %v1719_v18, %v535_v8  ;;  %v813_v21 = vpop.f32.mrb[15].mxu0  ;;  %v877_v22 = vpop.f32.mrb[15].mxu1  ;;  %v965_v43 = vld [vmem:[#allocation2 + $0x40] sm:$0xff] (!%p1486_p0)  ;;  %v2123_v7 = vld [vmem:[#allocation2 + $0xa8] sm:$0xff] (!%p1486_p0)  ;;  %v1601_v8 = vpack.c.bf16 (!%p1486_p0), %v2119_v5, %v2117_v1 }
 0x15b   : > { %933 = vst [vmem:[#allocation2 + $0x60] sm:$0xff] %v901_v15  ;;  %949 = vst [vmem:[#allocation2 + $0xe0] sm:$0xff] %v917_v16  ;;  %v902_v23 = vadd.f32 %v813_v21, %v517_v13  ;;  %v918_v24 = vadd.f32 %v877_v22, %v533_v14  ;;  %v2091_v51 = vld [vmem:[#allocation2 + $0x58] sm:$0xff] (!%p1486_p0)  ;;  %v1606_v9 = vpack.c.bf16 (!%p1486_p0), %v2123_v7, %v2121_v6  ;;  %v2131_v10 = vld [vmem:[#allocation2 + $0xb0] sm:$0xff] (!%p1486_p0) }
 0x15c   : > { %936 = vst [vmem:[#allocation2 + $0x78] sm:$0xff] %v904_v19  ;;  %952 = vst [vmem:[#allocation2 + $0xf8] sm:$0xff] %v920_v20  ;;  %v2084_v44 = vld [vmem:[#allocation2 + $0x48] sm:$0xff] (!%p1486_p0)  ;;  %v1581_v54 = vpack.c.bf16 (!%p1486_p0), %v2091_v51, %v2089_v47  ;;  %v1223_v11 = vadd.f32 (!%p1486_p0), %v1222_v3, %v1192_v59  ;;  %v1154_v12 = vadd.f32 (!%p1486_p0), %v1153_v2, %v963_v38  ;;  %v2133_v14 = vld [vmem:[#allocation2 + $0xb8] sm:$0xff] (!%p1486_p0) }
 0x15d   : > { %934 = vst [vmem:[#allocation2 + $0x68] sm:$0xff] %v902_v23  ;;  %950 = vst [vmem:[#allocation2 + $0xe8] sm:$0xff] %v918_v24  ;;  %v1576_v46 = vpack.c.bf16 (!%p1486_p0), %v2084_v44, %v965_v43  ;;  %v1194_v13 = vmul.f32 (!%p1486_p0), %v964_v42, %v964_v42  ;;  %v2135_v15 = vld [vmem:[#allocation2 + $0xc0] sm:$0xff] (!%p1486_p0)  ;;  %v2137_v16 = vld [vmem:[#allocation2 + $0xc8] sm:$0xff] (!%p1486_p0)  ;;  %v1611_v17 = vpack.c.bf16 (!%p1486_p0), %v2133_v14, %v2131_v10 }
 0x15e   : > { %1637 = vst [vmem:[%s2043_s15 + $0x28] sm:$0xff] %v1581_v54   ;;  %1641 = vst [vmem:[%s2043_s15 + $0x48] sm:$0xff] %v1601_v8   ;;  %v1616_v18 = vpack.c.bf16 %v2137_v16, %v2135_v15  ;;  %v2145_v19 = vld [vmem:[#allocation2 + $0xd0] sm:$0xff]  ;;  %v1155_v20 = vadd.f32 %v1154_v12, %v964_v42  ;;  %v1224_v21 = vadd.f32 %v1223_v11, %v1193_v4  ;;  %v2147_v23 = vld [vmem:[#allocation2 + $0xd8] sm:$0xff] }
 0x15f   : > { %1636 = vst [vmem:[%s2043_s15 + $0x20] sm:$0xff] %v1576_v46   ;;  %1642 = vst [vmem:[%s2043_s15 + $0x50] sm:$0xff] %v1606_v9   ;;  %v1195_v22 = vmul.f32 %v965_v43, %v965_v43  ;;  %v1621_v26 = vpack.c.bf16 %v2147_v23, %v2145_v19  ;;  %v1196_v30 = vmul.f32 %v2084_v44, %v2084_v44 }
 0x160   : > { %1643 = vst [vmem:[%s2043_s15 + $0x58] sm:$0xff] %v1611_v17   ;;  %1644 = vst [vmem:[%s2043_s15 + $0x60] sm:$0xff] %v1616_v18   ;;  %v1225_v28 = vadd.f32 %v1224_v21, %v1194_v13  ;;  %v1156_v29 = vadd.f32 %v1155_v20, %v965_v43  ;;  %v1197_v36 = vmul.f32 %v2089_v47, %v2089_v47 }
 0x161   : > { %v2103_v56 = vld [vmem:[#allocation2 + $0x70] sm:$0xff]  ;;  %1645 = vst [vmem:[%s2043_s15 + $0x68] sm:$0xff] %v1621_v26   ;;  %v1198_v39 = vmul.f32 %v2091_v51, %v2091_v51 }
 0x162   : > { %v2093_v52 = vld [vmem:[#allocation2 + $0x60] sm:$0xff]  ;;  %v2161_v31 = vld [vmem:[#allocation2 + $0xf0] sm:$0xff]  ;;  %v1157_v34 = vadd.f32 %v1156_v29, %v2084_v44  ;;  %v1226_v35 = vadd.f32 %v1225_v28, %v1195_v22 }
 0x163   : > { %v2105_v60 = vld [vmem:[#allocation2 + $0x78] sm:$0xff]  ;;  %v2149_v24 = vld [vmem:[#allocation2 + $0xe0] sm:$0xff]  ;;  %v1199_v42 = vmul.f32 %v2093_v52, %v2093_v52 }
 0x164   : > { %v2095_v53 = vld [vmem:[#allocation2 + $0x68] sm:$0xff]  ;;  %v1591_v63 = vpack.c.bf16 %v2105_v60, %v2103_v56  ;;  %v2163_v32 = vld [vmem:[#allocation2 + $0xf8] sm:$0xff]  ;;  %v1227_v37 = vadd.f32 %v1226_v35, %v1196_v30  ;;  %v1158_v38 = vadd.f32 %v1157_v34, %v2089_v47  ;;  %v1201_v47 = vmul.f32 %v2103_v56, %v2103_v56 }
 0x165   : > { %v1586_v55 = vpack.c.bf16 %v2095_v53, %v2093_v52  ;;  %v2151_v25 = vld [vmem:[#allocation2 + $0xe8] sm:$0xff]  ;;  %v1631_v33 = vpack.c.bf16 %v2163_v32, %v2161_v31  ;;  %v1200_v45 = vmul.f32 %v2095_v53, %v2095_v53 }
 0x166   : > { %1639 = vst [vmem:[%s2043_s15 + $0x38] sm:$0xff] %v1591_v63   ;;  %v1626_v27 = vpack.c.bf16 %v2151_v25, %v2149_v24  ;;  %v1159_v40 = vadd.f32 %v1158_v38, %v2091_v51  ;;  %v1228_v41 = vadd.f32 %v1227_v37, %v1197_v36  ;;  %v1202_v51 = vmul.f32 %v2105_v60, %v2105_v60 }
 0x167   : > { %1638 = vst [vmem:[%s2043_s15 + $0x30] sm:$0xff] %v1586_v55   ;;  %1647 = vst [vmem:[%s2043_s15 + $0x78] sm:$0xff] %v1631_v33  }
 0x168   : > { %1646 = vst [vmem:[%s2043_s15 + $0x70] sm:$0xff] %v1626_v27   ;;  %v1229_v43 = vadd.f32 %v1228_v41, %v1198_v39  ;;  %v1160_v44 = vadd.f32 %v1159_v40, %v2093_v52  ;;  %v1203_v52 = vmul.f32 %v2107_v61, %v2107_v61 }
 0x16a   : > { %v1161_v46 = vadd.f32 %v1160_v44, %v2095_v53  ;;  %v1230_v48 = vadd.f32 %v1229_v43, %v1199_v42  ;;  %v1204_v53 = vmul.f32 %v2109_v62, %v2109_v62 }
 0x16c   : > { %v1231_v49 = vadd.f32 %v1230_v48, %v1200_v45  ;;  %v1162_v50 = vadd.f32 %v1161_v46, %v2103_v56  ;;  %v1205_v56 = vmul.f32 %v2117_v1, %v2117_v1 }
 0x16e   : > { %v1163_v54 = vadd.f32 %v1162_v50, %v2105_v60  ;;  %v1232_v55 = vadd.f32 %v1231_v49, %v1201_v47  ;;  %v1206_v60 = vmul.f32 %v2119_v5, %v2119_v5 }
 0x170   : > { %v1233_v57 = vadd.f32 %v1232_v55, %v1202_v51  ;;  %v1164_v58 = vadd.f32 %v1163_v54, %v2107_v61  ;;  %v1207_v61 = vmul.f32 %v2121_v6, %v2121_v6 }
 0x172   : > { %v1165_v59 = vadd.f32 %v1164_v58, %v2109_v62  ;;  %v1234_v63 = vadd.f32 %v1233_v57, %v1203_v52  ;;  %v1208_v62 = vmul.f32 %v2123_v7, %v2123_v7 }
 0x174   : > { %v1235_v0 = vadd.f32 %v1234_v63, %v1204_v53  ;;  %v1166_v2 = vadd.f32 %v1165_v59, %v2117_v1  ;;  %v1209_v1 = vmul.f32 %v2131_v10, %v2131_v10 }
 0x176   : > { %v1167_v3 = vadd.f32 %v1166_v2, %v2119_v5  ;;  %v1236_v4 = vadd.f32 %v1235_v0, %v1205_v56  ;;  %v1210_v5 = vmul.f32 %v2133_v14, %v2133_v14 }
 0x178   : > { %v1237_v8 = vadd.f32 %v1236_v4, %v1206_v60  ;;  %v1168_v9 = vadd.f32 %v1167_v3, %v2121_v6  ;;  %v1211_v6 = vmul.f32 %v2135_v15, %v2135_v15 }
 0x17a   : > { %v1169_v11 = vadd.f32 %v1168_v9, %v2123_v7  ;;  %v1238_v12 = vadd.f32 %v1237_v8, %v1207_v61  ;;  %v1212_v7 = vmul.f32 %v2137_v16, %v2137_v16 }
 0x17c   : > { %v1239_v13 = vadd.f32 %v1238_v12, %v1208_v62  ;;  %v1170_v17 = vadd.f32 %v1169_v11, %v2131_v10  ;;  %v1213_v10 = vmul.f32 %v2145_v19, %v2145_v19 }
 0x17e   : > { %v1171_v18 = vadd.f32 %v1170_v17, %v2133_v14  ;;  %v1240_v20 = vadd.f32 %v1239_v13, %v1209_v1  ;;  %v1214_v14 = vmul.f32 %v2147_v23, %v2147_v23 }
 0x180   : > { %v1241_v21 = vadd.f32 %v1240_v20, %v1210_v5  ;;  %v1172_v22 = vadd.f32 %v1171_v18, %v2135_v15  ;;  %v1215_v15 = vmul.f32 %v2149_v24, %v2149_v24 }
 0x182   : > { %v1173_v26 = vadd.f32 %v1172_v22, %v2137_v16  ;;  %v1242_v27 = vadd.f32 %v1241_v21, %v1211_v6  ;;  %v1216_v16 = vmul.f32 %v2151_v25, %v2151_v25 }
 0x184   : > { %v1243_v28 = vadd.f32 %v1242_v27, %v1212_v7  ;;  %v1174_v29 = vadd.f32 %v1173_v26, %v2145_v19  ;;  %v1217_v19 = vmul.f32 %v2161_v31, %v2161_v31 }
 0x186   : > { %v1175_v30 = vadd.f32 %v1174_v29, %v2147_v23  ;;  %v1244_v33 = vadd.f32 %v1243_v28, %v1213_v10  ;;  %v1218_v23 = vmul.f32 %v2163_v32, %v2163_v32 }
 0x188   : > { %v1245_v34 = vadd.f32 %v1244_v33, %v1214_v14  ;;  %v1176_v35 = vadd.f32 %v1175_v30, %v2149_v24 }
 0x18a   : > { %v1177_v36 = vadd.f32 %v1176_v35, %v2151_v25  ;;  %v1246_v37 = vadd.f32 %v1245_v34, %v1215_v15 }
 0x18c   : > { %v1247_v38 = vadd.f32 %v1246_v37, %v1216_v16  ;;  %v1178_v39 = vadd.f32 %v1177_v36, %v2161_v31 }
 0x18e   : > { %v1179_v40 = vadd.f32 %v1178_v39, %v2163_v32  ;;  %v1248_v41 = vadd.f32 %v1247_v38, %v1217_v19 }
 0x190   : > { %v1180_v24 = vrot.slane %v1179_v40, 4  ;;  %v1249_v42 = vadd.f32 %v1248_v41, %v1218_v23 }
 0x192   : > { %v1181_v43 = vadd.f32 %v1180_v24, %v1179_v40  ;;  %v1250_v44 = vrot.slane %v1249_v42, 4 }
 0x194   : > { %v1182_v25 = vrot.slane %v1181_v43, 2  ;;  %v1251_v45 = vadd.f32 %v1250_v44, %v1249_v42 }
 0x196   : > { %v1183_v46 = vadd.f32 %v1182_v25, %v1181_v43  ;;  %v1252_v48 = vrot.slane %v1251_v45, 2 }
 0x198   : > { %v1184_v47 = vrot.slane %v1183_v46, 1  ;;  %v1253_v49 = vadd.f32 %v1252_v48, %v1251_v45 }
 0x19a   : > { %v1185_v50 = vadd.f32 %v1184_v47, %v1183_v46  ;;  %v1254_v31 = vrot.slane %v1253_v49, 1 }
 0x19c   : > { %v1186_v51 = vmul.f32 0.125, %v1185_v50  ;;  %v1255_v54 = vadd.f32 %v1254_v31, %v1253_v49 }
 0x19e   : > { %1257 = vst [vmem:[%s2048_s10] sm:$0xff] %v1186_v51  ;;  %v1256_v55 = vmul.f32 0.125, %v1255_v54 }
 0x1a0   : > { %1258 = vst [vmem:[%s2053_s13] sm:$0xff] %v1256_v55 }
 0x1a1 PF: > { %s15_s21 = sadd.s32 1, %s1872_s21   ;;  %s2265_s15 = smov %s1852_s16 }
 0x1a2   : > { %p12_p1 = scmp.ge.s32.totalorder %s15_s21, 14   ;;  %s2266_s16 = smov %s1951_s28 }
 0x1a3   : > { %s2267_s17 = smov %s1864_s19  ;;  %s2268_s18 = smov %s1868_s20 }
 0x1a4   : > { %s2269_s19 = smov %s2272_s22  ;;  %s2270_s20 = smov %s2276_s23 }
 0x1a5   :  { %14 = sbr.rel (!%p12_p1) target bundleno = 4 (0x4), region = 139 }

// kernel: _lambda_.31
= control target key start
LH: loop header
LB: loop body
LE: loop exit
PB: predicated region body
PF: predicated region fallthrough
CT: control target
= control target key end

     0   :  { %s500_s12 = smov 0   ;;  %s587_s0 = inlined_call_operand.vmem [shape: bf16[256,128], index: 0, kind: input, shape index: {}]   ;;  %s588_s1 = inlined_call_operand.vmem [shape: bf16[256,128], index: 1, kind: input, shape index: {}]   ;;  %s589_s2 = inlined_call_operand.vmem [shape: bf16[256,128], index: 2, kind: input, shape index: {}]   ;;  %s590_s3 = inlined_call_operand.vmem [shape: bf16[256,128], index: 3, kind: output, shape index: {}]  }
   0x1 LB: > { %s394_s13 = sadd.s32 4294967295, %s478_s12   ;;  %p398_p0 = scmp.ge.s32.totalorder %s478_s12, 1  ;;  %s478_s12 = sphi %s500_s12, %s13_s12  }
   0x2   : > { %p160_p1 = scmp.lt.s32.totalorder %s478_s12, 3 }
   0x4   : > { %p161_p2 = pnand %p398_p0, %p160_p1 }
   0x5   : > { %s399_s14 = sshll.u32 (!%p161_p2), %s394_s13, 4 }
   0x6   : > { %164 = sbr.rel (%p161_p2) target bundleno = 40 (0x28), region = 32  ;;  %p195_p3 = scmp.lt.s32.totalorder (!%p161_p2), %s399_s14, 31 }
   0xd   : > { %s592_s14 = smov (!%p195_p3, %s399_s14), 31 }
   0xe   : > { %s400_s15 = sshll.u32 %s592_s14, 2 }
   0xf   : > { %s511_s18 = scalar_lea.vmem %s587_s0, %s400_s15  ;;  %s516_s21 = scalar_lea.vmem %s588_s1, %s400_s15 }
  0x10   : > { %s521_s24 = scalar_lea.vmem %s589_s2, %s400_s15  ;;  %v218_v0 = vld [vmem:[%s511_s18] sm:$0xf]  ;;  %v219_v1 = vld [vmem:[%s511_s18 + $0x4] sm:$0xf]  ;;  %v220_v8 = vld [vmem:[%s511_s18 + $0x8] sm:$0xf]  ;;  %s541_s27 = scalar_lea.vmem %s590_s3, %s400_s15 }
  0x11   : > { %v234_v2 = vld [vmem:[%s516_s21] sm:$0xf]  ;;  %v235_v3 = vld [vmem:[%s516_s21 + $0x4] sm:$0xf]  ;;  %v221_v9 = vld [vmem:[%s511_s18 + $0xc] sm:$0xf] }
  0x12   : > { %v250_v4 = vmax.bf16 %v234_v2, %v218_v0  ;;  %v266_v5 = vld [vmem:[%s521_s24] sm:$0xf]  ;;  %v267_v6 = vld [vmem:[%s521_s24 + $0x4] sm:$0xf]  ;;  %v251_v7 = vmax.bf16 %v235_v3, %v219_v1  ;;  %v236_v10 = vld [vmem:[%s516_s21 + $0x8] sm:$0xf] }
  0x13   : > { %v237_v12 = vld [vmem:[%s516_s21 + $0xc] sm:$0xf]  ;;  %v252_v13 = vmax.bf16 %v236_v10, %v220_v8  ;;  %v268_v14 = vld [vmem:[%s521_s24 + $0x8] sm:$0xf]  ;;  %v222_v18 = vld [vmem:[%s511_s18 + $0x10] sm:$0xf] }
  0x14   : > { %v282_v11 = vmax.bf16 %v266_v5, %v250_v4  ;;  %v269_v15 = vld [vmem:[%s521_s24 + $0xc] sm:$0xf]  ;;  %v283_v16 = vmax.bf16 %v267_v6, %v251_v7  ;;  %v253_v17 = vmax.bf16 %v237_v12, %v221_v9  ;;  %v223_v19 = vld [vmem:[%s511_s18 + $0x14] sm:$0xf]  ;;  %v238_v20 = vld [vmem:[%s516_s21 + $0x10] sm:$0xf] }
  0x15   : > { %v284_v21 = vmax.bf16 %v268_v14, %v252_v13  ;;  %v239_v22 = vld [vmem:[%s516_s21 + $0x14] sm:$0xf]  ;;  %v254_v23 = vmax.bf16 %v238_v20, %v222_v18  ;;  %v270_v24 = vld [vmem:[%s521_s24 + $0x10] sm:$0xf]  ;;  %v224_v29 = vld [vmem:[%s511_s18 + $0x18] sm:$0xf] }
  0x16   : > { %v271_v25 = vld [vmem:[%s521_s24 + $0x14] sm:$0xf]  ;;  %v449_v26 = vcombine.low %v282_v11, %v283_v16  ;;  %v285_v27 = vmax.bf16 %v269_v15, %v253_v17  ;;  %v255_v28 = vmax.bf16 %v239_v22, %v223_v19  ;;  %v225_v30 = vld [vmem:[%s511_s18 + $0x1c] sm:$0xf]  ;;  %v240_v31 = vld [vmem:[%s516_s21 + $0x18] sm:$0xf] }
  0x17   : > { %v286_v32 = vmax.bf16 %v270_v24, %v254_v23  ;;  %v241_v33 = vld [vmem:[%s516_s21 + $0x1c] sm:$0xf]  ;;  %v256_v34 = vmax.bf16 %v240_v31, %v224_v29  ;;  %v272_v35 = vld [vmem:[%s521_s24 + $0x18] sm:$0xf]  ;;  %v226_v40 = vld [vmem:[%s511_s18 + $0x20] sm:$0xf] }
  0x18   : > { %v273_v36 = vld [vmem:[%s521_s24 + $0x1c] sm:$0xf]  ;;  %413 = vst [vmem:[%s541_s27] sm:$0xff] %v449_v26   ;;  %v450_v37 = vcombine.low %v284_v21, %v285_v27  ;;  %v287_v38 = vmax.bf16 %v271_v25, %v255_v28  ;;  %v257_v39 = vmax.bf16 %v241_v33, %v225_v30  ;;  %v227_v41 = vld [vmem:[%s511_s18 + $0x24] sm:$0xf]  ;;  %v242_v42 = vld [vmem:[%s516_s21 + $0x20] sm:$0xf] }
  0x19   : > { %v288_v43 = vmax.bf16 %v272_v35, %v256_v34  ;;  %v243_v44 = vld [vmem:[%s516_s21 + $0x24] sm:$0xf]  ;;  %v258_v45 = vmax.bf16 %v242_v42, %v226_v40  ;;  %v274_v46 = vld [vmem:[%s521_s24 + $0x20] sm:$0xf]  ;;  %v228_v51 = vld [vmem:[%s511_s18 + $0x28] sm:$0xf] }
  0x1a   : > { %v275_v47 = vld [vmem:[%s521_s24 + $0x24] sm:$0xf]  ;;  %451 = vst [vmem:[%s541_s27 + $0x8] sm:$0xff] %v450_v37   ;;  %v452_v48 = vcombine.low %v286_v32, %v287_v38  ;;  %v289_v49 = vmax.bf16 %v273_v36, %v257_v39  ;;  %v259_v50 = vmax.bf16 %v243_v44, %v227_v41  ;;  %v229_v52 = vld [vmem:[%s511_s18 + $0x2c] sm:$0xf] }
  0x1b   : > { %v244_v53 = vld [vmem:[%s516_s21 + $0x28] sm:$0xf]  ;;  %v290_v54 = vmax.bf16 %v274_v46, %v258_v45  ;;  %v245_v55 = vld [vmem:[%s516_s21 + $0x2c] sm:$0xf]  ;;  %v230_v62 = vld [vmem:[%s511_s18 + $0x30] sm:$0xf] }
  0x1c   : > { %v260_v56 = vmax.bf16 %v244_v53, %v228_v51  ;;  %v276_v57 = vld [vmem:[%s521_s24 + $0x28] sm:$0xf]  ;;  %v277_v58 = vld [vmem:[%s521_s24 + $0x2c] sm:$0xf]  ;;  %453 = vst [vmem:[%s541_s27 + $0x10] sm:$0xff] %v452_v48   ;;  %v454_v59 = vcombine.low %v288_v43, %v289_v49  ;;  %v291_v60 = vmax.bf16 %v275_v47, %v259_v50  ;;  %v261_v61 = vmax.bf16 %v245_v55, %v229_v52 }
  0x1d   : > { %v231_v63 = vld [vmem:[%s511_s18 + $0x34] sm:$0xf]  ;;  %v246_v0 = vld [vmem:[%s516_s21 + $0x30] sm:$0xf]  ;;  %v232_v9 = vld [vmem:[%s511_s18 + $0x38] sm:$0xf] }
  0x1e   : > { %v292_v1 = vmax.bf16 %v276_v57, %v260_v56  ;;  %v247_v2 = vld [vmem:[%s516_s21 + $0x34] sm:$0xf]  ;;  %v262_v3 = vmax.bf16 %v246_v0, %v230_v62  ;;  %v278_v4 = vld [vmem:[%s521_s24 + $0x30] sm:$0xf]  ;;  %455 = vst [vmem:[%s541_s27 + $0x18] sm:$0xff] %v454_v59   ;;  %v456_v6 = vcombine.low %v290_v54, %v291_v60  ;;  %v293_v7 = vmax.bf16 %v277_v58, %v261_v61 }
  0x1f   : > { %v279_v5 = vld [vmem:[%s521_s24 + $0x34] sm:$0xf]  ;;  %v263_v8 = vmax.bf16 %v247_v2, %v231_v63  ;;  %v233_v10 = vld [vmem:[%s511_s18 + $0x3c] sm:$0xf]  ;;  %v248_v11 = vld [vmem:[%s516_s21 + $0x38] sm:$0xf] }
  0x20   : > { %v294_v12 = vmax.bf16 %v278_v4, %v262_v3  ;;  %v249_v13 = vld [vmem:[%s516_s21 + $0x3c] sm:$0xf]  ;;  %v264_v14 = vmax.bf16 %v248_v11, %v232_v9  ;;  %v280_v15 = vld [vmem:[%s521_s24 + $0x38] sm:$0xf]  ;;  %457 = vst [vmem:[%s541_s27 + $0x20] sm:$0xff] %v456_v6   ;;  %v458_v17 = vcombine.low %v292_v1, %v293_v7 }
  0x21   : > { %v281_v16 = vld [vmem:[%s521_s24 + $0x3c] sm:$0xf]  ;;  %v295_v18 = vmax.bf16 %v279_v5, %v263_v8  ;;  %v265_v19 = vmax.bf16 %v249_v13, %v233_v10 }
  0x22   : > { %v296_v20 = vmax.bf16 %v280_v15, %v264_v14  ;;  %459 = vst [vmem:[%s541_s27 + $0x28] sm:$0xff] %v458_v17  }
  0x23   : > { %v460_v21 = vcombine.low %v294_v12, %v295_v18  ;;  %v297_v22 = vmax.bf16 %v281_v16, %v265_v19 }
  0x25   : > { %461 = vst [vmem:[%s541_s27 + $0x30] sm:$0xff] %v460_v21   ;;  %v462_v23 = vcombine.low %v296_v20, %v297_v22 }
  0x27   : > { %463 = vst [vmem:[%s541_s27 + $0x38] sm:$0xff] %v462_v23  }
  0x28 PF: > { %s13_s12 = sadd.s32 1, %s478_s12  }
  0x29   : > { %p10_p4 = scmp.ge.s32.totalorder %s13_s12, 4  }
  0x2b   :  { %12 = sbr.rel (!%p10_p4) target bundleno = 1 (0x1), region = 68 }

// kernel: _lambda_.32
= control target key start
LH: loop header
LB: loop body
LE: loop exit
PB: predicated region body
PF: predicated region fallthrough
CT: control target
= control target key end

     0   :  { %s424_s12 = smov 0   ;;  %s477_s0 = inlined_call_operand.vmem [shape: bf16[128,128], index: 0, kind: input, shape index: {}]   ;;  %s478_s1 = inlined_call_operand.vmem [shape: bf16[128,128], index: 1, kind: input, shape index: {}]   ;;  %s479_s2 = inlined_call_operand.vmem [shape: bf16[128,128], index: 2, kind: input, shape index: {}]   ;;  %s480_s3 = inlined_call_operand.vmem [shape: bf16[128,128], index: 3, kind: output, shape index: {}]  }
   0x1 LB: > { %s346_s13 = sadd.s32 4294967295, %s402_s12   ;;  %p350_p0 = scmp.ge.s32.totalorder %s402_s12, 1  ;;  %s402_s12 = sphi %s424_s12, %s13_s12  }
   0x2   : > { %p160_p1 = scmp.lt.s32.totalorder %s402_s12, 3 }
   0x4   : > { %p161_p2 = pnand %p350_p0, %p160_p1 }
   0x5   : > { %s351_s14 = sshll.u32 (!%p161_p2), %s346_s13, 3 }
   0x6   : > { %164 = sbr.rel (%p161_p2) target bundleno = 31 (0x1f), region = 32  ;;  %p195_p3 = scmp.lt.s32.totalorder (!%p161_p2), %s351_s14, 15 }
   0xd   : > { %s482_s14 = smov (!%p195_p3, %s351_s14), 15 }
   0xe   : > { %s352_s15 = sshll.u32 %s482_s14, 2 }
   0xf   : > { %s435_s18 = scalar_lea.vmem %s477_s0, %s352_s15  ;;  %s440_s21 = scalar_lea.vmem %s478_s1, %s352_s15 }
  0x10   : > { %s445_s24 = scalar_lea.vmem %s479_s2, %s352_s15  ;;  %v218_v0 = vld [vmem:[%s435_s18] sm:$0xf]  ;;  %v219_v1 = vld [vmem:[%s435_s18 + $0x4] sm:$0xf]  ;;  %v220_v8 = vld [vmem:[%s435_s18 + $0x8] sm:$0xf]  ;;  %s216_s27 = scalar_lea.vmem %s480_s3, %s352_s15 }
  0x11   : > { %v226_v2 = vld [vmem:[%s440_s21] sm:$0xf]  ;;  %v227_v3 = vld [vmem:[%s440_s21 + $0x4] sm:$0xf]  ;;  %v221_v9 = vld [vmem:[%s435_s18 + $0xc] sm:$0xf] }
  0x12   : > { %v234_v4 = vmax.bf16 %v226_v2, %v218_v0  ;;  %v242_v5 = vld [vmem:[%s445_s24] sm:$0xf]  ;;  %v243_v6 = vld [vmem:[%s445_s24 + $0x4] sm:$0xf]  ;;  %v235_v7 = vmax.bf16 %v227_v3, %v219_v1  ;;  %v228_v10 = vld [vmem:[%s440_s21 + $0x8] sm:$0xf] }
  0x13   : > { %v229_v12 = vld [vmem:[%s440_s21 + $0xc] sm:$0xf]  ;;  %v236_v13 = vmax.bf16 %v228_v10, %v220_v8  ;;  %v244_v14 = vld [vmem:[%s445_s24 + $0x8] sm:$0xf]  ;;  %v222_v18 = vld [vmem:[%s435_s18 + $0x10] sm:$0xf] }
  0x14   : > { %v250_v11 = vmax.bf16 %v242_v5, %v234_v4  ;;  %v245_v15 = vld [vmem:[%s445_s24 + $0xc] sm:$0xf]  ;;  %v251_v16 = vmax.bf16 %v243_v6, %v235_v7  ;;  %v237_v17 = vmax.bf16 %v229_v12, %v221_v9  ;;  %v223_v19 = vld [vmem:[%s435_s18 + $0x14] sm:$0xf]  ;;  %v230_v20 = vld [vmem:[%s440_s21 + $0x10] sm:$0xf] }
  0x15   : > { %v252_v21 = vmax.bf16 %v244_v14, %v236_v13  ;;  %v231_v22 = vld [vmem:[%s440_s21 + $0x14] sm:$0xf]  ;;  %v238_v23 = vmax.bf16 %v230_v20, %v222_v18  ;;  %v246_v24 = vld [vmem:[%s445_s24 + $0x10] sm:$0xf]  ;;  %v224_v29 = vld [vmem:[%s435_s18 + $0x18] sm:$0xf] }
  0x16   : > { %v247_v25 = vld [vmem:[%s445_s24 + $0x14] sm:$0xf]  ;;  %v381_v26 = vcombine.low %v250_v11, %v251_v16  ;;  %v253_v27 = vmax.bf16 %v245_v15, %v237_v17  ;;  %v239_v28 = vmax.bf16 %v231_v22, %v223_v19  ;;  %v225_v30 = vld [vmem:[%s435_s18 + $0x1c] sm:$0xf]  ;;  %v232_v31 = vld [vmem:[%s440_s21 + $0x18] sm:$0xf] }
  0x17   : > { %v254_v32 = vmax.bf16 %v246_v24, %v238_v23  ;;  %v233_v33 = vld [vmem:[%s440_s21 + $0x1c] sm:$0xf]  ;;  %v240_v34 = vmax.bf16 %v232_v31, %v224_v29  ;;  %v248_v35 = vld [vmem:[%s445_s24 + $0x18] sm:$0xf] }
  0x18   : > { %v249_v36 = vld [vmem:[%s445_s24 + $0x1c] sm:$0xf]  ;;  %365 = vst [vmem:[%s216_s27] sm:$0xff] %v381_v26   ;;  %v382_v37 = vcombine.low %v252_v21, %v253_v27  ;;  %v255_v38 = vmax.bf16 %v247_v25, %v239_v28  ;;  %v241_v39 = vmax.bf16 %v233_v33, %v225_v30 }
  0x19   : > { %v256_v40 = vmax.bf16 %v248_v35, %v240_v34 }
  0x1a   : > { %383 = vst [vmem:[%s216_s27 + $0x8] sm:$0xff] %v382_v37   ;;  %v384_v41 = vcombine.low %v254_v32, %v255_v38  ;;  %v257_v42 = vmax.bf16 %v249_v36, %v241_v39 }
  0x1c   : > { %385 = vst [vmem:[%s216_s27 + $0x10] sm:$0xff] %v384_v41   ;;  %v386_v43 = vcombine.low %v256_v40, %v257_v42 }
  0x1e   : > { %387 = vst [vmem:[%s216_s27 + $0x18] sm:$0xff] %v386_v43  }
  0x1f PF: > { %s13_s12 = sadd.s32 1, %s402_s12  }
  0x20   : > { %p10_p4 = scmp.ge.s32.totalorder %s13_s12, 4  }
  0x22   :  { %12 = sbr.rel (!%p10_p4) target bundleno = 1 (0x1), region = 68 }

// kernel: _lambda_.33
= control target key start
LH: loop header
LB: loop body
LE: loop exit
PB: predicated region body
PF: predicated region fallthrough
CT: control target
= control target key end

     0   :  { %s386_s12 = smov 0   ;;  %s409_s0 = inlined_call_operand.vmem [shape: bf16[64,128], index: 0, kind: input, shape index: {}]   ;;  %s410_s1 = inlined_call_operand.vmem [shape: bf16[64,128], index: 1, kind: input, shape index: {}]   ;;  %s411_s2 = inlined_call_operand.vmem [shape: bf16[64,128], index: 2, kind: input, shape index: {}]   ;;  %s412_s3 = inlined_call_operand.vmem [shape: bf16[64,128], index: 3, kind: output, shape index: {}]  }
   0x1 LB: > { %s322_s13 = sadd.s32 4294967295, %s364_s12   ;;  %p326_p0 = scmp.ge.s32.totalorder %s364_s12, 1  ;;  %s364_s12 = sphi %s386_s12, %s13_s12  }
   0x2   : > { %p160_p1 = scmp.lt.s32.totalorder %s364_s12, 3 }
   0x4   : > { %p161_p2 = pnand %p326_p0, %p160_p1 }
   0x5   : > { %s327_s14 = sshll.u32 (!%p161_p2), %s322_s13, 2 }
   0x6   : > { %164 = sbr.rel (%p161_p2) target bundleno = 27 (0x1b), region = 32  ;;  %p195_p3 = scmp.lt.s32.totalorder (!%p161_p2), %s327_s14, 7 }
   0xd   : > { %s414_s14 = smov (!%p195_p3, %s327_s14), 7 }
   0xe   : > { %s328_s15 = sshll.u32 %s414_s14, 2 }
   0xf   : > { %s198_s18 = scalar_lea.vmem %s409_s0, %s328_s15  ;;  %s204_s21 = scalar_lea.vmem %s410_s1, %s328_s15 }
  0x10   : > { %s210_s24 = scalar_lea.vmem %s411_s2, %s328_s15  ;;  %v218_v0 = vld [vmem:[%s198_s18] sm:$0xf]  ;;  %v219_v1 = vld [vmem:[%s198_s18 + $0x4] sm:$0xf]  ;;  %v220_v8 = vld [vmem:[%s198_s18 + $0x8] sm:$0xf]  ;;  %s216_s27 = scalar_lea.vmem %s412_s3, %s328_s15 }
  0x11   : > { %v222_v2 = vld [vmem:[%s204_s21] sm:$0xf]  ;;  %v223_v3 = vld [vmem:[%s204_s21 + $0x4] sm:$0xf]  ;;  %v221_v9 = vld [vmem:[%s198_s18 + $0xc] sm:$0xf] }
  0x12   : > { %v226_v4 = vmax.bf16 %v222_v2, %v218_v0  ;;  %v230_v5 = vld [vmem:[%s210_s24] sm:$0xf]  ;;  %v231_v6 = vld [vmem:[%s210_s24 + $0x4] sm:$0xf]  ;;  %v227_v7 = vmax.bf16 %v223_v3, %v219_v1  ;;  %v224_v10 = vld [vmem:[%s204_s21 + $0x8] sm:$0xf] }
  0x13   : > { %v225_v12 = vld [vmem:[%s204_s21 + $0xc] sm:$0xf]  ;;  %v228_v13 = vmax.bf16 %v224_v10, %v220_v8  ;;  %v232_v14 = vld [vmem:[%s210_s24 + $0x8] sm:$0xf] }
  0x14   : > { %v234_v11 = vmax.bf16 %v230_v5, %v226_v4  ;;  %v233_v15 = vld [vmem:[%s210_s24 + $0xc] sm:$0xf]  ;;  %v235_v16 = vmax.bf16 %v231_v6, %v227_v7  ;;  %v229_v17 = vmax.bf16 %v225_v12, %v221_v9 }
  0x15   : > { %v236_v18 = vmax.bf16 %v232_v14, %v228_v13 }
  0x16   : > { %v347_v19 = vcombine.low %v234_v11, %v235_v16  ;;  %v237_v20 = vmax.bf16 %v233_v15, %v229_v17 }
  0x18   : > { %341 = vst [vmem:[%s216_s27] sm:$0xff] %v347_v19   ;;  %v348_v21 = vcombine.low %v236_v18, %v237_v20 }
  0x1a   : > { %349 = vst [vmem:[%s216_s27 + $0x8] sm:$0xff] %v348_v21  }
  0x1b PF: > { %s13_s12 = sadd.s32 1, %s364_s12  }
  0x1c   : > { %p10_p4 = scmp.ge.s32.totalorder %s13_s12, 4  }
  0x1e   :  { %12 = sbr.rel (!%p10_p4) target bundleno = 1 (0x1), region = 68 }

// kernel: _lambda_.34
= control target key start
LH: loop header
LB: loop body
LE: loop exit
PB: predicated region body
PF: predicated region fallthrough
CT: control target
= control target key end

     0   :  { %s1482_s15 = smov 0   ;;  %s1484_s16 = smov 0   ;;  %s1633_s0 = inlined_call_operand.vmem [shape: bf16[128,1792], index: 0, kind: input, shape index: {}]   ;;  %s1634_s1 = inlined_call_operand.vmem [shape: bf16[1792,128], index: 1, kind: input, shape index: {}]   ;;  %s1635_s2 = inlined_call_operand.vmem [shape: bf16[128,128], index: 2, kind: output, shape index: {0}]   ;;  %s1636_s3 = inlined_call_operand.vmem [shape: f32[8,128], index: 3, kind: output, shape index: {1}]   ;;  %s1637_s4 = inlined_call_operand.vmem [shape: f32[8,128], index: 4, kind: output, shape index: {2}]  }
   0x1   :  { %s1486_s17 = smov 0   ;;  %s1488_s18 = smov 0  }
   0x2   :  { %s1490_s19 = smov 0  }
   0x3 LB: > { %s27_s20 = sadd.s32 1, %s1450_s18  ;;  %p50_p1 = scmp.ne.s32.totalorder %s1442_s16, %s1438_s15  ;;  %s1454_s19 = sphi %s1490_s19, %s15_s19   ;;  %s1450_s18 = sphi %s1488_s18, %s1641_s18   ;;  %s1446_s17 = sphi %s1486_s17, %s1640_s17   ;;  %s1442_s16 = sphi %s1484_s16, %s1639_s16   ;;  %s1438_s15 = sphi %s1482_s15, %s1638_s15  }
   0x4   : > { %p28_p0 = scmp.ge.s32.totalorder %s27_s20, 7  ;;  %p51_p2 = scmp.eq.s32.totalorder %s1454_s19, 0 }
   0x5   : > { %s43_s22 = sadd.s32 1, %s1442_s16  ;;  %p1127_p5 = scmp.ge.s32.totalorder %s1454_s19, 7 }
   0x6   : > { %s1643_s20 = smov (%p28_p0, %s27_s20), 0  ;;  %p52_p3 = por %p51_p2, %p50_p1 }
   0x7   : > { %s39_s21 = ssub.s32 %s1450_s18, %s1643_s20  ;;  %188 = sbr.rel (%p1127_p5) target bundleno = 26 (0x1a), region = 16 }
   0x8   : > { %p41_p4 = scmp.eq.s32.totalorder %s39_s21, 0 }
   0xa   : > { %s1517_s23 = scalar_select %p41_p4, %s1442_s16, %s43_s22  }
   0xe   : > { %191 = sbr.rel (!%p52_p3) target bundleno = 26 (0x1a), region = 20  ;;  %s193_s24 = sand.u32 (%p52_p3), 1, %s1442_s16  }
   0xf   : > { %s1191_s25 = sshll.u32 (%p52_p3), %s1450_s18, 3  ;;  %s1128_s26 = sshll.u32 (%p52_p3), %s193_s24, 7 }
  0x10   : > { %s1525_s29 = scalar_lea.vmem (%p52_p3), %s1633_s0, %s1191_s25  ;;  %s195_s30 = scalar_lea.vmem (%p52_p3), [#allocation3], %s1128_s26 }
  0x11   : > { %v259_v0 = vld [vmem:[%s1525_s29] sm:$0xff] (%p52_p3)  ;;  %v261_v1 = vld [vmem:[%s1525_s29 + $0x38] sm:$0xff] (%p52_p3)  ;;  %v263_v2 = vld [vmem:[%s1525_s29 + $0x70] sm:$0xff] (%p52_p3) }
  0x12   : > { %260 = vst [vmem:[%s195_s30] sm:$0xff] (%p52_p3), %v259_v0  ;;  %262 = vst [vmem:[%s195_s30 + $0x8] sm:$0xff] (%p52_p3), %v261_v1  ;;  %v265_v3 = vld [vmem:[%s1525_s29 + $0xa8] sm:$0xff] (%p52_p3)  ;;  %v267_v4 = vld [vmem:[%s1525_s29 + $0xe0] sm:$0xff] (%p52_p3) }
  0x13   : > { %264 = vst [vmem:[%s195_s30 + $0x10] sm:$0xff] (%p52_p3), %v263_v2  ;;  %v269_v5 = vld [vmem:[%s1525_s29 + $0x118] sm:$0xff] (%p52_p3)  ;;  %266 = vst [vmem:[%s195_s30 + $0x18] sm:$0xff] (%p52_p3), %v265_v3  ;;  %v271_v6 = vld [vmem:[%s1525_s29 + $0x150] sm:$0xff] (%p52_p3) }
  0x14   : > { %268 = vst [vmem:[%s195_s30 + $0x20] sm:$0xff] (%p52_p3), %v267_v4  ;;  %270 = vst [vmem:[%s195_s30 + $0x28] sm:$0xff] (%p52_p3), %v269_v5  ;;  %v273_v7 = vld [vmem:[%s1525_s29 + $0x188] sm:$0xff] (%p52_p3)  ;;  %v275_v8 = vld [vmem:[%s1525_s29 + $0x1c0] sm:$0xff] (%p52_p3) }
  0x15   : > { %272 = vst [vmem:[%s195_s30 + $0x30] sm:$0xff] %v271_v6  ;;  %274 = vst [vmem:[%s195_s30 + $0x38] sm:$0xff] %v273_v7  ;;  %v277_v9 = vld [vmem:[%s1525_s29 + $0x1f8] sm:$0xff]  ;;  %v279_v10 = vld [vmem:[%s1525_s29 + $0x230] sm:$0xff] }
  0x16   : > { %276 = vst [vmem:[%s195_s30 + $0x40] sm:$0xff] %v275_v8  ;;  %v281_v11 = vld [vmem:[%s1525_s29 + $0x268] sm:$0xff]  ;;  %278 = vst [vmem:[%s195_s30 + $0x48] sm:$0xff] %v277_v9  ;;  %v283_v12 = vld [vmem:[%s1525_s29 + $0x2a0] sm:$0xff] }
  0x17   : > { %280 = vst [vmem:[%s195_s30 + $0x50] sm:$0xff] %v279_v10  ;;  %282 = vst [vmem:[%s195_s30 + $0x58] sm:$0xff] %v281_v11  ;;  %v285_v13 = vld [vmem:[%s1525_s29 + $0x2d8] sm:$0xff]  ;;  %v287_v14 = vld [vmem:[%s1525_s29 + $0x310] sm:$0xff] }
  0x18   : > { %284 = vst [vmem:[%s195_s30 + $0x60] sm:$0xff] %v283_v12  ;;  %286 = vst [vmem:[%s195_s30 + $0x68] sm:$0xff] %v285_v13  ;;  %v289_v15 = vld [vmem:[%s1525_s29 + $0x348] sm:$0xff] }
  0x19   : > { %288 = vst [vmem:[%s195_s30 + $0x70] sm:$0xff] %v287_v14  ;;  %290 = vst [vmem:[%s195_s30 + $0x78] sm:$0xff] %v289_v15 }
  0x1a PF: > { %p1131_p6 = scmp.ge.s32.totalorder %s1454_s19, 1  ;;  %p307_p7 = scmp.lt.s32.totalorder %s1454_s19, 8 }
  0x1c   : > { %p308_p8 = pnand %p1131_p6, %p307_p7 }
  0x1d   : > { %s314_s5 = sand.u32 (!%p308_p8), 1, %s1438_s15   ;;  %s1133_s6 = sshll.u32 (!%p308_p8), %s1446_s17, 5 }
  0x1e   : > { %311 = sbr.rel (%p308_p8) target bundleno = 366 (0x16e), region = 62  ;;  %s1132_s7 = sshll.u32 (!%p308_p8), %s314_s5, 7 }
  0x1f   : > { %p367_p9 = scmp.lt.s32.totalorder (!%p308_p8), %s1133_s6, 223  ;;  %s1552_s12 = scalar_lea.vmem (!%p308_p8), [#allocation3], %s1132_s7 }
  0x20   : > { %p1135_p10 = scmp.ne.s32.totalorder (!%p308_p8), %s1446_s17, 0 }
  0x25   : > { %s1645_s6 = smov (!%p367_p9, %s1133_s6), 223  ;;  %402 = sbr.rel (%p1135_p10) target bundleno = 47 (0x2f), region = 70 }
  0x26   : > { %s1134_s8 = sshll.u32 %s1645_s6, 2  ;;  %v1456_v16 = vmov (!%p1135_p10), 0.0  }
  0x27   : > { %s1550_s11 = scalar_lea.vmem %s1634_s1, %s1134_s8  ;;  %403 = vst [vmem:[#allocation2] sm:$0xff] (!%p1135_p10), %v1456_v16  ;;  %404 = vst [vmem:[#allocation2 + $0x8] sm:$0xff] (!%p1135_p10), %v1456_v16 }
  0x28   : > { %405 = vst [vmem:[#allocation2 + $0x10] sm:$0xff] (!%p1135_p10), %v1456_v16  ;;  %406 = vst [vmem:[#allocation2 + $0x18] sm:$0xff] (!%p1135_p10), %v1456_v16 }
  0x29   : > { %407 = vst [vmem:[#allocation2 + $0x20] sm:$0xff] (!%p1135_p10), %v1456_v16  ;;  %408 = vst [vmem:[#allocation2 + $0x28] sm:$0xff] (!%p1135_p10), %v1456_v16 }
  0x2a   : > { %409 = vst [vmem:[#allocation2 + $0x30] sm:$0xff] (!%p1135_p10), %v1456_v16  ;;  %410 = vst [vmem:[#allocation2 + $0x38] sm:$0xff] (!%p1135_p10), %v1456_v16 }
  0x2b   : > { %411 = vst [vmem:[#allocation2 + $0x40] sm:$0xff] (!%p1135_p10), %v1456_v16  ;;  %412 = vst [vmem:[#allocation2 + $0x48] sm:$0xff] (!%p1135_p10), %v1456_v16 }
  0x2c   : > { %413 = vst [vmem:[#allocation2 + $0x50] sm:$0xff] %v1456_v16  ;;  %414 = vst [vmem:[#allocation2 + $0x58] sm:$0xff] %v1456_v16 }
  0x2d   : > { %415 = vst [vmem:[#allocation2 + $0x60] sm:$0xff] %v1456_v16  ;;  %416 = vst [vmem:[#allocation2 + $0x68] sm:$0xff] %v1456_v16 }
  0x2e   : > { %417 = vst [vmem:[#allocation2 + $0x70] sm:$0xff] %v1456_v16  ;;  %418 = vst [vmem:[#allocation2 + $0x78] sm:$0xff] %v1456_v16 }
  0x2f PF: > { %v1376_v17 = vld [vmem:[%s1550_s11 + $0x40] sm:$0xff]   ;;  %v1378_v19 = vld [vmem:[%s1550_s11 + $0x48] sm:$0xff]   ;;  %v1380_v21 = vld [vmem:[%s1550_s11 + $0x50] sm:$0xff]   ;;  %p1168_p11 = scmp.ne.s32.totalorder %s1446_s17, 6 }
  0x30   : > { %v1377_v18 = vld [vmem:[%s1550_s11] sm:$0xff]   ;;  %1255 = vmatprep.subr.bf16.mxu0 %v1376_v17  ;;  %1319 = vmatprep.subr.bf16.mxu1 %v1376_v17  ;;  %v1379_v20 = vld [vmem:[%s1550_s11 + $0x8] sm:$0xff]   ;;  %v1381_v22 = vld [vmem:[%s1550_s11 + $0x10] sm:$0xff]  }
  0x31   : > { %1256 = vmatpush3.bf16.msra.mxu0 %v1377_v18  ;;  %1327 = vmatpush3.bf16.msra.mxu1 %v1377_v18  ;;  %v1382_v23 = vld [vmem:[%s1550_s11 + $0x58] sm:$0xff]   ;;  %v1384_v25 = vld [vmem:[%s1550_s11 + $0x60] sm:$0xff]   ;;  %v1386_v27 = vld [vmem:[%s1550_s11 + $0x68] sm:$0xff]  }
  0x32   : > { %1257 = vmatprep.subr.bf16.mxu0 %v1378_v19  ;;  %1320 = vmatprep.subr.bf16.mxu1 %v1378_v19  ;;  %v1383_v24 = vld [vmem:[%s1550_s11 + $0x18] sm:$0xff]   ;;  %v1385_v26 = vld [vmem:[%s1550_s11 + $0x20] sm:$0xff]   ;;  %v1387_v30 = vld [vmem:[%s1550_s11 + $0x28] sm:$0xff]  }
  0x33   : > { %v1394_v28 = vld [vmem:[%s1552_s12 + $0x4] ss:$8 sps:$4 sm:$0xff]   ;;  %v1392_v35 = vld [vmem:[%s1552_s12] ss:$8 sps:$4 sm:$0xff]   ;;  %v1398_v37 = vld [vmem:[%s1552_s12 + $0x14] ss:$8 sps:$4 sm:$0xff]  }
  0x34   : > { %v1397_v29 = vld [vmem:[%s1552_s12 + $0x44] ss:$8 sps:$4 sm:$0xff]   ;;  %691 = vmatprep.mubr.bf16.mxu0 %v1394_v28  ;;  %v1395_v36 = vld [vmem:[%s1552_s12 + $0x40] ss:$8 sps:$4 sm:$0xff]   ;;  %v1400_v38 = vld [vmem:[%s1552_s12 + $0x54] ss:$8 sps:$4 sm:$0xff]  }
  0x35   : > { %1258 = vmatpush3.bf16.msra.mxu0 %v1379_v20  ;;  %1328 = vmatpush3.bf16.msra.mxu1 %v1379_v20  ;;  %v1388_v31 = vld [vmem:[%s1550_s11 + $0x70] sm:$0xff]   ;;  %v1390_v33 = vld [vmem:[%s1550_s11 + $0x78] sm:$0xff]   ;;  %v1402_v39 = vld [vmem:[%s1552_s12 + $0x10] ss:$8 sps:$4 sm:$0xff]  }
  0x36   : > { %1259 = vmatprep.subr.bf16.mxu0 %v1380_v21  ;;  %1321 = vmatprep.subr.bf16.mxu1 %v1380_v21  ;;  %v1389_v32 = vld [vmem:[%s1550_s11 + $0x30] sm:$0xff]   ;;  %v1391_v34 = vld [vmem:[%s1550_s11 + $0x38] sm:$0xff]   ;;  %v1403_v40 = vld [vmem:[%s1552_s12 + $0x50] ss:$8 sps:$4 sm:$0xff]  }
  0x37   : > { %723 = vmatprep.mubr.bf16.mxu1 %v1397_v29  ;;  %v1404_v41 = vld [vmem:[%s1552_s12 + $0x24] ss:$8 sps:$4 sm:$0xff]   ;;  %v1408_v43 = vld [vmem:[%s1552_s12 + $0x20] ss:$8 sps:$4 sm:$0xff]   ;;  %v1410_v45 = vld [vmem:[%s1552_s12 + $0x34] ss:$8 sps:$4 sm:$0xff]  }
  0x38   : > { %v1406_v42 = vld [vmem:[%s1552_s12 + $0x64] ss:$8 sps:$4 sm:$0xff]   ;;  %v1409_v44 = vld [vmem:[%s1552_s12 + $0x60] ss:$8 sps:$4 sm:$0xff]   ;;  %v1412_v46 = vld [vmem:[%s1552_s12 + $0x74] ss:$8 sps:$4 sm:$0xff]  }
  0x39   : > { %1260 = vmatpush3.bf16.msra.mxu0 %v1381_v22  ;;  %1329 = vmatpush3.bf16.msra.mxu1 %v1381_v22  ;;  %v1414_v47 = vld [vmem:[%s1552_s12 + $0x30] ss:$8 sps:$4 sm:$0xff]   ;;  %v419_v51 = vld [vmem:[#allocation2] sm:$0xff]  ;;  %v420_v59 = vld [vmem:[#allocation2 + $0x8] sm:$0xff] }
  0x3a   : > { %1261 = vmatprep.subr.bf16.mxu0 %v1382_v23  ;;  %1322 = vmatprep.subr.bf16.mxu1 %v1382_v23  ;;  %v1415_v48 = vld [vmem:[%s1552_s12 + $0x70] ss:$8 sps:$4 sm:$0xff]   ;;  %v427_v53 = vld [vmem:[#allocation2 + $0x40] sm:$0xff]  ;;  %v428_v61 = vld [vmem:[#allocation2 + $0x48] sm:$0xff] }
  0x3b   : > { %v421_v7 = vld [vmem:[#allocation2 + $0x10] sm:$0xff]  ;;  %v422_v15 = vld [vmem:[#allocation2 + $0x18] sm:$0xff]  ;;  %v431_v29 = vld [vmem:[#allocation2 + $0x60] sm:$0xff] }
  0x3c   : > { %v429_v9 = vld [vmem:[#allocation2 + $0x50] sm:$0xff]  ;;  %v430_v17 = vld [vmem:[#allocation2 + $0x58] sm:$0xff] }
  0x3d   : > { %1262 = vmatpush3.bf16.msra.mxu0 %v1383_v24  ;;  %1330 = vmatpush3.bf16.msra.mxu1 %v1383_v24 }
  0x3e   : > { %1263 = vmatprep.subr.bf16.mxu0 %v1384_v25  ;;  %1323 = vmatprep.subr.bf16.mxu1 %v1384_v25 }
  0x41   : > { %1264 = vmatpush3.bf16.msra.mxu0 %v1385_v26  ;;  %1331 = vmatpush3.bf16.msra.mxu1 %v1385_v26 }
  0x42   : > { %1265 = vmatprep.subr.bf16.mxu0 %v1386_v27  ;;  %1324 = vmatprep.subr.bf16.mxu1 %v1386_v27  ;;  %v423_v27 = vld [vmem:[#allocation2 + $0x20] sm:$0xff] }
  0x45   : > { %1266 = vmatpush3.bf16.msra.mxu0 %v1387_v30  ;;  %1332 = vmatpush3.bf16.msra.mxu1 %v1387_v30 }
  0x46   : > { %1267 = vmatprep.subr.bf16.mxu0 %v1388_v31  ;;  %1325 = vmatprep.subr.bf16.mxu1 %v1388_v31 }
  0x49   : > { %1268 = vmatpush3.bf16.msra.mxu0 %v1389_v32  ;;  %1333 = vmatpush3.bf16.msra.mxu1 %v1389_v32 }
  0x4a   : > { %1269 = vmatprep.subr.bf16.mxu0 %v1390_v33  ;;  %1326 = vmatprep.subr.bf16.mxu1 %v1390_v33 }
  0x4d   : > { %1270 = vmatpush3.bf16.msra.mxu0 %v1391_v34  ;;  %1334 = vmatpush3.bf16.msra.mxu1 %v1391_v34 }
  0x50   : > { %692 = vmatmul.mubr.bf16.vlgmr.msra.gmra.mrb[0].mxu0 %v1392_v35  ;;  %724 = vmatmul.mubr.bf16.vlgmr.msra.gmra.mrb[0].mxu1 %v1395_v36  ;;  %v424_v35 = vld [vmem:[#allocation2 + $0x28] sm:$0xff] }
  0x51   : > { %699 = vmatprep.mubr.bf16.mxu0 %v1398_v37  ;;  %731 = vmatprep.mubr.bf16.mxu1 %v1400_v38  ;;  %v432_v37 = vld [vmem:[#allocation2 + $0x68] sm:$0xff] }
  0x58   : > { %700 = vmatmul.mubr.bf16.gmra.mrb[4].mxu0 %v1402_v39  ;;  %732 = vmatmul.mubr.bf16.gmra.mrb[4].mxu1 %v1403_v40 }
  0x59   : > { %707 = vmatprep.mubr.bf16.mxu0 %v1404_v41  ;;  %739 = vmatprep.mubr.bf16.mxu1 %v1406_v42 }
  0x60   : > { %708 = vmatmul.mubr.bf16.gmra.mrb[8].mxu0 %v1408_v43  ;;  %740 = vmatmul.mubr.bf16.gmra.mrb[8].mxu1 %v1409_v44 }
  0x61   : > { %715 = vmatprep.mubr.bf16.mxu0 %v1410_v45  ;;  %747 = vmatprep.mubr.bf16.mxu1 %v1412_v46 }
  0x68   : > { %716 = vmatmul.mubr.bf16.gmra.mrb[12].mxu0 %v1414_v47  ;;  %748 = vmatmul.mubr.bf16.gmra.mrb[12].mxu1 %v1415_v48  ;;  %v425_v47 = vld [vmem:[#allocation2 + $0x30] sm:$0xff] }
 0x123   : > { %v1271_v49 = vpop.f32.mrb[0].mxu0  ;;  %v1295_v50 = vpop.f32.mrb[0].mxu1 }
 0x124   : > { %v1272_v52 = vpop.f32.mrb[1].mxu0  ;;  %v1296_v54 = vpop.f32.mrb[1].mxu1 }
 0x125   : > { %v1273_v55 = vadd.f32 %v1272_v52, %v1271_v49  ;;  %v1297_v56 = vadd.f32 %v1296_v54, %v1295_v50  ;;  %v1274_v57 = vpop.f32.mrb[2].mxu0  ;;  %v1298_v58 = vpop.f32.mrb[2].mxu1  ;;  %v433_v49 = vld [vmem:[#allocation2 + $0x70] sm:$0xff] }
 0x126   : > { %v1275_v60 = vpop.f32.mrb[3].mxu0  ;;  %v1299_v62 = vpop.f32.mrb[3].mxu1 }
 0x127   : > { %v756_v63 = vadd.f32 %v1273_v55, %v419_v51  ;;  %v764_v0 = vadd.f32 %v1297_v56, %v427_v53  ;;  %v1276_v1 = vadd.f32 %v1275_v60, %v1274_v57  ;;  %v1300_v2 = vadd.f32 %v1299_v62, %v1298_v58  ;;  %v426_v55 = vld [vmem:[#allocation2 + $0x38] sm:$0xff] }
 0x128   : > { %v434_v57 = vld [vmem:[#allocation2 + $0x78] sm:$0xff] }
 0x129   : > { %772 = vst [vmem:[#allocation2] sm:$0xff] %v756_v63  ;;  %780 = vst [vmem:[#allocation2 + $0x40] sm:$0xff] %v764_v0  ;;  %v757_v3 = vadd.f32 %v1276_v1, %v420_v59  ;;  %v765_v4 = vadd.f32 %v1300_v2, %v428_v61 }
 0x12b   : > { %773 = vst [vmem:[#allocation2 + $0x8] sm:$0xff] %v757_v3  ;;  %781 = vst [vmem:[#allocation2 + $0x48] sm:$0xff] %v765_v4  ;;  %v1277_v5 = vpop.f32.mrb[4].mxu0  ;;  %v1301_v6 = vpop.f32.mrb[4].mxu1 }
 0x12c   : > { %v1278_v8 = vpop.f32.mrb[5].mxu0  ;;  %v1302_v10 = vpop.f32.mrb[5].mxu1 }
 0x12d   : > { %v1279_v11 = vadd.f32 %v1278_v8, %v1277_v5  ;;  %v1303_v12 = vadd.f32 %v1302_v10, %v1301_v6  ;;  %v1280_v13 = vpop.f32.mrb[6].mxu0  ;;  %v1304_v14 = vpop.f32.mrb[6].mxu1 }
 0x12e   : > { %v1281_v16 = vpop.f32.mrb[7].mxu0  ;;  %v1305_v18 = vpop.f32.mrb[7].mxu1 }
 0x12f   : > { %v758_v19 = vadd.f32 %v1279_v11, %v421_v7  ;;  %v766_v20 = vadd.f32 %v1303_v12, %v429_v9  ;;  %v1282_v21 = vadd.f32 %v1281_v16, %v1280_v13  ;;  %v1306_v22 = vadd.f32 %v1305_v18, %v1304_v14 }
 0x130   : > { %v792_v1 = vld [vmem:[#allocation2] sm:$0xff] (!%p1168_p11) }
 0x131   : > { %774 = vst [vmem:[#allocation2 + $0x10] sm:$0xff] %v758_v19  ;;  %782 = vst [vmem:[#allocation2 + $0x50] sm:$0xff] %v766_v20  ;;  %v759_v23 = vadd.f32 %v1282_v21, %v422_v15  ;;  %v767_v24 = vadd.f32 %v1306_v22, %v430_v17  ;;  %v910_v6 = vmul.f32 (!%p1168_p11), %v792_v1, %v792_v1  ;;  %v800_v19 = vld [vmem:[#allocation2 + $0x40] sm:$0xff] (!%p1168_p11) }
 0x132   : > { %v793_v2 = vld [vmem:[#allocation2 + $0x8] sm:$0xff] (!%p1168_p11) }
 0x133   : > { %775 = vst [vmem:[#allocation2 + $0x18] sm:$0xff] %v759_v23  ;;  %783 = vst [vmem:[#allocation2 + $0x58] sm:$0xff] %v767_v24  ;;  %v1283_v25 = vpop.f32.mrb[8].mxu0  ;;  %v1307_v26 = vpop.f32.mrb[8].mxu1  ;;  %v1211_v4 = vpack.c.bf16 (!%p1168_p11), %v793_v2, %v792_v1  ;;  %v888_v5 = vadd.f32 (!%p1168_p11), %v793_v2, %v792_v1  ;;  %v911_v7 = vmul.f32 (!%p1168_p11), %v793_v2, %v793_v2  ;;  %v801_v20 = vld [vmem:[#allocation2 + $0x48] sm:$0xff] (!%p1168_p11) }
 0x134   : > { %v1284_v28 = vpop.f32.mrb[9].mxu0  ;;  %v1308_v30 = vpop.f32.mrb[9].mxu1  ;;  %v1231_v22 = vpack.c.bf16 (!%p1168_p11), %v801_v20, %v800_v19 }
 0x135   : > { %v1285_v31 = vadd.f32 %v1284_v28, %v1283_v25  ;;  %v1309_v32 = vadd.f32 %v1308_v30, %v1307_v26  ;;  %v1286_v33 = vpop.f32.mrb[10].mxu0  ;;  %v1310_v34 = vpop.f32.mrb[10].mxu1  ;;  %1212 = vst [vmem:[%s1635_s2] sm:$0xff] (!%p1168_p11), %v1211_v4   ;;  %v926_v15 = vadd.f32 (!%p1168_p11), %v911_v7, %v910_v6 }
 0x136   : > { %v1287_v36 = vpop.f32.mrb[11].mxu0  ;;  %v1311_v38 = vpop.f32.mrb[11].mxu1  ;;  %1251 = vst [vmem:[%s1635_s2 + $0x20] sm:$0xff] (!%p1168_p11), %v1231_v22  }
 0x137   : > { %v760_v39 = vadd.f32 %v1285_v31, %v423_v27  ;;  %v768_v40 = vadd.f32 %v1309_v32, %v431_v29  ;;  %v1288_v41 = vadd.f32 %v1287_v36, %v1286_v33  ;;  %v1312_v42 = vadd.f32 %v1311_v38, %v1310_v34 }
 0x138   : > { %v794_v3 = vld [vmem:[#allocation2 + $0x10] sm:$0xff] (!%p1168_p11) }
 0x139   : > { %776 = vst [vmem:[#allocation2 + $0x20] sm:$0xff] %v760_v39  ;;  %784 = vst [vmem:[#allocation2 + $0x60] sm:$0xff] %v768_v40  ;;  %v761_v43 = vadd.f32 %v1288_v41, %v424_v35  ;;  %v769_v44 = vadd.f32 %v1312_v42, %v432_v37  ;;  %v912_v12 = vmul.f32 (!%p1168_p11), %v794_v3, %v794_v3  ;;  %v802_v23 = vld [vmem:[#allocation2 + $0x50] sm:$0xff] (!%p1168_p11) }
 0x13a   : > { %v795_v8 = vld [vmem:[#allocation2 + $0x18] sm:$0xff] (!%p1168_p11)  ;;  %v889_v16 = vadd.f32 (!%p1168_p11), %v888_v5, %v794_v3 }
 0x13b   : > { %777 = vst [vmem:[#allocation2 + $0x28] sm:$0xff] %v761_v43  ;;  %785 = vst [vmem:[#allocation2 + $0x68] sm:$0xff] %v769_v44  ;;  %v1289_v45 = vpop.f32.mrb[12].mxu0  ;;  %v1313_v46 = vpop.f32.mrb[12].mxu1  ;;  %v1216_v11 = vpack.c.bf16 (!%p1168_p11), %v795_v8, %v794_v3  ;;  %v913_v17 = vmul.f32 (!%p1168_p11), %v795_v8, %v795_v8  ;;  %v927_v25 = vadd.f32 (!%p1168_p11), %v926_v15, %v912_v12  ;;  %v803_v27 = vld [vmem:[#allocation2 + $0x58] sm:$0xff] (!%p1168_p11) }
 0x13c   : > { %v1290_v48 = vpop.f32.mrb[13].mxu0  ;;  %v1314_v50 = vpop.f32.mrb[13].mxu1  ;;  %v890_v24 = vadd.f32 (!%p1168_p11), %v889_v16, %v795_v8  ;;  %v1236_v30 = vpack.c.bf16 (!%p1168_p11), %v803_v27, %v802_v23 }
 0x13d   : > { %v1291_v51 = vadd.f32 %v1290_v48, %v1289_v45  ;;  %v1315_v52 = vadd.f32 %v1314_v50, %v1313_v46  ;;  %v1292_v53 = vpop.f32.mrb[14].mxu0  ;;  %v1316_v54 = vpop.f32.mrb[14].mxu1  ;;  %791 = sbr.rel (%p1168_p11) target bundleno = 366 (0x16e), region = 74  ;;  %1248 = vst [vmem:[%s1635_s2 + $0x8] sm:$0xff] (!%p1168_p11), %v1216_v11   ;;  %v928_v32 = vadd.f32 (!%p1168_p11), %v927_v25, %v913_v17  ;;  %v918_v46 = vmul.f32 (!%p1168_p11), %v800_v19, %v800_v19 }
 0x13e   : > { %v1293_v56 = vpop.f32.mrb[15].mxu0  ;;  %v1317_v58 = vpop.f32.mrb[15].mxu1  ;;  %1252 = vst [vmem:[%s1635_s2 + $0x28] sm:$0xff] (!%p1168_p11), %v1236_v30  }
 0x13f   : > { %v762_v59 = vadd.f32 %v1291_v51, %v425_v47  ;;  %v770_v60 = vadd.f32 %v1315_v52, %v433_v49  ;;  %v1294_v61 = vadd.f32 %v1293_v56, %v1292_v53  ;;  %v1318_v62 = vadd.f32 %v1317_v58, %v1316_v54 }
 0x140   : > { %v796_v9 = vld [vmem:[#allocation2 + $0x20] sm:$0xff] (!%p1168_p11)  ;;  %v919_v49 = vmul.f32 (!%p1168_p11), %v801_v20, %v801_v20  ;;  %v920_v52 = vmul.f32 (!%p1168_p11), %v802_v23, %v802_v23 }
 0x141   : > { %778 = vst [vmem:[#allocation2 + $0x30] sm:$0xff] %v762_v59  ;;  %786 = vst [vmem:[#allocation2 + $0x70] sm:$0xff] %v770_v60  ;;  %v763_v63 = vadd.f32 %v1294_v61, %v426_v55  ;;  %v771_v0 = vadd.f32 %v1318_v62, %v434_v57  ;;  %v914_v26 = vmul.f32 (!%p1168_p11), %v796_v9, %v796_v9  ;;  %v804_v28 = vld [vmem:[#allocation2 + $0x60] sm:$0xff] (!%p1168_p11) }
 0x142   : > { %v797_v10 = vld [vmem:[#allocation2 + $0x28] sm:$0xff] (!%p1168_p11)  ;;  %v891_v33 = vadd.f32 (!%p1168_p11), %v890_v24, %v796_v9  ;;  %v921_v55 = vmul.f32 (!%p1168_p11), %v803_v27, %v803_v27  ;;  %v922_v58 = vmul.f32 (!%p1168_p11), %v804_v28, %v804_v28 }
 0x143   : > { %779 = vst [vmem:[#allocation2 + $0x38] sm:$0xff] %v763_v63  ;;  %787 = vst [vmem:[#allocation2 + $0x78] sm:$0xff] %v771_v0  ;;  %v1221_v13 = vpack.c.bf16 (!%p1168_p11), %v797_v10, %v796_v9  ;;  %v805_v29 = vld [vmem:[#allocation2 + $0x68] sm:$0xff] (!%p1168_p11)  ;;  %v915_v34 = vmul.f32 (!%p1168_p11), %v797_v10, %v797_v10  ;;  %v929_v39 = vadd.f32 (!%p1168_p11), %v928_v32, %v914_v26 }
 0x144   : > { %v1241_v31 = vpack.c.bf16 %v805_v29, %v804_v28  ;;  %v892_v38 = vadd.f32 %v891_v33, %v797_v10  ;;  %v923_v61 = vmul.f32 %v805_v29, %v805_v29 }
 0x145   : > { %1249 = vst [vmem:[%s1635_s2 + $0x10] sm:$0xff] %v1221_v13   ;;  %v930_v41 = vadd.f32 %v929_v39, %v915_v34 }
 0x146   : > { %1253 = vst [vmem:[%s1635_s2 + $0x30] sm:$0xff] %v1241_v31  }
 0x148   : > { %v798_v14 = vld [vmem:[#allocation2 + $0x30] sm:$0xff] }
 0x149   : > { %v806_v35 = vld [vmem:[#allocation2 + $0x70] sm:$0xff]  ;;  %v916_v40 = vmul.f32 %v798_v14, %v798_v14  ;;  %v893_v42 = vadd.f32 %v892_v38, %v798_v14 }
 0x14a   : > { %v799_v18 = vld [vmem:[#allocation2 + $0x38] sm:$0xff]  ;;  %v924_v0 = vmul.f32 %v806_v35, %v806_v35 }
 0x14b   : > { %v1226_v21 = vpack.c.bf16 %v799_v18, %v798_v14  ;;  %v807_v36 = vld [vmem:[#allocation2 + $0x78] sm:$0xff]  ;;  %v917_v43 = vmul.f32 %v799_v18, %v799_v18  ;;  %v894_v44 = vadd.f32 %v893_v42, %v799_v18  ;;  %v931_v45 = vadd.f32 %v930_v41, %v916_v40 }
 0x14c   : > { %v1246_v37 = vpack.c.bf16 %v807_v36, %v806_v35  ;;  %v925_v3 = vmul.f32 %v807_v36, %v807_v36 }
 0x14d   : > { %1250 = vst [vmem:[%s1635_s2 + $0x18] sm:$0xff] %v1226_v21   ;;  %v932_v47 = vadd.f32 %v931_v45, %v917_v43  ;;  %v895_v48 = vadd.f32 %v894_v44, %v800_v19 }
 0x14e   : > { %1254 = vst [vmem:[%s1635_s2 + $0x38] sm:$0xff] %v1246_v37  }
 0x14f   : > { %v896_v50 = vadd.f32 %v895_v48, %v801_v20  ;;  %v933_v51 = vadd.f32 %v932_v47, %v918_v46 }
 0x151   : > { %v934_v53 = vadd.f32 %v933_v51, %v919_v49  ;;  %v897_v54 = vadd.f32 %v896_v50, %v802_v23 }
 0x153   : > { %v898_v56 = vadd.f32 %v897_v54, %v803_v27  ;;  %v935_v57 = vadd.f32 %v934_v53, %v920_v52 }
 0x155   : > { %v936_v59 = vadd.f32 %v935_v57, %v921_v55  ;;  %v899_v60 = vadd.f32 %v898_v56, %v804_v28 }
 0x157   : > { %v900_v62 = vadd.f32 %v899_v60, %v805_v29  ;;  %v937_v63 = vadd.f32 %v936_v59, %v922_v58 }
 0x159   : > { %v938_v1 = vadd.f32 %v937_v63, %v923_v61  ;;  %v901_v2 = vadd.f32 %v900_v62, %v806_v35 }
 0x15b   : > { %v902_v4 = vadd.f32 %v901_v2, %v807_v36  ;;  %v939_v5 = vadd.f32 %v938_v1, %v924_v0 }
 0x15d   : > { %v903_v6 = vrot.slane %v902_v4, 4  ;;  %v940_v7 = vadd.f32 %v939_v5, %v925_v3 }
 0x15f   : > { %v904_v8 = vadd.f32 %v903_v6, %v902_v4  ;;  %v941_v9 = vrot.slane %v940_v7, 4 }
 0x161   : > { %v905_v10 = vrot.slane %v904_v8, 2  ;;  %v942_v11 = vadd.f32 %v941_v9, %v940_v7 }
 0x163   : > { %v906_v12 = vadd.f32 %v905_v10, %v904_v8  ;;  %v943_v13 = vrot.slane %v942_v11, 2 }
 0x165   : > { %v907_v14 = vrot.slane %v906_v12, 1  ;;  %v944_v15 = vadd.f32 %v943_v13, %v942_v11 }
 0x167   : > { %v908_v16 = vadd.f32 %v907_v14, %v906_v12  ;;  %v945_v17 = vrot.slane %v944_v15, 1 }
 0x169   : > { %v909_v18 = vmul.f32 0.125, %v908_v16  ;;  %v946_v19 = vadd.f32 %v945_v17, %v944_v15 }
 0x16b   : > { %948 = vst [vmem:[%s1636_s3] sm:$0xff] %v909_v18  ;;  %v947_v20 = vmul.f32 0.125, %v946_v19 }
 0x16d   : > { %949 = vst [vmem:[%s1637_s4] sm:$0xff] %v947_v20 }
 0x16e PF: > { %s15_s19 = sadd.s32 1, %s1454_s19   ;;  %s1638_s15 = smov %s1442_s16 }
 0x16f   : > { %p12_p12 = scmp.ge.s32.totalorder %s15_s19, 9   ;;  %s1639_s16 = smov %s1517_s23 }
 0x170   : > { %s1640_s17 = smov %s1450_s18  ;;  %s1641_s18 = smov %s1643_s20 }
 0x171   :  { %14 = sbr.rel (!%p12_p12) target bundleno = 3 (0x3), region = 136 }

// kernel: _lambda_.35
= control target key start
LH: loop header
LB: loop body
LE: loop exit
PB: predicated region body
PF: predicated region fallthrough
CT: control target
= control target key end

     0   :  { %s361_s12 = smov 0   ;;  %s384_s0 = inlined_call_operand.vmem [shape: bf16[64,128], index: 0, kind: input, shape index: {}]   ;;  %s385_s1 = inlined_call_operand.vmem [shape: f32[1,128], index: 1, kind: input, shape index: {}]   ;;  %s386_s2 = inlined_call_operand.vmem [shape: f32[1,128], index: 2, kind: input, shape index: {}]   ;;  %s387_s3 = inlined_call_operand.vmem [shape: bf16[64,128], index: 3, kind: output, shape index: {}]  }
   0x1 LB: > { %s284_s13 = sadd.s32 4294967295, %s339_s12   ;;  %p288_p0 = scmp.ge.s32.totalorder %s339_s12, 1  ;;  %s339_s12 = sphi %s361_s12, %s13_s12  }
   0x2   : > { %p138_p1 = scmp.lt.s32.totalorder %s339_s12, 3 }
   0x4   : > { %p139_p2 = pnand %p288_p0, %p138_p1 }
   0x5   : > { %s289_s14 = sshll.u32 (!%p139_p2), %s284_s13, 2  ;;  %v293_v2 = vld [vmem:[%s385_s1] ss:$0 sm:$0xff] (!%p139_p2) }
   0x6   : > { %142 = sbr.rel (%p139_p2) target bundleno = 28 (0x1c), region = 32  ;;  %p163_p3 = scmp.lt.s32.totalorder (!%p139_p2), %s289_s14, 7  ;;  %v294_v7 = vld [vmem:[%s386_s2] ss:$0 sm:$0xff] (!%p139_p2) }
   0xd   : > { %s389_s14 = smov (!%p163_p3, %s289_s14), 7 }
   0xe   : > { %s290_s15 = sshll.u32 %s389_s14, 2 }
   0xf   : > { %s166_s18 = scalar_lea.vmem %s384_s0, %s290_s15  ;;  %s172_s25 = scalar_lea.vmem %s387_s3, %s290_s15 }
  0x10   : > { %v306_v0 = vld [vmem:[%s166_s18] sm:$0xff]   ;;  %v323_v1 = vld [vmem:[%s166_s18 + $0x8] sm:$0xff]  }
  0x11   : > { %v307_v3 = vunpack.c.l.bf16 %v306_v0  ;;  %v308_v4 = vunpack.c.h.bf16 %v306_v0  ;;  %v311_v5 = vunpack.c.l.bf16 %v323_v1  ;;  %v312_v6 = vunpack.c.h.bf16 %v323_v1 }
  0x13   : > { %v189_v8 = vmul.f32 %v307_v3, %v293_v2  ;;  %v190_v9 = vmul.f32 %v308_v4, %v293_v2  ;;  %v191_v10 = vmul.f32 %v311_v5, %v293_v2  ;;  %v192_v11 = vmul.f32 %v312_v6, %v293_v2 }
  0x15   : > { %v200_v12 = vadd.f32 %v294_v7, %v189_v8  ;;  %v201_v13 = vadd.f32 %v294_v7, %v190_v9  ;;  %v202_v14 = vadd.f32 %v294_v7, %v191_v10  ;;  %v203_v15 = vadd.f32 %v294_v7, %v192_v11 }
  0x17   : > { %v204_v16 = vmax.f32 %v200_v12, 0.0  ;;  %v205_v17 = vmax.f32 %v201_v13, 0.0  ;;  %v206_v18 = vmax.f32 %v202_v14, 0.0  ;;  %v207_v19 = vmax.f32 %v203_v15, 0.0 }
  0x19   : > { %v316_v20 = vpack.c.bf16 %v205_v17, %v204_v16  ;;  %v321_v21 = vpack.c.bf16 %v207_v19, %v206_v18 }
  0x1b   : > { %317 = vst [vmem:[%s172_s25] sm:$0xff] %v316_v20   ;;  %324 = vst [vmem:[%s172_s25 + $0x8] sm:$0xff] %v321_v21  }
  0x1c PF: > { %s13_s12 = sadd.s32 1, %s339_s12  }
  0x1d   : > { %p10_p4 = scmp.ge.s32.totalorder %s13_s12, 4  }
  0x1f   :  { %12 = sbr.rel (!%p10_p4) target bundleno = 1 (0x1), region = 62 }

// kernel: _lambda_.37
= control target key start
LH: loop header
LB: loop body
LE: loop exit
PB: predicated region body
PF: predicated region fallthrough
CT: control target
= control target key end

     0   :  { %s450_s15 = smov 0   ;;  %s481_s0 = inlined_call_operand.vmem [shape: bf16[64,128], index: 0, kind: input, shape index: {}]   ;;  %s482_s1 = inlined_call_operand.vmem [shape: bf16[64,128], index: 1, kind: input, shape index: {}]   ;;  %s483_s2 = inlined_call_operand.vmem [shape: f32[1,128], index: 2, kind: input, shape index: {}]   ;;  %s484_s3 = inlined_call_operand.vmem [shape: f32[1,128], index: 3, kind: input, shape index: {}]   ;;  %s485_s4 = inlined_call_operand.vmem [shape: bf16[64,128], index: 4, kind: output, shape index: {}]  }
   0x1 LB: > { %s357_s16 = sadd.s32 4294967295, %s423_s15   ;;  %p361_p0 = scmp.ge.s32.totalorder %s423_s15, 1  ;;  %s423_s15 = sphi %s450_s15, %s14_s15  }
   0x2   : > { %p174_p1 = scmp.lt.s32.totalorder %s423_s15, 3 }
   0x4   : > { %p175_p2 = pnand %p361_p0, %p174_p1 }
   0x5   : > { %s362_s17 = sshll.u32 (!%p175_p2), %s357_s16, 2  ;;  %v368_v0 = vld [vmem:[%s483_s2] ss:$0 sm:$0xff] (!%p175_p2) }
   0x6   : > { %178 = sbr.rel (%p175_p2) target bundleno = 30 (0x1e), region = 36  ;;  %p206_p3 = scmp.lt.s32.totalorder (!%p175_p2), %s362_s17, 7  ;;  %v369_v9 = vld [vmem:[%s484_s3] ss:$0 sm:$0xff] (!%p175_p2) }
   0xd   : > { %s487_s17 = smov (!%p206_p3, %s362_s17), 7 }
   0xe   : > { %s458_s18 = sshll.u32 %s487_s17, 2 }
   0xf   : > { %s209_s21 = scalar_lea.vmem %s481_s0, %s458_s18  ;;  %s215_s24 = scalar_lea.vmem %s482_s1, %s458_s18 }
  0x10   : > { %v381_v1 = vld [vmem:[%s209_s21] sm:$0xff]   ;;  %v406_v2 = vld [vmem:[%s209_s21 + $0x8] sm:$0xff]   ;;  %s221_s5 = scalar_lea.vmem %s485_s4, %s458_s18 }
  0x11   : > { %v389_v3 = vld [vmem:[%s215_s24] sm:$0xff]   ;;  %v382_v4 = vunpack.c.l.bf16 %v381_v1  ;;  %v383_v5 = vunpack.c.h.bf16 %v381_v1  ;;  %v386_v6 = vunpack.c.l.bf16 %v406_v2  ;;  %v387_v7 = vunpack.c.h.bf16 %v406_v2  ;;  %v407_v8 = vld [vmem:[%s215_s24 + $0x8] sm:$0xff]  }
  0x12   : > { %v390_v10 = vunpack.c.l.bf16 %v389_v3  ;;  %v391_v11 = vunpack.c.h.bf16 %v389_v3  ;;  %v394_v12 = vunpack.c.l.bf16 %v407_v8  ;;  %v395_v13 = vunpack.c.h.bf16 %v407_v8 }
  0x13   : > { %v238_v14 = vmul.f32 %v382_v4, %v368_v0  ;;  %v239_v15 = vmul.f32 %v383_v5, %v368_v0  ;;  %v240_v16 = vmul.f32 %v386_v6, %v368_v0  ;;  %v241_v17 = vmul.f32 %v387_v7, %v368_v0 }
  0x15   : > { %v249_v18 = vadd.f32 %v369_v9, %v238_v14  ;;  %v250_v19 = vadd.f32 %v369_v9, %v239_v15  ;;  %v251_v20 = vadd.f32 %v369_v9, %v240_v16  ;;  %v252_v21 = vadd.f32 %v369_v9, %v241_v17 }
  0x17   : > { %v261_v22 = vadd.f32 %v390_v10, %v249_v18  ;;  %v262_v23 = vadd.f32 %v391_v11, %v250_v19  ;;  %v263_v24 = vadd.f32 %v394_v12, %v251_v20  ;;  %v264_v25 = vadd.f32 %v395_v13, %v252_v21 }
  0x19   : > { %v265_v26 = vmax.f32 %v261_v22, 0.0  ;;  %v266_v27 = vmax.f32 %v262_v23, 0.0  ;;  %v267_v28 = vmax.f32 %v263_v24, 0.0  ;;  %v268_v29 = vmax.f32 %v264_v25, 0.0 }
  0x1b   : > { %v399_v30 = vpack.c.bf16 %v266_v27, %v265_v26  ;;  %v404_v31 = vpack.c.bf16 %v268_v29, %v267_v28 }
  0x1d   : > { %400 = vst [vmem:[%s221_s5] sm:$0xff] %v399_v30   ;;  %408 = vst [vmem:[%s221_s5 + $0x8] sm:$0xff] %v404_v31  }
  0x1e PF: > { %s14_s15 = sadd.s32 1, %s423_s15  }
  0x1f   : > { %p11_p4 = scmp.ge.s32.totalorder %s14_s15, 4  }
  0x21   :  { %13 = sbr.rel (!%p11_p4) target bundleno = 1 (0x1), region = 69 }

// kernel: _lambda_.38
= control target key start
LH: loop header
LB: loop body
LE: loop exit
PB: predicated region body
PF: predicated region fallthrough
CT: control target
= control target key end

     0   :  { %s941_s15 = smov 0   ;;  %s943_s16 = smov 0   ;;  %s1042_s0 = inlined_call_operand.vmem [shape: bf16[16,1792], index: 0, kind: input, shape index: {}]   ;;  %s1043_s1 = inlined_call_operand.vmem [shape: bf16[1792,128], index: 1, kind: input, shape index: {}]   ;;  %s1044_s2 = inlined_call_operand.vmem [shape: bf16[16,128], index: 2, kind: output, shape index: {0}]   ;;  %s1045_s3 = inlined_call_operand.vmem [shape: f32[8,128], index: 3, kind: output, shape index: {1}]   ;;  %s1046_s4 = inlined_call_operand.vmem [shape: f32[8,128], index: 4, kind: output, shape index: {2}]  }
   0x1   :  { %s945_s17 = smov 0   ;;  %s947_s18 = smov 0  }
   0x2   :  { %s949_s19 = smov 0  }
   0x3 LB: > { %s27_s20 = sadd.s32 1, %s909_s18  ;;  %p50_p1 = scmp.ne.s32.totalorder %s901_s16, %s897_s15  ;;  %s913_s19 = sphi %s949_s19, %s15_s19   ;;  %s909_s18 = sphi %s947_s18, %s1050_s18   ;;  %s905_s17 = sphi %s945_s17, %s1049_s17   ;;  %s901_s16 = sphi %s943_s16, %s1048_s16   ;;  %s897_s15 = sphi %s941_s15, %s1047_s15  }
   0x4   : > { %p28_p0 = scmp.ge.s32.totalorder %s27_s20, 7  ;;  %p51_p2 = scmp.eq.s32.totalorder %s913_s19, 0 }
   0x5   : > { %s43_s22 = sadd.s32 1, %s901_s16  ;;  %p749_p5 = scmp.ge.s32.totalorder %s913_s19, 7 }
   0x6   : > { %s1052_s20 = smov (%p28_p0, %s27_s20), 0  ;;  %p52_p3 = por %p51_p2, %p50_p1 }
   0x7   : > { %s39_s21 = ssub.s32 %s909_s18, %s1052_s20  ;;  %188 = sbr.rel (%p749_p5) target bundleno = 21 (0x15), region = 16 }
   0x8   : > { %p41_p4 = scmp.eq.s32.totalorder %s39_s21, 0 }
   0xa   : > { %s976_s23 = scalar_select %p41_p4, %s901_s16, %s43_s22  }
   0xe   : > { %191 = sbr.rel (!%p52_p3) target bundleno = 21 (0x15), region = 20  ;;  %s193_s24 = sand.u32 (%p52_p3), 1, %s901_s16  }
   0xf   : > { %s785_s25 = sshll.u32 (%p52_p3), %s909_s18, 3  ;;  %s750_s26 = sshll.u32 (%p52_p3), %s193_s24, 4 }
  0x10   : > { %s201_s29 = scalar_lea.vmem (%p52_p3), %s1042_s0, %s785_s25  ;;  %s195_s30 = scalar_lea.vmem (%p52_p3), [#allocation3], %s750_s26 }
  0x11   : > { %v231_v0 = vld [vmem:[%s201_s29] sm:$0xff] (%p52_p3)  ;;  %v233_v1 = vld [vmem:[%s201_s29 + $0x38] sm:$0xff] (%p52_p3) }
  0x12   : > { %232 = vst [vmem:[%s195_s30] sm:$0xff] (%p52_p3), %v231_v0  ;;  %234 = vst [vmem:[%s195_s30 + $0x8] sm:$0xff] (%p52_p3), %v233_v1 }
  0x15 PF: > { %p753_p6 = scmp.ge.s32.totalorder %s913_s19, 1  ;;  %p251_p7 = scmp.lt.s32.totalorder %s913_s19, 8 }
  0x17   : > { %p252_p8 = pnand %p753_p6, %p251_p7 }
  0x18   : > { %s258_s5 = sand.u32 (!%p252_p8), 1, %s897_s15   ;;  %s755_s6 = sshll.u32 (!%p252_p8), %s905_s17, 5 }
  0x19   : > { %255 = sbr.rel (%p252_p8) target bundleno = 318 (0x13e), region = 62  ;;  %s988_s7 = sshll.u32 (!%p252_p8), %s258_s5, 4 }
  0x1a   : > { %p311_p9 = scmp.lt.s32.totalorder (!%p252_p8), %s755_s6, 223  ;;  %s260_s12 = scalar_lea.vmem (!%p252_p8), [#allocation3], %s988_s7 }
  0x1b   : > { %p757_p10 = scmp.ne.s32.totalorder (!%p252_p8), %s905_s17, 0 }
  0x20   : > { %s1054_s6 = smov (!%p311_p9, %s755_s6), 223  ;;  %346 = sbr.rel (%p757_p10) target bundleno = 39 (0x27), region = 70 }
  0x21   : > { %s756_s8 = sshll.u32 %s1054_s6, 2  ;;  %v915_v2 = vmov (!%p757_p10), 0.0  }
  0x22   : > { %s993_s11 = scalar_lea.vmem %s1043_s1, %s756_s8  ;;  %347 = vst [vmem:[#allocation2] sm:$0xff] (!%p757_p10), %v915_v2  ;;  %348 = vst [vmem:[#allocation2 + $0x8] sm:$0xff] (!%p757_p10), %v915_v2 }
  0x27 PF: > { %v856_v3 = vld [vmem:[%s993_s11 + $0x40] sm:$0xff]   ;;  %v858_v5 = vld [vmem:[%s993_s11 + $0x48] sm:$0xff]   ;;  %v860_v7 = vld [vmem:[%s993_s11 + $0x50] sm:$0xff]   ;;  %p776_p11 = scmp.ne.s32.totalorder %s905_s17, 6 }
  0x28   : > { %v857_v4 = vld [vmem:[%s993_s11] sm:$0xff]   ;;  %793 = vmatprep.subr.bf16.mxu0 %v856_v3  ;;  %v859_v6 = vld [vmem:[%s993_s11 + $0x8] sm:$0xff]   ;;  %v861_v8 = vld [vmem:[%s993_s11 + $0x10] sm:$0xff]  }
  0x29   : > { %794 = vmatpush3.bf16.msra.mxu0 %v857_v4  ;;  %v862_v9 = vld [vmem:[%s993_s11 + $0x58] sm:$0xff]   ;;  %v864_v11 = vld [vmem:[%s993_s11 + $0x60] sm:$0xff]   ;;  %v866_v13 = vld [vmem:[%s993_s11 + $0x68] sm:$0xff]  }
  0x2a   : > { %795 = vmatprep.subr.bf16.mxu0 %v858_v5  ;;  %v863_v10 = vld [vmem:[%s993_s11 + $0x18] sm:$0xff]   ;;  %v865_v12 = vld [vmem:[%s993_s11 + $0x20] sm:$0xff]   ;;  %v867_v15 = vld [vmem:[%s993_s11 + $0x28] sm:$0xff]  }
  0x2b   : > { %v874_v14 = vld [vmem:[%s260_s12 + $0x4] ss:$8 sps:$4 sm:$0xff]   ;;  %v872_v20 = vld [vmem:[%s260_s12] ss:$8 sps:$4 sm:$0xff]  }
  0x2c   : > { %523 = vmatprep.mubr.bf16.mxu0 %v874_v14  ;;  %v868_v16 = vld [vmem:[%s993_s11 + $0x70] sm:$0xff]   ;;  %v870_v18 = vld [vmem:[%s993_s11 + $0x78] sm:$0xff]  }
  0x2d   : > { %796 = vmatpush3.bf16.msra.mxu0 %v859_v6  ;;  %v869_v17 = vld [vmem:[%s993_s11 + $0x30] sm:$0xff]   ;;  %v871_v19 = vld [vmem:[%s993_s11 + $0x38] sm:$0xff]  }
  0x2e   : > { %797 = vmatprep.subr.bf16.mxu0 %v860_v7  ;;  %v349_v22 = vld [vmem:[#allocation2] sm:$0xff]  ;;  %v350_v26 = vld [vmem:[#allocation2 + $0x8] sm:$0xff] }
  0x31   : > { %798 = vmatpush3.bf16.msra.mxu0 %v861_v8 }
  0x32   : > { %799 = vmatprep.subr.bf16.mxu0 %v862_v9 }
  0x35   : > { %800 = vmatpush3.bf16.msra.mxu0 %v863_v10 }
  0x36   : > { %801 = vmatprep.subr.bf16.mxu0 %v864_v11 }
  0x39   : > { %802 = vmatpush3.bf16.msra.mxu0 %v865_v12 }
  0x3a   : > { %803 = vmatprep.subr.bf16.mxu0 %v866_v13 }
  0x3d   : > { %804 = vmatpush3.bf16.msra.mxu0 %v867_v15 }
  0x3e   : > { %805 = vmatprep.subr.bf16.mxu0 %v868_v16 }
  0x41   : > { %806 = vmatpush3.bf16.msra.mxu0 %v869_v17 }
  0x42   : > { %807 = vmatprep.subr.bf16.mxu0 %v870_v18 }
  0x45   : > { %808 = vmatpush3.bf16.msra.mxu0 %v871_v19 }
  0x48   : > { %524 = vmatmul.mubr.bf16.vlgmr.msra.gmra.mrb[0].mxu0 %v872_v20 }
 0x11b   : > { %v809_v21 = vpop.f32.mrb[0].mxu0 }
 0x11c   : > { %v810_v23 = vpop.f32.mrb[1].mxu0 }
 0x11d   : > { %v811_v24 = vadd.f32 %v810_v23, %v809_v21  ;;  %v812_v25 = vpop.f32.mrb[2].mxu0  ;;  %539 = sbr.rel (%p776_p11) target bundleno = 318 (0x13e), region = 74 }
 0x11e   : > { %v813_v27 = vpop.f32.mrb[3].mxu0 }
 0x11f   : > { %v532_v28 = vadd.f32 %v811_v24, %v349_v22  ;;  %v814_v29 = vadd.f32 %v813_v27, %v812_v25 }
 0x121   : > { %534 = vst [vmem:[#allocation2] sm:$0xff] %v532_v28  ;;  %v533_v30 = vadd.f32 %v814_v29, %v350_v26 }
 0x123   : > { %535 = vst [vmem:[#allocation2 + $0x8] sm:$0xff] %v533_v30 }
 0x128   : > { %v540_v31 = vld [vmem:[#allocation2] sm:$0xff] }
 0x129   : > { %v560_v35 = vmul.f32 %v540_v31, %v540_v31 }
 0x12a   : > { %v541_v32 = vld [vmem:[#allocation2 + $0x8] sm:$0xff] }
 0x12b   : > { %v791_v33 = vpack.c.bf16 %v541_v32, %v540_v31  ;;  %v552_v34 = vadd.f32 %v541_v32, %v540_v31  ;;  %v561_v36 = vmul.f32 %v541_v32, %v541_v32 }
 0x12d   : > { %792 = vst [vmem:[%s1044_s2] sm:$0xff] %v791_v33   ;;  %v553_v37 = vrot.slane %v552_v34, 4  ;;  %v562_v38 = vadd.f32 %v561_v36, %v560_v35 }
 0x12f   : > { %v554_v39 = vadd.f32 %v553_v37, %v552_v34  ;;  %v563_v40 = vrot.slane %v562_v38, 4 }
 0x131   : > { %v555_v41 = vrot.slane %v554_v39, 2  ;;  %v564_v42 = vadd.f32 %v563_v40, %v562_v38 }
 0x133   : > { %v556_v43 = vadd.f32 %v555_v41, %v554_v39  ;;  %v565_v44 = vrot.slane %v564_v42, 2 }
 0x135   : > { %v557_v45 = vrot.slane %v556_v43, 1  ;;  %v566_v46 = vadd.f32 %v565_v44, %v564_v42 }
 0x137   : > { %v558_v47 = vadd.f32 %v557_v45, %v556_v43  ;;  %v567_v48 = vrot.slane %v566_v46, 1 }
 0x139   : > { %v559_v49 = vmul.f32 0.125, %v558_v47  ;;  %v568_v50 = vadd.f32 %v567_v48, %v566_v46 }
 0x13b   : > { %570 = vst [vmem:[%s1045_s3] sm:$0xff] %v559_v49  ;;  %v569_v51 = vmul.f32 0.125, %v568_v50 }
 0x13d   : > { %571 = vst [vmem:[%s1046_s4] sm:$0xff] %v569_v51 }
 0x13e PF: > { %s15_s19 = sadd.s32 1, %s913_s19   ;;  %s1047_s15 = smov %s901_s16 }
 0x13f   : > { %p12_p12 = scmp.ge.s32.totalorder %s15_s19, 9   ;;  %s1048_s16 = smov %s976_s23 }
 0x140   : > { %s1049_s17 = smov %s909_s18  ;;  %s1050_s18 = smov %s1052_s20 }
 0x141   :  { %14 = sbr.rel (!%p12_p12) target bundleno = 3 (0x3), region = 136 }

// kernel: _lambda_.39
= control target key start
LH: loop header
LB: loop body
LE: loop exit
PB: predicated region body
PF: predicated region fallthrough
CT: control target
= control target key end

     0   :  { %s99_s0 = inlined_call_operand.vmem [shape: bf16[16,128], index: 0, kind: input, shape index: {}]   ;;  %s100_s1 = inlined_call_operand.vmem [shape: f32[1,128], index: 1, kind: input, shape index: {}]   ;;  %s101_s2 = inlined_call_operand.vmem [shape: f32[1,128], index: 2, kind: input, shape index: {}]   ;;  %s102_s3 = inlined_call_operand.vmem [shape: bf16[16,128], index: 3, kind: output, shape index: {}]  }
   0x1   :  { %v59_v0 = vld [vmem:[%s99_s0] sm:$0xff]  }
   0x2   :  { %v52_v1 = vld [vmem:[%s100_s1] ss:$0 sm:$0xff]  ;;  %v60_v2 = vunpack.c.l.bf16 %v59_v0  ;;  %v61_v3 = vunpack.c.h.bf16 %v59_v0 }
   0x3   :  { %v53_v4 = vld [vmem:[%s101_s2] ss:$0 sm:$0xff] }
   0x4   :  { %v25_v5 = vmul.f32 %v60_v2, %v52_v1  ;;  %v26_v6 = vmul.f32 %v61_v3, %v52_v1 }
   0x6   :  { %v34_v7 = vadd.f32 %v53_v4, %v25_v5  ;;  %v35_v8 = vadd.f32 %v53_v4, %v26_v6 }
   0x8   :  { %v36_v9 = vmax.f32 %v34_v7, 0.0  ;;  %v37_v10 = vmax.f32 %v35_v8, 0.0 }
   0xa   :  { %v65_v11 = vpack.c.bf16 %v37_v10, %v36_v9 }
   0xc   :  { %66 = vst [vmem:[%s102_s3] sm:$0xff] %v65_v11  }

// kernel: _lambda_.40
= control target key start
LH: loop header
LB: loop body
LE: loop exit
PB: predicated region body
PF: predicated region fallthrough
CT: control target
= control target key end

     0   :  { %s867_s15 = smov 0   ;;  %s869_s16 = smov 0   ;;  %s958_s0 = inlined_call_operand.vmem [shape: bf16[16,3456], index: 0, kind: input, shape index: {}]   ;;  %s959_s1 = inlined_call_operand.vmem [shape: bf16[3456,128], index: 1, kind: input, shape index: {}]   ;;  %s960_s2 = inlined_call_operand.vmem [shape: bf16[16,128], index: 2, kind: output, shape index: {0}]   ;;  %s961_s3 = inlined_call_operand.vmem [shape: f32[8,128], index: 3, kind: output, shape index: {1}]   ;;  %s962_s4 = inlined_call_operand.vmem [shape: f32[8,128], index: 4, kind: output, shape index: {2}]  }
   0x1   :  { %s871_s17 = smov 0   ;;  %s873_s18 = smov 0  }
   0x2   :  { %s875_s19 = smov 0  }
   0x3 LB: > { %s27_s20 = sadd.s32 1, %s833_s18  ;;  %p50_p1 = scmp.ne.s32.totalorder %s825_s16, %s821_s15  ;;  %s837_s19 = sphi %s875_s19, %s15_s19   ;;  %s833_s18 = sphi %s873_s18, %s966_s18   ;;  %s829_s17 = sphi %s871_s17, %s965_s17   ;;  %s825_s16 = sphi %s869_s16, %s964_s16   ;;  %s821_s15 = sphi %s867_s15, %s963_s15  }
   0x4   : > { %p28_p0 = scmp.ge.s32.totalorder %s27_s20, 27  ;;  %p51_p2 = scmp.eq.s32.totalorder %s837_s19, 0 }
   0x5   : > { %s43_s22 = sadd.s32 1, %s825_s16  ;;  %p685_p5 = scmp.ge.s32.totalorder %s837_s19, 27 }
   0x6   : > { %s968_s20 = smov (%p28_p0, %s27_s20), 0  ;;  %p52_p3 = por %p51_p2, %p50_p1 }
   0x7   : > { %s39_s21 = ssub.s32 %s833_s18, %s968_s20  ;;  %188 = sbr.rel (%p685_p5) target bundleno = 21 (0x15), region = 16 }
   0x8   : > { %p41_p4 = scmp.eq.s32.totalorder %s39_s21, 0 }
   0xa   : > { %s902_s23 = scalar_select %p41_p4, %s825_s16, %s43_s22  }
   0xe   : > { %191 = sbr.rel (!%p52_p3) target bundleno = 21 (0x15), region = 20  ;;  %s193_s24 = sand.u32 (%p52_p3), 1, %s825_s16  }
   0xf   : > { %s687_s25 = sshll.u32 (%p52_p3), %s833_s18, 2  ;;  %s686_s26 = sshll.u32 (%p52_p3), %s193_s24, 3 }
  0x10   : > { %s200_s29 = scalar_lea.vmem (%p52_p3), %s958_s0, %s687_s25  ;;  %s195_s30 = scalar_lea.vmem (%p52_p3), [#allocation3], %s686_s26 }
  0x11   : > { %v216_v0 = vld [vmem:[%s200_s29] sm:$0xf] (%p52_p3)  ;;  %v218_v1 = vld [vmem:[%s200_s29 + $0x6c] sm:$0xf] (%p52_p3) }
  0x12   : > { %217 = vst [vmem:[%s195_s30] sm:$0xf] (%p52_p3), %v216_v0  ;;  %219 = vst [vmem:[%s195_s30 + $0x4] sm:$0xf] (%p52_p3), %v218_v1 }
  0x15 PF: > { %p688_p6 = scmp.ge.s32.totalorder %s837_s19, 1  ;;  %p257_p7 = scmp.lt.s32.totalorder %s837_s19, 28 }
  0x17   : > { %p258_p8 = pnand %p688_p6, %p257_p7 }
  0x18   : > { %s264_s5 = sand.u32 (!%p258_p8), 1, %s821_s15   ;;  %s690_s6 = sshll.u32 (!%p258_p8), %s829_s17, 4 }
  0x19   : > { %261 = sbr.rel (%p258_p8) target bundleno = 315 (0x13b), region = 65  ;;  %s914_s7 = sshll.u32 (!%p258_p8), %s264_s5, 3 }
  0x1a   : > { %p316_p9 = scmp.lt.s32.totalorder (!%p258_p8), %s690_s6, 431  ;;  %s266_s12 = scalar_lea.vmem (!%p258_p8), [#allocation3], %s914_s7 }
  0x1b   : > { %p692_p10 = scmp.ne.s32.totalorder (!%p258_p8), %s829_s17, 0 }
  0x20   : > { %s970_s6 = smov (!%p316_p9, %s690_s6), 431  ;;  %351 = sbr.rel (%p692_p10) target bundleno = 39 (0x27), region = 73 }
  0x21   : > { %s691_s8 = sshll.u32 %s970_s6, 2  ;;  %v839_v2 = vmov (!%p692_p10), 0.0  }
  0x22   : > { %s919_s11 = scalar_lea.vmem %s959_s1, %s691_s8  ;;  %352 = vst [vmem:[#allocation2] sm:$0xff] (!%p692_p10), %v839_v2  ;;  %353 = vst [vmem:[#allocation2 + $0x8] sm:$0xff] (!%p692_p10), %v839_v2 }
  0x27 PF: > { %v790_v3 = vld [vmem:[%s919_s11] sm:$0xff]   ;;  %v840_v4 = vmov 0.0   ;;  %v791_v5 = vld [vmem:[%s919_s11 + $0x8] sm:$0xff]   ;;  %vm841_vm0 = vmmov 0   ;;  %v792_v6 = vld [vmem:[%s919_s11 + $0x10] sm:$0xff]   ;;  %p702_p11 = scmp.ne.s32.totalorder %s829_s17, 26 }
  0x28   : > { %727 = vmatprep.subr.bf16.mxu0 %v840_v4  ;;  %743 = vmatprep.mubr.msk.bf16.mxu0 %vm841_vm0, %v840_v4  ;;  %v793_v7 = vld [vmem:[%s919_s11 + $0x18] sm:$0xff]   ;;  %v794_v8 = vld [vmem:[%s919_s11 + $0x20] sm:$0xff]   ;;  %v795_v9 = vld [vmem:[%s919_s11 + $0x28] sm:$0xff]  }
  0x29   : > { %728 = vmatpush3.bf16.msra.mxu0 %v790_v3  ;;  %v796_v10 = vld [vmem:[%s919_s11 + $0x30] sm:$0xff]   ;;  %v797_v11 = vld [vmem:[%s919_s11 + $0x38] sm:$0xff]   ;;  %v798_v12 = vld [vmem:[%s266_s12] sm:$0xff]  }
  0x2a   : > { %729 = vmatprep.subr.bf16.mxu0 %v840_v4  ;;  %v354_v13 = vld [vmem:[#allocation2] sm:$0xff]  ;;  %v355_v15 = vld [vmem:[#allocation2 + $0x8] sm:$0xff] }
  0x2d   : > { %730 = vmatpush3.bf16.msra.mxu0 %v791_v5 }
  0x2e   : > { %731 = vmatprep.subr.bf16.mxu0 %v840_v4 }
  0x31   : > { %732 = vmatpush3.bf16.msra.mxu0 %v792_v6 }
  0x32   : > { %733 = vmatprep.subr.bf16.mxu0 %v840_v4 }
  0x35   : > { %734 = vmatpush3.bf16.msra.mxu0 %v793_v7 }
  0x36   : > { %735 = vmatprep.subr.bf16.mxu0 %v840_v4 }
  0x39   : > { %736 = vmatpush3.bf16.msra.mxu0 %v794_v8 }
  0x3a   : > { %737 = vmatprep.subr.bf16.mxu0 %v840_v4 }
  0x3d   : > { %738 = vmatpush3.bf16.msra.mxu0 %v795_v9 }
  0x3e   : > { %739 = vmatprep.subr.bf16.mxu0 %v840_v4 }
  0x41   : > { %740 = vmatpush3.bf16.msra.mxu0 %v796_v10 }
  0x42   : > { %741 = vmatprep.subr.bf16.mxu0 %v840_v4 }
  0x45   : > { %742 = vmatpush3.bf16.msra.mxu0 %v797_v11 }
  0x48   : > { %744 = vmatmul.mubr.bf16.vlgmr.msra.gmra.mrb[0].mxu0 %v798_v12 }
 0x11a   : > { %476 = sbr.rel (%p702_p11) target bundleno = 315 (0x13b), region = 77 }
 0x11b   : > { %v462_v14 = vpop.f32.mrb[0].mxu0 }
 0x11c   : > { %v469_v16 = vadd.f32 %v462_v14, %v354_v13  ;;  %v745_v17 = vpop.f32.mrb[1].mxu0 }
 0x11d   : > { %v465_v18 = vpop.f32.mrb[2].mxu0 }
 0x11e   : > { %471 = vst [vmem:[#allocation2] sm:$0xff] %v469_v16  ;;  %v470_v19 = vadd.f32 %v465_v18, %v355_v15  ;;  %v746_v20 = vpop.f32.mrb[3].mxu0 }
 0x120   : > { %472 = vst [vmem:[#allocation2 + $0x8] sm:$0xff] %v470_v19 }
 0x125   : > { %v477_v21 = vld [vmem:[#allocation2] sm:$0xff] }
 0x126   : > { %v497_v25 = vmul.f32 %v477_v21, %v477_v21 }
 0x127   : > { %v478_v22 = vld [vmem:[#allocation2 + $0x8] sm:$0xff] }
 0x128   : > { %v716_v23 = vpack.c.bf16 %v478_v22, %v477_v21  ;;  %v489_v24 = vadd.f32 %v478_v22, %v477_v21  ;;  %v498_v26 = vmul.f32 %v478_v22, %v478_v22 }
 0x12a   : > { %717 = vst [vmem:[%s960_s2] sm:$0xff] %v716_v23   ;;  %v490_v27 = vrot.slane %v489_v24, 4  ;;  %v499_v28 = vadd.f32 %v498_v26, %v497_v25 }
 0x12c   : > { %v491_v29 = vadd.f32 %v490_v27, %v489_v24  ;;  %v500_v30 = vrot.slane %v499_v28, 4 }
 0x12e   : > { %v492_v31 = vrot.slane %v491_v29, 2  ;;  %v501_v32 = vadd.f32 %v500_v30, %v499_v28 }
 0x130   : > { %v493_v33 = vadd.f32 %v492_v31, %v491_v29  ;;  %v502_v34 = vrot.slane %v501_v32, 2 }
 0x132   : > { %v494_v35 = vrot.slane %v493_v33, 1  ;;  %v503_v36 = vadd.f32 %v502_v34, %v501_v32 }
 0x134   : > { %v495_v37 = vadd.f32 %v494_v35, %v493_v33  ;;  %v504_v38 = vrot.slane %v503_v36, 1 }
 0x136   : > { %v496_v39 = vmul.f32 0.125, %v495_v37  ;;  %v505_v40 = vadd.f32 %v504_v38, %v503_v36 }
 0x138   : > { %507 = vst [vmem:[%s961_s3] sm:$0xff] %v496_v39  ;;  %v506_v41 = vmul.f32 0.125, %v505_v40 }
 0x13a   : > { %508 = vst [vmem:[%s962_s4] sm:$0xff] %v506_v41 }
 0x13b PF: > { %s15_s19 = sadd.s32 1, %s837_s19   ;;  %s963_s15 = smov %s825_s16 }
 0x13c   : > { %p12_p12 = scmp.ge.s32.totalorder %s15_s19, 29   ;;  %s964_s16 = smov %s902_s23 }
 0x13d   : > { %s965_s17 = smov %s833_s18  ;;  %s966_s18 = smov %s968_s20 }
 0x13e   :  { %14 = sbr.rel (!%p12_p12) target bundleno = 3 (0x3), region = 139 }

// kernel: _lambda_.41
= control target key start
LH: loop header
LB: loop body
LE: loop exit
PB: predicated region body
PF: predicated region fallthrough
CT: control target
= control target key end

     0   :  { %v197_v0 = vmov 0.0   ;;  %vm198_vm0 = vmmov 0   ;;  %vm62_vm1 = vcmask 523264   ;;  %s248_s1 = inlined_call_operand.vmem [shape: bf16[64,128], index: 1, kind: input, shape index: {}]   ;;  %s249_s0 = inlined_call_operand.vmem [shape: bf16[16,64], index: 0, kind: input, shape index: {}]   ;;  %s250_s2 = inlined_call_operand.vmem [shape: bf16[16,128], index: 2, kind: output, shape index: {0}]   ;;  %s251_s3 = inlined_call_operand.vmem [shape: f32[8,128], index: 3, kind: output, shape index: {1}]   ;;  %s252_s4 = inlined_call_operand.vmem [shape: f32[8,128], index: 4, kind: output, shape index: {2}]  }
   0x1   :  { %178 = vmatprep.subr.bf16.mxu0 %v197_v0  ;;  %v192_v1 = vld [vmem:[%s248_s1] sm:$0xff]   ;;  %186 = vmatprep.mubr.msk.bf16.mxu0 %vm198_vm0, %v197_v0  ;;  %v193_v2 = vld [vmem:[%s248_s1 + $0x8] sm:$0xff]   ;;  %v194_v3 = vld [vmem:[%s248_s1 + $0x10] sm:$0xff]  }
   0x2   :  { %179 = vmatpush3.bf16.msra.mxu0 %v192_v1  ;;  %v195_v4 = vld [vmem:[%s248_s1 + $0x18] sm:$0xff]   ;;  %v196_v5 = vld [vmem:[%s249_s0] sm:$0xff]  }
   0x3   :  { %180 = vmatprep.subr.bf16.mxu0 %v197_v0 }
   0x6   :  { %181 = vmatpush3.bf16.msra.mxu0 %v193_v2 }
   0x7   :  { %182 = vmatprep.subr.bf16.mxu0 %v197_v0 }
   0xa   :  { %183 = vmatpush3.bf16.msra.mxu0 %v194_v3 }
   0xb   :  { %184 = vmatprep.subr.bf16.mxu0 %v197_v0 }
   0xe   :  { %185 = vmatpush3.bf16.msra.mxu0 %v195_v4 }
  0x11   :  { %187 = vmatmul.mubr.msk.bf16.vlgmr.msra.gmra.mrb[0].mxu0 %vm62_vm1, %v196_v5 }
  0xe4   :  { %v100_v6 = vpop.f32.mrb[0].mxu0 }
  0xe5   :  { %v188_v7 = vpop.f32.mrb[1].mxu0  ;;  %v134_v9 = vmul.f32 %v100_v6, %v100_v6 }
  0xe6   :  { %v103_v8 = vpop.f32.mrb[2].mxu0 }
  0xe7   :  { %v171_v10 = vpack.c.bf16 %v103_v8, %v100_v6  ;;  %v126_v11 = vadd.f32 %v103_v8, %v100_v6  ;;  %v135_v12 = vmul.f32 %v103_v8, %v103_v8  ;;  %v189_v13 = vpop.f32.mrb[3].mxu0 }
  0xe9   :  { %172 = vst [vmem:[%s250_s2] sm:$0xff] %v171_v10   ;;  %v127_v14 = vrot.slane %v126_v11, 4  ;;  %v136_v15 = vadd.f32 %v135_v12, %v134_v9 }
  0xeb   :  { %v128_v16 = vadd.f32 %v127_v14, %v126_v11  ;;  %v137_v17 = vrot.slane %v136_v15, 4 }
  0xed   :  { %v129_v18 = vrot.slane %v128_v16, 2  ;;  %v138_v19 = vadd.f32 %v137_v17, %v136_v15 }
  0xef   :  { %v130_v20 = vadd.f32 %v129_v18, %v128_v16  ;;  %v139_v21 = vrot.slane %v138_v19, 2 }
  0xf1   :  { %v131_v22 = vrot.slane %v130_v20, 1  ;;  %v140_v23 = vadd.f32 %v139_v21, %v138_v19 }
  0xf3   :  { %v132_v24 = vadd.f32 %v131_v22, %v130_v20  ;;  %v141_v25 = vrot.slane %v140_v23, 1 }
  0xf5   :  { %v133_v26 = vmul.f32 0.125, %v132_v24  ;;  %v142_v27 = vadd.f32 %v141_v25, %v140_v23 }
  0xf7   :  { %v143_v28 = vmul.f32 0.125, %v142_v27  ;;  %144 = vst [vmem:[%s251_s3] sm:$0xff] %v133_v26 }
  0xf9   :  { %145 = vst [vmem:[%s252_s4] sm:$0xff] %v143_v28 }

// kernel: _lambda_.42
= control target key start
LH: loop header
LB: loop body
LE: loop exit
PB: predicated region body
PF: predicated region fallthrough
CT: control target
= control target key end

     0   :  { %s162_s0 = inlined_call_operand.vmem [shape: bf16[16,128], index: 0, kind: input, shape index: {}]   ;;  %s163_s1 = inlined_call_operand.vmem [shape: bf16[16,128], index: 1, kind: input, shape index: {}]   ;;  %s164_s2 = inlined_call_operand.vmem [shape: f32[1,128], index: 2, kind: input, shape index: {}]   ;;  %s165_s3 = inlined_call_operand.vmem [shape: f32[1,128], index: 3, kind: input, shape index: {}]   ;;  %s166_s4 = inlined_call_operand.vmem [shape: f32[1,128], index: 4, kind: input, shape index: {}]   ;;  %s167_s5 = inlined_call_operand.vmem [shape: f32[1,128], index: 5, kind: input, shape index: {}]   ;;  %s168_s6 = inlined_call_operand.vmem [shape: bf16[16,128], index: 6, kind: output, shape index: {}]  }
   0x1   :  { %v94_v0 = vld [vmem:[%s162_s0] sm:$0xff]  }
   0x2   :  { %v85_v1 = vld [vmem:[%s164_s2] ss:$0 sm:$0xff]  ;;  %v95_v2 = vunpack.c.l.bf16 %v94_v0  ;;  %v96_v3 = vunpack.c.h.bf16 %v94_v0 }
   0x3   :  { %v98_v4 = vld [vmem:[%s163_s1] sm:$0xff]  }
   0x4   :  { %v87_v5 = vld [vmem:[%s166_s4] ss:$0 sm:$0xff]  ;;  %v99_v7 = vunpack.c.l.bf16 %v98_v4  ;;  %v100_v8 = vunpack.c.h.bf16 %v98_v4  ;;  %v34_v9 = vmul.f32 %v95_v2, %v85_v1  ;;  %v35_v10 = vmul.f32 %v96_v3, %v85_v1 }
   0x5   :  { %v86_v6 = vld [vmem:[%s165_s3] ss:$0 sm:$0xff] }
   0x6   :  { %v56_v11 = vmul.f32 %v99_v7, %v87_v5  ;;  %v57_v12 = vmul.f32 %v100_v8, %v87_v5  ;;  %v43_v13 = vadd.f32 %v86_v6, %v34_v9  ;;  %v44_v14 = vadd.f32 %v86_v6, %v35_v10  ;;  %v88_v15 = vld [vmem:[%s167_s5] ss:$0 sm:$0xff] }
   0x8   :  { %v58_v16 = vadd.f32 %v56_v11, %v43_v13  ;;  %v59_v17 = vadd.f32 %v57_v12, %v44_v14 }
   0xa   :  { %v67_v18 = vadd.f32 %v88_v15, %v58_v16  ;;  %v68_v19 = vadd.f32 %v88_v15, %v59_v17 }
   0xc   :  { %v69_v20 = vmax.f32 %v67_v18, 0.0  ;;  %v70_v21 = vmax.f32 %v68_v19, 0.0 }
   0xe   :  { %v104_v22 = vpack.c.bf16 %v70_v21, %v69_v20 }
  0x10   :  { %105 = vst [vmem:[%s168_s6] sm:$0xff] %v104_v22  }

// kernel: _lambda_.46
= control target key start
LH: loop header
LB: loop body
LE: loop exit
PB: predicated region body
PF: predicated region fallthrough
CT: control target
= control target key end

     0   :  { %v302_v1 = vmov 0   ;;  %s397_s1 = inlined_call_operand.vmem [shape: bf16[128,256], index: 1, kind: input, shape index: {}]   ;;  %s398_s0 = inlined_call_operand.vmem [shape: bf16[16,128], index: 0, kind: input, shape index: {}]   ;;  %s399_s2 = inlined_call_operand.vmem [shape: bf16[16,256], index: 2, kind: output, shape index: {0}]   ;;  %s400_s3 = inlined_call_operand.vmem [shape: f32[8,256], index: 3, kind: output, shape index: {1}]   ;;  %s401_s4 = inlined_call_operand.vmem [shape: f32[8,256], index: 4, kind: output, shape index: {2}]  }
   0x1   :  { %v277_v0 = vld [vmem:[%s397_s1 + $0x4] ss:$8 sps:$4 sm:$0xff]   ;;  %163 = vmatprep.mubr.bf16.mxu0 %v302_v1  ;;  %v279_v2 = vld [vmem:[%s397_s1] ss:$8 sps:$4 sm:$0xff]   ;;  %v280_v3 = vld [vmem:[%s397_s1 + $0x14] ss:$8 sps:$4 sm:$0xff]  }
   0x2   :  { %131 = vmatprep.subr.bf16.mxu0 %v277_v0  ;;  %v282_v4 = vld [vmem:[%s397_s1 + $0x10] ss:$8 sps:$4 sm:$0xff]   ;;  %v283_v5 = vld [vmem:[%s397_s1 + $0x24] ss:$8 sps:$4 sm:$0xff]   ;;  %v285_v6 = vld [vmem:[%s397_s1 + $0x20] ss:$8 sps:$4 sm:$0xff]  }
   0x3   :  { %132 = vmatpush1.bf16.msra.mxu0 %v279_v2  ;;  %v286_v7 = vld [vmem:[%s397_s1 + $0x34] ss:$8 sps:$4 sm:$0xff]   ;;  %v288_v8 = vld [vmem:[%s397_s1 + $0x30] ss:$8 sps:$4 sm:$0xff]   ;;  %v289_v9 = vld [vmem:[%s397_s1 + $0x44] ss:$8 sps:$4 sm:$0xff]  }
   0x4   :  { %133 = vmatprep.subr.bf16.mxu0 %v280_v3  ;;  %v291_v10 = vld [vmem:[%s397_s1 + $0x40] ss:$8 sps:$4 sm:$0xff]   ;;  %v292_v11 = vld [vmem:[%s397_s1 + $0x54] ss:$8 sps:$4 sm:$0xff]   ;;  %v294_v12 = vld [vmem:[%s397_s1 + $0x50] ss:$8 sps:$4 sm:$0xff]  }
   0x5   :  { %v295_v13 = vld [vmem:[%s397_s1 + $0x64] ss:$8 sps:$4 sm:$0xff]   ;;  %v297_v14 = vld [vmem:[%s397_s1 + $0x60] ss:$8 sps:$4 sm:$0xff]   ;;  %v298_v15 = vld [vmem:[%s397_s1 + $0x74] ss:$8 sps:$4 sm:$0xff]  }
   0x6   :  { %v300_v16 = vld [vmem:[%s397_s1 + $0x70] ss:$8 sps:$4 sm:$0xff]   ;;  %v301_v17 = vld [vmem:[%s398_s0] sm:$0xff]  }
   0x7   :  { %134 = vmatpush1.bf16.msra.mxu0 %v282_v4 }
   0x8   :  { %135 = vmatprep.subr.bf16.mxu0 %v283_v5 }
   0xb   :  { %136 = vmatpush1.bf16.msra.mxu0 %v285_v6 }
   0xc   :  { %137 = vmatprep.subr.bf16.mxu0 %v286_v7 }
   0xf   :  { %138 = vmatpush1.bf16.msra.mxu0 %v288_v8 }
  0x10   :  { %139 = vmatprep.subr.bf16.mxu0 %v289_v9 }
  0x13   :  { %140 = vmatpush1.bf16.msra.mxu0 %v291_v10 }
  0x14   :  { %141 = vmatprep.subr.bf16.mxu0 %v292_v11 }
  0x17   :  { %142 = vmatpush1.bf16.msra.mxu0 %v294_v12 }
  0x18   :  { %143 = vmatprep.subr.bf16.mxu0 %v295_v13 }
  0x1b   :  { %144 = vmatpush1.bf16.msra.mxu0 %v297_v14 }
  0x1c   :  { %145 = vmatprep.subr.bf16.mxu0 %v298_v15 }
  0x1f   :  { %146 = vmatpush1.bf16.msra.mxu0 %v300_v16 }
  0x22   :  { %164 = vmatmul.mubr.bf16.vlgmr.msra.gmra.mrb[0].mxu0 %v301_v17 }
  0xf5   :  { %v165_v18 = vpop.f32.mrb[0].mxu0 }
  0xf6   :  { %v167_v19 = vpop.f32.mrb[1].mxu0  ;;  %v219_v22 = vmul.f32 %v165_v18, %v165_v18 }
  0xf7   :  { %v274_v20 = vpack.c.bf16 %v167_v19, %v165_v18  ;;  %v169_v21 = vpop.f32.mrb[2].mxu0  ;;  %v220_v26 = vmul.f32 %v167_v19, %v167_v19 }
  0xf8   :  { %v203_v23 = vadd.f32 %v169_v21, %v165_v18  ;;  %v221_v24 = vmul.f32 %v169_v21, %v169_v21  ;;  %v171_v25 = vpop.f32.mrb[3].mxu0 }
  0xf9   :  { %v275_v27 = vpack.c.bf16 %v171_v25, %v169_v21  ;;  %201 = vst [vmem:[%s399_s2] sm:$0xff] %v274_v20  ;;  %v210_v28 = vadd.f32 %v171_v25, %v167_v19  ;;  %v222_v29 = vmul.f32 %v171_v25, %v171_v25 }
  0xfa   :  { %v204_v30 = vrot.slane %v203_v23, 4  ;;  %v223_v31 = vadd.f32 %v221_v24, %v219_v22 }
  0xfb   :  { %202 = vst [vmem:[%s399_s2 + $0x8] sm:$0xff] %v275_v27  ;;  %v211_v32 = vrot.slane %v210_v28, 4  ;;  %v230_v33 = vadd.f32 %v222_v29, %v220_v26 }
  0xfc   :  { %v205_v34 = vadd.f32 %v204_v30, %v203_v23  ;;  %v224_v35 = vrot.slane %v223_v31, 4 }
  0xfd   :  { %v212_v36 = vadd.f32 %v211_v32, %v210_v28  ;;  %v231_v37 = vrot.slane %v230_v33, 4 }
  0xfe   :  { %v206_v38 = vrot.slane %v205_v34, 2  ;;  %v225_v39 = vadd.f32 %v224_v35, %v223_v31 }
  0xff   :  { %v213_v40 = vrot.slane %v212_v36, 2  ;;  %v232_v41 = vadd.f32 %v231_v37, %v230_v33 }
 0x100   :  { %v207_v42 = vadd.f32 %v206_v38, %v205_v34  ;;  %v226_v43 = vrot.slane %v225_v39, 2 }
 0x101   :  { %v214_v44 = vadd.f32 %v213_v40, %v212_v36  ;;  %v233_v45 = vrot.slane %v232_v41, 2 }
 0x102   :  { %v208_v46 = vrot.slane %v207_v42, 1  ;;  %v227_v47 = vadd.f32 %v226_v43, %v225_v39 }
 0x103   :  { %v215_v48 = vrot.slane %v214_v44, 1  ;;  %v234_v49 = vadd.f32 %v233_v45, %v232_v41 }
 0x104   :  { %v209_v50 = vadd.f32 %v208_v46, %v207_v42  ;;  %v228_v51 = vrot.slane %v227_v47, 1 }
 0x105   :  { %v216_v52 = vadd.f32 %v215_v48, %v214_v44  ;;  %v235_v53 = vrot.slane %v234_v49, 1 }
 0x106   :  { %v217_v54 = vmul.f32 0.125, %v209_v50  ;;  %v229_v55 = vadd.f32 %v228_v51, %v227_v47 }
 0x107   :  { %v218_v56 = vmul.f32 0.125, %v216_v52  ;;  %v236_v57 = vadd.f32 %v235_v53, %v234_v49 }
 0x108   :  { %v237_v58 = vmul.f32 0.125, %v229_v55  ;;  %239 = vst [vmem:[%s400_s3] sm:$0xff] %v217_v54 }
 0x109   :  { %v238_v59 = vmul.f32 0.125, %v236_v57  ;;  %240 = vst [vmem:[%s400_s3 + $0x8] sm:$0xff] %v218_v56 }
 0x10a   :  { %241 = vst [vmem:[%s401_s4] sm:$0xff] %v237_v58 }
 0x10b   :  { %242 = vst [vmem:[%s401_s4 + $0x8] sm:$0xff] %v238_v59 }

// kernel: _lambda_.43
= control target key start
LH: loop header
LB: loop body
LE: loop exit
PB: predicated region body
PF: predicated region fallthrough
CT: control target
= control target key end

     0   :  { %s980_s15 = smov 0   ;;  %s982_s16 = smov 0   ;;  %s1088_s0 = inlined_call_operand.vmem [shape: bf16[16,3456], index: 0, kind: input, shape index: {}]   ;;  %s1089_s1 = inlined_call_operand.vmem [shape: bf16[3456,256], index: 1, kind: input, shape index: {}]   ;;  %s1090_s2 = inlined_call_operand.vmem [shape: bf16[16,256], index: 2, kind: output, shape index: {0}]   ;;  %s1091_s3 = inlined_call_operand.vmem [shape: f32[8,256], index: 3, kind: output, shape index: {1}]   ;;  %s1092_s4 = inlined_call_operand.vmem [shape: f32[8,256], index: 4, kind: output, shape index: {2}]  }
   0x1   :  { %s984_s17 = smov 0   ;;  %s986_s18 = smov 0  }
   0x2   :  { %s988_s19 = smov 0  }
   0x3 LB: > { %s27_s20 = sadd.s32 1, %s947_s18  ;;  %p50_p1 = scmp.ne.s32.totalorder %s939_s16, %s935_s15  ;;  %s951_s19 = sphi %s988_s19, %s15_s19   ;;  %s947_s18 = sphi %s986_s18, %s1096_s18   ;;  %s943_s17 = sphi %s984_s17, %s1095_s17   ;;  %s939_s16 = sphi %s982_s16, %s1094_s16   ;;  %s935_s15 = sphi %s980_s15, %s1093_s15  }
   0x4   : > { %p28_p0 = scmp.ge.s32.totalorder %s27_s20, 27  ;;  %p51_p2 = scmp.eq.s32.totalorder %s951_s19, 0 }
   0x5   : > { %s43_s22 = sadd.s32 1, %s939_s16  ;;  %p806_p5 = scmp.ge.s32.totalorder %s951_s19, 27 }
   0x6   : > { %s1098_s20 = smov (%p28_p0, %s27_s20), 0  ;;  %p52_p3 = por %p51_p2, %p50_p1 }
   0x7   : > { %s39_s21 = ssub.s32 %s947_s18, %s1098_s20  ;;  %188 = sbr.rel (%p806_p5) target bundleno = 21 (0x15), region = 16 }
   0x8   : > { %p41_p4 = scmp.eq.s32.totalorder %s39_s21, 0 }
   0xa   : > { %s1015_s23 = scalar_select %p41_p4, %s939_s16, %s43_s22  }
   0xe   : > { %191 = sbr.rel (!%p52_p3) target bundleno = 21 (0x15), region = 20  ;;  %s193_s24 = sand.u32 (%p52_p3), 1, %s939_s16  }
   0xf   : > { %s808_s25 = sshll.u32 (%p52_p3), %s947_s18, 2  ;;  %s807_s26 = sshll.u32 (%p52_p3), %s193_s24, 3 }
  0x10   : > { %s200_s29 = scalar_lea.vmem (%p52_p3), %s1088_s0, %s808_s25  ;;  %s195_s30 = scalar_lea.vmem (%p52_p3), [#allocation3], %s807_s26 }
  0x11   : > { %v216_v0 = vld [vmem:[%s200_s29] sm:$0xf] (%p52_p3)  ;;  %v218_v1 = vld [vmem:[%s200_s29 + $0x6c] sm:$0xf] (%p52_p3) }
  0x12   : > { %217 = vst [vmem:[%s195_s30] sm:$0xf] (%p52_p3), %v216_v0  ;;  %219 = vst [vmem:[%s195_s30 + $0x4] sm:$0xf] (%p52_p3), %v218_v1 }
  0x15 PF: > { %p809_p6 = scmp.ge.s32.totalorder %s951_s19, 1  ;;  %p260_p7 = scmp.lt.s32.totalorder %s951_s19, 28 }
  0x17   : > { %p261_p8 = pnand %p809_p6, %p260_p7 }
  0x18   : > { %s267_s5 = sand.u32 (!%p261_p8), 1, %s935_s15   ;;  %s811_s6 = sshll.u32 (!%p261_p8), %s943_s17, 4 }
  0x19   : > { %264 = sbr.rel (%p261_p8) target bundleno = 316 (0x13c), region = 65  ;;  %s1027_s7 = sshll.u32 (!%p261_p8), %s267_s5, 3 }
  0x1a   : > { %p328_p9 = scmp.lt.s32.totalorder (!%p261_p8), %s811_s6, 431  ;;  %s269_s12 = scalar_lea.vmem (!%p261_p8), [#allocation3], %s1027_s7 }
  0x1b   : > { %p814_p10 = scmp.ne.s32.totalorder (!%p261_p8), %s943_s17, 0 }
  0x20   : > { %s1100_s6 = smov (!%p328_p9, %s811_s6), 431  ;;  %374 = sbr.rel (%p814_p10) target bundleno = 39 (0x27), region = 73 }
  0x21   : > { %s843_s8 = sshll.u32 %s1100_s6, 3  ;;  %v953_v2 = vmov (!%p814_p10), 0.0  }
  0x22   : > { %s1032_s11 = scalar_lea.vmem %s1089_s1, %s843_s8  ;;  %375 = vst [vmem:[#allocation2] sm:$0xff] (!%p814_p10), %v953_v2  ;;  %376 = vst [vmem:[#allocation2 + $0x8] sm:$0xff] (!%p814_p10), %v953_v2 }
  0x23   : > { %377 = vst [vmem:[#allocation2 + $0x10] sm:$0xff] (!%p814_p10), %v953_v2  ;;  %378 = vst [vmem:[#allocation2 + $0x18] sm:$0xff] (!%p814_p10), %v953_v2 }
  0x27 PF: > { %v888_v3 = vld [vmem:[%s1032_s11 + $0x4] ss:$8 sps:$4 sm:$0xff]   ;;  %v890_v4 = vld [vmem:[%s1032_s11] ss:$8 sps:$4 sm:$0xff]   ;;  %v954_v5 = vmov 0   ;;  %v912_v20 = vld [vmem:[%s269_s12] sm:$0xff]  }
  0x28   : > { %519 = vmatprep.mubr.bf16.mxu0 %v954_v5  ;;  %487 = vmatprep.subr.bf16.mxu0 %v888_v3  ;;  %v891_v6 = vld [vmem:[%s1032_s11 + $0x14] ss:$8 sps:$4 sm:$0xff]   ;;  %v893_v7 = vld [vmem:[%s1032_s11 + $0x10] ss:$8 sps:$4 sm:$0xff]   ;;  %v894_v8 = vld [vmem:[%s1032_s11 + $0x24] ss:$8 sps:$4 sm:$0xff]  }
  0x29   : > { %488 = vmatpush1.bf16.msra.mxu0 %v890_v4  ;;  %v896_v9 = vld [vmem:[%s1032_s11 + $0x20] ss:$8 sps:$4 sm:$0xff]   ;;  %v897_v10 = vld [vmem:[%s1032_s11 + $0x34] ss:$8 sps:$4 sm:$0xff]   ;;  %v899_v11 = vld [vmem:[%s1032_s11 + $0x30] ss:$8 sps:$4 sm:$0xff]  }
  0x2a   : > { %489 = vmatprep.subr.bf16.mxu0 %v891_v6  ;;  %v900_v12 = vld [vmem:[%s1032_s11 + $0x44] ss:$8 sps:$4 sm:$0xff]   ;;  %v902_v13 = vld [vmem:[%s1032_s11 + $0x40] ss:$8 sps:$4 sm:$0xff]   ;;  %v903_v14 = vld [vmem:[%s1032_s11 + $0x54] ss:$8 sps:$4 sm:$0xff]  }
  0x2b   : > { %v905_v15 = vld [vmem:[%s1032_s11 + $0x50] ss:$8 sps:$4 sm:$0xff]   ;;  %v906_v16 = vld [vmem:[%s1032_s11 + $0x64] ss:$8 sps:$4 sm:$0xff]   ;;  %v908_v17 = vld [vmem:[%s1032_s11 + $0x60] ss:$8 sps:$4 sm:$0xff]  }
  0x2c   : > { %v909_v18 = vld [vmem:[%s1032_s11 + $0x74] ss:$8 sps:$4 sm:$0xff]   ;;  %v911_v19 = vld [vmem:[%s1032_s11 + $0x70] ss:$8 sps:$4 sm:$0xff]   ;;  %v381_v24 = vld [vmem:[#allocation2 + $0x10] sm:$0xff]  ;;  %p832_p11 = scmp.ne.s32.totalorder %s943_s17, 26 }
  0x2d   : > { %490 = vmatpush1.bf16.msra.mxu0 %v893_v7  ;;  %v379_v21 = vld [vmem:[#allocation2] sm:$0xff]  ;;  %v380_v22 = vld [vmem:[#allocation2 + $0x8] sm:$0xff]  ;;  %v382_v27 = vld [vmem:[#allocation2 + $0x18] sm:$0xff] }
  0x2e   : > { %491 = vmatprep.subr.bf16.mxu0 %v894_v8 }
  0x31   : > { %492 = vmatpush1.bf16.msra.mxu0 %v896_v9 }
  0x32   : > { %493 = vmatprep.subr.bf16.mxu0 %v897_v10 }
  0x35   : > { %494 = vmatpush1.bf16.msra.mxu0 %v899_v11 }
  0x36   : > { %495 = vmatprep.subr.bf16.mxu0 %v900_v12 }
  0x39   : > { %496 = vmatpush1.bf16.msra.mxu0 %v902_v13 }
  0x3a   : > { %497 = vmatprep.subr.bf16.mxu0 %v903_v14 }
  0x3d   : > { %498 = vmatpush1.bf16.msra.mxu0 %v905_v15 }
  0x3e   : > { %499 = vmatprep.subr.bf16.mxu0 %v906_v16 }
  0x41   : > { %500 = vmatpush1.bf16.msra.mxu0 %v908_v17 }
  0x42   : > { %501 = vmatprep.subr.bf16.mxu0 %v909_v18 }
  0x45   : > { %502 = vmatpush1.bf16.msra.mxu0 %v911_v19 }
  0x48   : > { %520 = vmatmul.mubr.bf16.vlgmr.msra.gmra.mrb[0].mxu0 %v912_v20 }
 0x11b   : > { %v521_v23 = vpop.f32.mrb[0].mxu0  ;;  %541 = sbr.rel (%p832_p11) target bundleno = 316 (0x13c), region = 77 }
 0x11c   : > { %v530_v25 = vadd.f32 %v521_v23, %v379_v21  ;;  %v523_v26 = vpop.f32.mrb[1].mxu0 }
 0x11d   : > { %v531_v28 = vadd.f32 %v523_v26, %v380_v22  ;;  %v525_v29 = vpop.f32.mrb[2].mxu0 }
 0x11e   : > { %534 = vst [vmem:[#allocation2] sm:$0xff] %v530_v25  ;;  %v532_v30 = vadd.f32 %v525_v29, %v381_v24  ;;  %v527_v31 = vpop.f32.mrb[3].mxu0 }
 0x11f   : > { %535 = vst [vmem:[#allocation2 + $0x8] sm:$0xff] %v531_v28  ;;  %v533_v32 = vadd.f32 %v527_v31, %v382_v27 }
 0x120   : > { %536 = vst [vmem:[#allocation2 + $0x10] sm:$0xff] %v532_v30 }
 0x121   : > { %537 = vst [vmem:[#allocation2 + $0x18] sm:$0xff] %v533_v32 }
 0x125   : > { %v542_v33 = vld [vmem:[#allocation2] sm:$0xff] }
 0x126   : > { %v543_v34 = vld [vmem:[#allocation2 + $0x8] sm:$0xff]  ;;  %v576_v37 = vmul.f32 %v542_v33, %v542_v33 }
 0x127   : > { %v544_v35 = vld [vmem:[#allocation2 + $0x10] sm:$0xff]  ;;  %v844_v36 = vpack.c.bf16 %v543_v34, %v542_v33  ;;  %v577_v38 = vmul.f32 %v543_v34, %v543_v34 }
 0x128   : > { %v545_v39 = vld [vmem:[#allocation2 + $0x18] sm:$0xff]  ;;  %v560_v40 = vadd.f32 %v544_v35, %v542_v33  ;;  %v578_v43 = vmul.f32 %v544_v35, %v544_v35 }
 0x129   : > { %v845_v41 = vpack.c.bf16 %v545_v39, %v544_v35  ;;  %v567_v42 = vadd.f32 %v545_v39, %v543_v34  ;;  %v579_v44 = vmul.f32 %v545_v39, %v545_v39  ;;  %558 = vst [vmem:[%s1090_s2] sm:$0xff] %v844_v36 }
 0x12a   : > { %v561_v45 = vrot.slane %v560_v40, 4  ;;  %v580_v47 = vadd.f32 %v578_v43, %v576_v37 }
 0x12b   : > { %559 = vst [vmem:[%s1090_s2 + $0x8] sm:$0xff] %v845_v41  ;;  %v568_v46 = vrot.slane %v567_v42, 4  ;;  %v587_v48 = vadd.f32 %v579_v44, %v577_v38 }
 0x12c   : > { %v562_v49 = vadd.f32 %v561_v45, %v560_v40  ;;  %v581_v51 = vrot.slane %v580_v47, 4 }
 0x12d   : > { %v569_v50 = vadd.f32 %v568_v46, %v567_v42  ;;  %v588_v52 = vrot.slane %v587_v48, 4 }
 0x12e   : > { %v563_v53 = vrot.slane %v562_v49, 2  ;;  %v582_v55 = vadd.f32 %v581_v51, %v580_v47 }
 0x12f   : > { %v570_v54 = vrot.slane %v569_v50, 2  ;;  %v589_v56 = vadd.f32 %v588_v52, %v587_v48 }
 0x130   : > { %v564_v57 = vadd.f32 %v563_v53, %v562_v49  ;;  %v583_v59 = vrot.slane %v582_v55, 2 }
 0x131   : > { %v571_v58 = vadd.f32 %v570_v54, %v569_v50  ;;  %v590_v60 = vrot.slane %v589_v56, 2 }
 0x132   : > { %v565_v61 = vrot.slane %v564_v57, 1  ;;  %v584_v63 = vadd.f32 %v583_v59, %v582_v55 }
 0x133   : > { %v572_v62 = vrot.slane %v571_v58, 1  ;;  %v591_v0 = vadd.f32 %v590_v60, %v589_v56 }
 0x134   : > { %v566_v1 = vadd.f32 %v565_v61, %v564_v57  ;;  %v585_v3 = vrot.slane %v584_v63, 1 }
 0x135   : > { %v573_v2 = vadd.f32 %v572_v62, %v571_v58  ;;  %v592_v4 = vrot.slane %v591_v0, 1 }
 0x136   : > { %v574_v5 = vmul.f32 0.125, %v566_v1  ;;  %v586_v7 = vadd.f32 %v585_v3, %v584_v63 }
 0x137   : > { %v575_v6 = vmul.f32 0.125, %v573_v2  ;;  %v593_v8 = vadd.f32 %v592_v4, %v591_v0 }
 0x138   : > { %596 = vst [vmem:[%s1091_s3] sm:$0xff] %v574_v5  ;;  %v594_v9 = vmul.f32 0.125, %v586_v7 }
 0x139   : > { %597 = vst [vmem:[%s1091_s3 + $0x8] sm:$0xff] %v575_v6  ;;  %v595_v10 = vmul.f32 0.125, %v593_v8 }
 0x13a   : > { %598 = vst [vmem:[%s1092_s4] sm:$0xff] %v594_v9 }
 0x13b   : > { %599 = vst [vmem:[%s1092_s4 + $0x8] sm:$0xff] %v595_v10 }
 0x13c PF: > { %s15_s19 = sadd.s32 1, %s951_s19   ;;  %s1093_s15 = smov %s939_s16 }
 0x13d   : > { %p12_p12 = scmp.ge.s32.totalorder %s15_s19, 29   ;;  %s1094_s16 = smov %s1015_s23 }
 0x13e   : > { %s1095_s17 = smov %s947_s18  ;;  %s1096_s18 = smov %s1098_s20 }
 0x13f   :  { %14 = sbr.rel (!%p12_p12) target bundleno = 3 (0x3), region = 139 }

// kernel: _lambda_.44
= control target key start
LH: loop header
LB: loop body
LE: loop exit
PB: predicated region body
PF: predicated region fallthrough
CT: control target
= control target key end

     0   :  { %v22_v0 = vlaneseq  ;;  %s116_s0 = inlined_call_operand.vmem [shape: bf16[16,256], index: 0, kind: input, shape index: {}]   ;;  %s117_s1 = inlined_call_operand.vmem [shape: f32[1,256], index: 1, kind: input, shape index: {}]   ;;  %s118_s2 = inlined_call_operand.vmem [shape: f32[1,256], index: 2, kind: input, shape index: {}]   ;;  %s119_s3 = inlined_call_operand.vmem [shape: bf16[16,256], index: 3, kind: output, shape index: {}]  }
   0x1   :  { %v14_v1 = vld [vmem:[%s116_s0] sm:$0xff]  ;;  %v15_v3 = vld [vmem:[%s116_s0 + $0x8] sm:$0xff] }
   0x2   :  { %v23_v2 = vshrl.u32 %v22_v0, 7  ;;  %v16_v4 = vunpack.c.l.bf16 %v14_v1  ;;  %v17_v5 = vunpack.c.h.bf16 %v14_v1  ;;  %v20_v6 = vld [vmem:[%s117_s1] sm:$0x3]  ;;  %v18_v10 = vunpack.c.l.bf16 %v15_v3 }
   0x3   :  { %v36_v7 = vld [vmem:[%s118_s2] sm:$0x3]  ;;  %v19_v11 = vunpack.c.h.bf16 %v15_v3 }
   0x4   :  { %v24_v8 = vsub.s32 0, %v23_v2  ;;  %v28_v9 = vsub.s32 1, %v23_v2 }
   0x6   :  { %v25_v12 = vrot.slane %v20_v6, %v24_v8  ;;  %v29_v13 = vrot.slane %v20_v6, %v28_v9  ;;  %v41_v14 = vrot.slane %v36_v7, %v24_v8  ;;  %v45_v15 = vrot.slane %v36_v7, %v28_v9 }
   0x8   :  { %v32_v16 = vmul.f32 %v25_v12, %v16_v4  ;;  %v33_v17 = vmul.f32 %v29_v13, %v17_v5  ;;  %v34_v18 = vmul.f32 %v25_v12, %v18_v10  ;;  %v35_v19 = vmul.f32 %v29_v13, %v19_v11 }
   0xa   :  { %v48_v20 = vadd.f32 %v41_v14, %v32_v16  ;;  %v49_v21 = vadd.f32 %v45_v15, %v33_v17  ;;  %v50_v22 = vadd.f32 %v41_v14, %v34_v18  ;;  %v51_v23 = vadd.f32 %v45_v15, %v35_v19 }
   0xc   :  { %v52_v24 = vmax.f32 %v48_v20, 0.0  ;;  %v53_v25 = vmax.f32 %v49_v21, 0.0  ;;  %v54_v26 = vmax.f32 %v50_v22, 0.0  ;;  %v55_v27 = vmax.f32 %v51_v23, 0.0 }
   0xe   :  { %v76_v28 = vpack.c.bf16 %v53_v25, %v52_v24  ;;  %v77_v29 = vpack.c.bf16 %v55_v27, %v54_v26 }
  0x10   :  { %68 = vst [vmem:[%s119_s3] sm:$0xff] %v76_v28  ;;  %69 = vst [vmem:[%s119_s3 + $0x8] sm:$0xff] %v77_v29 }

// kernel: _lambda_.47
= control target key start
LH: loop header
LB: loop body
LE: loop exit
PB: predicated region body
PF: predicated region fallthrough
CT: control target
= control target key end

     0   :  { %v31_v0 = vlaneseq  ;;  %s194_s0 = inlined_call_operand.vmem [shape: bf16[16,256], index: 0, kind: input, shape index: {}]   ;;  %s195_s1 = inlined_call_operand.vmem [shape: bf16[16,256], index: 1, kind: input, shape index: {}]   ;;  %s196_s2 = inlined_call_operand.vmem [shape: f32[1,256], index: 2, kind: input, shape index: {}]   ;;  %s197_s3 = inlined_call_operand.vmem [shape: f32[1,256], index: 3, kind: input, shape index: {}]   ;;  %s198_s4 = inlined_call_operand.vmem [shape: f32[1,256], index: 4, kind: input, shape index: {}]   ;;  %s199_s5 = inlined_call_operand.vmem [shape: f32[1,256], index: 5, kind: input, shape index: {}]   ;;  %s200_s6 = inlined_call_operand.vmem [shape: bf16[16,256], index: 6, kind: output, shape index: {}]  }
   0x1   :  { %v23_v1 = vld [vmem:[%s194_s0] sm:$0xff]  ;;  %v24_v8 = vld [vmem:[%s194_s0 + $0x8] sm:$0xff] }
   0x2   :  { %v29_v2 = vld [vmem:[%s196_s2] sm:$0x3]  ;;  %v32_v3 = vshrl.u32 %v31_v0, 7  ;;  %v25_v5 = vunpack.c.l.bf16 %v23_v1  ;;  %v26_v6 = vunpack.c.h.bf16 %v23_v1  ;;  %v62_v9 = vld [vmem:[%s195_s1 + $0x8] sm:$0xff]  ;;  %v27_v14 = vunpack.c.l.bf16 %v24_v8 }
   0x3   :  { %v61_v4 = vld [vmem:[%s195_s1] sm:$0xff]  ;;  %v28_v15 = vunpack.c.h.bf16 %v24_v8  ;;  %v65_v18 = vunpack.c.l.bf16 %v62_v9  ;;  %v66_v19 = vunpack.c.h.bf16 %v62_v9 }
   0x4   :  { %v45_v7 = vld [vmem:[%s197_s3] sm:$0x3]  ;;  %v33_v10 = vsub.s32 0, %v32_v3  ;;  %v37_v11 = vsub.s32 1, %v32_v3  ;;  %v63_v16 = vunpack.c.l.bf16 %v61_v4  ;;  %v64_v17 = vunpack.c.h.bf16 %v61_v4 }
   0x5   :  { %v67_v12 = vld [vmem:[%s198_s4] sm:$0x3] }
   0x6   :  { %v87_v13 = vld [vmem:[%s199_s5] sm:$0x3]  ;;  %v34_v20 = vrot.slane %v29_v2, %v33_v10  ;;  %v38_v21 = vrot.slane %v29_v2, %v37_v11  ;;  %v50_v22 = vrot.slane %v45_v7, %v33_v10  ;;  %v54_v23 = vrot.slane %v45_v7, %v37_v11 }
   0x7   :  { %v72_v24 = vrot.slane %v67_v12, %v33_v10  ;;  %v76_v25 = vrot.slane %v67_v12, %v37_v11  ;;  %v92_v26 = vrot.slane %v87_v13, %v33_v10  ;;  %v96_v27 = vrot.slane %v87_v13, %v37_v11 }
   0x8   :  { %v41_v28 = vmul.f32 %v34_v20, %v25_v5  ;;  %v42_v29 = vmul.f32 %v38_v21, %v26_v6  ;;  %v43_v30 = vmul.f32 %v34_v20, %v27_v14  ;;  %v44_v31 = vmul.f32 %v38_v21, %v28_v15 }
   0x9   :  { %v79_v32 = vmul.f32 %v72_v24, %v63_v16  ;;  %v80_v33 = vmul.f32 %v76_v25, %v64_v17  ;;  %v81_v34 = vmul.f32 %v72_v24, %v65_v18  ;;  %v82_v35 = vmul.f32 %v76_v25, %v66_v19 }
   0xa   :  { %v57_v36 = vadd.f32 %v50_v22, %v41_v28  ;;  %v58_v37 = vadd.f32 %v54_v23, %v42_v29  ;;  %v59_v38 = vadd.f32 %v50_v22, %v43_v30  ;;  %v60_v39 = vadd.f32 %v54_v23, %v44_v31 }
   0xc   :  { %v83_v40 = vadd.f32 %v79_v32, %v57_v36  ;;  %v84_v41 = vadd.f32 %v80_v33, %v58_v37  ;;  %v85_v42 = vadd.f32 %v81_v34, %v59_v38  ;;  %v86_v43 = vadd.f32 %v82_v35, %v60_v39 }
   0xe   :  { %v99_v44 = vadd.f32 %v92_v26, %v83_v40  ;;  %v100_v45 = vadd.f32 %v96_v27, %v84_v41  ;;  %v101_v46 = vadd.f32 %v92_v26, %v85_v42  ;;  %v102_v47 = vadd.f32 %v96_v27, %v86_v43 }
  0x10   :  { %v103_v48 = vmax.f32 %v99_v44, 0.0  ;;  %v104_v49 = vmax.f32 %v100_v45, 0.0  ;;  %v105_v50 = vmax.f32 %v101_v46, 0.0  ;;  %v106_v51 = vmax.f32 %v102_v47, 0.0 }
  0x12   :  { %v127_v52 = vpack.c.bf16 %v104_v49, %v103_v48  ;;  %v128_v53 = vpack.c.bf16 %v106_v51, %v105_v50 }
  0x14   :  { %119 = vst [vmem:[%s200_s6] sm:$0xff] %v127_v52  ;;  %120 = vst [vmem:[%s200_s6 + $0x8] sm:$0xff] %v128_v53 }

// kernel: _lambda_.45
= control target key start
LH: loop header
LB: loop body
LE: loop exit
PB: predicated region body
PF: predicated region fallthrough
CT: control target
= control target key end

     0   :  { %s1118_s15 = smov 0   ;;  %s1120_s16 = smov 0   ;;  %s1244_s0 = inlined_call_operand.vmem [shape: bf16[16,6912], index: 0, kind: input, shape index: {}]   ;;  %s1245_s1 = inlined_call_operand.vmem [shape: bf16[6912,256], index: 1, kind: input, shape index: {}]   ;;  %s1246_s2 = inlined_call_operand.vmem [shape: bf16[16,256], index: 2, kind: output, shape index: {0}]   ;;  %s1247_s3 = inlined_call_operand.vmem [shape: f32[8,256], index: 3, kind: output, shape index: {1}]   ;;  %s1248_s4 = inlined_call_operand.vmem [shape: f32[8,256], index: 4, kind: output, shape index: {2}]  }
   0x1   :  { %s1122_s17 = smov 0   ;;  %s1124_s18 = smov 0  }
   0x2   :  { %s1126_s19 = smov 0  }
   0x3 LB: > { %s27_s20 = sadd.s32 1, %s1086_s18  ;;  %p50_p1 = scmp.ne.s32.totalorder %s1078_s16, %s1074_s15  ;;  %s1090_s19 = sphi %s1126_s19, %s15_s19   ;;  %s1086_s18 = sphi %s1124_s18, %s1252_s18   ;;  %s1082_s17 = sphi %s1122_s17, %s1251_s17   ;;  %s1078_s16 = sphi %s1120_s16, %s1250_s16   ;;  %s1074_s15 = sphi %s1118_s15, %s1249_s15  }
   0x4   : > { %p28_p0 = scmp.ge.s32.totalorder %s27_s20, 27  ;;  %p51_p2 = scmp.eq.s32.totalorder %s1090_s19, 0 }
   0x5   : > { %s43_s22 = sadd.s32 1, %s1078_s16  ;;  %p901_p5 = scmp.ge.s32.totalorder %s1090_s19, 27 }
   0x6   : > { %s1254_s20 = smov (%p28_p0, %s27_s20), 0  ;;  %p52_p3 = por %p51_p2, %p50_p1 }
   0x7   : > { %s39_s21 = ssub.s32 %s1086_s18, %s1254_s20  ;;  %188 = sbr.rel (%p901_p5) target bundleno = 21 (0x15), region = 16 }
   0x8   : > { %p41_p4 = scmp.eq.s32.totalorder %s39_s21, 0 }
   0xa   : > { %s1153_s23 = scalar_select %p41_p4, %s1078_s16, %s43_s22  }
   0xe   : > { %191 = sbr.rel (!%p52_p3) target bundleno = 21 (0x15), region = 20  ;;  %s193_s24 = sand.u32 (%p52_p3), 1, %s1078_s16  }
   0xf   : > { %s956_s25 = sshll.u32 (%p52_p3), %s1086_s18, 3  ;;  %s902_s26 = sshll.u32 (%p52_p3), %s193_s24, 4 }
  0x10   : > { %s201_s29 = scalar_lea.vmem (%p52_p3), %s1244_s0, %s956_s25  ;;  %s195_s30 = scalar_lea.vmem (%p52_p3), [#allocation3], %s902_s26 }
  0x11   : > { %v231_v0 = vld [vmem:[%s201_s29] sm:$0xff] (%p52_p3)  ;;  %v233_v1 = vld [vmem:[%s201_s29 + $0xd8] sm:$0xff] (%p52_p3) }
  0x12   : > { %232 = vst [vmem:[%s195_s30] sm:$0xff] (%p52_p3), %v231_v0  ;;  %234 = vst [vmem:[%s195_s30 + $0x8] sm:$0xff] (%p52_p3), %v233_v1 }
  0x15 PF: > { %p905_p6 = scmp.ge.s32.totalorder %s1090_s19, 1  ;;  %p254_p7 = scmp.lt.s32.totalorder %s1090_s19, 28 }
  0x17   : > { %p255_p8 = pnand %p905_p6, %p254_p7 }
  0x18   : > { %s261_s5 = sand.u32 (!%p255_p8), 1, %s1074_s15   ;;  %s907_s6 = sshll.u32 (!%p255_p8), %s1082_s17, 5 }
  0x19   : > { %258 = sbr.rel (%p255_p8) target bundleno = 348 (0x15c), region = 62  ;;  %s1165_s7 = sshll.u32 (!%p255_p8), %s261_s5, 4 }
  0x1a   : > { %p323_p9 = scmp.lt.s32.totalorder (!%p255_p8), %s907_s6, 863  ;;  %s263_s12 = scalar_lea.vmem (!%p255_p8), [#allocation3], %s1165_s7 }
  0x1b   : > { %p910_p10 = scmp.ne.s32.totalorder (!%p255_p8), %s1082_s17, 0 }
  0x20   : > { %s1256_s6 = smov (!%p323_p9, %s907_s6), 863  ;;  %368 = sbr.rel (%p910_p10) target bundleno = 39 (0x27), region = 70 }
  0x21   : > { %s957_s8 = sshll.u32 %s1256_s6, 3  ;;  %v1092_v2 = vmov (!%p910_p10), 0.0  }
  0x22   : > { %s1170_s11 = scalar_lea.vmem %s1245_s1, %s957_s8  ;;  %369 = vst [vmem:[#allocation2] sm:$0xff] (!%p910_p10), %v1092_v2  ;;  %370 = vst [vmem:[#allocation2 + $0x8] sm:$0xff] (!%p910_p10), %v1092_v2 }
  0x23   : > { %371 = vst [vmem:[#allocation2 + $0x10] sm:$0xff] (!%p910_p10), %v1092_v2  ;;  %372 = vst [vmem:[#allocation2 + $0x18] sm:$0xff] (!%p910_p10), %v1092_v2 }
  0x27 PF: > { %v1001_v3 = vld [vmem:[%s1170_s11 + $0x4] ss:$8 sps:$4 sm:$0xff]   ;;  %v1003_v4 = vld [vmem:[%s1170_s11] ss:$8 sps:$4 sm:$0xff]   ;;  %v1004_v5 = vld [vmem:[%s1170_s11 + $0x14] ss:$8 sps:$4 sm:$0xff]  }
  0x28   : > { %581 = vmatprep.subr.bf16.mxu0 %v1001_v3  ;;  %v1006_v6 = vld [vmem:[%s1170_s11 + $0x10] ss:$8 sps:$4 sm:$0xff]   ;;  %v1007_v7 = vld [vmem:[%s1170_s11 + $0x24] ss:$8 sps:$4 sm:$0xff]   ;;  %v1009_v8 = vld [vmem:[%s1170_s11 + $0x20] ss:$8 sps:$4 sm:$0xff]  }
  0x29   : > { %582 = vmatpush1.bf16.msra.mxu0 %v1003_v4  ;;  %v1010_v9 = vld [vmem:[%s1170_s11 + $0x34] ss:$8 sps:$4 sm:$0xff]   ;;  %v1012_v10 = vld [vmem:[%s1170_s11 + $0x30] ss:$8 sps:$4 sm:$0xff]   ;;  %v1013_v11 = vld [vmem:[%s1170_s11 + $0x44] ss:$8 sps:$4 sm:$0xff]  }
  0x2a   : > { %583 = vmatprep.subr.bf16.mxu0 %v1004_v5  ;;  %v1015_v12 = vld [vmem:[%s1170_s11 + $0x40] ss:$8 sps:$4 sm:$0xff]   ;;  %v1016_v13 = vld [vmem:[%s1170_s11 + $0x54] ss:$8 sps:$4 sm:$0xff]   ;;  %v1018_v14 = vld [vmem:[%s1170_s11 + $0x50] ss:$8 sps:$4 sm:$0xff]  }
  0x2b   : > { %v1019_v15 = vld [vmem:[%s1170_s11 + $0x64] ss:$8 sps:$4 sm:$0xff]   ;;  %v1021_v17 = vld [vmem:[%s1170_s11 + $0x60] ss:$8 sps:$4 sm:$0xff]   ;;  %v1022_v18 = vld [vmem:[%s1170_s11 + $0x74] ss:$8 sps:$4 sm:$0xff]  }
  0x2c   : > { %v1051_v16 = vld [vmem:[%s263_s12 + $0x4] ss:$8 sps:$4 sm:$0xff]   ;;  %v1024_v19 = vld [vmem:[%s1170_s11 + $0x70] ss:$8 sps:$4 sm:$0xff]   ;;  %v1027_v21 = vld [vmem:[%s1170_s11 + $0x80] ss:$8 sps:$4 sm:$0xff]  }
  0x2d   : > { %584 = vmatpush1.bf16.msra.mxu0 %v1006_v6  ;;  %613 = vmatprep.mubr.bf16.mxu0 %v1051_v16  ;;  %v1025_v20 = vld [vmem:[%s1170_s11 + $0x84] ss:$8 sps:$4 sm:$0xff]   ;;  %v1028_v22 = vld [vmem:[%s1170_s11 + $0x94] ss:$8 sps:$4 sm:$0xff]   ;;  %v1030_v23 = vld [vmem:[%s1170_s11 + $0x90] ss:$8 sps:$4 sm:$0xff]  }
  0x2e   : > { %585 = vmatprep.subr.bf16.mxu0 %v1007_v7  ;;  %v1031_v24 = vld [vmem:[%s1170_s11 + $0xa4] ss:$8 sps:$4 sm:$0xff]   ;;  %v1033_v25 = vld [vmem:[%s1170_s11 + $0xa0] ss:$8 sps:$4 sm:$0xff]   ;;  %v1034_v26 = vld [vmem:[%s1170_s11 + $0xb4] ss:$8 sps:$4 sm:$0xff]  }
  0x2f   : > { %v1036_v27 = vld [vmem:[%s1170_s11 + $0xb0] ss:$8 sps:$4 sm:$0xff]   ;;  %v1037_v28 = vld [vmem:[%s1170_s11 + $0xc4] ss:$8 sps:$4 sm:$0xff]   ;;  %v1039_v29 = vld [vmem:[%s1170_s11 + $0xc0] ss:$8 sps:$4 sm:$0xff]  }
  0x30   : > { %v1040_v30 = vld [vmem:[%s1170_s11 + $0xd4] ss:$8 sps:$4 sm:$0xff]   ;;  %v1042_v31 = vld [vmem:[%s1170_s11 + $0xd0] ss:$8 sps:$4 sm:$0xff]   ;;  %v1043_v32 = vld [vmem:[%s1170_s11 + $0xe4] ss:$8 sps:$4 sm:$0xff]  }
  0x31   : > { %586 = vmatpush1.bf16.msra.mxu0 %v1009_v8  ;;  %v1045_v33 = vld [vmem:[%s1170_s11 + $0xe0] ss:$8 sps:$4 sm:$0xff]   ;;  %v1046_v34 = vld [vmem:[%s1170_s11 + $0xf4] ss:$8 sps:$4 sm:$0xff]   ;;  %v1048_v35 = vld [vmem:[%s1170_s11 + $0xf0] ss:$8 sps:$4 sm:$0xff]  }
  0x32   : > { %587 = vmatprep.subr.bf16.mxu0 %v1010_v9  ;;  %v1049_v36 = vld [vmem:[%s263_s12] ss:$8 sps:$4 sm:$0xff]   ;;  %p945_p11 = scmp.ne.s32.totalorder %s1082_s17, 26 }
  0x33   : > { %v373_v37 = vld [vmem:[#allocation2] sm:$0xff]  ;;  %v374_v38 = vld [vmem:[#allocation2 + $0x8] sm:$0xff]  ;;  %v375_v40 = vld [vmem:[#allocation2 + $0x10] sm:$0xff] }
  0x34   : > { %v376_v43 = vld [vmem:[#allocation2 + $0x18] sm:$0xff] }
  0x35   : > { %588 = vmatpush1.bf16.msra.mxu0 %v1012_v10 }
  0x36   : > { %589 = vmatprep.subr.bf16.mxu0 %v1013_v11 }
  0x39   : > { %590 = vmatpush1.bf16.msra.mxu0 %v1015_v12 }
  0x3a   : > { %591 = vmatprep.subr.bf16.mxu0 %v1016_v13 }
  0x3d   : > { %592 = vmatpush1.bf16.msra.mxu0 %v1018_v14 }
  0x3e   : > { %593 = vmatprep.subr.bf16.mxu0 %v1019_v15 }
  0x41   : > { %594 = vmatpush1.bf16.msra.mxu0 %v1021_v17 }
  0x42   : > { %595 = vmatprep.subr.bf16.mxu0 %v1022_v18 }
  0x45   : > { %596 = vmatpush1.bf16.msra.mxu0 %v1024_v19 }
  0x46   : > { %597 = vmatprep.subr.bf16.mxu0 %v1025_v20 }
  0x49   : > { %598 = vmatpush1.bf16.msra.mxu0 %v1027_v21 }
  0x4a   : > { %599 = vmatprep.subr.bf16.mxu0 %v1028_v22 }
  0x4d   : > { %600 = vmatpush1.bf16.msra.mxu0 %v1030_v23 }
  0x4e   : > { %601 = vmatprep.subr.bf16.mxu0 %v1031_v24 }
  0x51   : > { %602 = vmatpush1.bf16.msra.mxu0 %v1033_v25 }
  0x52   : > { %603 = vmatprep.subr.bf16.mxu0 %v1034_v26 }
  0x55   : > { %604 = vmatpush1.bf16.msra.mxu0 %v1036_v27 }
  0x56   : > { %605 = vmatprep.subr.bf16.mxu0 %v1037_v28 }
  0x59   : > { %606 = vmatpush1.bf16.msra.mxu0 %v1039_v29 }
  0x5a   : > { %607 = vmatprep.subr.bf16.mxu0 %v1040_v30 }
  0x5d   : > { %608 = vmatpush1.bf16.msra.mxu0 %v1042_v31 }
  0x5e   : > { %609 = vmatprep.subr.bf16.mxu0 %v1043_v32 }
  0x61   : > { %610 = vmatpush1.bf16.msra.mxu0 %v1045_v33 }
  0x62   : > { %611 = vmatprep.subr.bf16.mxu0 %v1046_v34 }
  0x65   : > { %612 = vmatpush1.bf16.msra.mxu0 %v1048_v35 }
  0x68   : > { %614 = vmatmul.mubr.bf16.vlgmr.msra.gmra.mrb[0].mxu0 %v1049_v36 }
 0x13b   : > { %v615_v39 = vpop.f32.mrb[0].mxu0  ;;  %635 = sbr.rel (%p945_p11) target bundleno = 348 (0x15c), region = 74 }
 0x13c   : > { %v624_v41 = vadd.f32 %v615_v39, %v373_v37  ;;  %v617_v42 = vpop.f32.mrb[1].mxu0 }
 0x13d   : > { %v625_v44 = vadd.f32 %v617_v42, %v374_v38  ;;  %v619_v45 = vpop.f32.mrb[2].mxu0 }
 0x13e   : > { %628 = vst [vmem:[#allocation2] sm:$0xff] %v624_v41  ;;  %v626_v46 = vadd.f32 %v619_v45, %v375_v40  ;;  %v621_v47 = vpop.f32.mrb[3].mxu0 }
 0x13f   : > { %629 = vst [vmem:[#allocation2 + $0x8] sm:$0xff] %v625_v44  ;;  %v627_v48 = vadd.f32 %v621_v47, %v376_v43 }
 0x140   : > { %630 = vst [vmem:[#allocation2 + $0x10] sm:$0xff] %v626_v46 }
 0x141   : > { %631 = vst [vmem:[#allocation2 + $0x18] sm:$0xff] %v627_v48 }
 0x145   : > { %v636_v49 = vld [vmem:[#allocation2] sm:$0xff] }
 0x146   : > { %v637_v50 = vld [vmem:[#allocation2 + $0x8] sm:$0xff]  ;;  %v670_v53 = vmul.f32 %v636_v49, %v636_v49 }
 0x147   : > { %v638_v51 = vld [vmem:[#allocation2 + $0x10] sm:$0xff]  ;;  %v958_v52 = vpack.c.bf16 %v637_v50, %v636_v49  ;;  %v671_v54 = vmul.f32 %v637_v50, %v637_v50 }
 0x148   : > { %v639_v55 = vld [vmem:[#allocation2 + $0x18] sm:$0xff]  ;;  %v654_v56 = vadd.f32 %v638_v51, %v636_v49  ;;  %v672_v59 = vmul.f32 %v638_v51, %v638_v51 }
 0x149   : > { %v959_v57 = vpack.c.bf16 %v639_v55, %v638_v51  ;;  %v661_v58 = vadd.f32 %v639_v55, %v637_v50  ;;  %v673_v60 = vmul.f32 %v639_v55, %v639_v55  ;;  %652 = vst [vmem:[%s1246_s2] sm:$0xff] %v958_v52 }
 0x14a   : > { %v655_v61 = vrot.slane %v654_v56, 4  ;;  %v674_v63 = vadd.f32 %v672_v59, %v670_v53 }
 0x14b   : > { %653 = vst [vmem:[%s1246_s2 + $0x8] sm:$0xff] %v959_v57  ;;  %v662_v62 = vrot.slane %v661_v58, 4  ;;  %v681_v0 = vadd.f32 %v673_v60, %v671_v54 }
 0x14c   : > { %v656_v1 = vadd.f32 %v655_v61, %v654_v56  ;;  %v675_v3 = vrot.slane %v674_v63, 4 }
 0x14d   : > { %v663_v2 = vadd.f32 %v662_v62, %v661_v58  ;;  %v682_v4 = vrot.slane %v681_v0, 4 }
 0x14e   : > { %v657_v5 = vrot.slane %v656_v1, 2  ;;  %v676_v7 = vadd.f32 %v675_v3, %v674_v63 }
 0x14f   : > { %v664_v6 = vrot.slane %v663_v2, 2  ;;  %v683_v8 = vadd.f32 %v682_v4, %v681_v0 }
 0x150   : > { %v658_v9 = vadd.f32 %v657_v5, %v656_v1  ;;  %v677_v11 = vrot.slane %v676_v7, 2 }
 0x151   : > { %v665_v10 = vadd.f32 %v664_v6, %v663_v2  ;;  %v684_v12 = vrot.slane %v683_v8, 2 }
 0x152   : > { %v659_v13 = vrot.slane %v658_v9, 1  ;;  %v678_v15 = vadd.f32 %v677_v11, %v676_v7 }
 0x153   : > { %v666_v14 = vrot.slane %v665_v10, 1  ;;  %v685_v16 = vadd.f32 %v684_v12, %v683_v8 }
 0x154   : > { %v660_v17 = vadd.f32 %v659_v13, %v658_v9  ;;  %v679_v19 = vrot.slane %v678_v15, 1 }
 0x155   : > { %v667_v18 = vadd.f32 %v666_v14, %v665_v10  ;;  %v686_v20 = vrot.slane %v685_v16, 1 }
 0x156   : > { %v668_v21 = vmul.f32 0.125, %v660_v17  ;;  %v680_v23 = vadd.f32 %v679_v19, %v678_v15 }
 0x157   : > { %v669_v22 = vmul.f32 0.125, %v667_v18  ;;  %v687_v24 = vadd.f32 %v686_v20, %v685_v16 }
 0x158   : > { %690 = vst [vmem:[%s1247_s3] sm:$0xff] %v668_v21  ;;  %v688_v25 = vmul.f32 0.125, %v680_v23 }
 0x159   : > { %691 = vst [vmem:[%s1247_s3 + $0x8] sm:$0xff] %v669_v22  ;;  %v689_v26 = vmul.f32 0.125, %v687_v24 }
 0x15a   : > { %692 = vst [vmem:[%s1248_s4] sm:$0xff] %v688_v25 }
 0x15b   : > { %693 = vst [vmem:[%s1248_s4 + $0x8] sm:$0xff] %v689_v26 }
 0x15c PF: > { %s15_s19 = sadd.s32 1, %s1090_s19   ;;  %s1249_s15 = smov %s1078_s16 }
 0x15d   : > { %p12_p12 = scmp.ge.s32.totalorder %s15_s19, 29   ;;  %s1250_s16 = smov %s1153_s23 }
 0x15e   : > { %s1251_s17 = smov %s1086_s18  ;;  %s1252_s18 = smov %s1254_s20 }
 0x15f   :  { %14 = sbr.rel (!%p12_p12) target bundleno = 3 (0x3), region = 136 }

// kernel: _lambda_.49
= control target key start
LH: loop header
LB: loop body
LE: loop exit
PB: predicated region body
PF: predicated region fallthrough
CT: control target
= control target key end

     0   :  { %v28_v0 = vlaneseq  ;;  %s184_s0 = inlined_call_operand.vmem [shape: bf16[16,512], index: 0, kind: input, shape index: {}]   ;;  %s185_s1 = inlined_call_operand.vmem [shape: f32[1,512], index: 1, kind: input, shape index: {}]   ;;  %s186_s2 = inlined_call_operand.vmem [shape: f32[1,512], index: 2, kind: input, shape index: {}]   ;;  %s187_s3 = inlined_call_operand.vmem [shape: bf16[16,512], index: 3, kind: output, shape index: {}]  }
   0x1   :  { %v14_v1 = vld [vmem:[%s184_s0] sm:$0xff]  ;;  %v15_v3 = vld [vmem:[%s184_s0 + $0x8] sm:$0xff]  ;;  %v16_v4 = vld [vmem:[%s184_s0 + $0x10] sm:$0xff] }
   0x2   :  { %v29_v2 = vshrl.u32 %v28_v0, 7  ;;  %v17_v5 = vld [vmem:[%s184_s0 + $0x18] sm:$0xff]  ;;  %v18_v6 = vunpack.c.l.bf16 %v14_v1  ;;  %v19_v7 = vunpack.c.h.bf16 %v14_v1  ;;  %v26_v8 = vld [vmem:[%s185_s1] sm:$0xf]  ;;  %v22_v10 = vunpack.c.l.bf16 %v16_v4 }
   0x3   :  { %v56_v9 = vld [vmem:[%s186_s2] sm:$0xf]  ;;  %v23_v11 = vunpack.c.h.bf16 %v16_v4  ;;  %v20_v16 = vunpack.c.l.bf16 %v15_v3  ;;  %v21_v17 = vunpack.c.h.bf16 %v15_v3  ;;  %v24_v18 = vunpack.c.l.bf16 %v17_v5 }
   0x4   :  { %v30_v12 = vsub.s32 0, %v29_v2  ;;  %v34_v13 = vsub.s32 1, %v29_v2  ;;  %v38_v14 = vsub.s32 2, %v29_v2  ;;  %v42_v15 = vsub.s32 3, %v29_v2 }
   0x5   :  { %v25_v19 = vunpack.c.h.bf16 %v17_v5 }
   0x6   :  { %v31_v20 = vrot.slane %v26_v8, %v30_v12  ;;  %v35_v21 = vrot.slane %v26_v8, %v34_v13  ;;  %v61_v22 = vrot.slane %v56_v9, %v30_v12  ;;  %v65_v23 = vrot.slane %v56_v9, %v34_v13 }
   0x7   :  { %v39_v24 = vrot.slane %v26_v8, %v38_v14  ;;  %v43_v25 = vrot.slane %v26_v8, %v42_v15  ;;  %v69_v26 = vrot.slane %v56_v9, %v38_v14  ;;  %v73_v27 = vrot.slane %v56_v9, %v42_v15 }
   0x8   :  { %v48_v28 = vmul.f32 %v31_v20, %v18_v6  ;;  %v49_v29 = vmul.f32 %v35_v21, %v19_v7  ;;  %v52_v30 = vmul.f32 %v31_v20, %v22_v10  ;;  %v53_v31 = vmul.f32 %v35_v21, %v23_v11 }
   0x9   :  { %v50_v32 = vmul.f32 %v39_v24, %v20_v16  ;;  %v51_v33 = vmul.f32 %v43_v25, %v21_v17  ;;  %v54_v34 = vmul.f32 %v39_v24, %v24_v18  ;;  %v55_v35 = vmul.f32 %v43_v25, %v25_v19 }
   0xa   :  { %v78_v36 = vadd.f32 %v61_v22, %v48_v28  ;;  %v79_v37 = vadd.f32 %v65_v23, %v49_v29  ;;  %v82_v38 = vadd.f32 %v61_v22, %v52_v30  ;;  %v83_v39 = vadd.f32 %v65_v23, %v53_v31 }
   0xb   :  { %v80_v40 = vadd.f32 %v69_v26, %v50_v32  ;;  %v81_v41 = vadd.f32 %v73_v27, %v51_v33  ;;  %v84_v42 = vadd.f32 %v69_v26, %v54_v34  ;;  %v85_v43 = vadd.f32 %v73_v27, %v55_v35 }
   0xc   :  { %v86_v44 = vmax.f32 %v78_v36, 0.0  ;;  %v87_v45 = vmax.f32 %v79_v37, 0.0  ;;  %v90_v46 = vmax.f32 %v82_v38, 0.0  ;;  %v91_v47 = vmax.f32 %v83_v39, 0.0 }
   0xd   :  { %v88_v48 = vmax.f32 %v80_v40, 0.0  ;;  %v89_v49 = vmax.f32 %v81_v41, 0.0  ;;  %v92_v50 = vmax.f32 %v84_v42, 0.0  ;;  %v93_v51 = vmax.f32 %v85_v43, 0.0 }
   0xe   :  { %v130_v52 = vpack.c.bf16 %v87_v45, %v86_v44  ;;  %v132_v53 = vpack.c.bf16 %v91_v47, %v90_v46 }
   0xf   :  { %v131_v54 = vpack.c.bf16 %v89_v49, %v88_v48  ;;  %v133_v55 = vpack.c.bf16 %v93_v51, %v92_v50 }
  0x10   :  { %118 = vst [vmem:[%s187_s3] sm:$0xff] %v130_v52  ;;  %120 = vst [vmem:[%s187_s3 + $0x10] sm:$0xff] %v132_v53 }
  0x11   :  { %119 = vst [vmem:[%s187_s3 + $0x8] sm:$0xff] %v131_v54  ;;  %121 = vst [vmem:[%s187_s3 + $0x18] sm:$0xff] %v133_v55 }

// kernel: _lambda_.51
= control target key start
LH: loop header
LB: loop body
LE: loop exit
PB: predicated region body
PF: predicated region fallthrough
CT: control target
= control target key end

     0   :  { %s1257_s15 = smov 0   ;;  %s1259_s16 = smov 0   ;;  %s1454_s0 = inlined_call_operand.vmem [shape: bf16[16,256], index: 0, kind: input, shape index: {}]   ;;  %s1455_s1 = inlined_call_operand.vmem [shape: bf16[256,512], index: 1, kind: input, shape index: {}]   ;;  %s1456_s2 = inlined_call_operand.vmem [shape: bf16[16,512], index: 2, kind: output, shape index: {0}]   ;;  %s1457_s3 = inlined_call_operand.vmem [shape: f32[8,512], index: 3, kind: output, shape index: {1}]   ;;  %s1458_s4 = inlined_call_operand.vmem [shape: f32[8,512], index: 4, kind: output, shape index: {2}]  }
   0x1   :  { %s1261_s17 = smov 0   ;;  %s1263_s18 = smov 0  }
   0x2   :  { %s1265_s19 = smov 0  }
   0x3 LB: > { %s30_s20 = sadd.s32 1, %s1226_s18  ;;  %s1041_s21 = sadd.s32 4294967295, %s1230_s19   ;;  %s1230_s19 = sphi %s1265_s19, %s15_s19   ;;  %s1226_s18 = sphi %s1263_s18, %s1463_s18   ;;  %s1222_s17 = sphi %s1261_s17, %s1462_s17   ;;  %s1218_s16 = sphi %s1259_s16, %s1461_s16   ;;  %s1214_s15 = sphi %s1257_s15, %s1460_s15  }
   0x4   : > { %p32_p0 = scmp.ge.s32.totalorder %s30_s20, 2  ;;  %p78_p1 = scmp.ne.s32.totalorder %s1218_s16, %s1214_s15 }
   0x5   : > { %p79_p2 = scmp.eq.s32.totalorder %s1230_s19, 0  ;;  %p110_p4 = scmp.eq.s32.totalorder %s1041_s21, 1 }
   0x6   : > { %s1465_s20 = smov (%p32_p0, %s30_s20), 0  ;;  %s71_s23 = sadd.s32 1, %s1218_s16 }
   0x7   : > { %p80_p3 = por %p79_p2, %p78_p1  ;;  %s67_s22 = ssub.s32 %s1226_s18, %s1465_s20 }
   0x8   : > { %p69_p5 = scmp.eq.s32.totalorder %s67_s22, 0  ;;  %p1292_p6 = por %p110_p4, %p78_p1 }
   0x9   : > { %p1045_p7 = scmp.ge.s32.totalorder %s1230_s19, 2 }
   0xa   : > { %s1297_s25 = scalar_select %p69_p5, %s1218_s16, %s71_s23  }
   0xb   : > { %203 = sbr.rel (%p1045_p7) target bundleno = 38 (0x26), region = 20 }
  0x12   : > { %206 = sbr.rel (!%p80_p3) target bundleno = 38 (0x26), region = 24  ;;  %s208_s26 = sand.u32 (%p80_p3), 1, %s1218_s16  }
  0x13   : > { %s1097_s27 = sshll.u32 (%p80_p3), %s1226_s18, 3  ;;  %s1046_s28 = sshll.u32 (%p80_p3), %s208_s26, 8 }
  0x14   : > { %s1305_s5 = scalar_lea.vmem (%p80_p3), %s1455_s1, %s1097_s27  ;;  %s1310_s6 = scalar_lea.vmem (%p80_p3), [#allocation3], %s1046_s28 }
  0x15   : > { %v306_v0 = vld [vmem:[%s1305_s5] sm:$0xff] (%p80_p3)  ;;  %v308_v1 = vld [vmem:[%s1305_s5 + $0x10] sm:$0xff] (%p80_p3) }
  0x16   : > { %v310_v2 = vld [vmem:[%s1305_s5 + $0x20] sm:$0xff] (%p80_p3)  ;;  %307 = vst [vmem:[%s1310_s6] sm:$0xff] (%p80_p3), %v306_v0  ;;  %309 = vst [vmem:[%s1310_s6 + $0x8] sm:$0xff] (%p80_p3), %v308_v1  ;;  %v312_v3 = vld [vmem:[%s1305_s5 + $0x30] sm:$0xff] (%p80_p3) }
  0x17   : > { %311 = vst [vmem:[%s1310_s6 + $0x10] sm:$0xff] (%p80_p3), %v310_v2  ;;  %v314_v4 = vld [vmem:[%s1305_s5 + $0x40] sm:$0xff] (%p80_p3)  ;;  %v316_v5 = vld [vmem:[%s1305_s5 + $0x50] sm:$0xff] (%p80_p3)  ;;  %313 = vst [vmem:[%s1310_s6 + $0x18] sm:$0xff] (%p80_p3), %v312_v3 }
  0x18   : > { %315 = vst [vmem:[%s1310_s6 + $0x20] sm:$0xff] (%p80_p3), %v314_v4  ;;  %317 = vst [vmem:[%s1310_s6 + $0x28] sm:$0xff] (%p80_p3), %v316_v5  ;;  %v318_v6 = vld [vmem:[%s1305_s5 + $0x60] sm:$0xff] (%p80_p3)  ;;  %v320_v7 = vld [vmem:[%s1305_s5 + $0x70] sm:$0xff] (%p80_p3) }
  0x19   : > { %v322_v8 = vld [vmem:[%s1305_s5 + $0x80] sm:$0xff]  ;;  %319 = vst [vmem:[%s1310_s6 + $0x30] sm:$0xff] %v318_v6  ;;  %321 = vst [vmem:[%s1310_s6 + $0x38] sm:$0xff] %v320_v7  ;;  %v324_v9 = vld [vmem:[%s1305_s5 + $0x90] sm:$0xff] }
  0x1a   : > { %323 = vst [vmem:[%s1310_s6 + $0x40] sm:$0xff] %v322_v8  ;;  %v326_v10 = vld [vmem:[%s1305_s5 + $0xa0] sm:$0xff]  ;;  %v328_v11 = vld [vmem:[%s1305_s5 + $0xb0] sm:$0xff]  ;;  %325 = vst [vmem:[%s1310_s6 + $0x48] sm:$0xff] %v324_v9 }
  0x1b   : > { %327 = vst [vmem:[%s1310_s6 + $0x50] sm:$0xff] %v326_v10  ;;  %329 = vst [vmem:[%s1310_s6 + $0x58] sm:$0xff] %v328_v11  ;;  %v330_v12 = vld [vmem:[%s1305_s5 + $0xc0] sm:$0xff]  ;;  %v332_v13 = vld [vmem:[%s1305_s5 + $0xd0] sm:$0xff] }
  0x1c   : > { %v334_v14 = vld [vmem:[%s1305_s5 + $0xe0] sm:$0xff]  ;;  %331 = vst [vmem:[%s1310_s6 + $0x60] sm:$0xff] %v330_v12  ;;  %333 = vst [vmem:[%s1310_s6 + $0x68] sm:$0xff] %v332_v13  ;;  %v336_v15 = vld [vmem:[%s1305_s5 + $0xf0] sm:$0xff] }
  0x1d   : > { %335 = vst [vmem:[%s1310_s6 + $0x70] sm:$0xff] %v334_v14  ;;  %v338_v16 = vld [vmem:[%s1305_s5 + $0x100] sm:$0xff]  ;;  %v340_v17 = vld [vmem:[%s1305_s5 + $0x110] sm:$0xff]  ;;  %337 = vst [vmem:[%s1310_s6 + $0x78] sm:$0xff] %v336_v15 }
  0x1e   : > { %339 = vst [vmem:[%s1310_s6 + $0x80] sm:$0xff] %v338_v16  ;;  %341 = vst [vmem:[%s1310_s6 + $0x88] sm:$0xff] %v340_v17  ;;  %v342_v18 = vld [vmem:[%s1305_s5 + $0x120] sm:$0xff]  ;;  %v344_v19 = vld [vmem:[%s1305_s5 + $0x130] sm:$0xff] }
  0x1f   : > { %v346_v20 = vld [vmem:[%s1305_s5 + $0x140] sm:$0xff]  ;;  %343 = vst [vmem:[%s1310_s6 + $0x90] sm:$0xff] %v342_v18  ;;  %345 = vst [vmem:[%s1310_s6 + $0x98] sm:$0xff] %v344_v19  ;;  %v348_v21 = vld [vmem:[%s1305_s5 + $0x150] sm:$0xff] }
  0x20   : > { %347 = vst [vmem:[%s1310_s6 + $0xa0] sm:$0xff] %v346_v20  ;;  %v350_v22 = vld [vmem:[%s1305_s5 + $0x160] sm:$0xff]  ;;  %v352_v23 = vld [vmem:[%s1305_s5 + $0x170] sm:$0xff]  ;;  %349 = vst [vmem:[%s1310_s6 + $0xa8] sm:$0xff] %v348_v21 }
  0x21   : > { %351 = vst [vmem:[%s1310_s6 + $0xb0] sm:$0xff] %v350_v22  ;;  %353 = vst [vmem:[%s1310_s6 + $0xb8] sm:$0xff] %v352_v23  ;;  %v354_v24 = vld [vmem:[%s1305_s5 + $0x180] sm:$0xff]  ;;  %v356_v25 = vld [vmem:[%s1305_s5 + $0x190] sm:$0xff] }
  0x22   : > { %v358_v26 = vld [vmem:[%s1305_s5 + $0x1a0] sm:$0xff]  ;;  %355 = vst [vmem:[%s1310_s6 + $0xc0] sm:$0xff] %v354_v24  ;;  %357 = vst [vmem:[%s1310_s6 + $0xc8] sm:$0xff] %v356_v25  ;;  %v360_v27 = vld [vmem:[%s1305_s5 + $0x1b0] sm:$0xff] }
  0x23   : > { %359 = vst [vmem:[%s1310_s6 + $0xd0] sm:$0xff] %v358_v26  ;;  %v362_v28 = vld [vmem:[%s1305_s5 + $0x1c0] sm:$0xff]  ;;  %v364_v29 = vld [vmem:[%s1305_s5 + $0x1d0] sm:$0xff]  ;;  %361 = vst [vmem:[%s1310_s6 + $0xd8] sm:$0xff] %v360_v27 }
  0x24   : > { %363 = vst [vmem:[%s1310_s6 + $0xe0] sm:$0xff] %v362_v28  ;;  %365 = vst [vmem:[%s1310_s6 + $0xe8] sm:$0xff] %v364_v29  ;;  %v366_v30 = vld [vmem:[%s1305_s5 + $0x1e0] sm:$0xff]  ;;  %v368_v31 = vld [vmem:[%s1305_s5 + $0x1f0] sm:$0xff] }
  0x25   : > { %367 = vst [vmem:[%s1310_s6 + $0xf0] sm:$0xff] %v366_v30  ;;  %369 = vst [vmem:[%s1310_s6 + $0xf8] sm:$0xff] %v368_v31 }
  0x26 PF: > { %p1049_p8 = scmp.ge.s32.totalorder %s1230_s19, 1  ;;  %p374_p9 = scmp.lt.s32.totalorder %s1230_s19, 3 }
  0x28   : > { %p375_p10 = pnand %p1049_p8, %p374_p9 }
  0x29   : > { %s381_s7 = sand.u32 (!%p375_p10), 1, %s1214_s15   ;;  %v1191_v32 = vld [vmem:[%s1454_s0 + $0x4] ss:$8 sps:$4 sm:$0xff] (!%p375_p10)   ;;  %v1189_v1 = vld [vmem:[%s1454_s0] ss:$8 sps:$4 sm:$0xff] (!%p375_p10)   ;;  %s1052_s21 = sshll.u32 (!%p375_p10), %s1222_s17, 1 }
  0x2a   : > { %378 = sbr.rel (%p375_p10) target bundleno = 343 (0x157), region = 62  ;;  %s1050_s8 = sshll.u32 (!%p375_p10), %s381_s7, 8  ;;  %717 = vmatprep.mubr.bf16.mxu0 (!%p375_p10), %v1191_v32 }
  0x2b   : > { %s1381_s11 = scalar_lea.vmem (!%p375_p10), [#allocation3], %s1050_s8  ;;  %s1051_s14 = sshll.u32 (!%p375_p10), %s381_s7, 4 }
  0x2c   : > { %v1141_v33 = vld [vmem:[%s1381_s11 + $0x4] ss:$8 sps:$4 sm:$0xff] (!%p375_p10)   ;;  %v1143_v34 = vld [vmem:[%s1381_s11] ss:$8 sps:$4 sm:$0xff] (!%p375_p10)   ;;  %v1144_v35 = vld [vmem:[%s1381_s11 + $0x14] ss:$8 sps:$4 sm:$0xff] (!%p375_p10)  }
  0x2d   : > { %685 = vmatprep.subr.bf16.mxu0 (!%p375_p10), %v1141_v33  ;;  %v1146_v36 = vld [vmem:[%s1381_s11 + $0x10] ss:$8 sps:$4 sm:$0xff] (!%p375_p10)   ;;  %v1147_v37 = vld [vmem:[%s1381_s11 + $0x24] ss:$8 sps:$4 sm:$0xff] (!%p375_p10)   ;;  %v1149_v38 = vld [vmem:[%s1381_s11 + $0x20] ss:$8 sps:$4 sm:$0xff] (!%p375_p10)  }
  0x2e   : > { %686 = vmatpush1.bf16.msra.mxu0 (!%p375_p10), %v1143_v34  ;;  %v1150_v39 = vld [vmem:[%s1381_s11 + $0x34] ss:$8 sps:$4 sm:$0xff] (!%p375_p10)   ;;  %v1152_v40 = vld [vmem:[%s1381_s11 + $0x30] ss:$8 sps:$4 sm:$0xff] (!%p375_p10)   ;;  %v1153_v41 = vld [vmem:[%s1381_s11 + $0x44] ss:$8 sps:$4 sm:$0xff] (!%p375_p10)  }
  0x2f   : > { %687 = vmatprep.subr.bf16.mxu0 (!%p375_p10), %v1144_v35  ;;  %v1155_v42 = vld [vmem:[%s1381_s11 + $0x40] ss:$8 sps:$4 sm:$0xff] (!%p375_p10)   ;;  %v1156_v43 = vld [vmem:[%s1381_s11 + $0x54] ss:$8 sps:$4 sm:$0xff] (!%p375_p10)   ;;  %v1158_v44 = vld [vmem:[%s1381_s11 + $0x50] ss:$8 sps:$4 sm:$0xff] (!%p375_p10)  }
  0x30   : > { %v1159_v45 = vld [vmem:[%s1381_s11 + $0x64] ss:$8 sps:$4 sm:$0xff] (!%p375_p10)   ;;  %v1161_v46 = vld [vmem:[%s1381_s11 + $0x60] ss:$8 sps:$4 sm:$0xff] (!%p375_p10)   ;;  %v1162_v47 = vld [vmem:[%s1381_s11 + $0x74] ss:$8 sps:$4 sm:$0xff] (!%p375_p10)  }
  0x31   : > { %v1164_v48 = vld [vmem:[%s1381_s11 + $0x70] ss:$8 sps:$4 sm:$0xff]   ;;  %v1165_v49 = vld [vmem:[%s1381_s11 + $0x84] ss:$8 sps:$4 sm:$0xff]   ;;  %v1167_v50 = vld [vmem:[%s1381_s11 + $0x80] ss:$8 sps:$4 sm:$0xff]  }
  0x32   : > { %688 = vmatpush1.bf16.msra.mxu0 %v1146_v36  ;;  %v1168_v51 = vld [vmem:[%s1381_s11 + $0x94] ss:$8 sps:$4 sm:$0xff]   ;;  %v1170_v52 = vld [vmem:[%s1381_s11 + $0x90] ss:$8 sps:$4 sm:$0xff]   ;;  %v1171_v53 = vld [vmem:[%s1381_s11 + $0xa4] ss:$8 sps:$4 sm:$0xff]  }
  0x33   : > { %689 = vmatprep.subr.bf16.mxu0 %v1147_v37  ;;  %v1173_v54 = vld [vmem:[%s1381_s11 + $0xa0] ss:$8 sps:$4 sm:$0xff]   ;;  %v1174_v55 = vld [vmem:[%s1381_s11 + $0xb4] ss:$8 sps:$4 sm:$0xff]   ;;  %v1176_v56 = vld [vmem:[%s1381_s11 + $0xb0] ss:$8 sps:$4 sm:$0xff]  }
  0x34   : > { %v1177_v57 = vld [vmem:[%s1381_s11 + $0xc4] ss:$8 sps:$4 sm:$0xff]   ;;  %v1179_v58 = vld [vmem:[%s1381_s11 + $0xc0] ss:$8 sps:$4 sm:$0xff]   ;;  %v1180_v59 = vld [vmem:[%s1381_s11 + $0xd4] ss:$8 sps:$4 sm:$0xff]  }
  0x35   : > { %v1182_v60 = vld [vmem:[%s1381_s11 + $0xd0] ss:$8 sps:$4 sm:$0xff]   ;;  %v1183_v61 = vld [vmem:[%s1381_s11 + $0xe4] ss:$8 sps:$4 sm:$0xff]   ;;  %v1185_v62 = vld [vmem:[%s1381_s11 + $0xe0] ss:$8 sps:$4 sm:$0xff]  }
  0x36   : > { %690 = vmatpush1.bf16.msra.mxu0 %v1149_v38  ;;  %v1186_v63 = vld [vmem:[%s1381_s11 + $0xf4] ss:$8 sps:$4 sm:$0xff]   ;;  %v1188_v0 = vld [vmem:[%s1381_s11 + $0xf0] ss:$8 sps:$4 sm:$0xff]   ;;  %s1421_s22 = scalar_lea.vmem [#allocation4], %s1051_s14  ;;  %p452_p11 = scmp.lt.s32.totalorder %s1052_s21, 3 }
  0x37   : > { %691 = vmatprep.subr.bf16.mxu0 %v1150_v39  ;;  %s1100_s5 = sshll.u32 (%p1292_p6), %s1222_s17, 3 }
  0x38   : > { %s1467_s21 = smov (!%p452_p11, %s1052_s21), 3  ;;  %s827_s8 = scalar_lea.vmem (%p1292_p6), %s1456_s2, %s1100_s5 }
  0x39   : > { %s1053_s15 = sshll.u32 %s1467_s21, 3 }
  0x3a   : > { %692 = vmatpush1.bf16.msra.mxu0 %v1152_v40  ;;  %s457_s27 = scalar_lea.vmem %s1457_s3, %s1053_s15  ;;  %s467_s30 = scalar_lea.vmem %s1458_s4, %s1053_s15 }
  0x3b   : > { %693 = vmatprep.subr.bf16.mxu0 %v1153_v41 }
  0x3e   : > { %694 = vmatpush1.bf16.msra.mxu0 %v1155_v42 }
  0x3f   : > { %695 = vmatprep.subr.bf16.mxu0 %v1156_v43 }
  0x42   : > { %696 = vmatpush1.bf16.msra.mxu0 %v1158_v44 }
  0x43   : > { %697 = vmatprep.subr.bf16.mxu0 %v1159_v45 }
  0x46   : > { %698 = vmatpush1.bf16.msra.mxu0 %v1161_v46 }
  0x47   : > { %699 = vmatprep.subr.bf16.mxu0 %v1162_v47 }
  0x4a   : > { %700 = vmatpush1.bf16.msra.mxu0 %v1164_v48 }
  0x4b   : > { %701 = vmatprep.subr.bf16.mxu0 %v1165_v49 }
  0x4e   : > { %702 = vmatpush1.bf16.msra.mxu0 %v1167_v50 }
  0x4f   : > { %703 = vmatprep.subr.bf16.mxu0 %v1168_v51 }
  0x52   : > { %704 = vmatpush1.bf16.msra.mxu0 %v1170_v52 }
  0x53   : > { %705 = vmatprep.subr.bf16.mxu0 %v1171_v53 }
  0x56   : > { %706 = vmatpush1.bf16.msra.mxu0 %v1173_v54 }
  0x57   : > { %707 = vmatprep.subr.bf16.mxu0 %v1174_v55 }
  0x5a   : > { %708 = vmatpush1.bf16.msra.mxu0 %v1176_v56 }
  0x5b   : > { %709 = vmatprep.subr.bf16.mxu0 %v1177_v57 }
  0x5e   : > { %710 = vmatpush1.bf16.msra.mxu0 %v1179_v58 }
  0x5f   : > { %711 = vmatprep.subr.bf16.mxu0 %v1180_v59 }
  0x62   : > { %712 = vmatpush1.bf16.msra.mxu0 %v1182_v60 }
  0x63   : > { %713 = vmatprep.subr.bf16.mxu0 %v1183_v61 }
  0x66   : > { %714 = vmatpush1.bf16.msra.mxu0 %v1185_v62 }
  0x67   : > { %715 = vmatprep.subr.bf16.mxu0 %v1186_v63 }
  0x6a   : > { %716 = vmatpush1.bf16.msra.mxu0 %v1188_v0 }
  0x6d   : > { %718 = vmatmul.mubr.bf16.vlgmr.msra.gmra.mrb[0].mxu0 %v1189_v1 }
 0x140   : > { %v719_v2 = vpop.f32.mrb[0].mxu0 }
 0x141   : > { %v721_v3 = vpop.f32.mrb[1].mxu0  ;;  %v773_v6 = vmul.f32 %v719_v2, %v719_v2 }
 0x142   : > { %v1098_v4 = vpack.c.bf16 %v721_v3, %v719_v2  ;;  %v723_v5 = vpop.f32.mrb[2].mxu0  ;;  %v774_v10 = vmul.f32 %v721_v3, %v721_v3 }
 0x143   : > { %v757_v7 = vadd.f32 %v723_v5, %v719_v2  ;;  %v775_v8 = vmul.f32 %v723_v5, %v723_v5  ;;  %v725_v9 = vpop.f32.mrb[3].mxu0 }
 0x144   : > { %v1099_v11 = vpack.c.bf16 %v725_v9, %v723_v5  ;;  %755 = vst [vmem:[%s1421_s22] sm:$0xff] %v1098_v4  ;;  %v764_v12 = vadd.f32 %v725_v9, %v721_v3  ;;  %v776_v13 = vmul.f32 %v725_v9, %v725_v9 }
 0x145   : > { %v758_v14 = vrot.slane %v757_v7, 4  ;;  %v777_v15 = vadd.f32 %v775_v8, %v773_v6 }
 0x146   : > { %756 = vst [vmem:[%s1421_s22 + $0x8] sm:$0xff] %v1099_v11  ;;  %v765_v16 = vrot.slane %v764_v12, 4  ;;  %v784_v17 = vadd.f32 %v776_v13, %v774_v10 }
 0x147   : > { %v759_v18 = vadd.f32 %v758_v14, %v757_v7  ;;  %v778_v19 = vrot.slane %v777_v15, 4 }
 0x148   : > { %v766_v20 = vadd.f32 %v765_v16, %v764_v12  ;;  %v785_v21 = vrot.slane %v784_v17, 4 }
 0x149   : > { %v760_v22 = vrot.slane %v759_v18, 2  ;;  %v779_v23 = vadd.f32 %v778_v19, %v777_v15 }
 0x14a   : > { %v767_v24 = vrot.slane %v766_v20, 2  ;;  %v786_v25 = vadd.f32 %v785_v21, %v784_v17 }
 0x14b   : > { %v761_v26 = vadd.f32 %v760_v22, %v759_v18  ;;  %v780_v27 = vrot.slane %v779_v23, 2  ;;  %v857_v44 = vld [vmem:[%s1421_s22] sm:$0xff] (%p1292_p6) }
 0x14c   : > { %v768_v28 = vadd.f32 %v767_v24, %v766_v20  ;;  %v787_v29 = vrot.slane %v786_v25, 2  ;;  %858 = vst [vmem:[%s827_s8] sm:$0xff] (%p1292_p6), %v857_v44 }
 0x14d   : > { %v762_v30 = vrot.slane %v761_v26, 1  ;;  %v781_v31 = vadd.f32 %v780_v27, %v779_v23  ;;  %v859_v45 = vld [vmem:[%s1421_s22 + $0x8] sm:$0xff] (%p1292_p6) }
 0x14e   : > { %v769_v32 = vrot.slane %v768_v28, 1  ;;  %v788_v33 = vadd.f32 %v787_v29, %v786_v25  ;;  %860 = vst [vmem:[%s827_s8 + $0x10] sm:$0xff] (%p1292_p6), %v859_v45 }
 0x14f   : > { %v763_v34 = vadd.f32 %v762_v30, %v761_v26  ;;  %v782_v35 = vrot.slane %v781_v31, 1 }
 0x150   : > { %v770_v36 = vadd.f32 %v769_v32, %v768_v28  ;;  %v789_v37 = vrot.slane %v788_v33, 1  ;;  %821 = sbr.rel (!%p1292_p6) target bundleno = 343 (0x157), region = 78 }
 0x151   : > { %v771_v38 = vmul.f32 0.125, %v763_v34  ;;  %v783_v39 = vadd.f32 %v782_v35, %v781_v31 }
 0x152   : > { %v772_v40 = vmul.f32 0.125, %v770_v36  ;;  %v790_v41 = vadd.f32 %v789_v37, %v788_v33 }
 0x153   : > { %v791_v42 = vmul.f32 0.125, %v783_v39  ;;  %793 = vst [vmem:[%s457_s27] sm:$0xff] %v771_v38 }
 0x154   : > { %v792_v43 = vmul.f32 0.125, %v790_v41  ;;  %794 = vst [vmem:[%s457_s27 + $0x8] sm:$0xff] %v772_v40 }
 0x155   : > { %795 = vst [vmem:[%s467_s30] sm:$0xff] %v791_v42 }
 0x156   : > { %796 = vst [vmem:[%s467_s30 + $0x8] sm:$0xff] %v792_v43 }
 0x157 PF: > { %s15_s19 = sadd.s32 1, %s1230_s19   ;;  %s1460_s15 = smov %s1218_s16 }
 0x158   : > { %p12_p12 = scmp.ge.s32.totalorder %s15_s19, 4   ;;  %s1461_s16 = smov %s1297_s25 }
 0x159   : > { %s1462_s17 = smov %s1226_s18  ;;  %s1463_s18 = smov %s1465_s20 }
 0x15a   :  { %14 = sbr.rel (!%p12_p12) target bundleno = 3 (0x3), region = 174 }

// kernel: _lambda_.48
= control target key start
LH: loop header
LB: loop body
LE: loop exit
PB: predicated region body
PF: predicated region fallthrough
CT: control target
= control target key end

     0   :  { %10 = vsyncpa [#allocation5], 0  ;;  %s1585_s0 = inlined_call_operand.vmem [shape: bf16[16,6912], index: 0, kind: input, shape index: {}]   ;;  %s1586_s1 = inlined_call_operand.hbm [shape: bf16[6912,512], index: 1, kind: input, shape index: {}]   ;;  %s1587_s2 = inlined_call_operand.vmem [shape: bf16[16,512], index: 2, kind: output, shape index: {0}]   ;;  %s1588_s3 = inlined_call_operand.vmem [shape: f32[8,512], index: 3, kind: output, shape index: {1}]   ;;  %s1589_s4 = inlined_call_operand.vmem [shape: f32[8,512], index: 4, kind: output, shape index: {2}]  }
   0x1   :  { %12 = vsyncpa [#allocation5 + $0x1], 0  ;;  %s1315_s15 = smov 0   ;;  %s1317_s16 = smov 0  }
   0x2   :  { %s1319_s17 = smov 0   ;;  %s1321_s18 = smov 0  }
   0x3   :  { %s1323_s19 = smov 0   ;;  %s1325_s20 = smov 0  }
   0x4   :  { %s1327_s21 = smov 0   ;;  %s1329_s22 = smov 0  }
   0x5   :  { %s1331_s23 = smov 0   ;;  %s1333_s24 = smov 0  }
   0x6   :  { %s1335_s25 = smov 0   ;;  %s1337_s26 = smov 0  }
   0x7 LB: > { %1594 = sst [smem:[#allocation8_spill]] %s1243_s16  ;;  %s936_s27 = sadd.s32 4294967295, %s1283_s26   ;;  %s1283_s26 = sphi %s1337_s26, %s18_s26   ;;  %s1279_s25 = sphi %s1335_s25, %s1619_s25   ;;  %s1275_s24 = sphi %s1333_s24, %s1618_s24   ;;  %s1271_s23 = sphi %s1331_s23, %s1617_s23   ;;  %s1267_s22 = sphi %s1329_s22, %s1616_s22   ;;  %s1263_s21 = sphi %s1327_s21, %s1610_s21   ;;  %s1259_s20 = sphi %s1325_s20, %s1609_s20   ;;  %s1255_s19 = sphi %s1323_s19, %s1615_s19   ;;  %s1251_s18 = sphi %s1321_s18, %s1614_s18   ;;  %s1247_s17 = sphi %s1319_s17, %s1613_s17   ;;  %s1243_s16 = sphi %s1317_s16, %s1607_s16   ;;  %s1239_s15 = sphi %s1315_s15, %s1606_s15  }
   0x8   : > { %1595 = sst [smem:[#allocation9_spill]] %s1263_s21  ;;  %s30_s28 = sadd.s32 1, %s1275_s24 }
   0x9   : > { %p31_p0 = scmp.ge.s32.totalorder %s30_s28, 27  ;;  %s33_s29 = sadd.s32 1, %s1279_s25 }
   0xa   : > { %s46_s30 = sadd.s32 1, %s1263_s21  ;;  %p53_p1 = scmp.ne.s32.totalorder %s1263_s21, %s1259_s20 }
   0xb   : > { %s1621_s28 = smov (%p31_p0, %s30_s28), 0  ;;  %s1623_s29 = smov (!%p31_p0, %s33_s29), %s1279_s25 }
   0xc   : > { %1596 = sst [smem:[#allocation10_spill]] %s1621_s28  ;;  %s42_s5 = ssub.s32 %s1275_s24, %s1621_s28 }
   0xd   : > { %p54_p2 = scmp.eq.s32.totalorder %s1283_s26, 0  ;;  %p35_p3 = scmp.ge.s32.totalorder %s1623_s29, 2 }
   0xe   : > { %p44_p4 = scmp.eq.s32.totalorder %s42_s5, 0  ;;  %s74_s7 = sadd.s32 1, %s1255_s19 }
   0xf   : > { %p1387_p5 = por %p54_p2, %p53_p1  ;;  %s1625_s29 = smov (%p35_p3, %s1623_s29), 0 }
  0x10   : > { %1598 = sst [smem:[#allocation11_spill]] %s1625_s29  ;;  %s70_s9 = ssub.s32 %s1279_s25, %s1625_s29 }
  0x11   : > { %s1395_s8 = scalar_select %p44_p4, %s1263_s21, %s46_s30  }
  0x12   : > { %p81_p6 = scmp.ne.s32.totalorder %s1255_s19, %s1251_s18  ;;  %s71_s10 = sor.u32 %s70_s9, %s42_s5 }
  0x13   : > { %1599 = sst [smem:[#allocation12_spill]] %s1395_s8  ;;  %p87_p7 = scmp.ne.s32.totalorder %s1251_s18, %s1247_s17 }
  0x14   : > { %p72_p8 = scmp.eq.s32.totalorder %s71_s10, 0  ;;  %p1403_p9 = por %p81_p6, %p54_p2 }
  0x15   : > { %p88_p10 = scmp.eq.s32.totalorder %s936_s27, 0  ;;  %p100_p11 = scmp.eq.s32.totalorder %s70_s9, 0 }
  0x16   : > { %s1410_s12 = scalar_select %p72_p8, %s1255_s19, %s74_s7  }
  0x17   : > { %p1412_p12 = por %p88_p10, %p87_p7  ;;  %s102_s14 = sadd.s32 1, %s1243_s16 }
  0x18   : > { %1601 = sst [smem:[#allocation13_spill]] %s1410_s12  ;;  %p112_p13 = scmp.ne.s32.totalorder %s1243_s16, %s1239_s15 }
  0x19   : > { %s1418_s30 = scalar_select %p100_p11, %s1243_s16, %s102_s14  }
  0x1a   : > { %p113_p0 = scmp.eq.s32.totalorder %s936_s27, 53  ;;  %p939_p2 = scmp.ge.s32.totalorder %s1283_s26, 54 }
  0x1b   : > { %1603 = sst [smem:[#allocation14_spill]] %s1418_s30 }
  0x1c   : > { %p1424_p1 = por %p113_p0, %p112_p13  ;;  %191 = sbr.rel (%p939_p2) target bundleno = 71 (0x47), region = 16 }
  0x1e   : > { %s1604_s17 = scalar_select %p1424_p1, 1, 0 }
  0x23   : > { %194 = sbr.rel (!%p1387_p5) target bundleno = 42 (0x2a), region = 20  ;;  %s196_s5 = sand.u32 (%p1387_p5), 1, %s1263_s21  }
  0x24   : > { %s999_s7 = sshll.u32 (%p1387_p5), %s1275_s24, 3  ;;  %s940_s9 = sshll.u32 (%p1387_p5), %s196_s5, 4 }
  0x25   : > { %s204_s29 = scalar_lea.vmem (%p1387_p5), %s1585_s0, %s999_s7  ;;  %s198_s27 = scalar_lea.vmem (%p1387_p5), [#allocation3], %s940_s9 }
  0x26   : > { %v234_v0 = vld [vmem:[%s204_s29] sm:$0xff] (%p1387_p5)  ;;  %v236_v1 = vld [vmem:[%s204_s29 + $0xd8] sm:$0xff] (%p1387_p5) }
  0x27   : > { %235 = vst [vmem:[%s198_s27] sm:$0xff] (%p1387_p5), %v234_v0  ;;  %237 = vst [vmem:[%s198_s27 + $0x8] sm:$0xff] (%p1387_p5), %v236_v1 }
  0x2a PF: > { %s244_s6 = sand.u32 1, %s1255_s19   ;;  %s945_s28 = sshll.u32 %s1279_s25, 1 }
  0x2b   : > { %s943_s8 = sshll.u32 %s244_s6, 8  ;;  %s1000_s21 = sshll.u32 %s1275_s24, 7 }
  0x2c   : > { %s255_s12 = sadd.s32 %s1000_s21, %s945_s28  ;;  %s248_s5 = scalar_lea.vmem [#allocation4], %s943_s8 }
  0x2d   : > { %s258_s30 = sshll.u32 %s248_s5, 4  ;;  %s947_s16 = sshll.u32 %s255_s12, 6  ;;  %s1439_s30 = int_to_ptr.vmem [resolvable:$true] %s258_s30 }
  0x2e   : > { %s1444_s9 = scalar_lea.hbm %s1586_s1, %s947_s16  ;;  %s1446_s10 = scalar_lea.sflag [#allocation5], %s244_s6 }
  0x2f   : > { %s1157_s14 = scalar_lea.hbm %s1444_s9, 4096  ;;  %s1161_s8 = scalar_lea.hbm %s1586_s1, 221184 }
  0x30   : > { %p1158_p3 = scmp.ne.s32.totalorder %s1444_s9, %s1157_s14  ;;  %p1162_p6 = scmp.lt.u32.totalorder %s1444_s9, %s1586_s1 }
  0x31   : > { %p1163_p7 = scmp.lt.u32.totalorder %s1161_s8, %s1157_s14  ;;  %p1165_p10 = scmp.lt.u32.totalorder %s1157_s14, %s1444_s9 }
  0x32   : > { %p1159_p4 = pnand %p1158_p3, %p1403_p9 }
  0x33   : > { %p1164_p8 = por %p1163_p7, %p1162_p6 }
  0x34   : > { %p1160_p5 = pneg %p1159_p4 }
  0x35   : > { %p1166_p11 = por %p1165_p10, %p1164_p8 }
  0x37   : > { %p1167_p13 = pnand %p1166_p11, %p1160_p5 }
  0x39   : > { %1170 = shalt.err (!%p1167_p13)
}
  0x3a   : > { %s1171_s16 = scalar_lea.vmem %s1439_s30, 4096  ;;  %s1285_s6 = smov [#allocation4]  }
  0x3b   : > { %p1172_p0 = scmp.ne.s32.totalorder %s1439_s30, %s1171_s16  ;;  %s1175_s5 = sshll.u32 %s1285_s6, 4  ;;  %s1176_s5 = int_to_ptr.vmem [resolvable:$false] %s1175_s5 }
  0x3c   : > { %s1177_s7 = scalar_lea.vmem %s1176_s5, 8192  ;;  %p1178_p4 = scmp.lt.s32.totalorder %s1439_s30, %s1176_s5 }
  0x3d   : > { %p1173_p2 = pnand %p1172_p0, %p1403_p9  ;;  %p1179_p1 = scmp.lt.s32.totalorder %s1177_s7, %s1171_s16 }
  0x3f   : > { %p1174_p3 = pneg %p1173_p2  ;;  %p1180_p6 = por %p1179_p1, %p1178_p4 }
  0x41   : > { %p1181_p7 = pnand %p1180_p6, %p1174_p3 }
  0x43   : > { %1184 = shalt.err (!%p1181_p7)
}
  0x44   : > { %s1286_s29 = smov 256   ;;  %s1287_s14 = smov 128  }
  0x45   : > { %s1288_s21 = smov 8  }
  0x46   : > { %1004 = dma.hbm_to_vmem [thread:$0]  (%p1403_p9), %s1444_s9, 4096, %s1439_s30, %s1446_s10, %s1286_s29, %s1287_s14, %s1288_s21  }
  0x47 PF: > { %p948_p5 = scmp.ge.s32.totalorder %s1283_s26, 1  ;;  %p266_p8 = scmp.lt.s32.totalorder %s1283_s26, 55 }
  0x49   : > { %p267_p10 = pnand %p948_p5, %p266_p8 }
  0x4a   : > { %s273_s28 = sand.u32 (!%p267_p10), 1, %s1259_s20   ;;  %s279_s8 = sand.u32 (!%p267_p10), 1, %s1251_s18  }
  0x4b   : > { %270 = sbr.rel (%p267_p10) target bundleno = 412 (0x19c), region = 62  ;;  %s1474_s12 = sshll.u32 (!%p267_p10), %s273_s28, 4 }
  0x4c   : > { %s950_s27 = sshll.u32 (!%p267_p10), %s279_s8, 8  ;;  %s275_s16 = scalar_lea.vmem (!%p267_p10), [#allocation3], %s1474_s12 }
  0x4d   : > { %s280_s6 = scalar_lea.sflag (!%p267_p10), [#allocation5], %s279_s8  ;;  %s1477_s11 = scalar_lea.vmem (!%p267_p10), [#allocation4], %s950_s27 }
  0x52   : > { %1234 = dma.done.wait (%p1412_p12), %s280_s6, 4096  }
  0x53   : > { %1236 = vsyncadd (%p1412_p12), %s280_s6, 4294963200  ;;  %s304_s30 = sand.u32 1, %s1239_s15   ;;  %s952_s9 = sshll.u32 %s1271_s23, 1 }
  0x54   : > { %s951_s10 = sshll.u32 %s304_s30, 4  ;;  %p338_p9 = scmp.lt.s32.totalorder %s952_s9, 3 }
  0x55   : > { %s1495_s13 = scalar_lea.vmem [#allocation6], %s951_s10  ;;  %p956_p12 = scmp.ne.s32.totalorder %s1267_s22, 0 }
  0x56   : > { %s1627_s9 = smov (!%p338_p9, %s952_s9), 3  ;;  %v1289_v2 = vmov (!%p956_p12), 0.0  }
  0x57   : > { %s953_s20 = sshll.u32 %s1627_s9, 3  ;;  %358 = sbr.rel (%p956_p12) target bundleno = 94 (0x5e), region = 74  ;;  %359 = vst [vmem:[#allocation2] sm:$0xff] (!%p956_p12), %v1289_v2  ;;  %360 = vst [vmem:[#allocation2 + $0x8] sm:$0xff] (!%p956_p12), %v1289_v2 }
  0x58   : > { %s1488_s29 = scalar_lea.vmem %s1588_s3, %s953_s20  ;;  %s1493_s28 = scalar_lea.vmem %s1589_s4, %s953_s20  ;;  %361 = vst [vmem:[#allocation2 + $0x10] sm:$0xff] (!%p956_p12), %v1289_v2  ;;  %362 = vst [vmem:[#allocation2 + $0x18] sm:$0xff] (!%p956_p12), %v1289_v2 }
  0x5e PF: > { %v1106_v3 = vld [vmem:[%s1477_s11 + $0x4] ss:$8 sps:$4 sm:$0xff]   ;;  %v1108_v4 = vld [vmem:[%s1477_s11] ss:$8 sps:$4 sm:$0xff]   ;;  %v1109_v5 = vld [vmem:[%s1477_s11 + $0x14] ss:$8 sps:$4 sm:$0xff]  }
  0x5f   : > { %571 = vmatprep.subr.bf16.mxu0 %v1106_v3  ;;  %v1111_v6 = vld [vmem:[%s1477_s11 + $0x10] ss:$8 sps:$4 sm:$0xff]   ;;  %v1112_v7 = vld [vmem:[%s1477_s11 + $0x24] ss:$8 sps:$4 sm:$0xff]   ;;  %v1114_v8 = vld [vmem:[%s1477_s11 + $0x20] ss:$8 sps:$4 sm:$0xff]  }
  0x60   : > { %572 = vmatpush1.bf16.msra.mxu0 %v1108_v4  ;;  %v1115_v9 = vld [vmem:[%s1477_s11 + $0x34] ss:$8 sps:$4 sm:$0xff]   ;;  %v1117_v10 = vld [vmem:[%s1477_s11 + $0x30] ss:$8 sps:$4 sm:$0xff]   ;;  %v1118_v11 = vld [vmem:[%s1477_s11 + $0x44] ss:$8 sps:$4 sm:$0xff]  }
  0x61   : > { %573 = vmatprep.subr.bf16.mxu0 %v1109_v5  ;;  %v1120_v12 = vld [vmem:[%s1477_s11 + $0x40] ss:$8 sps:$4 sm:$0xff]   ;;  %v1121_v13 = vld [vmem:[%s1477_s11 + $0x54] ss:$8 sps:$4 sm:$0xff]   ;;  %v1123_v14 = vld [vmem:[%s1477_s11 + $0x50] ss:$8 sps:$4 sm:$0xff]  }
  0x62   : > { %v1124_v15 = vld [vmem:[%s1477_s11 + $0x64] ss:$8 sps:$4 sm:$0xff]   ;;  %v1126_v17 = vld [vmem:[%s1477_s11 + $0x60] ss:$8 sps:$4 sm:$0xff]   ;;  %v1127_v18 = vld [vmem:[%s1477_s11 + $0x74] ss:$8 sps:$4 sm:$0xff]  }
  0x63   : > { %v1156_v16 = vld [vmem:[%s275_s16 + $0x4] ss:$8 sps:$4 sm:$0xff]   ;;  %v1129_v19 = vld [vmem:[%s1477_s11 + $0x70] ss:$8 sps:$4 sm:$0xff]   ;;  %v1132_v21 = vld [vmem:[%s1477_s11 + $0x80] ss:$8 sps:$4 sm:$0xff]  }
  0x64   : > { %574 = vmatpush1.bf16.msra.mxu0 %v1111_v6  ;;  %603 = vmatprep.mubr.bf16.mxu0 %v1156_v16  ;;  %v1130_v20 = vld [vmem:[%s1477_s11 + $0x84] ss:$8 sps:$4 sm:$0xff]   ;;  %v1133_v22 = vld [vmem:[%s1477_s11 + $0x94] ss:$8 sps:$4 sm:$0xff]   ;;  %v1135_v23 = vld [vmem:[%s1477_s11 + $0x90] ss:$8 sps:$4 sm:$0xff]  }
  0x65   : > { %575 = vmatprep.subr.bf16.mxu0 %v1112_v7  ;;  %v1136_v24 = vld [vmem:[%s1477_s11 + $0xa4] ss:$8 sps:$4 sm:$0xff]   ;;  %v1138_v25 = vld [vmem:[%s1477_s11 + $0xa0] ss:$8 sps:$4 sm:$0xff]   ;;  %v1139_v26 = vld [vmem:[%s1477_s11 + $0xb4] ss:$8 sps:$4 sm:$0xff]  }
  0x66   : > { %v1141_v27 = vld [vmem:[%s1477_s11 + $0xb0] ss:$8 sps:$4 sm:$0xff]   ;;  %v1142_v28 = vld [vmem:[%s1477_s11 + $0xc4] ss:$8 sps:$4 sm:$0xff]   ;;  %v1144_v29 = vld [vmem:[%s1477_s11 + $0xc0] ss:$8 sps:$4 sm:$0xff]  }
  0x67   : > { %v1145_v30 = vld [vmem:[%s1477_s11 + $0xd4] ss:$8 sps:$4 sm:$0xff]   ;;  %v1147_v31 = vld [vmem:[%s1477_s11 + $0xd0] ss:$8 sps:$4 sm:$0xff]   ;;  %v1148_v32 = vld [vmem:[%s1477_s11 + $0xe4] ss:$8 sps:$4 sm:$0xff]  }
  0x68   : > { %576 = vmatpush1.bf16.msra.mxu0 %v1114_v8  ;;  %v1150_v33 = vld [vmem:[%s1477_s11 + $0xe0] ss:$8 sps:$4 sm:$0xff]   ;;  %v1151_v34 = vld [vmem:[%s1477_s11 + $0xf4] ss:$8 sps:$4 sm:$0xff]   ;;  %v1153_v35 = vld [vmem:[%s1477_s11 + $0xf0] ss:$8 sps:$4 sm:$0xff]  }
  0x69   : > { %577 = vmatprep.subr.bf16.mxu0 %v1115_v9  ;;  %v1154_v36 = vld [vmem:[%s275_s16] ss:$8 sps:$4 sm:$0xff]   ;;  %p991_p1 = scmp.ne.s32.totalorder %s1267_s22, 26 }
  0x6a   : > { %v363_v37 = vld [vmem:[#allocation2] sm:$0xff]  ;;  %v364_v38 = vld [vmem:[#allocation2 + $0x8] sm:$0xff]  ;;  %v365_v40 = vld [vmem:[#allocation2 + $0x10] sm:$0xff] }
  0x6b   : > { %v366_v43 = vld [vmem:[#allocation2 + $0x18] sm:$0xff] }
  0x6c   : > { %578 = vmatpush1.bf16.msra.mxu0 %v1117_v10 }
  0x6d   : > { %579 = vmatprep.subr.bf16.mxu0 %v1118_v11 }
  0x70   : > { %580 = vmatpush1.bf16.msra.mxu0 %v1120_v12 }
  0x71   : > { %581 = vmatprep.subr.bf16.mxu0 %v1121_v13 }
  0x74   : > { %582 = vmatpush1.bf16.msra.mxu0 %v1123_v14 }
  0x75   : > { %583 = vmatprep.subr.bf16.mxu0 %v1124_v15 }
  0x78   : > { %584 = vmatpush1.bf16.msra.mxu0 %v1126_v17 }
  0x79   : > { %585 = vmatprep.subr.bf16.mxu0 %v1127_v18 }
  0x7c   : > { %586 = vmatpush1.bf16.msra.mxu0 %v1129_v19 }
  0x7d   : > { %587 = vmatprep.subr.bf16.mxu0 %v1130_v20 }
  0x80   : > { %588 = vmatpush1.bf16.msra.mxu0 %v1132_v21 }
  0x81   : > { %589 = vmatprep.subr.bf16.mxu0 %v1133_v22 }
  0x84   : > { %590 = vmatpush1.bf16.msra.mxu0 %v1135_v23 }
  0x85   : > { %591 = vmatprep.subr.bf16.mxu0 %v1136_v24 }
  0x88   : > { %592 = vmatpush1.bf16.msra.mxu0 %v1138_v25 }
  0x89   : > { %593 = vmatprep.subr.bf16.mxu0 %v1139_v26 }
  0x8c   : > { %594 = vmatpush1.bf16.msra.mxu0 %v1141_v27 }
  0x8d   : > { %595 = vmatprep.subr.bf16.mxu0 %v1142_v28 }
  0x90   : > { %596 = vmatpush1.bf16.msra.mxu0 %v1144_v29 }
  0x91   : > { %597 = vmatprep.subr.bf16.mxu0 %v1145_v30 }
  0x94   : > { %598 = vmatpush1.bf16.msra.mxu0 %v1147_v31 }
  0x95   : > { %599 = vmatprep.subr.bf16.mxu0 %v1148_v32 }
  0x98   : > { %600 = vmatpush1.bf16.msra.mxu0 %v1150_v33 }
  0x99   : > { %601 = vmatprep.subr.bf16.mxu0 %v1151_v34 }
  0x9c   : > { %602 = vmatpush1.bf16.msra.mxu0 %v1153_v35 }
  0x9f   : > { %604 = vmatmul.mubr.bf16.vlgmr.msra.gmra.mrb[0].mxu0 %v1154_v36 }
 0x172   : > { %v605_v39 = vpop.f32.mrb[0].mxu0  ;;  %625 = sbr.rel (%p991_p1) target bundleno = 403 (0x193), region = 78 }
 0x173   : > { %v614_v41 = vadd.f32 %v605_v39, %v363_v37  ;;  %v607_v42 = vpop.f32.mrb[1].mxu0 }
 0x174   : > { %v615_v44 = vadd.f32 %v607_v42, %v364_v38  ;;  %v609_v45 = vpop.f32.mrb[2].mxu0 }
 0x175   : > { %618 = vst [vmem:[#allocation2] sm:$0xff] %v614_v41  ;;  %v616_v46 = vadd.f32 %v609_v45, %v365_v40  ;;  %v611_v47 = vpop.f32.mrb[3].mxu0 }
 0x176   : > { %619 = vst [vmem:[#allocation2 + $0x8] sm:$0xff] %v615_v44  ;;  %v617_v48 = vadd.f32 %v611_v47, %v366_v43 }
 0x177   : > { %620 = vst [vmem:[#allocation2 + $0x10] sm:$0xff] %v616_v46 }
 0x178   : > { %621 = vst [vmem:[#allocation2 + $0x18] sm:$0xff] %v617_v48 }
 0x17c   : > { %v626_v49 = vld [vmem:[#allocation2] sm:$0xff] }
 0x17d   : > { %v627_v51 = vld [vmem:[#allocation2 + $0x8] sm:$0xff]  ;;  %v660_v53 = vmul.f32 %v626_v49, %v626_v49 }
 0x17e   : > { %v628_v50 = vld [vmem:[#allocation2 + $0x10] sm:$0xff]  ;;  %v1001_v55 = vpack.c.bf16 %v627_v51, %v626_v49  ;;  %v661_v57 = vmul.f32 %v627_v51, %v627_v51 }
 0x17f   : > { %v644_v52 = vadd.f32 %v628_v50, %v626_v49  ;;  %v662_v54 = vmul.f32 %v628_v50, %v628_v50  ;;  %v629_v56 = vld [vmem:[#allocation2 + $0x18] sm:$0xff] }
 0x180   : > { %v1002_v58 = vpack.c.bf16 %v629_v56, %v628_v50  ;;  %v651_v59 = vadd.f32 %v629_v56, %v627_v51  ;;  %v663_v60 = vmul.f32 %v629_v56, %v629_v56  ;;  %642 = vst [vmem:[%s1495_s13] sm:$0xff] %v1001_v55 }
 0x181   : > { %v645_v61 = vrot.slane %v644_v52, 4  ;;  %v664_v62 = vadd.f32 %v662_v54, %v660_v53 }
 0x182   : > { %643 = vst [vmem:[%s1495_s13 + $0x8] sm:$0xff] %v1002_v58  ;;  %v652_v63 = vrot.slane %v651_v59, 4  ;;  %v671_v0 = vadd.f32 %v663_v60, %v661_v57 }
 0x183   : > { %v646_v1 = vadd.f32 %v645_v61, %v644_v52  ;;  %v665_v2 = vrot.slane %v664_v62, 4 }
 0x184   : > { %v653_v3 = vadd.f32 %v652_v63, %v651_v59  ;;  %v672_v4 = vrot.slane %v671_v0, 4 }
 0x185   : > { %v647_v5 = vrot.slane %v646_v1, 2  ;;  %v666_v6 = vadd.f32 %v665_v2, %v664_v62 }
 0x186   : > { %v654_v7 = vrot.slane %v653_v3, 2  ;;  %v673_v8 = vadd.f32 %v672_v4, %v671_v0 }
 0x187   : > { %v648_v9 = vadd.f32 %v647_v5, %v646_v1  ;;  %v667_v10 = vrot.slane %v666_v6, 2 }
 0x188   : > { %v655_v11 = vadd.f32 %v654_v7, %v653_v3  ;;  %v674_v12 = vrot.slane %v673_v8, 2 }
 0x189   : > { %v649_v13 = vrot.slane %v648_v9, 1  ;;  %v668_v14 = vadd.f32 %v667_v10, %v666_v6 }
 0x18a   : > { %v656_v15 = vrot.slane %v655_v11, 1  ;;  %v675_v16 = vadd.f32 %v674_v12, %v673_v8 }
 0x18b   : > { %v650_v17 = vadd.f32 %v649_v13, %v648_v9  ;;  %v669_v18 = vrot.slane %v668_v14, 1 }
 0x18c   : > { %v657_v19 = vadd.f32 %v656_v15, %v655_v11  ;;  %v676_v20 = vrot.slane %v675_v16, 1 }
 0x18d   : > { %v658_v21 = vmul.f32 0.125, %v650_v17  ;;  %v670_v22 = vadd.f32 %v669_v18, %v668_v14 }
 0x18e   : > { %v659_v23 = vmul.f32 0.125, %v657_v19  ;;  %v677_v24 = vadd.f32 %v676_v20, %v675_v16 }
 0x18f   : > { %680 = vst [vmem:[%s1488_s29] sm:$0xff] %v658_v21  ;;  %v678_v25 = vmul.f32 0.125, %v670_v22 }
 0x190   : > { %681 = vst [vmem:[%s1488_s29 + $0x8] sm:$0xff] %v659_v23  ;;  %v679_v26 = vmul.f32 0.125, %v677_v24 }
 0x191   : > { %682 = vst [vmem:[%s1493_s28] sm:$0xff] %v678_v25 }
 0x192   : > { %683 = vst [vmem:[%s1493_s28 + $0x8] sm:$0xff] %v679_v26 }
 0x193 PF: > { %p1605_p11 = scmp.ne.s32.totalorder %s1604_s17, 0 }
 0x194   : > { %s1003_s15 = sshll.u32 (%p1605_p11), %s1271_s23, 3  ;;  %v744_v27 = vld [vmem:[%s1495_s13] sm:$0xff] (%p1605_p11)  ;;  %v746_v28 = vld [vmem:[%s1495_s13 + $0x8] sm:$0xff] (%p1605_p11) }
 0x195   : > { %708 = sbr.rel (!%p1605_p11) target bundleno = 412 (0x19c), region = 82  ;;  %s714_s12 = scalar_lea.vmem (%p1605_p11), %s1587_s2, %s1003_s15 }
 0x196   : > { %745 = vst [vmem:[%s714_s12] sm:$0xff] (%p1605_p11), %v744_v27  ;;  %747 = vst [vmem:[%s714_s12 + $0x10] sm:$0xff] (%p1605_p11), %v746_v28 }
 0x19c PF: > { %s18_s26 = sadd.s32 1, %s1283_s26   ;;  %s1606_s15 = sld [smem:[#allocation8_spill]] }
 0x19d   : > { %p15_p13 = scmp.ge.s32.totalorder %s18_s26, 56   ;;  %s1607_s16 = sld [smem:[#allocation14_spill]] }
 0x19e   : > { %s1608_s27 = sld [smem:[#allocation13_spill]]  ;;  %s1609_s20 = sld [smem:[#allocation9_spill]] }
 0x19f   : > { %s1610_s21 = sld [smem:[#allocation12_spill]]  ;;  %s1611_s6 = sld [smem:[#allocation10_spill]] }
 0x1a0   : > { %s1612_s11 = sld [smem:[#allocation11_spill]]  ;;  %s1613_s17 = smov %s1251_s18 }
 0x1a1   : > { %s1614_s18 = smov %s1255_s19  ;;  %s1616_s22 = smov %s1275_s24 }
 0x1a2   : > { %s1617_s23 = smov %s1279_s25  ;;  %17 = sbr.rel (!%p15_p13) target bundleno = 7 (0x7), region = 184 }
 0x1a4   : > { %s1615_s19 = smov %s1608_s27 }
 0x1a5   : > { %s1618_s24 = smov %s1611_s6 }
 0x1a6   : > { %s1619_s25 = smov %s1612_s11 }
 0x1a9   :  { %795 = vsyncpa [#allocation5], 1 }
 0x1aa   :  { %797 = vsyncpa [#allocation5 + $0x1], 1 }

// kernel: _lambda_.50
= control target key start
LH: loop header
LB: loop body
LE: loop exit
PB: predicated region body
PF: predicated region fallthrough
CT: control target
= control target key end

     0   :  { %s1392_s15 = smov 0   ;;  %s1394_s16 = smov 0   ;;  %s1682_s0 = inlined_call_operand.vmem [shape: bf16[16,13824], index: 0, kind: input, shape index: {}]   ;;  %s1683_s1 = inlined_call_operand.vmem [shape: bf16[13824,512], index: 1, kind: input, shape index: {}]   ;;  %s1684_s2 = inlined_call_operand.vmem [shape: bf16[16,512], index: 2, kind: output, shape index: {0}]   ;;  %s1685_s3 = inlined_call_operand.vmem [shape: f32[8,512], index: 3, kind: output, shape index: {1}]   ;;  %s1686_s4 = inlined_call_operand.vmem [shape: f32[8,512], index: 4, kind: output, shape index: {2}]  }
   0x1   :  { %s1396_s17 = smov 0   ;;  %s1398_s18 = smov 0  }
   0x2   :  { %s1400_s19 = smov 0   ;;  %s1402_s20 = smov 0  }
   0x3   :  { %s1404_s21 = smov 0   ;;  %s1406_s22 = smov 0  }
   0x4   :  { %s1408_s23 = smov 0   ;;  %s1410_s24 = smov 0  }
   0x5   :  { %s1412_s25 = smov 0  }
   0x6 LB: > { %1690 = sst [smem:[#allocation6_spill]] %s1344_s20  ;;  %s1070_s26 = sadd.s32 4294967295, %s1364_s25   ;;  %s1364_s25 = sphi %s1412_s25, %s15_s25   ;;  %s1360_s24 = sphi %s1410_s24, %s1708_s24   ;;  %s1356_s23 = sphi %s1408_s23, %s1707_s23   ;;  %s1352_s22 = sphi %s1406_s22, %s1706_s22   ;;  %s1348_s21 = sphi %s1404_s21, %s1705_s21   ;;  %s1344_s20 = sphi %s1402_s20, %s1698_s20   ;;  %s1340_s19 = sphi %s1400_s19, %s1697_s19   ;;  %s1336_s18 = sphi %s1398_s18, %s1704_s18   ;;  %s1332_s17 = sphi %s1396_s17, %s1703_s17   ;;  %s1328_s16 = sphi %s1394_s16, %s1702_s16   ;;  %s1324_s15 = sphi %s1392_s15, %s1701_s15  }
   0x7   : > { %s27_s27 = sadd.s32 1, %s1356_s23  ;;  %s30_s28 = sadd.s32 1, %s1360_s24 }
   0x8   : > { %p28_p0 = scmp.ge.s32.totalorder %s27_s27, 54  ;;  %s43_s29 = sadd.s32 1, %s1344_s20 }
   0x9   : > { %p50_p1 = scmp.ne.s32.totalorder %s1344_s20, %s1340_s19  ;;  %p51_p2 = scmp.eq.s32.totalorder %s1364_s25, 0 }
   0xa   : > { %s1710_s27 = smov (%p28_p0, %s27_s27), 0  ;;  %s1712_s28 = smov (!%p28_p0, %s30_s28), %s1360_s24 }
   0xb   : > { %1691 = sst [smem:[#allocation7_spill]] %s1710_s27  ;;  %s39_s30 = ssub.s32 %s1356_s23, %s1710_s27 }
   0xc   : > { %p32_p3 = scmp.ge.s32.totalorder %s1712_s28, 2  ;;  %p41_p4 = scmp.eq.s32.totalorder %s39_s30, 0 }
   0xd   : > { %p1459_p5 = por %p51_p2, %p50_p1  ;;  %s71_s6 = sadd.s32 1, %s1336_s18 }
   0xe   : > { %s1714_s28 = smov (%p32_p3, %s1712_s28), 0  ;;  %p78_p6 = scmp.ne.s32.totalorder %s1336_s18, %s1332_s17 }
   0xf   : > { %1693 = sst [smem:[#allocation8_spill]] %s1714_s28  ;;  %s67_s8 = ssub.s32 %s1360_s24, %s1714_s28 }
  0x10   : > { %s1467_s7 = scalar_select %p41_p4, %s1344_s20, %s43_s29  }
  0x11   : > { %s68_s9 = sor.u32 %s67_s8, %s39_s30  ;;  %p97_p7 = scmp.eq.s32.totalorder %s67_s8, 0 }
  0x12   : > { %1694 = sst [smem:[#allocation9_spill]] %s1467_s7  ;;  %p69_p8 = scmp.eq.s32.totalorder %s68_s9, 0 }
  0x13   : > { %p1473_p9 = por %p78_p6, %p51_p2  ;;  %s99_s11 = sadd.s32 1, %s1328_s16 }
  0x14   : > { %p109_p10 = scmp.ne.s32.totalorder %s1328_s16, %s1324_s15  ;;  %p110_p11 = scmp.eq.s32.totalorder %s1070_s26, 107 }
  0x15   : > { %s1481_s12 = scalar_select %p69_p8, %s1336_s18, %s71_s6  }
  0x16   : > { %s1484_s13 = scalar_select %p97_p7, %s1328_s16, %s99_s11  }
  0x17   : > { %p1486_p12 = por %p110_p11, %p109_p10  ;;  %p1073_p13 = scmp.ge.s32.totalorder %s1364_s25, 108 }
  0x19   : > { %188 = sbr.rel (%p1073_p13) target bundleno = 62 (0x3e), region = 16 }
  0x20   : > { %191 = sbr.rel (!%p1459_p5) target bundleno = 39 (0x27), region = 20  ;;  %s193_s29 = sand.u32 (%p1459_p5), 1, %s1344_s20  }
  0x21   : > { %s1133_s30 = sshll.u32 (%p1459_p5), %s1356_s23, 3  ;;  %s1074_s8 = sshll.u32 (%p1459_p5), %s193_s29, 4 }
  0x22   : > { %s201_s11 = scalar_lea.vmem (%p1459_p5), %s1682_s0, %s1133_s30  ;;  %s195_s26 = scalar_lea.vmem (%p1459_p5), [#allocation3], %s1074_s8 }
  0x23   : > { %v231_v0 = vld [vmem:[%s201_s11] sm:$0xff] (%p1459_p5)  ;;  %v233_v1 = vld [vmem:[%s201_s11 + $0x1b0] sm:$0xff] (%p1459_p5) }
  0x24   : > { %232 = vst [vmem:[%s195_s26] sm:$0xff] (%p1459_p5), %v231_v0  ;;  %234 = vst [vmem:[%s195_s26 + $0x8] sm:$0xff] (%p1459_p5), %v233_v1 }
  0x27 PF: > { %240 = sbr.rel (!%p1473_p9) target bundleno = 62 (0x3e), region = 58  ;;  %s242_s5 = sand.u32 (%p1473_p9), 1, %s1336_s18  }
  0x28   : > { %s1079_s28 = sshll.u32 (%p1473_p9), %s1360_s24, 1  ;;  %s1077_s27 = sshll.u32 (%p1473_p9), %s242_s5, 8 }
  0x29   : > { %s1134_s29 = sshll.u32 (%p1473_p9), %s1356_s23, 7  ;;  %s1511_s10 = scalar_lea.vmem (%p1473_p9), [#allocation4], %s1077_s27 }
  0x2a   : > { %s248_s7 = sadd.s32 (%p1473_p9), %s1134_s29, %s1079_s28 }
  0x2b   : > { %s1081_s20 = sshll.u32 (%p1473_p9), %s248_s7, 2 }
  0x2c   : > { %s1506_s9 = scalar_lea.vmem (%p1473_p9), %s1683_s1, %s1081_s20 }
  0x2d   : > { %v340_v2 = vld [vmem:[%s1506_s9] sm:$0xff] (%p1473_p9)  ;;  %v342_v3 = vld [vmem:[%s1506_s9 + $0x10] sm:$0xff] (%p1473_p9) }
  0x2e   : > { %v344_v4 = vld [vmem:[%s1506_s9 + $0x20] sm:$0xff]  ;;  %341 = vst [vmem:[%s1511_s10] sm:$0xff] %v340_v2  ;;  %343 = vst [vmem:[%s1511_s10 + $0x8] sm:$0xff] %v342_v3  ;;  %v346_v5 = vld [vmem:[%s1506_s9 + $0x30] sm:$0xff] }
  0x2f   : > { %345 = vst [vmem:[%s1511_s10 + $0x10] sm:$0xff] %v344_v4  ;;  %v348_v6 = vld [vmem:[%s1506_s9 + $0x40] sm:$0xff]  ;;  %v350_v7 = vld [vmem:[%s1506_s9 + $0x50] sm:$0xff]  ;;  %347 = vst [vmem:[%s1511_s10 + $0x18] sm:$0xff] %v346_v5 }
  0x30   : > { %349 = vst [vmem:[%s1511_s10 + $0x20] sm:$0xff] %v348_v6  ;;  %351 = vst [vmem:[%s1511_s10 + $0x28] sm:$0xff] %v350_v7  ;;  %v352_v8 = vld [vmem:[%s1506_s9 + $0x60] sm:$0xff]  ;;  %v354_v9 = vld [vmem:[%s1506_s9 + $0x70] sm:$0xff] }
  0x31   : > { %v356_v10 = vld [vmem:[%s1506_s9 + $0x80] sm:$0xff]  ;;  %353 = vst [vmem:[%s1511_s10 + $0x30] sm:$0xff] %v352_v8  ;;  %355 = vst [vmem:[%s1511_s10 + $0x38] sm:$0xff] %v354_v9  ;;  %v358_v11 = vld [vmem:[%s1506_s9 + $0x90] sm:$0xff] }
  0x32   : > { %357 = vst [vmem:[%s1511_s10 + $0x40] sm:$0xff] %v356_v10  ;;  %v360_v12 = vld [vmem:[%s1506_s9 + $0xa0] sm:$0xff]  ;;  %v362_v13 = vld [vmem:[%s1506_s9 + $0xb0] sm:$0xff]  ;;  %359 = vst [vmem:[%s1511_s10 + $0x48] sm:$0xff] %v358_v11 }
  0x33   : > { %361 = vst [vmem:[%s1511_s10 + $0x50] sm:$0xff] %v360_v12  ;;  %363 = vst [vmem:[%s1511_s10 + $0x58] sm:$0xff] %v362_v13  ;;  %v364_v14 = vld [vmem:[%s1506_s9 + $0xc0] sm:$0xff]  ;;  %v366_v15 = vld [vmem:[%s1506_s9 + $0xd0] sm:$0xff] }
  0x34   : > { %v368_v16 = vld [vmem:[%s1506_s9 + $0xe0] sm:$0xff]  ;;  %365 = vst [vmem:[%s1511_s10 + $0x60] sm:$0xff] %v364_v14  ;;  %367 = vst [vmem:[%s1511_s10 + $0x68] sm:$0xff] %v366_v15  ;;  %v370_v17 = vld [vmem:[%s1506_s9 + $0xf0] sm:$0xff] }
  0x35   : > { %369 = vst [vmem:[%s1511_s10 + $0x70] sm:$0xff] %v368_v16  ;;  %v372_v18 = vld [vmem:[%s1506_s9 + $0x100] sm:$0xff]  ;;  %v374_v19 = vld [vmem:[%s1506_s9 + $0x110] sm:$0xff]  ;;  %371 = vst [vmem:[%s1511_s10 + $0x78] sm:$0xff] %v370_v17 }
  0x36   : > { %373 = vst [vmem:[%s1511_s10 + $0x80] sm:$0xff] %v372_v18  ;;  %375 = vst [vmem:[%s1511_s10 + $0x88] sm:$0xff] %v374_v19  ;;  %v376_v20 = vld [vmem:[%s1506_s9 + $0x120] sm:$0xff]  ;;  %v378_v21 = vld [vmem:[%s1506_s9 + $0x130] sm:$0xff] }
  0x37   : > { %v380_v22 = vld [vmem:[%s1506_s9 + $0x140] sm:$0xff]  ;;  %377 = vst [vmem:[%s1511_s10 + $0x90] sm:$0xff] %v376_v20  ;;  %379 = vst [vmem:[%s1511_s10 + $0x98] sm:$0xff] %v378_v21  ;;  %v382_v23 = vld [vmem:[%s1506_s9 + $0x150] sm:$0xff] }
  0x38   : > { %381 = vst [vmem:[%s1511_s10 + $0xa0] sm:$0xff] %v380_v22  ;;  %v384_v24 = vld [vmem:[%s1506_s9 + $0x160] sm:$0xff]  ;;  %v386_v25 = vld [vmem:[%s1506_s9 + $0x170] sm:$0xff]  ;;  %383 = vst [vmem:[%s1511_s10 + $0xa8] sm:$0xff] %v382_v23 }
  0x39   : > { %385 = vst [vmem:[%s1511_s10 + $0xb0] sm:$0xff] %v384_v24  ;;  %387 = vst [vmem:[%s1511_s10 + $0xb8] sm:$0xff] %v386_v25  ;;  %v388_v26 = vld [vmem:[%s1506_s9 + $0x180] sm:$0xff]  ;;  %v390_v27 = vld [vmem:[%s1506_s9 + $0x190] sm:$0xff] }
  0x3a   : > { %v392_v28 = vld [vmem:[%s1506_s9 + $0x1a0] sm:$0xff]  ;;  %389 = vst [vmem:[%s1511_s10 + $0xc0] sm:$0xff] %v388_v26  ;;  %391 = vst [vmem:[%s1511_s10 + $0xc8] sm:$0xff] %v390_v27  ;;  %v394_v29 = vld [vmem:[%s1506_s9 + $0x1b0] sm:$0xff] }
  0x3b   : > { %393 = vst [vmem:[%s1511_s10 + $0xd0] sm:$0xff] %v392_v28  ;;  %v396_v30 = vld [vmem:[%s1506_s9 + $0x1c0] sm:$0xff]  ;;  %v398_v31 = vld [vmem:[%s1506_s9 + $0x1d0] sm:$0xff]  ;;  %395 = vst [vmem:[%s1511_s10 + $0xd8] sm:$0xff] %v394_v29 }
  0x3c   : > { %397 = vst [vmem:[%s1511_s10 + $0xe0] sm:$0xff] %v396_v30  ;;  %399 = vst [vmem:[%s1511_s10 + $0xe8] sm:$0xff] %v398_v31  ;;  %v400_v32 = vld [vmem:[%s1506_s9 + $0x1e0] sm:$0xff]  ;;  %v402_v33 = vld [vmem:[%s1506_s9 + $0x1f0] sm:$0xff] }
  0x3d   : > { %401 = vst [vmem:[%s1511_s10 + $0xf0] sm:$0xff] %v400_v32  ;;  %403 = vst [vmem:[%s1511_s10 + $0xf8] sm:$0xff] %v402_v33 }
  0x3e PF: > { %p1082_p0 = scmp.ge.s32.totalorder %s1364_s25, 1  ;;  %p408_p1 = scmp.lt.s32.totalorder %s1364_s25, 109 }
  0x40   : > { %p409_p2 = pnand %p1082_p0, %p408_p1 }
  0x41   : > { %s415_s20 = sand.u32 (!%p409_p2), 1, %s1340_s19   ;;  %s422_s27 = sand.u32 (!%p409_p2), 1, %s1332_s17  }
  0x42   : > { %412 = sbr.rel (%p409_p2) target bundleno = 396 (0x18c), region = 96  ;;  %s1578_s28 = sshll.u32 (!%p409_p2), %s415_s20, 4 }
  0x43   : > { %s1084_s7 = sshll.u32 (!%p409_p2), %s422_s27, 8  ;;  %s443_s8 = sand.u32 (!%p409_p2), 1, %s1324_s15  }
  0x44   : > { %s1086_s11 = sshll.u32 (!%p409_p2), %s1352_s22, 1  ;;  %s1085_s26 = sshll.u32 (!%p409_p2), %s443_s8, 4 }
  0x45   : > { %p477_p3 = scmp.lt.s32.totalorder (!%p409_p2), %s1086_s11, 3  ;;  %s417_s17 = scalar_lea.vmem (!%p409_p2), [#allocation3], %s1578_s28 }
  0x46   : > { %s1593_s20 = scalar_lea.vmem (!%p409_p2), [#allocation4], %s1084_s7  ;;  %s1595_s27 = scalar_lea.vmem (!%p409_p2), [#allocation5], %s1085_s26 }
  0x47   : > { %p1090_p4 = scmp.ne.s32.totalorder (!%p409_p2), %s1348_s21, 0 }
  0x49   : > { %s1716_s11 = smov (!%p477_p3, %s1086_s11), 3  ;;  %497 = sbr.rel (%p1090_p4) target bundleno = 80 (0x50), region = 108 }
  0x4a   : > { %s1087_s5 = sshll.u32 %s1716_s11, 3  ;;  %v1366_v34 = vmov (!%p1090_p4), 0.0  }
  0x4b   : > { %s1585_s30 = scalar_lea.vmem %s1685_s3, %s1087_s5  ;;  %s1590_s19 = scalar_lea.vmem %s1686_s4, %s1087_s5  ;;  %498 = vst [vmem:[#allocation2] sm:$0xff] (!%p1090_p4), %v1366_v34  ;;  %499 = vst [vmem:[#allocation2 + $0x8] sm:$0xff] (!%p1090_p4), %v1366_v34 }
  0x4c   : > { %500 = vst [vmem:[#allocation2 + $0x10] sm:$0xff] (!%p1090_p4), %v1366_v34  ;;  %501 = vst [vmem:[#allocation2 + $0x18] sm:$0xff] (!%p1090_p4), %v1366_v34 }
  0x50 PF: > { %v1227_v35 = vld [vmem:[%s1593_s20 + $0x4] ss:$8 sps:$4 sm:$0xff]   ;;  %v1229_v36 = vld [vmem:[%s1593_s20] ss:$8 sps:$4 sm:$0xff]   ;;  %v1230_v37 = vld [vmem:[%s1593_s20 + $0x14] ss:$8 sps:$4 sm:$0xff]  }
  0x51   : > { %710 = vmatprep.subr.bf16.mxu0 %v1227_v35  ;;  %v1232_v38 = vld [vmem:[%s1593_s20 + $0x10] ss:$8 sps:$4 sm:$0xff]   ;;  %v1233_v39 = vld [vmem:[%s1593_s20 + $0x24] ss:$8 sps:$4 sm:$0xff]   ;;  %v1235_v40 = vld [vmem:[%s1593_s20 + $0x20] ss:$8 sps:$4 sm:$0xff]  }
  0x52   : > { %711 = vmatpush1.bf16.msra.mxu0 %v1229_v36  ;;  %v1236_v41 = vld [vmem:[%s1593_s20 + $0x34] ss:$8 sps:$4 sm:$0xff]   ;;  %v1238_v42 = vld [vmem:[%s1593_s20 + $0x30] ss:$8 sps:$4 sm:$0xff]   ;;  %v1239_v43 = vld [vmem:[%s1593_s20 + $0x44] ss:$8 sps:$4 sm:$0xff]  }
  0x53   : > { %712 = vmatprep.subr.bf16.mxu0 %v1230_v37  ;;  %v1241_v44 = vld [vmem:[%s1593_s20 + $0x40] ss:$8 sps:$4 sm:$0xff]   ;;  %v1242_v45 = vld [vmem:[%s1593_s20 + $0x54] ss:$8 sps:$4 sm:$0xff]   ;;  %v1244_v46 = vld [vmem:[%s1593_s20 + $0x50] ss:$8 sps:$4 sm:$0xff]  }
  0x54   : > { %v1245_v47 = vld [vmem:[%s1593_s20 + $0x64] ss:$8 sps:$4 sm:$0xff]   ;;  %v1247_v49 = vld [vmem:[%s1593_s20 + $0x60] ss:$8 sps:$4 sm:$0xff]   ;;  %v1248_v50 = vld [vmem:[%s1593_s20 + $0x74] ss:$8 sps:$4 sm:$0xff]  }
  0x55   : > { %v1277_v48 = vld [vmem:[%s417_s17 + $0x4] ss:$8 sps:$4 sm:$0xff]   ;;  %v1250_v51 = vld [vmem:[%s1593_s20 + $0x70] ss:$8 sps:$4 sm:$0xff]   ;;  %v1253_v53 = vld [vmem:[%s1593_s20 + $0x80] ss:$8 sps:$4 sm:$0xff]  }
  0x56   : > { %713 = vmatpush1.bf16.msra.mxu0 %v1232_v38  ;;  %742 = vmatprep.mubr.bf16.mxu0 %v1277_v48  ;;  %v1251_v52 = vld [vmem:[%s1593_s20 + $0x84] ss:$8 sps:$4 sm:$0xff]   ;;  %v1254_v54 = vld [vmem:[%s1593_s20 + $0x94] ss:$8 sps:$4 sm:$0xff]   ;;  %v1256_v55 = vld [vmem:[%s1593_s20 + $0x90] ss:$8 sps:$4 sm:$0xff]  }
  0x57   : > { %714 = vmatprep.subr.bf16.mxu0 %v1233_v39  ;;  %v1257_v56 = vld [vmem:[%s1593_s20 + $0xa4] ss:$8 sps:$4 sm:$0xff]   ;;  %v1259_v57 = vld [vmem:[%s1593_s20 + $0xa0] ss:$8 sps:$4 sm:$0xff]   ;;  %v1260_v58 = vld [vmem:[%s1593_s20 + $0xb4] ss:$8 sps:$4 sm:$0xff]  }
  0x58   : > { %v1262_v59 = vld [vmem:[%s1593_s20 + $0xb0] ss:$8 sps:$4 sm:$0xff]   ;;  %v1263_v60 = vld [vmem:[%s1593_s20 + $0xc4] ss:$8 sps:$4 sm:$0xff]   ;;  %v1265_v61 = vld [vmem:[%s1593_s20 + $0xc0] ss:$8 sps:$4 sm:$0xff]  }
  0x59   : > { %v1266_v62 = vld [vmem:[%s1593_s20 + $0xd4] ss:$8 sps:$4 sm:$0xff]   ;;  %v1268_v63 = vld [vmem:[%s1593_s20 + $0xd0] ss:$8 sps:$4 sm:$0xff]   ;;  %v1269_v0 = vld [vmem:[%s1593_s20 + $0xe4] ss:$8 sps:$4 sm:$0xff]  }
  0x5a   : > { %715 = vmatpush1.bf16.msra.mxu0 %v1235_v40  ;;  %v1271_v1 = vld [vmem:[%s1593_s20 + $0xe0] ss:$8 sps:$4 sm:$0xff]   ;;  %v1272_v2 = vld [vmem:[%s1593_s20 + $0xf4] ss:$8 sps:$4 sm:$0xff]   ;;  %v1274_v3 = vld [vmem:[%s1593_s20 + $0xf0] ss:$8 sps:$4 sm:$0xff]  }
  0x5b   : > { %716 = vmatprep.subr.bf16.mxu0 %v1236_v41  ;;  %v1275_v4 = vld [vmem:[%s417_s17] ss:$8 sps:$4 sm:$0xff]   ;;  %p1125_p5 = scmp.ne.s32.totalorder %s1348_s21, 53 }
  0x5c   : > { %v502_v5 = vld [vmem:[#allocation2] sm:$0xff]  ;;  %v503_v6 = vld [vmem:[#allocation2 + $0x8] sm:$0xff]  ;;  %v504_v8 = vld [vmem:[#allocation2 + $0x10] sm:$0xff] }
  0x5d   : > { %v505_v11 = vld [vmem:[#allocation2 + $0x18] sm:$0xff] }
  0x5e   : > { %717 = vmatpush1.bf16.msra.mxu0 %v1238_v42 }
  0x5f   : > { %718 = vmatprep.subr.bf16.mxu0 %v1239_v43 }
  0x62   : > { %719 = vmatpush1.bf16.msra.mxu0 %v1241_v44 }
  0x63   : > { %720 = vmatprep.subr.bf16.mxu0 %v1242_v45 }
  0x66   : > { %721 = vmatpush1.bf16.msra.mxu0 %v1244_v46 }
  0x67   : > { %722 = vmatprep.subr.bf16.mxu0 %v1245_v47 }
  0x6a   : > { %723 = vmatpush1.bf16.msra.mxu0 %v1247_v49 }
  0x6b   : > { %724 = vmatprep.subr.bf16.mxu0 %v1248_v50 }
  0x6e   : > { %725 = vmatpush1.bf16.msra.mxu0 %v1250_v51 }
  0x6f   : > { %726 = vmatprep.subr.bf16.mxu0 %v1251_v52 }
  0x72   : > { %727 = vmatpush1.bf16.msra.mxu0 %v1253_v53 }
  0x73   : > { %728 = vmatprep.subr.bf16.mxu0 %v1254_v54 }
  0x76   : > { %729 = vmatpush1.bf16.msra.mxu0 %v1256_v55 }
  0x77   : > { %730 = vmatprep.subr.bf16.mxu0 %v1257_v56 }
  0x7a   : > { %731 = vmatpush1.bf16.msra.mxu0 %v1259_v57 }
  0x7b   : > { %732 = vmatprep.subr.bf16.mxu0 %v1260_v58 }
  0x7e   : > { %733 = vmatpush1.bf16.msra.mxu0 %v1262_v59 }
  0x7f   : > { %734 = vmatprep.subr.bf16.mxu0 %v1263_v60 }
  0x82   : > { %735 = vmatpush1.bf16.msra.mxu0 %v1265_v61 }
  0x83   : > { %736 = vmatprep.subr.bf16.mxu0 %v1266_v62 }
  0x86   : > { %737 = vmatpush1.bf16.msra.mxu0 %v1268_v63 }
  0x87   : > { %738 = vmatprep.subr.bf16.mxu0 %v1269_v0 }
  0x8a   : > { %739 = vmatpush1.bf16.msra.mxu0 %v1271_v1 }
  0x8b   : > { %740 = vmatprep.subr.bf16.mxu0 %v1272_v2 }
  0x8e   : > { %741 = vmatpush1.bf16.msra.mxu0 %v1274_v3 }
  0x91   : > { %743 = vmatmul.mubr.bf16.vlgmr.msra.gmra.mrb[0].mxu0 %v1275_v4 }
 0x164   : > { %v744_v7 = vpop.f32.mrb[0].mxu0  ;;  %764 = sbr.rel (%p1125_p5) target bundleno = 389 (0x185), region = 112 }
 0x165   : > { %v753_v9 = vadd.f32 %v744_v7, %v502_v5  ;;  %v746_v10 = vpop.f32.mrb[1].mxu0 }
 0x166   : > { %v754_v12 = vadd.f32 %v746_v10, %v503_v6  ;;  %v748_v13 = vpop.f32.mrb[2].mxu0 }
 0x167   : > { %757 = vst [vmem:[#allocation2] sm:$0xff] %v753_v9  ;;  %v755_v14 = vadd.f32 %v748_v13, %v504_v8  ;;  %v750_v15 = vpop.f32.mrb[3].mxu0 }
 0x168   : > { %758 = vst [vmem:[#allocation2 + $0x8] sm:$0xff] %v754_v12  ;;  %v756_v16 = vadd.f32 %v750_v15, %v505_v11 }
 0x169   : > { %759 = vst [vmem:[#allocation2 + $0x10] sm:$0xff] %v755_v14 }
 0x16a   : > { %760 = vst [vmem:[#allocation2 + $0x18] sm:$0xff] %v756_v16 }
 0x16e   : > { %v765_v17 = vld [vmem:[#allocation2] sm:$0xff] }
 0x16f   : > { %v766_v19 = vld [vmem:[#allocation2 + $0x8] sm:$0xff]  ;;  %v799_v21 = vmul.f32 %v765_v17, %v765_v17 }
 0x170   : > { %v767_v18 = vld [vmem:[#allocation2 + $0x10] sm:$0xff]  ;;  %v1135_v23 = vpack.c.bf16 %v766_v19, %v765_v17  ;;  %v800_v25 = vmul.f32 %v766_v19, %v766_v19 }
 0x171   : > { %v783_v20 = vadd.f32 %v767_v18, %v765_v17  ;;  %v801_v22 = vmul.f32 %v767_v18, %v767_v18  ;;  %v768_v24 = vld [vmem:[#allocation2 + $0x18] sm:$0xff] }
 0x172   : > { %v1136_v26 = vpack.c.bf16 %v768_v24, %v767_v18  ;;  %v790_v27 = vadd.f32 %v768_v24, %v766_v19  ;;  %v802_v28 = vmul.f32 %v768_v24, %v768_v24  ;;  %781 = vst [vmem:[%s1595_s27] sm:$0xff] %v1135_v23 }
 0x173   : > { %v784_v29 = vrot.slane %v783_v20, 4  ;;  %v803_v30 = vadd.f32 %v801_v22, %v799_v21 }
 0x174   : > { %782 = vst [vmem:[%s1595_s27 + $0x8] sm:$0xff] %v1136_v26  ;;  %v791_v31 = vrot.slane %v790_v27, 4  ;;  %v810_v32 = vadd.f32 %v802_v28, %v800_v25 }
 0x175   : > { %v785_v33 = vadd.f32 %v784_v29, %v783_v20  ;;  %v804_v34 = vrot.slane %v803_v30, 4 }
 0x176   : > { %v792_v35 = vadd.f32 %v791_v31, %v790_v27  ;;  %v811_v36 = vrot.slane %v810_v32, 4 }
 0x177   : > { %v786_v37 = vrot.slane %v785_v33, 2  ;;  %v805_v38 = vadd.f32 %v804_v34, %v803_v30 }
 0x178   : > { %v793_v39 = vrot.slane %v792_v35, 2  ;;  %v812_v40 = vadd.f32 %v811_v36, %v810_v32 }
 0x179   : > { %v787_v41 = vadd.f32 %v786_v37, %v785_v33  ;;  %v806_v42 = vrot.slane %v805_v38, 2 }
 0x17a   : > { %v794_v43 = vadd.f32 %v793_v39, %v792_v35  ;;  %v813_v44 = vrot.slane %v812_v40, 2 }
 0x17b   : > { %v788_v45 = vrot.slane %v787_v41, 1  ;;  %v807_v46 = vadd.f32 %v806_v42, %v805_v38 }
 0x17c   : > { %v795_v47 = vrot.slane %v794_v43, 1  ;;  %v814_v48 = vadd.f32 %v813_v44, %v812_v40 }
 0x17d   : > { %v789_v49 = vadd.f32 %v788_v45, %v787_v41  ;;  %v808_v50 = vrot.slane %v807_v46, 1 }
 0x17e   : > { %v796_v51 = vadd.f32 %v795_v47, %v794_v43  ;;  %v815_v52 = vrot.slane %v814_v48, 1 }
 0x17f   : > { %v797_v53 = vmul.f32 0.125, %v789_v49  ;;  %v809_v54 = vadd.f32 %v808_v50, %v807_v46 }
 0x180   : > { %v798_v55 = vmul.f32 0.125, %v796_v51  ;;  %v816_v56 = vadd.f32 %v815_v52, %v814_v48 }
 0x181   : > { %819 = vst [vmem:[%s1585_s30] sm:$0xff] %v797_v53  ;;  %v817_v57 = vmul.f32 0.125, %v809_v54 }
 0x182   : > { %820 = vst [vmem:[%s1585_s30 + $0x8] sm:$0xff] %v798_v55  ;;  %v818_v58 = vmul.f32 0.125, %v816_v56 }
 0x183   : > { %821 = vst [vmem:[%s1590_s19] sm:$0xff] %v817_v57 }
 0x184   : > { %822 = vst [vmem:[%s1590_s19 + $0x8] sm:$0xff] %v818_v58 }
 0x185 PF: > { %847 = sbr.rel (!%p1486_p12) target bundleno = 396 (0x18c), region = 116  ;;  %s1137_s15 = sshll.u32 (%p1486_p12), %s1352_s22, 3  ;;  %v883_v59 = vld [vmem:[%s1595_s27] sm:$0xff] (%p1486_p12)  ;;  %v885_v60 = vld [vmem:[%s1595_s27 + $0x8] sm:$0xff] (%p1486_p12) }
 0x186   : > { %s853_s7 = scalar_lea.vmem (%p1486_p12), %s1684_s2, %s1137_s15 }
 0x187   : > { %884 = vst [vmem:[%s853_s7] sm:$0xff] (%p1486_p12), %v883_v59  ;;  %886 = vst [vmem:[%s853_s7 + $0x10] sm:$0xff] (%p1486_p12), %v885_v60 }
 0x18c PF: > { %s15_s25 = sadd.s32 1, %s1364_s25   ;;  %s1697_s19 = sld [smem:[#allocation6_spill]] }
 0x18d   : > { %p12_p6 = scmp.ge.s32.totalorder %s15_s25, 110   ;;  %s1698_s20 = sld [smem:[#allocation9_spill]] }
 0x18e   : > { %s1699_s14 = sld [smem:[#allocation7_spill]]  ;;  %s1700_s8 = sld [smem:[#allocation8_spill]] }
 0x18f   : > { %s1701_s15 = smov %s1328_s16  ;;  %s1702_s16 = smov %s1484_s13 }
 0x190   : > { %s1703_s17 = smov %s1336_s18  ;;  %s1704_s18 = smov %s1481_s12 }
 0x191   : > { %s1705_s21 = smov %s1356_s23  ;;  %s1706_s22 = smov %s1360_s24 }
 0x192   :  { %14 = sbr.rel (!%p12_p6) target bundleno = 6 (0x6), region = 217 }
 0x194   : > { %s1707_s23 = smov %s1699_s14  ;;  %s1708_s24 = smov %s1700_s8 }

// kernel: _lambda_.52
= control target key start
LH: loop header
LB: loop body
LE: loop exit
PB: predicated region body
PF: predicated region fallthrough
CT: control target
= control target key end

     0   :  { %v37_v0 = vlaneseq  ;;  %s306_s0 = inlined_call_operand.vmem [shape: bf16[16,512], index: 0, kind: input, shape index: {}]   ;;  %s307_s1 = inlined_call_operand.vmem [shape: bf16[16,512], index: 1, kind: input, shape index: {}]   ;;  %s308_s2 = inlined_call_operand.vmem [shape: f32[1,512], index: 2, kind: input, shape index: {}]   ;;  %s309_s3 = inlined_call_operand.vmem [shape: f32[1,512], index: 3, kind: input, shape index: {}]   ;;  %s310_s4 = inlined_call_operand.vmem [shape: f32[1,512], index: 4, kind: input, shape index: {}]   ;;  %s311_s5 = inlined_call_operand.vmem [shape: f32[1,512], index: 5, kind: input, shape index: {}]   ;;  %s312_s6 = inlined_call_operand.vmem [shape: bf16[16,512], index: 6, kind: output, shape index: {}]  }
   0x1   :  { %v23_v1 = vld [vmem:[%s306_s0] sm:$0xff]  ;;  %v24_v10 = vld [vmem:[%s306_s0 + $0x8] sm:$0xff]  ;;  %v25_v42 = vld [vmem:[%s306_s0 + $0x10] sm:$0xff] }
   0x2   :  { %v35_v2 = vld [vmem:[%s308_s2] sm:$0xf]  ;;  %v38_v3 = vshrl.u32 %v37_v0, 7  ;;  %v27_v5 = vunpack.c.l.bf16 %v23_v1  ;;  %v28_v6 = vunpack.c.h.bf16 %v23_v1  ;;  %v96_v11 = vld [vmem:[%s307_s1 + $0x8] sm:$0xff]  ;;  %v29_v16 = vunpack.c.l.bf16 %v24_v10  ;;  %v97_v47 = vld [vmem:[%s307_s1 + $0x10] sm:$0xff] }
   0x3   :  { %v95_v4 = vld [vmem:[%s307_s1] sm:$0xff]  ;;  %v30_v17 = vunpack.c.h.bf16 %v24_v10  ;;  %v101_v20 = vunpack.c.l.bf16 %v96_v11  ;;  %v102_v21 = vunpack.c.h.bf16 %v96_v11  ;;  %v31_v54 = vunpack.c.l.bf16 %v25_v42  ;;  %v26_v0 = vld [vmem:[%s306_s0 + $0x18] sm:$0xff] }
   0x4   :  { %v65_v7 = vld [vmem:[%s309_s3] sm:$0xf]  ;;  %v99_v8 = vunpack.c.l.bf16 %v95_v4  ;;  %v100_v9 = vunpack.c.h.bf16 %v95_v4  ;;  %v39_v12 = vsub.s32 0, %v38_v3  ;;  %v43_v13 = vsub.s32 1, %v38_v3  ;;  %v98_v1 = vld [vmem:[%s307_s1 + $0x18] sm:$0xff] }
   0x5   :  { %v107_v14 = vld [vmem:[%s310_s4] sm:$0xf]  ;;  %v47_v18 = vsub.s32 2, %v38_v3  ;;  %v51_v19 = vsub.s32 3, %v38_v3  ;;  %v32_v55 = vunpack.c.h.bf16 %v25_v42  ;;  %v103_v58 = vunpack.c.l.bf16 %v97_v47 }
   0x6   :  { %v145_v15 = vld [vmem:[%s311_s5] sm:$0xf]  ;;  %v40_v22 = vrot.slane %v35_v2, %v39_v12  ;;  %v44_v23 = vrot.slane %v35_v2, %v43_v13  ;;  %v70_v24 = vrot.slane %v65_v7, %v39_v12  ;;  %v74_v25 = vrot.slane %v65_v7, %v43_v13 }
   0x7   :  { %v112_v26 = vrot.slane %v107_v14, %v39_v12  ;;  %v116_v27 = vrot.slane %v107_v14, %v43_v13  ;;  %v150_v28 = vrot.slane %v145_v15, %v39_v12  ;;  %v154_v29 = vrot.slane %v145_v15, %v43_v13 }
   0x8   :  { %v57_v30 = vmul.f32 %v40_v22, %v27_v5  ;;  %v58_v31 = vmul.f32 %v44_v23, %v28_v6  ;;  %v48_v32 = vrot.slane %v35_v2, %v47_v18  ;;  %v52_v33 = vrot.slane %v35_v2, %v51_v19 }
   0x9   :  { %v129_v34 = vmul.f32 %v112_v26, %v99_v8  ;;  %v130_v35 = vmul.f32 %v116_v27, %v100_v9  ;;  %v78_v36 = vrot.slane %v65_v7, %v47_v18  ;;  %v82_v37 = vrot.slane %v65_v7, %v51_v19 }
   0xa   :  { %v87_v38 = vadd.f32 %v70_v24, %v57_v30  ;;  %v88_v39 = vadd.f32 %v74_v25, %v58_v31  ;;  %v59_v40 = vmul.f32 %v48_v32, %v29_v16  ;;  %v60_v41 = vmul.f32 %v52_v33, %v30_v17 }
   0xb   :  { %v120_v43 = vrot.slane %v107_v14, %v47_v18  ;;  %v124_v44 = vrot.slane %v107_v14, %v51_v19  ;;  %v158_v45 = vrot.slane %v145_v15, %v47_v18  ;;  %v162_v46 = vrot.slane %v145_v15, %v51_v19 }
   0xc   :  { %v137_v48 = vadd.f32 %v129_v34, %v87_v38  ;;  %v138_v49 = vadd.f32 %v130_v35, %v88_v39  ;;  %v89_v50 = vadd.f32 %v78_v36, %v59_v40  ;;  %v90_v51 = vadd.f32 %v82_v37, %v60_v41 }
   0xd   :  { %v131_v52 = vmul.f32 %v120_v43, %v101_v20  ;;  %v132_v53 = vmul.f32 %v124_v44, %v102_v21  ;;  %v104_v59 = vunpack.c.h.bf16 %v97_v47  ;;  %v61_v62 = vmul.f32 %v40_v22, %v31_v54 }
   0xe   :  { %v167_v56 = vadd.f32 %v150_v28, %v137_v48  ;;  %v168_v57 = vadd.f32 %v154_v29, %v138_v49  ;;  %v62_v63 = vmul.f32 %v44_v23, %v32_v55  ;;  %v133_v4 = vmul.f32 %v112_v26, %v103_v58 }
   0xf   :  { %v139_v60 = vadd.f32 %v131_v52, %v89_v50  ;;  %v140_v61 = vadd.f32 %v132_v53, %v90_v51  ;;  %v134_v5 = vmul.f32 %v116_v27, %v104_v59  ;;  %v91_v8 = vadd.f32 %v70_v24, %v61_v62 }
  0x10   :  { %v175_v2 = vmax.f32 %v167_v56, 0.0  ;;  %v176_v3 = vmax.f32 %v168_v57, 0.0  ;;  %v92_v9 = vadd.f32 %v74_v25, %v62_v63  ;;  %v33_v11 = vunpack.c.l.bf16 %v26_v0 }
  0x11   :  { %v169_v6 = vadd.f32 %v158_v45, %v139_v60  ;;  %v170_v7 = vadd.f32 %v162_v46, %v140_v61  ;;  %v34_v12 = vunpack.c.h.bf16 %v26_v0  ;;  %v105_v13 = vunpack.c.l.bf16 %v98_v1 }
  0x12   :  { %v219_v10 = vpack.c.bf16 %v176_v3, %v175_v2  ;;  %v141_v16 = vadd.f32 %v133_v4, %v91_v8  ;;  %v142_v17 = vadd.f32 %v134_v5, %v92_v9  ;;  %v63_v18 = vmul.f32 %v48_v32, %v33_v11 }
  0x13   :  { %v177_v14 = vmax.f32 %v169_v6, 0.0  ;;  %v178_v15 = vmax.f32 %v170_v7, 0.0  ;;  %v64_v19 = vmul.f32 %v52_v33, %v34_v12  ;;  %v106_v20 = vunpack.c.h.bf16 %v98_v1 }
  0x14   :  { %207 = vst [vmem:[%s312_s6] sm:$0xff] %v219_v10  ;;  %v135_v21 = vmul.f32 %v120_v43, %v105_v13  ;;  %v171_v23 = vadd.f32 %v150_v28, %v141_v16  ;;  %v172_v24 = vadd.f32 %v154_v29, %v142_v17  ;;  %v93_v25 = vadd.f32 %v78_v36, %v63_v18 }
  0x15   :  { %v220_v22 = vpack.c.bf16 %v178_v15, %v177_v14  ;;  %v94_v26 = vadd.f32 %v82_v37, %v64_v19  ;;  %v136_v27 = vmul.f32 %v124_v44, %v106_v20 }
  0x16   :  { %v179_v30 = vmax.f32 %v171_v23, 0.0  ;;  %v180_v31 = vmax.f32 %v172_v24, 0.0  ;;  %v143_v34 = vadd.f32 %v135_v21, %v93_v25 }
  0x17   :  { %208 = vst [vmem:[%s312_s6 + $0x8] sm:$0xff] %v220_v22  ;;  %v144_v35 = vadd.f32 %v136_v27, %v94_v26 }
  0x18   :  { %v221_v38 = vpack.c.bf16 %v180_v31, %v179_v30  ;;  %v173_v39 = vadd.f32 %v158_v45, %v143_v34 }
  0x19   :  { %v174_v32 = vadd.f32 %v162_v46, %v144_v35 }
  0x1a   :  { %209 = vst [vmem:[%s312_s6 + $0x10] sm:$0xff] %v221_v38  ;;  %v181_v28 = vmax.f32 %v173_v39, 0.0 }
  0x1b   :  { %v182_v29 = vmax.f32 %v174_v32, 0.0 }
  0x1d   :  { %v222_v33 = vpack.c.bf16 %v182_v29, %v181_v28 }
  0x1f   :  { %210 = vst [vmem:[%s312_s6 + $0x18] sm:$0xff] %v222_v33 }

// kernel: _lambda_.53
= control target key start
LH: loop header
LB: loop body
LE: loop exit
PB: predicated region body
PF: predicated region fallthrough
CT: control target
= control target key end

     0   :  { %s1118_s15 = smov 0   ;;  %s1120_s16 = smov 0   ;;  %s1244_s0 = inlined_call_operand.vmem [shape: bf16[16,512], index: 0, kind: input, shape index: {}]   ;;  %s1245_s1 = inlined_call_operand.vmem [shape: bf16[512,256], index: 1, kind: input, shape index: {}]   ;;  %s1246_s2 = inlined_call_operand.vmem [shape: bf16[16,256], index: 2, kind: output, shape index: {0}]   ;;  %s1247_s3 = inlined_call_operand.vmem [shape: f32[8,256], index: 3, kind: output, shape index: {1}]   ;;  %s1248_s4 = inlined_call_operand.vmem [shape: f32[8,256], index: 4, kind: output, shape index: {2}]  }
   0x1   :  { %s1122_s17 = smov 0   ;;  %s1124_s18 = smov 0  }
   0x2   :  { %s1126_s19 = smov 0  }
   0x3 LB: > { %s27_s20 = sadd.s32 1, %s1086_s18  ;;  %p50_p1 = scmp.ne.s32.totalorder %s1078_s16, %s1074_s15  ;;  %s1090_s19 = sphi %s1126_s19, %s15_s19   ;;  %s1086_s18 = sphi %s1124_s18, %s1252_s18   ;;  %s1082_s17 = sphi %s1122_s17, %s1251_s17   ;;  %s1078_s16 = sphi %s1120_s16, %s1250_s16   ;;  %s1074_s15 = sphi %s1118_s15, %s1249_s15  }
   0x4   : > { %p28_p0 = scmp.ge.s32.totalorder %s27_s20, 2  ;;  %p51_p2 = scmp.eq.s32.totalorder %s1090_s19, 0 }
   0x5   : > { %s43_s22 = sadd.s32 1, %s1078_s16  ;;  %p901_p5 = scmp.ge.s32.totalorder %s1090_s19, 2 }
   0x6   : > { %s1254_s20 = smov (%p28_p0, %s27_s20), 0  ;;  %p52_p3 = por %p51_p2, %p50_p1 }
   0x7   : > { %s39_s21 = ssub.s32 %s1086_s18, %s1254_s20  ;;  %188 = sbr.rel (%p901_p5) target bundleno = 21 (0x15), region = 16 }
   0x8   : > { %p41_p4 = scmp.eq.s32.totalorder %s39_s21, 0 }
   0xa   : > { %s1153_s23 = scalar_select %p41_p4, %s1078_s16, %s43_s22  }
   0xe   : > { %191 = sbr.rel (!%p52_p3) target bundleno = 21 (0x15), region = 20  ;;  %s193_s24 = sand.u32 (%p52_p3), 1, %s1078_s16  }
   0xf   : > { %s956_s25 = sshll.u32 (%p52_p3), %s1086_s18, 3  ;;  %s902_s26 = sshll.u32 (%p52_p3), %s193_s24, 4 }
  0x10   : > { %s201_s29 = scalar_lea.vmem (%p52_p3), %s1244_s0, %s956_s25  ;;  %s195_s30 = scalar_lea.vmem (%p52_p3), [#allocation3], %s902_s26 }
  0x11   : > { %v231_v0 = vld [vmem:[%s201_s29] sm:$0xff] (%p52_p3)  ;;  %v233_v1 = vld [vmem:[%s201_s29 + $0x10] sm:$0xff] (%p52_p3) }
  0x12   : > { %232 = vst [vmem:[%s195_s30] sm:$0xff] (%p52_p3), %v231_v0  ;;  %234 = vst [vmem:[%s195_s30 + $0x8] sm:$0xff] (%p52_p3), %v233_v1 }
  0x15 PF: > { %p905_p6 = scmp.ge.s32.totalorder %s1090_s19, 1  ;;  %p254_p7 = scmp.lt.s32.totalorder %s1090_s19, 3 }
  0x17   : > { %p255_p8 = pnand %p905_p6, %p254_p7 }
  0x18   : > { %s261_s5 = sand.u32 (!%p255_p8), 1, %s1074_s15   ;;  %s907_s6 = sshll.u32 (!%p255_p8), %s1082_s17, 5 }
  0x19   : > { %258 = sbr.rel (%p255_p8) target bundleno = 348 (0x15c), region = 62  ;;  %s1165_s7 = sshll.u32 (!%p255_p8), %s261_s5, 4 }
  0x1a   : > { %p323_p9 = scmp.lt.s32.totalorder (!%p255_p8), %s907_s6, 63  ;;  %s263_s12 = scalar_lea.vmem (!%p255_p8), [#allocation3], %s1165_s7 }
  0x1b   : > { %p910_p10 = scmp.ne.s32.totalorder (!%p255_p8), %s1082_s17, 0 }
  0x20   : > { %s1256_s6 = smov (!%p323_p9, %s907_s6), 63  ;;  %368 = sbr.rel (%p910_p10) target bundleno = 39 (0x27), region = 70 }
  0x21   : > { %s957_s8 = sshll.u32 %s1256_s6, 3  ;;  %v1092_v2 = vmov (!%p910_p10), 0.0  }
  0x22   : > { %s1170_s11 = scalar_lea.vmem %s1245_s1, %s957_s8  ;;  %369 = vst [vmem:[#allocation2] sm:$0xff] (!%p910_p10), %v1092_v2  ;;  %370 = vst [vmem:[#allocation2 + $0x8] sm:$0xff] (!%p910_p10), %v1092_v2 }
  0x23   : > { %371 = vst [vmem:[#allocation2 + $0x10] sm:$0xff] (!%p910_p10), %v1092_v2  ;;  %372 = vst [vmem:[#allocation2 + $0x18] sm:$0xff] (!%p910_p10), %v1092_v2 }
  0x27 PF: > { %v1001_v3 = vld [vmem:[%s1170_s11 + $0x4] ss:$8 sps:$4 sm:$0xff]   ;;  %v1003_v4 = vld [vmem:[%s1170_s11] ss:$8 sps:$4 sm:$0xff]   ;;  %v1004_v5 = vld [vmem:[%s1170_s11 + $0x14] ss:$8 sps:$4 sm:$0xff]  }
  0x28   : > { %581 = vmatprep.subr.bf16.mxu0 %v1001_v3  ;;  %v1006_v6 = vld [vmem:[%s1170_s11 + $0x10] ss:$8 sps:$4 sm:$0xff]   ;;  %v1007_v7 = vld [vmem:[%s1170_s11 + $0x24] ss:$8 sps:$4 sm:$0xff]   ;;  %v1009_v8 = vld [vmem:[%s1170_s11 + $0x20] ss:$8 sps:$4 sm:$0xff]  }
  0x29   : > { %582 = vmatpush1.bf16.msra.mxu0 %v1003_v4  ;;  %v1010_v9 = vld [vmem:[%s1170_s11 + $0x34] ss:$8 sps:$4 sm:$0xff]   ;;  %v1012_v10 = vld [vmem:[%s1170_s11 + $0x30] ss:$8 sps:$4 sm:$0xff]   ;;  %v1013_v11 = vld [vmem:[%s1170_s11 + $0x44] ss:$8 sps:$4 sm:$0xff]  }
  0x2a   : > { %583 = vmatprep.subr.bf16.mxu0 %v1004_v5  ;;  %v1015_v12 = vld [vmem:[%s1170_s11 + $0x40] ss:$8 sps:$4 sm:$0xff]   ;;  %v1016_v13 = vld [vmem:[%s1170_s11 + $0x54] ss:$8 sps:$4 sm:$0xff]   ;;  %v1018_v14 = vld [vmem:[%s1170_s11 + $0x50] ss:$8 sps:$4 sm:$0xff]  }
  0x2b   : > { %v1019_v15 = vld [vmem:[%s1170_s11 + $0x64] ss:$8 sps:$4 sm:$0xff]   ;;  %v1021_v17 = vld [vmem:[%s1170_s11 + $0x60] ss:$8 sps:$4 sm:$0xff]   ;;  %v1022_v18 = vld [vmem:[%s1170_s11 + $0x74] ss:$8 sps:$4 sm:$0xff]  }
  0x2c   : > { %v1051_v16 = vld [vmem:[%s263_s12 + $0x4] ss:$8 sps:$4 sm:$0xff]   ;;  %v1024_v19 = vld [vmem:[%s1170_s11 + $0x70] ss:$8 sps:$4 sm:$0xff]   ;;  %v1027_v21 = vld [vmem:[%s1170_s11 + $0x80] ss:$8 sps:$4 sm:$0xff]  }
  0x2d   : > { %584 = vmatpush1.bf16.msra.mxu0 %v1006_v6  ;;  %613 = vmatprep.mubr.bf16.mxu0 %v1051_v16  ;;  %v1025_v20 = vld [vmem:[%s1170_s11 + $0x84] ss:$8 sps:$4 sm:$0xff]   ;;  %v1028_v22 = vld [vmem:[%s1170_s11 + $0x94] ss:$8 sps:$4 sm:$0xff]   ;;  %v1030_v23 = vld [vmem:[%s1170_s11 + $0x90] ss:$8 sps:$4 sm:$0xff]  }
  0x2e   : > { %585 = vmatprep.subr.bf16.mxu0 %v1007_v7  ;;  %v1031_v24 = vld [vmem:[%s1170_s11 + $0xa4] ss:$8 sps:$4 sm:$0xff]   ;;  %v1033_v25 = vld [vmem:[%s1170_s11 + $0xa0] ss:$8 sps:$4 sm:$0xff]   ;;  %v1034_v26 = vld [vmem:[%s1170_s11 + $0xb4] ss:$8 sps:$4 sm:$0xff]  }
  0x2f   : > { %v1036_v27 = vld [vmem:[%s1170_s11 + $0xb0] ss:$8 sps:$4 sm:$0xff]   ;;  %v1037_v28 = vld [vmem:[%s1170_s11 + $0xc4] ss:$8 sps:$4 sm:$0xff]   ;;  %v1039_v29 = vld [vmem:[%s1170_s11 + $0xc0] ss:$8 sps:$4 sm:$0xff]  }
  0x30   : > { %v1040_v30 = vld [vmem:[%s1170_s11 + $0xd4] ss:$8 sps:$4 sm:$0xff]   ;;  %v1042_v31 = vld [vmem:[%s1170_s11 + $0xd0] ss:$8 sps:$4 sm:$0xff]   ;;  %v1043_v32 = vld [vmem:[%s1170_s11 + $0xe4] ss:$8 sps:$4 sm:$0xff]  }
  0x31   : > { %586 = vmatpush1.bf16.msra.mxu0 %v1009_v8  ;;  %v1045_v33 = vld [vmem:[%s1170_s11 + $0xe0] ss:$8 sps:$4 sm:$0xff]   ;;  %v1046_v34 = vld [vmem:[%s1170_s11 + $0xf4] ss:$8 sps:$4 sm:$0xff]   ;;  %v1048_v35 = vld [vmem:[%s1170_s11 + $0xf0] ss:$8 sps:$4 sm:$0xff]  }
  0x32   : > { %587 = vmatprep.subr.bf16.mxu0 %v1010_v9  ;;  %v1049_v36 = vld [vmem:[%s263_s12] ss:$8 sps:$4 sm:$0xff]   ;;  %p945_p11 = scmp.ne.s32.totalorder %s1082_s17, 1 }
  0x33   : > { %v373_v37 = vld [vmem:[#allocation2] sm:$0xff]  ;;  %v374_v38 = vld [vmem:[#allocation2 + $0x8] sm:$0xff]  ;;  %v375_v40 = vld [vmem:[#allocation2 + $0x10] sm:$0xff] }
  0x34   : > { %v376_v43 = vld [vmem:[#allocation2 + $0x18] sm:$0xff] }
  0x35   : > { %588 = vmatpush1.bf16.msra.mxu0 %v1012_v10 }
  0x36   : > { %589 = vmatprep.subr.bf16.mxu0 %v1013_v11 }
  0x39   : > { %590 = vmatpush1.bf16.msra.mxu0 %v1015_v12 }
  0x3a   : > { %591 = vmatprep.subr.bf16.mxu0 %v1016_v13 }
  0x3d   : > { %592 = vmatpush1.bf16.msra.mxu0 %v1018_v14 }
  0x3e   : > { %593 = vmatprep.subr.bf16.mxu0 %v1019_v15 }
  0x41   : > { %594 = vmatpush1.bf16.msra.mxu0 %v1021_v17 }
  0x42   : > { %595 = vmatprep.subr.bf16.mxu0 %v1022_v18 }
  0x45   : > { %596 = vmatpush1.bf16.msra.mxu0 %v1024_v19 }
  0x46   : > { %597 = vmatprep.subr.bf16.mxu0 %v1025_v20 }
  0x49   : > { %598 = vmatpush1.bf16.msra.mxu0 %v1027_v21 }
  0x4a   : > { %599 = vmatprep.subr.bf16.mxu0 %v1028_v22 }
  0x4d   : > { %600 = vmatpush1.bf16.msra.mxu0 %v1030_v23 }
  0x4e   : > { %601 = vmatprep.subr.bf16.mxu0 %v1031_v24 }
  0x51   : > { %602 = vmatpush1.bf16.msra.mxu0 %v1033_v25 }
  0x52   : > { %603 = vmatprep.subr.bf16.mxu0 %v1034_v26 }
  0x55   : > { %604 = vmatpush1.bf16.msra.mxu0 %v1036_v27 }
  0x56   : > { %605 = vmatprep.subr.bf16.mxu0 %v1037_v28 }
  0x59   : > { %606 = vmatpush1.bf16.msra.mxu0 %v1039_v29 }
  0x5a   : > { %607 = vmatprep.subr.bf16.mxu0 %v1040_v30 }
  0x5d   : > { %608 = vmatpush1.bf16.msra.mxu0 %v1042_v31 }
  0x5e   : > { %609 = vmatprep.subr.bf16.mxu0 %v1043_v32 }
  0x61   : > { %610 = vmatpush1.bf16.msra.mxu0 %v1045_v33 }
  0x62   : > { %611 = vmatprep.subr.bf16.mxu0 %v1046_v34 }
  0x65   : > { %612 = vmatpush1.bf16.msra.mxu0 %v1048_v35 }
  0x68   : > { %614 = vmatmul.mubr.bf16.vlgmr.msra.gmra.mrb[0].mxu0 %v1049_v36 }
 0x13b   : > { %v615_v39 = vpop.f32.mrb[0].mxu0  ;;  %635 = sbr.rel (%p945_p11) target bundleno = 348 (0x15c), region = 74 }
 0x13c   : > { %v624_v41 = vadd.f32 %v615_v39, %v373_v37  ;;  %v617_v42 = vpop.f32.mrb[1].mxu0 }
 0x13d   : > { %v625_v44 = vadd.f32 %v617_v42, %v374_v38  ;;  %v619_v45 = vpop.f32.mrb[2].mxu0 }
 0x13e   : > { %628 = vst [vmem:[#allocation2] sm:$0xff] %v624_v41  ;;  %v626_v46 = vadd.f32 %v619_v45, %v375_v40  ;;  %v621_v47 = vpop.f32.mrb[3].mxu0 }
 0x13f   : > { %629 = vst [vmem:[#allocation2 + $0x8] sm:$0xff] %v625_v44  ;;  %v627_v48 = vadd.f32 %v621_v47, %v376_v43 }
 0x140   : > { %630 = vst [vmem:[#allocation2 + $0x10] sm:$0xff] %v626_v46 }
 0x141   : > { %631 = vst [vmem:[#allocation2 + $0x18] sm:$0xff] %v627_v48 }
 0x145   : > { %v636_v49 = vld [vmem:[#allocation2] sm:$0xff] }
 0x146   : > { %v637_v50 = vld [vmem:[#allocation2 + $0x8] sm:$0xff]  ;;  %v670_v53 = vmul.f32 %v636_v49, %v636_v49 }
 0x147   : > { %v638_v51 = vld [vmem:[#allocation2 + $0x10] sm:$0xff]  ;;  %v958_v52 = vpack.c.bf16 %v637_v50, %v636_v49  ;;  %v671_v54 = vmul.f32 %v637_v50, %v637_v50 }
 0x148   : > { %v639_v55 = vld [vmem:[#allocation2 + $0x18] sm:$0xff]  ;;  %v654_v56 = vadd.f32 %v638_v51, %v636_v49  ;;  %v672_v59 = vmul.f32 %v638_v51, %v638_v51 }
 0x149   : > { %v959_v57 = vpack.c.bf16 %v639_v55, %v638_v51  ;;  %v661_v58 = vadd.f32 %v639_v55, %v637_v50  ;;  %v673_v60 = vmul.f32 %v639_v55, %v639_v55  ;;  %652 = vst [vmem:[%s1246_s2] sm:$0xff] %v958_v52 }
 0x14a   : > { %v655_v61 = vrot.slane %v654_v56, 4  ;;  %v674_v63 = vadd.f32 %v672_v59, %v670_v53 }
 0x14b   : > { %653 = vst [vmem:[%s1246_s2 + $0x8] sm:$0xff] %v959_v57  ;;  %v662_v62 = vrot.slane %v661_v58, 4  ;;  %v681_v0 = vadd.f32 %v673_v60, %v671_v54 }
 0x14c   : > { %v656_v1 = vadd.f32 %v655_v61, %v654_v56  ;;  %v675_v3 = vrot.slane %v674_v63, 4 }
 0x14d   : > { %v663_v2 = vadd.f32 %v662_v62, %v661_v58  ;;  %v682_v4 = vrot.slane %v681_v0, 4 }
 0x14e   : > { %v657_v5 = vrot.slane %v656_v1, 2  ;;  %v676_v7 = vadd.f32 %v675_v3, %v674_v63 }
 0x14f   : > { %v664_v6 = vrot.slane %v663_v2, 2  ;;  %v683_v8 = vadd.f32 %v682_v4, %v681_v0 }
 0x150   : > { %v658_v9 = vadd.f32 %v657_v5, %v656_v1  ;;  %v677_v11 = vrot.slane %v676_v7, 2 }
 0x151   : > { %v665_v10 = vadd.f32 %v664_v6, %v663_v2  ;;  %v684_v12 = vrot.slane %v683_v8, 2 }
 0x152   : > { %v659_v13 = vrot.slane %v658_v9, 1  ;;  %v678_v15 = vadd.f32 %v677_v11, %v676_v7 }
 0x153   : > { %v666_v14 = vrot.slane %v665_v10, 1  ;;  %v685_v16 = vadd.f32 %v684_v12, %v683_v8 }
 0x154   : > { %v660_v17 = vadd.f32 %v659_v13, %v658_v9  ;;  %v679_v19 = vrot.slane %v678_v15, 1 }
 0x155   : > { %v667_v18 = vadd.f32 %v666_v14, %v665_v10  ;;  %v686_v20 = vrot.slane %v685_v16, 1 }
 0x156   : > { %v668_v21 = vmul.f32 0.125, %v660_v17  ;;  %v680_v23 = vadd.f32 %v679_v19, %v678_v15 }
 0x157   : > { %v669_v22 = vmul.f32 0.125, %v667_v18  ;;  %v687_v24 = vadd.f32 %v686_v20, %v685_v16 }
 0x158   : > { %690 = vst [vmem:[%s1247_s3] sm:$0xff] %v668_v21  ;;  %v688_v25 = vmul.f32 0.125, %v680_v23 }
 0x159   : > { %691 = vst [vmem:[%s1247_s3 + $0x8] sm:$0xff] %v669_v22  ;;  %v689_v26 = vmul.f32 0.125, %v687_v24 }
 0x15a   : > { %692 = vst [vmem:[%s1248_s4] sm:$0xff] %v688_v25 }
 0x15b   : > { %693 = vst [vmem:[%s1248_s4 + $0x8] sm:$0xff] %v689_v26 }
 0x15c PF: > { %s15_s19 = sadd.s32 1, %s1090_s19   ;;  %s1249_s15 = smov %s1078_s16 }
 0x15d   : > { %p12_p12 = scmp.ge.s32.totalorder %s15_s19, 4   ;;  %s1250_s16 = smov %s1153_s23 }
 0x15e   : > { %s1251_s17 = smov %s1086_s18  ;;  %s1252_s18 = smov %s1254_s20 }
 0x15f   :  { %14 = sbr.rel (!%p12_p12) target bundleno = 3 (0x3), region = 136 }

// kernel: tile.119
= control target key start
LH: loop header
LB: loop body
LE: loop exit
PB: predicated region body
PF: predicated region fallthrough
CT: control target
= control target key end

     0   :  { %s22_s0 = inlined_call_operand.vmem [shape: f32[32], index: 0, kind: input, shape index: {}]   ;;  %s23_s1 = inlined_call_operand.vmem [shape: f32[4,32], index: 1, kind: output, shape index: {}]  }
   0x1   :  { %v4_v0 = vld [vmem:[%s22_s0] ss:$0 sm:$0xff] }
   0x2   :  { %5 = vst [vmem:[%s23_s1] sm:$0xf] %v4_v0 }

// kernel: tile.120
= control target key start
LH: loop header
LB: loop body
LE: loop exit
PB: predicated region body
PF: predicated region fallthrough
CT: control target
= control target key end

     0   :  { %vm7_vm0 = vcmask 261120   ;;  %s37_s8 = smov 32   ;;  %s38_s9 = smov 64   ;;  %vm13_vm1 = vcmask 1048320   ;;  %vm19_vm2 = vcmask 785920   ;;  %vm25_vm3 = vcmask 523520   ;;  %s55_s0 = inlined_call_operand.vmem [shape: f32[4,32], index: 0, kind: input, shape index: {}]   ;;  %s56_s1 = inlined_call_operand.vmem [shape: f32[1,128], index: 1, kind: output, shape index: {}]  }
   0x1   :  { %v4_v0 = vld [vmem:[%s55_s0] sm:$0xf]  ;;  %s36_s0 = smov 96  }
   0x2   :  { %5 = vst [vmem:[#allocation1] sm:$0xf] %v4_v0 }
   0x9   :  { %v10_v1 = vld [vmem:[#allocation1 + $0x3] sm:$0x1]   ;;  %v22_v2 = vld [vmem:[#allocation1 + $0x1] sm:$0x1]   ;;  %v6_v3 = vld [vmem:[#allocation1] sm:$0x1]  }
   0xa   :  { %11 = vrot.lane.b32.xlu0 %v10_v1, %s36_s0  ;;  %23 = vrot.lane.b32.xlu1 %v22_v2, %s37_s8  ;;  %v16_v4 = vld [vmem:[#allocation1 + $0x2] sm:$0x1]   ;;  %8 = vst.msk [vmem:[#allocation0] sm:$0x1] %vm7_vm0, %v6_v3  }
   0xe   :  { %17 = vrot.lane.b32.xlu0 %v16_v4, %s38_s9 }
  0x7c   :  { %v12_v5 = vpop.permute.xlu0 %11   ;;  %v24_v6 = vpop.permute.xlu1 %23  }
  0x7d   :  { %14 = vst.msk [vmem:[#allocation0] sm:$0x1] %vm13_vm1, %v12_v5  }
  0x80   :  { %v18_v7 = vpop.permute.xlu0 %17  }
  0x81   :  { %20 = vst.msk [vmem:[#allocation0] sm:$0x1] %vm19_vm2, %v18_v7  }
  0x82   :  { %26 = vst.msk [vmem:[#allocation0] sm:$0x1] %vm25_vm3, %v24_v6  }
  0x89   :  { %v30_v8 = vld [vmem:[#allocation0] sm:$0x1] }
  0x8a   :  { %32 = vst [vmem:[%s56_s1] sm:$0x1] %v30_v8 }

// kernel: _lambda_.54
= control target key start
LH: loop header
LB: loop body
LE: loop exit
PB: predicated region body
PF: predicated region fallthrough
CT: control target
= control target key end

     0   :  { %s326_s12 = smov 0   ;;  %s343_s0 = inlined_call_operand.vmem [shape: bf16[32,128], index: 0, kind: input, shape index: {}]   ;;  %s344_s1 = inlined_call_operand.vmem [shape: f32[1,128], index: 1, kind: input, shape index: {}]   ;;  %s345_s2 = inlined_call_operand.vmem [shape: f32[1,128], index: 2, kind: input, shape index: {}]   ;;  %s346_s3 = inlined_call_operand.vmem [shape: bf16[32,128], index: 3, kind: output, shape index: {}]  }
   0x1 LB: > { %s264_s13 = sadd.s32 4294967295, %s304_s12   ;;  %p268_p0 = scmp.ge.s32.totalorder %s304_s12, 1  ;;  %s304_s12 = sphi %s326_s12, %s13_s12  }
   0x2   : > { %p138_p1 = scmp.lt.s32.totalorder %s304_s12, 3 }
   0x4   : > { %p139_p2 = pnand %p268_p0, %p138_p1 }
   0x5   : > { %s269_s14 = sshll.u32 (!%p139_p2), %s264_s13, 1  ;;  %v273_v1 = vld [vmem:[%s344_s1] ss:$0 sm:$0xff] (!%p139_p2) }
   0x6   : > { %142 = sbr.rel (%p139_p2) target bundleno = 28 (0x1c), region = 32  ;;  %p163_p3 = scmp.lt.s32.totalorder (!%p139_p2), %s269_s14, 3  ;;  %v274_v4 = vld [vmem:[%s345_s2] ss:$0 sm:$0xff] (!%p139_p2) }
   0xd   : > { %s348_s14 = smov (!%p163_p3, %s269_s14), 3 }
   0xe   : > { %s270_s15 = sshll.u32 %s348_s14, 2 }
   0xf   : > { %s166_s18 = scalar_lea.vmem %s343_s0, %s270_s15  ;;  %s172_s25 = scalar_lea.vmem %s346_s3, %s270_s15 }
  0x10   : > { %v282_v0 = vld [vmem:[%s166_s18] sm:$0xff]  }
  0x11   : > { %v283_v2 = vunpack.c.l.bf16 %v282_v0  ;;  %v284_v3 = vunpack.c.h.bf16 %v282_v0 }
  0x13   : > { %v185_v5 = vmul.f32 %v283_v2, %v273_v1  ;;  %v186_v6 = vmul.f32 %v284_v3, %v273_v1 }
  0x15   : > { %v194_v7 = vadd.f32 %v274_v4, %v185_v5  ;;  %v195_v8 = vadd.f32 %v274_v4, %v186_v6 }
  0x17   : > { %v196_v9 = vmax.f32 %v194_v7, 0.0  ;;  %v197_v10 = vmax.f32 %v195_v8, 0.0 }
  0x19   : > { %v288_v11 = vpack.c.bf16 %v197_v10, %v196_v9 }
  0x1b   : > { %289 = vst [vmem:[%s172_s25] sm:$0xff] %v288_v11  }
  0x1c PF: > { %s13_s12 = sadd.s32 1, %s304_s12  }
  0x1d   : > { %p10_p4 = scmp.ge.s32.totalorder %s13_s12, 4  }
  0x1f   :  { %12 = sbr.rel (!%p10_p4) target bundleno = 1 (0x1), region = 62 }

// kernel: _lambda_.55
= control target key start
LH: loop header
LB: loop body
LE: loop exit
PB: predicated region body
PF: predicated region fallthrough
CT: control target
= control target key end

     0   :  { %s1332_s15 = smov 0   ;;  %s1334_s16 = smov 0   ;;  %s1467_s0 = inlined_call_operand.vmem [shape: bf16[128,896], index: 0, kind: input, shape index: {}]   ;;  %s1468_s1 = inlined_call_operand.vmem [shape: bf16[896,128], index: 1, kind: input, shape index: {}]   ;;  %s1469_s2 = inlined_call_operand.vmem [shape: bf16[128,128], index: 2, kind: output, shape index: {0}]   ;;  %s1470_s3 = inlined_call_operand.vmem [shape: f32[8,128], index: 3, kind: output, shape index: {1}]   ;;  %s1471_s4 = inlined_call_operand.vmem [shape: f32[8,128], index: 4, kind: output, shape index: {2}]  }
   0x1   :  { %s1336_s17 = smov 0   ;;  %s1338_s18 = smov 0  }
   0x2   :  { %s1340_s19 = smov 0  }
   0x3 LB: > { %s27_s20 = sadd.s32 1, %s1300_s18  ;;  %p50_p1 = scmp.ne.s32.totalorder %s1292_s16, %s1288_s15  ;;  %s1304_s19 = sphi %s1340_s19, %s15_s19   ;;  %s1300_s18 = sphi %s1338_s18, %s1475_s18   ;;  %s1296_s17 = sphi %s1336_s17, %s1474_s17   ;;  %s1292_s16 = sphi %s1334_s16, %s1473_s16   ;;  %s1288_s15 = sphi %s1332_s15, %s1472_s15  }
   0x4   : > { %p28_p0 = scmp.ge.s32.totalorder %s27_s20, 7  ;;  %p51_p2 = scmp.eq.s32.totalorder %s1304_s19, 0 }
   0x5   : > { %s43_s22 = sadd.s32 1, %s1292_s16  ;;  %p1035_p5 = scmp.ge.s32.totalorder %s1304_s19, 7 }
   0x6   : > { %s1477_s20 = smov (%p28_p0, %s27_s20), 0  ;;  %p52_p3 = por %p51_p2, %p50_p1 }
   0x7   : > { %s39_s21 = ssub.s32 %s1300_s18, %s1477_s20  ;;  %188 = sbr.rel (%p1035_p5) target bundleno = 28 (0x1c), region = 16 }
   0x8   : > { %p41_p4 = scmp.eq.s32.totalorder %s39_s21, 0 }
   0xa   : > { %s1367_s23 = scalar_select %p41_p4, %s1292_s16, %s43_s22  }
   0xe   : > { %191 = sbr.rel (!%p52_p3) target bundleno = 28 (0x1c), region = 20  ;;  %s193_s24 = sand.u32 (%p52_p3), 1, %s1292_s16  }
   0xf   : > { %s1037_s25 = sshll.u32 (%p52_p3), %s1300_s18, 2  ;;  %s1036_s26 = sshll.u32 (%p52_p3), %s193_s24, 6 }
  0x10   : > { %s1375_s29 = scalar_lea.vmem (%p52_p3), %s1467_s0, %s1037_s25  ;;  %s195_s30 = scalar_lea.vmem (%p52_p3), [#allocation3], %s1036_s26 }
  0x11   : > { %v216_v0 = vld [vmem:[%s1375_s29] sm:$0xf] (%p52_p3)  ;;  %v218_v1 = vld [vmem:[%s1375_s29 + $0x1c] sm:$0xf] (%p52_p3)  ;;  %v220_v2 = vld [vmem:[%s1375_s29 + $0x38] sm:$0xf] (%p52_p3) }
  0x12   : > { %217 = vst [vmem:[%s195_s30] sm:$0xf] (%p52_p3), %v216_v0  ;;  %219 = vst [vmem:[%s195_s30 + $0x4] sm:$0xf] (%p52_p3), %v218_v1  ;;  %v222_v3 = vld [vmem:[%s1375_s29 + $0x54] sm:$0xf] (%p52_p3) }
  0x13   : > { %v224_v4 = vld [vmem:[%s1375_s29 + $0x70] sm:$0xf] (%p52_p3)  ;;  %221 = vst [vmem:[%s195_s30 + $0x8] sm:$0xf] (%p52_p3), %v220_v2  ;;  %223 = vst [vmem:[%s195_s30 + $0xc] sm:$0xf] (%p52_p3), %v222_v3 }
  0x14   : > { %225 = vst [vmem:[%s195_s30 + $0x10] sm:$0xf] (%p52_p3), %v224_v4  ;;  %v226_v5 = vld [vmem:[%s1375_s29 + $0x8c] sm:$0xf] (%p52_p3)  ;;  %v228_v6 = vld [vmem:[%s1375_s29 + $0xa8] sm:$0xf] (%p52_p3) }
  0x15   : > { %v230_v7 = vld [vmem:[%s1375_s29 + $0xc4] sm:$0xf]  ;;  %227 = vst [vmem:[%s195_s30 + $0x14] sm:$0xf] %v226_v5  ;;  %229 = vst [vmem:[%s195_s30 + $0x18] sm:$0xf] %v228_v6 }
  0x16   : > { %231 = vst [vmem:[%s195_s30 + $0x1c] sm:$0xf] %v230_v7  ;;  %v232_v8 = vld [vmem:[%s1375_s29 + $0xe0] sm:$0xf]  ;;  %v234_v9 = vld [vmem:[%s1375_s29 + $0xfc] sm:$0xf] }
  0x17   : > { %v236_v10 = vld [vmem:[%s1375_s29 + $0x118] sm:$0xf]  ;;  %233 = vst [vmem:[%s195_s30 + $0x20] sm:$0xf] %v232_v8  ;;  %235 = vst [vmem:[%s195_s30 + $0x24] sm:$0xf] %v234_v9 }
  0x18   : > { %237 = vst [vmem:[%s195_s30 + $0x28] sm:$0xf] %v236_v10  ;;  %v238_v11 = vld [vmem:[%s1375_s29 + $0x134] sm:$0xf]  ;;  %v240_v12 = vld [vmem:[%s1375_s29 + $0x150] sm:$0xf] }
  0x19   : > { %v242_v13 = vld [vmem:[%s1375_s29 + $0x16c] sm:$0xf]  ;;  %239 = vst [vmem:[%s195_s30 + $0x2c] sm:$0xf] %v238_v11  ;;  %241 = vst [vmem:[%s195_s30 + $0x30] sm:$0xf] %v240_v12 }
  0x1a   : > { %243 = vst [vmem:[%s195_s30 + $0x34] sm:$0xf] %v242_v13  ;;  %v244_v14 = vld [vmem:[%s1375_s29 + $0x188] sm:$0xf]  ;;  %v246_v15 = vld [vmem:[%s1375_s29 + $0x1a4] sm:$0xf] }
  0x1b   : > { %245 = vst [vmem:[%s195_s30 + $0x38] sm:$0xf] %v244_v14  ;;  %247 = vst [vmem:[%s195_s30 + $0x3c] sm:$0xf] %v246_v15 }
  0x1c PF: > { %p1038_p6 = scmp.ge.s32.totalorder %s1304_s19, 1  ;;  %p313_p7 = scmp.lt.s32.totalorder %s1304_s19, 8 }
  0x1e   : > { %p314_p8 = pnand %p1038_p6, %p313_p7 }
  0x1f   : > { %s320_s5 = sand.u32 (!%p314_p8), 1, %s1288_s15   ;;  %s1040_s6 = sshll.u32 (!%p314_p8), %s1296_s17, 4 }
  0x20   : > { %317 = sbr.rel (%p314_p8) target bundleno = 355 (0x163), region = 65  ;;  %s1039_s7 = sshll.u32 (!%p314_p8), %s320_s5, 6 }
  0x21   : > { %p372_p9 = scmp.lt.s32.totalorder (!%p314_p8), %s1040_s6, 111  ;;  %s1402_s12 = scalar_lea.vmem (!%p314_p8), [#allocation3], %s1039_s7 }
  0x22   : > { %p1042_p10 = scmp.ne.s32.totalorder (!%p314_p8), %s1296_s17, 0 }
  0x27   : > { %s1479_s6 = smov (!%p372_p9, %s1040_s6), 111  ;;  %407 = sbr.rel (%p1042_p10) target bundleno = 49 (0x31), region = 73 }
  0x28   : > { %s1041_s8 = sshll.u32 %s1479_s6, 2  ;;  %v1306_v16 = vmov (!%p1042_p10), 0.0  }
  0x29   : > { %s1400_s11 = scalar_lea.vmem %s1468_s1, %s1041_s8  ;;  %408 = vst [vmem:[#allocation2] sm:$0xff] (!%p1042_p10), %v1306_v16  ;;  %409 = vst [vmem:[#allocation2 + $0x8] sm:$0xff] (!%p1042_p10), %v1306_v16 }
  0x2a   : > { %410 = vst [vmem:[#allocation2 + $0x10] sm:$0xff] (!%p1042_p10), %v1306_v16  ;;  %411 = vst [vmem:[#allocation2 + $0x18] sm:$0xff] (!%p1042_p10), %v1306_v16 }
  0x2b   : > { %412 = vst [vmem:[#allocation2 + $0x20] sm:$0xff] (!%p1042_p10), %v1306_v16  ;;  %413 = vst [vmem:[#allocation2 + $0x28] sm:$0xff] (!%p1042_p10), %v1306_v16 }
  0x2c   : > { %414 = vst [vmem:[#allocation2 + $0x30] sm:$0xff] (!%p1042_p10), %v1306_v16  ;;  %415 = vst [vmem:[#allocation2 + $0x38] sm:$0xff] (!%p1042_p10), %v1306_v16 }
  0x2d   : > { %416 = vst [vmem:[#allocation2 + $0x40] sm:$0xff] (!%p1042_p10), %v1306_v16  ;;  %417 = vst [vmem:[#allocation2 + $0x48] sm:$0xff] (!%p1042_p10), %v1306_v16 }
  0x2e   : > { %418 = vst [vmem:[#allocation2 + $0x50] sm:$0xff] %v1306_v16  ;;  %419 = vst [vmem:[#allocation2 + $0x58] sm:$0xff] %v1306_v16 }
  0x2f   : > { %420 = vst [vmem:[#allocation2 + $0x60] sm:$0xff] %v1306_v16  ;;  %421 = vst [vmem:[#allocation2 + $0x68] sm:$0xff] %v1306_v16 }
  0x30   : > { %422 = vst [vmem:[#allocation2 + $0x70] sm:$0xff] %v1306_v16  ;;  %423 = vst [vmem:[#allocation2 + $0x78] sm:$0xff] %v1306_v16 }
  0x31 PF: > { %v1250_v17 = vld [vmem:[%s1400_s11] sm:$0xff]   ;;  %v1251_v18 = vld [vmem:[%s1400_s11 + $0x8] sm:$0xff]   ;;  %v1252_v19 = vld [vmem:[%s1400_s11 + $0x10] sm:$0xff]   ;;  %p1059_p11 = scmp.ne.s32.totalorder %s1296_s17, 6 }
  0x32   : > { %1161 = vmatprep.subr.bf16.mxu0 %v1250_v17  ;;  %1193 = vmatprep.subr.bf16.mxu1 %v1250_v17  ;;  %v1253_v20 = vld [vmem:[%s1400_s11 + $0x18] sm:$0xff]   ;;  %v1258_v21 = vld [vmem:[%s1402_s12] sm:$0xff]   ;;  %v1254_v23 = vld [vmem:[%s1400_s11 + $0x20] sm:$0xff]  }
  0x33   : > { %1162 = vmatpush3.bf16.msra.mxu0 %v1250_v17  ;;  %1201 = vmatpush3.bf16.msra.mxu1 %v1250_v17  ;;  %v1259_v22 = vld [vmem:[%s1402_s12 + $0x20] sm:$0xff]   ;;  %v1255_v24 = vld [vmem:[%s1400_s11 + $0x28] sm:$0xff]   ;;  %v1257_v26 = vld [vmem:[%s1400_s11 + $0x38] sm:$0xff]  }
  0x34   : > { %1163 = vmatprep.subr.bf16.mxu0 %v1251_v18  ;;  %1194 = vmatprep.subr.bf16.mxu1 %v1251_v18  ;;  %v1256_v25 = vld [vmem:[%s1400_s11 + $0x30] sm:$0xff]   ;;  %v1260_v27 = vld [vmem:[%s1402_s12 + $0x8] sm:$0xff]   ;;  %v1262_v29 = vld [vmem:[%s1402_s12 + $0x10] sm:$0xff]  }
  0x35   : > { %1177 = vmatprep.mubr.bf16.mxu0 %v1258_v21  ;;  %1185 = vmatprep.mubr.bf16.mxu1 %v1259_v22  ;;  %v1261_v28 = vld [vmem:[%s1402_s12 + $0x28] sm:$0xff]   ;;  %v1263_v30 = vld [vmem:[%s1402_s12 + $0x30] sm:$0xff]   ;;  %v1264_v31 = vld [vmem:[%s1402_s12 + $0x18] sm:$0xff]  }
  0x36   : > { %v1265_v32 = vld [vmem:[%s1402_s12 + $0x38] sm:$0xff]   ;;  %v426_v33 = vld [vmem:[#allocation2 + $0x10] sm:$0xff]  ;;  %v424_v35 = vld [vmem:[#allocation2] sm:$0xff] }
  0x37   : > { %1164 = vmatpush3.bf16.msra.mxu0 %v1251_v18  ;;  %1202 = vmatpush3.bf16.msra.mxu1 %v1251_v18  ;;  %v434_v34 = vld [vmem:[#allocation2 + $0x50] sm:$0xff]  ;;  %v432_v36 = vld [vmem:[#allocation2 + $0x40] sm:$0xff]  ;;  %v427_v39 = vld [vmem:[#allocation2 + $0x18] sm:$0xff] }
  0x38   : > { %1165 = vmatprep.subr.bf16.mxu0 %v1252_v19  ;;  %1195 = vmatprep.subr.bf16.mxu1 %v1252_v19  ;;  %v435_v40 = vld [vmem:[#allocation2 + $0x58] sm:$0xff]  ;;  %v425_v45 = vld [vmem:[#allocation2 + $0x8] sm:$0xff]  ;;  %v430_v57 = vld [vmem:[#allocation2 + $0x30] sm:$0xff] }
  0x39   : > { %v433_v46 = vld [vmem:[#allocation2 + $0x48] sm:$0xff]  ;;  %v438_v58 = vld [vmem:[#allocation2 + $0x70] sm:$0xff]  ;;  %v428_v59 = vld [vmem:[#allocation2 + $0x20] sm:$0xff] }
  0x3a   : > { %v436_v60 = vld [vmem:[#allocation2 + $0x60] sm:$0xff]  ;;  %v431_v63 = vld [vmem:[#allocation2 + $0x38] sm:$0xff]  ;;  %v429_v5 = vld [vmem:[#allocation2 + $0x28] sm:$0xff] }
  0x3b   : > { %1166 = vmatpush3.bf16.msra.mxu0 %v1252_v19  ;;  %1203 = vmatpush3.bf16.msra.mxu1 %v1252_v19  ;;  %v439_v0 = vld [vmem:[#allocation2 + $0x78] sm:$0xff]  ;;  %v437_v6 = vld [vmem:[#allocation2 + $0x68] sm:$0xff] }
  0x3c   : > { %1167 = vmatprep.subr.bf16.mxu0 %v1253_v20  ;;  %1196 = vmatprep.subr.bf16.mxu1 %v1253_v20 }
  0x3f   : > { %1168 = vmatpush3.bf16.msra.mxu0 %v1253_v20  ;;  %1204 = vmatpush3.bf16.msra.mxu1 %v1253_v20 }
  0x40   : > { %1169 = vmatprep.subr.bf16.mxu0 %v1254_v23  ;;  %1197 = vmatprep.subr.bf16.mxu1 %v1254_v23 }
  0x43   : > { %1170 = vmatpush3.bf16.msra.mxu0 %v1254_v23  ;;  %1205 = vmatpush3.bf16.msra.mxu1 %v1254_v23 }
  0x44   : > { %1171 = vmatprep.subr.bf16.mxu0 %v1255_v24  ;;  %1198 = vmatprep.subr.bf16.mxu1 %v1255_v24 }
  0x47   : > { %1172 = vmatpush3.bf16.msra.mxu0 %v1255_v24  ;;  %1206 = vmatpush3.bf16.msra.mxu1 %v1255_v24 }
  0x48   : > { %1173 = vmatprep.subr.bf16.mxu0 %v1256_v25  ;;  %1199 = vmatprep.subr.bf16.mxu1 %v1256_v25 }
  0x4b   : > { %1174 = vmatpush3.bf16.msra.mxu0 %v1256_v25  ;;  %1207 = vmatpush3.bf16.msra.mxu1 %v1256_v25 }
  0x4c   : > { %1175 = vmatprep.subr.bf16.mxu0 %v1257_v26  ;;  %1200 = vmatprep.subr.bf16.mxu1 %v1257_v26 }
  0x4f   : > { %1176 = vmatpush3.bf16.msra.mxu0 %v1257_v26  ;;  %1208 = vmatpush3.bf16.msra.mxu1 %v1257_v26 }
  0x52   : > { %1178 = vmatmul.mubr.bf16.vlgmr.msra.gmra.mrb[0].mxu0 %v1260_v27  ;;  %1186 = vmatmul.mubr.bf16.vlgmr.msra.gmra.mrb[0].mxu1 %v1261_v28 }
  0x53   : > { %1181 = vmatprep.mubr.bf16.mxu0 %v1262_v29  ;;  %1189 = vmatprep.mubr.bf16.mxu1 %v1263_v30 }
  0x5a   : > { %1182 = vmatmul.mubr.bf16.gmra.mrb[4].mxu0 %v1264_v31  ;;  %1190 = vmatmul.mubr.bf16.gmra.mrb[4].mxu1 %v1265_v32 }
 0x125   : > { %v1179_v37 = vpop.f32.mrb[0].mxu0  ;;  %v1187_v38 = vpop.f32.mrb[0].mxu1 }
 0x126   : > { %v667_v41 = vadd.f32 %v1179_v37, %v426_v33  ;;  %v675_v42 = vadd.f32 %v1187_v38, %v434_v34  ;;  %v602_v43 = vpop.f32.mrb[1].mxu0  ;;  %v634_v44 = vpop.f32.mrb[1].mxu1 }
 0x127   : > { %v665_v47 = vadd.f32 %v602_v43, %v424_v35  ;;  %v673_v48 = vadd.f32 %v634_v44, %v432_v36  ;;  %v1180_v49 = vpop.f32.mrb[2].mxu0  ;;  %v1188_v50 = vpop.f32.mrb[2].mxu1 }
 0x128   : > { %683 = vst [vmem:[#allocation2 + $0x10] sm:$0xff] %v667_v41  ;;  %691 = vst [vmem:[#allocation2 + $0x50] sm:$0xff] %v675_v42  ;;  %v668_v51 = vadd.f32 %v1180_v49, %v427_v39  ;;  %v676_v52 = vadd.f32 %v1188_v50, %v435_v40  ;;  %v605_v53 = vpop.f32.mrb[3].mxu0  ;;  %v637_v54 = vpop.f32.mrb[3].mxu1 }
 0x129   : > { %681 = vst [vmem:[#allocation2] sm:$0xff] %v665_v47  ;;  %689 = vst [vmem:[#allocation2 + $0x40] sm:$0xff] %v673_v48  ;;  %v666_v55 = vadd.f32 %v605_v53, %v425_v45  ;;  %v674_v56 = vadd.f32 %v637_v54, %v433_v46 }
 0x12a   : > { %684 = vst [vmem:[#allocation2 + $0x18] sm:$0xff] %v668_v51  ;;  %692 = vst [vmem:[#allocation2 + $0x58] sm:$0xff] %v676_v52 }
 0x12b   : > { %682 = vst [vmem:[#allocation2 + $0x8] sm:$0xff] %v666_v55  ;;  %690 = vst [vmem:[#allocation2 + $0x48] sm:$0xff] %v674_v56 }
 0x12d   : > { %v1183_v61 = vpop.f32.mrb[4].mxu0  ;;  %v1191_v62 = vpop.f32.mrb[4].mxu1  ;;  %700 = sbr.rel (%p1059_p11) target bundleno = 355 (0x163), region = 77 }
 0x12e   : > { %v671_v1 = vadd.f32 %v1183_v61, %v430_v57  ;;  %v679_v2 = vadd.f32 %v1191_v62, %v438_v58  ;;  %v618_v3 = vpop.f32.mrb[5].mxu0  ;;  %v650_v4 = vpop.f32.mrb[5].mxu1 }
 0x12f   : > { %v669_v7 = vadd.f32 %v618_v3, %v428_v59  ;;  %v677_v8 = vadd.f32 %v650_v4, %v436_v60  ;;  %v1184_v9 = vpop.f32.mrb[6].mxu0  ;;  %v1192_v10 = vpop.f32.mrb[6].mxu1  ;;  %v703_v19 = vld [vmem:[#allocation2 + $0x10] sm:$0xff] (!%p1059_p11) }
 0x130   : > { %687 = vst [vmem:[#allocation2 + $0x30] sm:$0xff] %v671_v1  ;;  %695 = vst [vmem:[#allocation2 + $0x70] sm:$0xff] %v679_v2  ;;  %v672_v11 = vadd.f32 %v1184_v9, %v431_v63  ;;  %v680_v12 = vadd.f32 %v1192_v10, %v439_v0  ;;  %v621_v13 = vpop.f32.mrb[7].mxu0  ;;  %v653_v14 = vpop.f32.mrb[7].mxu1  ;;  %v701_v17 = vld [vmem:[#allocation2] sm:$0xff] (!%p1059_p11)  ;;  %v821_v28 = vmul.f32 (!%p1059_p11), %v703_v19, %v703_v19  ;;  %v711_v39 = vld [vmem:[#allocation2 + $0x50] sm:$0xff] (!%p1059_p11) }
 0x131   : > { %685 = vst [vmem:[#allocation2 + $0x20] sm:$0xff] %v669_v7  ;;  %693 = vst [vmem:[#allocation2 + $0x60] sm:$0xff] %v677_v8  ;;  %v670_v15 = vadd.f32 %v621_v13, %v429_v5  ;;  %v678_v16 = vadd.f32 %v653_v14, %v437_v6  ;;  %v819_v22 = vmul.f32 (!%p1059_p11), %v701_v17, %v701_v17  ;;  %v704_v24 = vld [vmem:[#allocation2 + $0x18] sm:$0xff] (!%p1059_p11)  ;;  %v709_v35 = vld [vmem:[#allocation2 + $0x40] sm:$0xff] (!%p1059_p11) }
 0x132   : > { %688 = vst [vmem:[#allocation2 + $0x38] sm:$0xff] %v672_v11  ;;  %696 = vst [vmem:[#allocation2 + $0x78] sm:$0xff] %v680_v12  ;;  %v702_v18 = vld [vmem:[#allocation2 + $0x8] sm:$0xff] (!%p1059_p11)  ;;  %v1106_v27 = vpack.c.bf16 (!%p1059_p11), %v704_v24, %v703_v19  ;;  %v822_v33 = vmul.f32 (!%p1059_p11), %v704_v24, %v704_v24  ;;  %v712_v43 = vld [vmem:[#allocation2 + $0x58] sm:$0xff] (!%p1059_p11)  ;;  %v827_v62 = vmul.f32 (!%p1059_p11), %v709_v35, %v709_v35 }
 0x133   : > { %686 = vst [vmem:[#allocation2 + $0x28] sm:$0xff] %v670_v15  ;;  %694 = vst [vmem:[#allocation2 + $0x68] sm:$0xff] %v678_v16  ;;  %v1101_v20 = vpack.c.bf16 (!%p1059_p11), %v702_v18, %v701_v17  ;;  %v797_v21 = vadd.f32 (!%p1059_p11), %v702_v18, %v701_v17  ;;  %v820_v23 = vmul.f32 (!%p1059_p11), %v702_v18, %v702_v18  ;;  %v710_v36 = vld [vmem:[#allocation2 + $0x48] sm:$0xff] (!%p1059_p11) }
 0x134   : > { %1138 = vst [vmem:[%s1469_s2 + $0x8] sm:$0xff] %v1106_v27   ;;  %v1121_v38 = vpack.c.bf16 %v710_v36, %v709_v35  ;;  %v1126_v46 = vpack.c.bf16 %v712_v43, %v711_v39  ;;  %v828_v1 = vmul.f32 %v710_v36, %v710_v36  ;;  %v829_v4 = vmul.f32 %v711_v39, %v711_v39 }
 0x135   : > { %1102 = vst [vmem:[%s1469_s2] sm:$0xff] %v1101_v20   ;;  %v835_v31 = vadd.f32 %v820_v23, %v819_v22  ;;  %v798_v32 = vadd.f32 %v797_v21, %v703_v19  ;;  %v830_v7 = vmul.f32 %v712_v43, %v712_v43 }
 0x136   : > { %1141 = vst [vmem:[%s1469_s2 + $0x20] sm:$0xff] %v1121_v38   ;;  %1142 = vst [vmem:[%s1469_s2 + $0x28] sm:$0xff] %v1126_v46  }
 0x137   : > { %v707_v30 = vld [vmem:[#allocation2 + $0x30] sm:$0xff]  ;;  %v799_v40 = vadd.f32 %v798_v32, %v704_v24  ;;  %v836_v41 = vadd.f32 %v835_v31, %v821_v28 }
 0x138   : > { %v705_v25 = vld [vmem:[#allocation2 + $0x20] sm:$0xff]  ;;  %v715_v51 = vld [vmem:[#allocation2 + $0x70] sm:$0xff]  ;;  %v825_v56 = vmul.f32 %v707_v30, %v707_v30 }
 0x139   : > { %v708_v34 = vld [vmem:[#allocation2 + $0x38] sm:$0xff]  ;;  %v823_v42 = vmul.f32 %v705_v25, %v705_v25  ;;  %v713_v44 = vld [vmem:[#allocation2 + $0x60] sm:$0xff]  ;;  %v837_v48 = vadd.f32 %v836_v41, %v822_v33  ;;  %v800_v49 = vadd.f32 %v799_v40, %v705_v25  ;;  %v833_v16 = vmul.f32 %v715_v51, %v715_v51 }
 0x13a   : > { %v706_v26 = vld [vmem:[#allocation2 + $0x28] sm:$0xff]  ;;  %v1116_v37 = vpack.c.bf16 %v708_v34, %v707_v30  ;;  %v716_v52 = vld [vmem:[#allocation2 + $0x78] sm:$0xff]  ;;  %v826_v59 = vmul.f32 %v708_v34, %v708_v34  ;;  %v831_v10 = vmul.f32 %v713_v44, %v713_v44 }
 0x13b   : > { %v1111_v29 = vpack.c.bf16 %v706_v26, %v705_v25  ;;  %v714_v45 = vld [vmem:[#allocation2 + $0x68] sm:$0xff]  ;;  %v824_v50 = vmul.f32 %v706_v26, %v706_v26  ;;  %v1136_v53 = vpack.c.bf16 %v716_v52, %v715_v51  ;;  %v801_v54 = vadd.f32 %v800_v49, %v706_v26 }
 0x13c   : > { %1140 = vst [vmem:[%s1469_s2 + $0x18] sm:$0xff] %v1116_v37   ;;  %v1131_v47 = vpack.c.bf16 %v714_v45, %v713_v44  ;;  %v838_v55 = vadd.f32 %v837_v48, %v823_v42  ;;  %v832_v13 = vmul.f32 %v714_v45, %v714_v45  ;;  %v834_v19 = vmul.f32 %v716_v52, %v716_v52 }
 0x13d   : > { %1139 = vst [vmem:[%s1469_s2 + $0x10] sm:$0xff] %v1111_v29   ;;  %1144 = vst [vmem:[%s1469_s2 + $0x38] sm:$0xff] %v1136_v53   ;;  %v802_v58 = vadd.f32 %v801_v54, %v707_v30 }
 0x13e   : > { %1143 = vst [vmem:[%s1469_s2 + $0x30] sm:$0xff] %v1131_v47   ;;  %v839_v57 = vadd.f32 %v838_v55, %v824_v50 }
 0x13f   : > { %v803_v60 = vadd.f32 %v802_v58, %v708_v34 }
 0x140   : > { %v840_v61 = vadd.f32 %v839_v57, %v825_v56 }
 0x141   : > { %v804_v0 = vadd.f32 %v803_v60, %v709_v35 }
 0x142   : > { %v841_v63 = vadd.f32 %v840_v61, %v826_v59 }
 0x143   : > { %v805_v2 = vadd.f32 %v804_v0, %v710_v36 }
 0x144   : > { %v842_v3 = vadd.f32 %v841_v63, %v827_v62 }
 0x145   : > { %v806_v6 = vadd.f32 %v805_v2, %v711_v39 }
 0x146   : > { %v843_v5 = vadd.f32 %v842_v3, %v828_v1 }
 0x147   : > { %v807_v8 = vadd.f32 %v806_v6, %v712_v43 }
 0x148   : > { %v844_v9 = vadd.f32 %v843_v5, %v829_v4 }
 0x149   : > { %v808_v12 = vadd.f32 %v807_v8, %v713_v44 }
 0x14a   : > { %v845_v11 = vadd.f32 %v844_v9, %v830_v7 }
 0x14b   : > { %v809_v14 = vadd.f32 %v808_v12, %v714_v45 }
 0x14c   : > { %v846_v15 = vadd.f32 %v845_v11, %v831_v10 }
 0x14d   : > { %v810_v18 = vadd.f32 %v809_v14, %v715_v51 }
 0x14e   : > { %v847_v17 = vadd.f32 %v846_v15, %v832_v13 }
 0x14f   : > { %v811_v20 = vadd.f32 %v810_v18, %v716_v52 }
 0x150   : > { %v848_v21 = vadd.f32 %v847_v17, %v833_v16 }
 0x151   : > { %v812_v22 = vrot.slane %v811_v20, 4 }
 0x152   : > { %v849_v23 = vadd.f32 %v848_v21, %v834_v19 }
 0x153   : > { %v813_v24 = vadd.f32 %v812_v22, %v811_v20 }
 0x154   : > { %v850_v25 = vrot.slane %v849_v23, 4 }
 0x155   : > { %v814_v26 = vrot.slane %v813_v24, 2 }
 0x156   : > { %v851_v27 = vadd.f32 %v850_v25, %v849_v23 }
 0x157   : > { %v815_v28 = vadd.f32 %v814_v26, %v813_v24 }
 0x158   : > { %v852_v29 = vrot.slane %v851_v27, 2 }
 0x159   : > { %v816_v30 = vrot.slane %v815_v28, 1 }
 0x15a   : > { %v853_v31 = vadd.f32 %v852_v29, %v851_v27 }
 0x15b   : > { %v817_v32 = vadd.f32 %v816_v30, %v815_v28 }
 0x15c   : > { %v854_v33 = vrot.slane %v853_v31, 1 }
 0x15d   : > { %v818_v34 = vmul.f32 0.125, %v817_v32 }
 0x15e   : > { %v855_v35 = vadd.f32 %v854_v33, %v853_v31 }
 0x15f   : > { %857 = vst [vmem:[%s1470_s3] sm:$0xff] %v818_v34 }
 0x160   : > { %v856_v36 = vmul.f32 0.125, %v855_v35 }
 0x162   : > { %858 = vst [vmem:[%s1471_s4] sm:$0xff] %v856_v36 }
 0x163 PF: > { %s15_s19 = sadd.s32 1, %s1304_s19   ;;  %s1472_s15 = smov %s1292_s16 }
 0x164   : > { %p12_p12 = scmp.ge.s32.totalorder %s15_s19, 9   ;;  %s1473_s16 = smov %s1367_s23 }
 0x165   : > { %s1474_s17 = smov %s1300_s18  ;;  %s1475_s18 = smov %s1477_s20 }
 0x166   :  { %14 = sbr.rel (!%p12_p12) target bundleno = 3 (0x3), region = 139 }

// kernel: _lambda_.57
= control target key start
LH: loop header
LB: loop body
LE: loop exit
PB: predicated region body
PF: predicated region fallthrough
CT: control target
= control target key end

     0   :  { %vm120_vm0 = vcmask 261120   ;;  %s476_s1 = inlined_call_operand.vmem [shape: bf16[32,128], index: 1, kind: input, shape index: {}]   ;;  %s477_s0 = inlined_call_operand.vmem [shape: bf16[128,32], index: 0, kind: input, shape index: {}]   ;;  %s478_s2 = inlined_call_operand.vmem [shape: f32[128,128], index: 2, kind: output, shape index: {}]  }
   0x1   :  { %v365_v0 = vld [vmem:[%s476_s1] sm:$0xff]   ;;  %v366_v1 = vld [vmem:[%s476_s1 + $0x8] sm:$0xff]   ;;  %v371_v6 = vld [vmem:[%s477_s0 + $0x10] sm:$0xff]  }
   0x2   :  { %341 = vmatprep.subr.bf16.mxu0 %v365_v0  ;;  %361 = vmatprep.subr.bf16.mxu1 %v365_v0  ;;  %v367_v2 = vld [vmem:[%s477_s0] sm:$0xff]   ;;  %v369_v4 = vld [vmem:[%s477_s0 + $0x8] sm:$0xff]   ;;  %v372_v7 = vld [vmem:[%s477_s0 + $0x30] sm:$0xff]  }
   0x3   :  { %342 = vmatpush3.bf16.msra.mxu0 %v365_v0  ;;  %363 = vmatpush3.bf16.msra.mxu1 %v365_v0  ;;  %v368_v3 = vld [vmem:[%s477_s0 + $0x20] sm:$0xff]   ;;  %v370_v5 = vld [vmem:[%s477_s0 + $0x28] sm:$0xff]   ;;  %v373_v8 = vld [vmem:[%s477_s0 + $0x18] sm:$0xff]  }
   0x4   :  { %343 = vmatprep.subr.bf16.mxu0 %v366_v1  ;;  %362 = vmatprep.subr.bf16.mxu1 %v366_v1  ;;  %v374_v9 = vld [vmem:[%s477_s0 + $0x38] sm:$0xff]  }
   0x5   :  { %345 = vmatprep.mubr.msk.bf16.mxu0 %vm120_vm0, %v367_v2  ;;  %353 = vmatprep.mubr.msk.bf16.mxu1 %vm120_vm0, %v368_v3 }
   0x7   :  { %344 = vmatpush3.bf16.msra.mxu0 %v366_v1  ;;  %364 = vmatpush3.bf16.msra.mxu1 %v366_v1 }
   0xa   :  { %346 = vmatmul.mubr.msk.bf16.vlgmr.msra.gmra.mrb[0].mxu0 %vm120_vm0, %v369_v4  ;;  %354 = vmatmul.mubr.msk.bf16.vlgmr.msra.gmra.mrb[0].mxu1 %vm120_vm0, %v370_v5 }
   0xb   :  { %349 = vmatprep.mubr.msk.bf16.mxu0 %vm120_vm0, %v371_v6  ;;  %357 = vmatprep.mubr.msk.bf16.mxu1 %vm120_vm0, %v372_v7 }
  0x12   :  { %350 = vmatmul.mubr.msk.bf16.gmra.mrb[4].mxu0 %vm120_vm0, %v373_v8  ;;  %358 = vmatmul.mubr.msk.bf16.gmra.mrb[4].mxu1 %vm120_vm0, %v374_v9 }
  0xdd   :  { %v347_v10 = vpop.f32.mrb[0].mxu0  ;;  %v355_v11 = vpop.f32.mrb[0].mxu1 }
  0xde   :  { %295 = vst [vmem:[%s478_s2 + $0x10] sm:$0xff] %v347_v10  ;;  %303 = vst [vmem:[%s478_s2 + $0x50] sm:$0xff] %v355_v11  ;;  %v179_v12 = vpop.f32.mrb[1].mxu0  ;;  %v211_v13 = vpop.f32.mrb[1].mxu1 }
  0xdf   :  { %293 = vst [vmem:[%s478_s2] sm:$0xff] %v179_v12  ;;  %301 = vst [vmem:[%s478_s2 + $0x40] sm:$0xff] %v211_v13  ;;  %v348_v14 = vpop.f32.mrb[2].mxu0  ;;  %v356_v15 = vpop.f32.mrb[2].mxu1 }
  0xe0   :  { %296 = vst [vmem:[%s478_s2 + $0x18] sm:$0xff] %v348_v14  ;;  %304 = vst [vmem:[%s478_s2 + $0x58] sm:$0xff] %v356_v15  ;;  %v182_v16 = vpop.f32.mrb[3].mxu0  ;;  %v214_v17 = vpop.f32.mrb[3].mxu1 }
  0xe1   :  { %294 = vst [vmem:[%s478_s2 + $0x8] sm:$0xff] %v182_v16  ;;  %302 = vst [vmem:[%s478_s2 + $0x48] sm:$0xff] %v214_v17 }
  0xe5   :  { %v351_v18 = vpop.f32.mrb[4].mxu0  ;;  %v359_v19 = vpop.f32.mrb[4].mxu1 }
  0xe6   :  { %299 = vst [vmem:[%s478_s2 + $0x30] sm:$0xff] %v351_v18  ;;  %307 = vst [vmem:[%s478_s2 + $0x70] sm:$0xff] %v359_v19  ;;  %v195_v20 = vpop.f32.mrb[5].mxu0  ;;  %v227_v21 = vpop.f32.mrb[5].mxu1 }
  0xe7   :  { %297 = vst [vmem:[%s478_s2 + $0x20] sm:$0xff] %v195_v20  ;;  %305 = vst [vmem:[%s478_s2 + $0x60] sm:$0xff] %v227_v21  ;;  %v352_v22 = vpop.f32.mrb[6].mxu0  ;;  %v360_v23 = vpop.f32.mrb[6].mxu1 }
  0xe8   :  { %300 = vst [vmem:[%s478_s2 + $0x38] sm:$0xff] %v352_v22  ;;  %308 = vst [vmem:[%s478_s2 + $0x78] sm:$0xff] %v360_v23  ;;  %v198_v24 = vpop.f32.mrb[7].mxu0  ;;  %v230_v25 = vpop.f32.mrb[7].mxu1 }
  0xe9   :  { %298 = vst [vmem:[%s478_s2 + $0x28] sm:$0xff] %v198_v24  ;;  %306 = vst [vmem:[%s478_s2 + $0x68] sm:$0xff] %v230_v25 }

</bundles_post_ra>
